<compile_context>
chip_gen: v6e
topology: v6e:2x2x1
jax: 0.10.0
libtpu: 0.0.40
codegen_flags: <defaults>
</compile_context>

<pallas_src>
import jax
import jax.numpy as jnp
from jax import lax
from jax.experimental import pallas as pl
from jax.experimental.pallas import tpu as pltpu


# ---------------------------------------------------------------------------
# Fused kernel: 3x (conv3x3 + BN + ReLU) + residual add + 2x2 maxpool
# ---------------------------------------------------------------------------
def _fused_residual_down_kernel(x_ref, w1_ref, s1_ref, b1_ref,
                                w2_ref, s2_ref, b2_ref,
                                w3_ref, s3_ref, b3_ref,
                                skip_ref, pool_ref,
                                apad_ref, pstage_ref):
    # x_ref   : (1, H+2, W+2, Cin) f32, zero-padded input image (one per grid step)
    # w*_ref  : (9*Cin_l, Cout)    bf16 im2col conv weights
    # s*,b*   : (1, Cout)          f32 folded BN scale / bias (conv bias included)
    # skip_ref: (1, Cout, H*W)     f32  (== flattened NCHW skip output)
    # pool_ref: (1, Cout, (H/2)*(W/2)) f32 (== flattened NCHW pooled output)
    # apad_ref: (H+2, W+2, Cout)   f32 VMEM scratch, zero-haloed activations
    # pstage_ref: (H/2, W/2, Cout) f32 VMEM scratch for maxpool staging
    H = x_ref.shape[1] - 2
    W = x_ref.shape[2] - 2
    Cout = skip_ref.shape[1]
    H2, W2 = H // 2, W // 2

    def conv_bn_relu(src, w_ref, s_ref, b_ref):
        """src: (H+2, W+2, C) f32 zero-padded activation -> (H*W, Cout) f32."""
        C = src.shape[-1]
        # im2col patch: one (H*W, 9*C) matrix -> a single MXU matmul per layer.
        cols = [src[dy:dy + H, dx:dx + W, :].reshape(H * W, C)
                for dy in range(3) for dx in range(3)]
        patch = jnp.concatenate(cols, axis=1).astype(jnp.bfloat16)
        acc = jnp.dot(patch, w_ref[...], preferred_element_type=jnp.float32)
        return jnp.maximum(acc * s_ref[...] + b_ref[...], 0.0)

    # ---- layer 1 (self.conv): x1 = relu(bn(conv(x))) -------------------------
    x1 = conv_bn_relu(x_ref[0], w1_ref, s1_ref, b1_ref)          # (H*W, Cout) f32

    # Stage x1 with a zero halo in VMEM (halo handled in-kernel, no HBM pad).
    apad_ref[...] = jnp.zeros_like(apad_ref)
    apad_ref[pl.ds(1, H), pl.ds(1, W), :] = x1.reshape(H, W, Cout)

    # ---- layers 2+3 (self.residual_conv) --------------------------------------
    y = conv_bn_relu(apad_ref[...], w2_ref, s2_ref, b2_ref)
    apad_ref[pl.ds(1, H), pl.ds(1, W), :] = y.reshape(H, W, Cout)
    y = conv_bn_relu(apad_ref[...], w3_ref, s3_ref, b3_ref)

    # ---- residual add ----------------------------------------------------------
    y = y + x1                                                   # (H*W, Cout) f32

    # ---- skip output: channel-major (Cout, H*W) => lane-dense store, NCHW-free -
    skip_ref[...] = jnp.transpose(y, (1, 0)).reshape(1, Cout, H * W)

    # ---- 2x2 maxpool -----------------------------------------------------------
    # H pairs: split leading dim (layout-free reshape) and reduce.
    t = jnp.max(y.reshape(H2, 2, W, Cout), axis=1)               # (H2, W, Cout)
    # W pairs: pairwise max staged in VMEM scratch, then ONE dense output store.
    for j in range(W2):
        pstage_ref[:, pl.ds(j, 1), :] = jnp.maximum(
            t[:, 2 * j:2 * j + 1, :], t[:, 2 * j + 1:2 * j + 2, :])
    pooled = pstage_ref[...].reshape(H2 * W2, Cout)              # (H2*W2, Cout)
    pool_ref[...] = jnp.transpose(pooled, (1, 0)).reshape(1, Cout, H2 * W2)


# ---------------------------------------------------------------------------
# Wrapper
# ---------------------------------------------------------------------------
def residual_down_block_forward(x_nchw, params):
    """Pallas implementation of residual_down_block.forward.

    Returns (maxpool(x1 + residual_conv(x1)), x1 + residual_conv(x1)) in NCHW.
    """
    N, Cin, H, W = x_nchw.shape
    Cout = params[0]["scale"].shape[0]
    H2, W2 = H // 2, W // 2

    # Single NCHW->NHWC transpose + single zero pad for the whole fused block.
    xpad = jnp.pad(jnp.transpose(x_nchw, (0, 2, 3, 1)),
                   ((0, 0), (1, 1), (1, 1), (0, 0)))

    p1, p2, p3 = params
    args = (xpad,
            p1["w_mat"], p1["scale"].reshape(1, Cout), p1["bias"].reshape(1, Cout),
            p2["w_mat"], p2["scale"].reshape(1, Cout), p2["bias"].reshape(1, Cout),
            p3["w_mat"], p3["scale"].reshape(1, Cout), p3["bias"].reshape(1, Cout))

    def rep(arr):  # full-array block, broadcast across the batch grid
        shp = arr.shape
        return pl.BlockSpec(shp, lambda n, _z=(0,) * len(shp): _z)

    in_specs = [pl.BlockSpec((1, H + 2, W + 2, Cin), lambda n: (n, 0, 0, 0))]
    in_specs += [rep(a) for a in args[1:]]

    out_shape = (jax.ShapeDtypeStruct((N, Cout, H * W), jnp.float32),
                 jax.ShapeDtypeStruct((N, Cout, H2 * W2), jnp.float32))
    out_specs = (pl.BlockSpec((1, Cout, H * W), lambda n: (n, 0, 0)),
                 pl.BlockSpec((1, Cout, H2 * W2), lambda n: (n, 0, 0)))

    skip_flat, pool_flat = pl.pallas_call(
        _fused_residual_down_kernel,
        out_shape=out_shape,
        grid=(N,),
        in_specs=in_specs,
        out_specs=out_specs,
        scratch_shapes=[pltpu.VMEM((H + 2, W + 2, Cout), jnp.float32),
                        pltpu.VMEM((H2, W2, Cout), jnp.float32)],
        compiler_params=pltpu.CompilerParams(dimension_semantics=("parallel",)),
    )(*args)

    # (N, Cout, H*W) is exactly flattened NCHW -> reshapes are free (no transpose).
    return pool_flat.reshape(N, Cout, H2, W2), skip_flat.reshape(N, Cout, H, W)


# ---------------------------------------------------------------------------
# Parameter setup (deterministic, synthetic)
# ---------------------------------------------------------------------------
def init_params(key, in_c, out_c, eps=1e-5):
    """Three conv3x3 + BN(eval) + ReLU layers: (in->out), (out->out), (out->out)."""
    layer_dims = [(in_c, out_c), (out_c, out_c), (out_c, out_c)]
    params = []
    for i, (ci, co) in enumerate(layer_dims):
        ks = jax.random.split(jax.random.fold_in(key, i), 6)
        w = 0.1 * jax.random.normal(ks[0], (3, 3, ci, co), jnp.float32)   # HWIO
        b = 0.1 * jax.random.normal(ks[1], (co,), jnp.float32)            # conv bias
        gamma = 1.0 + 0.1 * jax.random.normal(ks[2], (co,), jnp.float32)
        beta = 0.1 * jax.random.normal(ks[3], (co,), jnp.float32)
        mean = 0.1 * jax.random.normal(ks[4], (co,), jnp.float32)
        var = jax.random.uniform(ks[5], (co,), jnp.float32, 0.5, 1.5)
        scale = gamma / jnp.sqrt(var + eps)                # folded BN scale
        bias = beta + scale * (b - mean)                   # folded BN bias (+conv bias)
        params.append({
            "w_hwio": w,                                               # f32 (reference)
            "w_mat": w.reshape(9 * ci, co).astype(jnp.bfloat16),       # im2col, bf16 MXU
            "scale": scale, "bias": bias,
        })
    return params


# ---------------------------------------------------------------------------
# Plain-JAX reference (same bf16 MXU-operand rounding, f32 accumulation)
# ---------------------------------------------------------------------------
def _ref_conv_bn_relu(x, p):
    y = lax.conv_general_dilated(
        x.astype(jnp.bfloat16), p["w_hwio"].astype(jnp.bfloat16),
        window_strides=(1, 1), padding="SAME",
        dimension_numbers=("NHWC", "HWIO", "NHWC"),
        preferred_element_type=jnp.float32)
    return jnp.maximum(y * p["scale"] + p["bias"], 0.0)


def reference_forward(x_nchw, params):
    x = jnp.transpose(x_nchw, (0, 2, 3, 1))
    p1, p2, p3 = params
    x1 = _ref_conv_bn_relu(x, p1)
    y = _ref_conv_bn_relu(x1, p2)
    y = _ref_conv_bn_relu(y, p3) + x1
    N, H, W, C = y.shape
    pooled = jnp.max(y.reshape(N, H // 2, 2, W // 2, 2, C), axis=(2, 4))
    return (jnp.transpose(pooled, (0, 3, 1, 2)),
            jnp.transpose(y, (0, 3, 1, 2)))


if __name__ == "__main__":
    key = jax.random.PRNGKey(0)
    in_channel, out_channel = 4, 8
    N, H, W = 2, 16, 16

    x = jax.random.normal(jax.random.fold_in(key, 100), (N, in_channel, H, W),
                          jnp.float32)
    params = init_params(key, in_channel, out_channel)

    pooled, skip = residual_down_block_forward(x, params)
    jax.block_until_ready((pooled, skip))

    assert pooled.shape == (N, out_channel, H // 2, W // 2), pooled.shape
    assert skip.shape == (N, out_channel, H, W), skip.shape

    pooled_ref, skip_ref = reference_forward(x, params)
    err = max(float(jnp.max(jnp.abs(pooled - pooled_ref))),
              float(jnp.max(jnp.abs(skip - skip_ref))))
    assert err < 1e-2, f"max abs error vs reference: {err}"

    print("KERNEL_OK")
</pallas_src>

<mosaic_0001>
module attributes {stable_mosaic.version = 11 : i64} {
  func.func @_fused_residual_down_kernel(%arg0: i32, %arg1: memref<1x18x18x4xf32, #tpu.memory_space<vmem>>, %arg2: memref<36x8xbf16, #tpu.memory_space<vmem>>, %arg3: memref<1x8xf32, #tpu.memory_space<vmem>>, %arg4: memref<1x8xf32, #tpu.memory_space<vmem>>, %arg5: memref<72x8xbf16, #tpu.memory_space<vmem>>, %arg6: memref<1x8xf32, #tpu.memory_space<vmem>>, %arg7: memref<1x8xf32, #tpu.memory_space<vmem>>, %arg8: memref<72x8xbf16, #tpu.memory_space<vmem>>, %arg9: memref<1x8xf32, #tpu.memory_space<vmem>>, %arg10: memref<1x8xf32, #tpu.memory_space<vmem>>, %arg11: memref<1x8x256xf32, #tpu.memory_space<vmem>>, %arg12: memref<1x8x64xf32, #tpu.memory_space<vmem>>, %arg13: memref<18x18x8xf32, #tpu.memory_space<vmem>>, %arg14: memref<8x8x8xf32, #tpu.memory_space<vmem>>) attributes {dimension_semantics = [#tpu.dimension_semantics<parallel>], iteration_bounds = array<i64: 2>, scalar_prefetch = 0 : i64, scratch_operands = 2 : i64, tpu.core_type = #tpu.core_type<tc>, window_params = [{transform_indices = @transform_0, window_bounds = array<i64: 1, 18, 18, 4>}, {pipeline_mode = #tpu.pipeline_mode<synchronous>, transform_indices = @transform_1, window_bounds = array<i64: 36, 8>}, {pipeline_mode = #tpu.pipeline_mode<synchronous>, transform_indices = @transform_2, window_bounds = array<i64: 1, 8>}, {pipeline_mode = #tpu.pipeline_mode<synchronous>, transform_indices = @transform_3, window_bounds = array<i64: 1, 8>}, {pipeline_mode = #tpu.pipeline_mode<synchronous>, transform_indices = @transform_4, window_bounds = array<i64: 72, 8>}, {pipeline_mode = #tpu.pipeline_mode<synchronous>, transform_indices = @transform_5, window_bounds = array<i64: 1, 8>}, {pipeline_mode = #tpu.pipeline_mode<synchronous>, transform_indices = @transform_6, window_bounds = array<i64: 1, 8>}, {pipeline_mode = #tpu.pipeline_mode<synchronous>, transform_indices = @transform_7, window_bounds = array<i64: 72, 8>}, {pipeline_mode = #tpu.pipeline_mode<synchronous>, transform_indices = @transform_8, window_bounds = array<i64: 1, 8>}, {pipeline_mode = #tpu.pipeline_mode<synchronous>, transform_indices = @transform_9, window_bounds = array<i64: 1, 8>}, {transform_indices = @transform_10, window_bounds = array<i64: 1, 8, 256>}, {transform_indices = @transform_11, window_bounds = array<i64: 1, 8, 64>}]} {
    %c0 = arith.constant 0 : index
    %c0_0 = arith.constant 0 : index
    %c0_1 = arith.constant 0 : index
    %c0_2 = arith.constant 0 : index
    %0 = vector.load %arg1[%c0, %c0_0, %c0_1, %c0_2] : memref<1x18x18x4xf32, #tpu.memory_space<vmem>>, vector<1x18x18x4xf32>
    %1 = vector.shape_cast %0 : vector<1x18x18x4xf32> to vector<18x18x4xf32>
    %2 = vector.extract_strided_slice %1 {offsets = [0, 0, 0], sizes = [16, 16, 4], strides = [1, 1, 1]} : vector<18x18x4xf32> to vector<16x16x4xf32>
    %3 = vector.shape_cast %2 : vector<16x16x4xf32> to vector<256x4xf32>
    %4 = vector.extract_strided_slice %1 {offsets = [0, 1, 0], sizes = [16, 16, 4], strides = [1, 1, 1]} : vector<18x18x4xf32> to vector<16x16x4xf32>
    %5 = vector.shape_cast %4 : vector<16x16x4xf32> to vector<256x4xf32>
    %6 = vector.extract_strided_slice %1 {offsets = [0, 2, 0], sizes = [16, 16, 4], strides = [1, 1, 1]} : vector<18x18x4xf32> to vector<16x16x4xf32>
    %7 = vector.shape_cast %6 : vector<16x16x4xf32> to vector<256x4xf32>
    %8 = vector.extract_strided_slice %1 {offsets = [1, 0, 0], sizes = [16, 16, 4], strides = [1, 1, 1]} : vector<18x18x4xf32> to vector<16x16x4xf32>
    %9 = vector.shape_cast %8 : vector<16x16x4xf32> to vector<256x4xf32>
    %10 = vector.extract_strided_slice %1 {offsets = [1, 1, 0], sizes = [16, 16, 4], strides = [1, 1, 1]} : vector<18x18x4xf32> to vector<16x16x4xf32>
    %11 = vector.shape_cast %10 : vector<16x16x4xf32> to vector<256x4xf32>
    %12 = vector.extract_strided_slice %1 {offsets = [1, 2, 0], sizes = [16, 16, 4], strides = [1, 1, 1]} : vector<18x18x4xf32> to vector<16x16x4xf32>
    %13 = vector.shape_cast %12 : vector<16x16x4xf32> to vector<256x4xf32>
    %14 = vector.extract_strided_slice %1 {offsets = [2, 0, 0], sizes = [16, 16, 4], strides = [1, 1, 1]} : vector<18x18x4xf32> to vector<16x16x4xf32>
    %15 = vector.shape_cast %14 : vector<16x16x4xf32> to vector<256x4xf32>
    %16 = vector.extract_strided_slice %1 {offsets = [2, 1, 0], sizes = [16, 16, 4], strides = [1, 1, 1]} : vector<18x18x4xf32> to vector<16x16x4xf32>
    %17 = vector.shape_cast %16 : vector<16x16x4xf32> to vector<256x4xf32>
    %18 = vector.extract_strided_slice %1 {offsets = [2, 2, 0], sizes = [16, 16, 4], strides = [1, 1, 1]} : vector<18x18x4xf32> to vector<16x16x4xf32>
    %19 = vector.shape_cast %18 : vector<16x16x4xf32> to vector<256x4xf32>
    %20 = tpu.concatenate %3, %5, %7, %9, %11, %13, %15, %17, %19 in 1 : vector<256x4xf32>, vector<256x4xf32>, vector<256x4xf32>, vector<256x4xf32>, vector<256x4xf32>, vector<256x4xf32>, vector<256x4xf32>, vector<256x4xf32>, vector<256x4xf32> -> vector<256x36xf32>
    %21 = arith.truncf %20 : vector<256x36xf32> to vector<256x36xbf16>
    %c0_3 = arith.constant 0 : index
    %c0_4 = arith.constant 0 : index
    %22 = vector.load %arg2[%c0_3, %c0_4] : memref<36x8xbf16, #tpu.memory_space<vmem>>, vector<36x8xbf16>
    %cst = arith.constant dense<0.000000e+00> : vector<256x8xf32>
    %23 = tpu.matmul %21, %22, %cst {dimension_numbers = #tpu.dot_dimension_numbers<[1], [0], [0], [1], [0, 0, 1, 1], [], []>} : vector<256x36xbf16>, vector<36x8xbf16>, vector<256x8xf32> -> vector<256x8xf32>
    %c0_5 = arith.constant 0 : index
    %c0_6 = arith.constant 0 : index
    %24 = vector.load %arg3[%c0_5, %c0_6] : memref<1x8xf32, #tpu.memory_space<vmem>>, vector<1x8xf32>
    %25 = vector.broadcast %24 : vector<1x8xf32> to vector<256x8xf32>
    %26 = arith.mulf %23, %25 : vector<256x8xf32>
    %c0_7 = arith.constant 0 : index
    %c0_8 = arith.constant 0 : index
    %27 = vector.load %arg4[%c0_7, %c0_8] : memref<1x8xf32, #tpu.memory_space<vmem>>, vector<1x8xf32>
    %28 = vector.broadcast %27 : vector<1x8xf32> to vector<256x8xf32>
    %29 = arith.addf %26, %28 : vector<256x8xf32>
    %cst_9 = arith.constant 0.000000e+00 : f32
    %30 = vector.broadcast %cst_9 : f32 to vector<256x8xf32>
    %31 = arith.maximumf %29, %30 : vector<256x8xf32>
    %cst_10 = arith.constant 0.000000e+00 : f32
    %32 = vector.broadcast %cst_10 : f32 to vector<18x18x8xf32>
    %c0_11 = arith.constant 0 : index
    %c0_12 = arith.constant 0 : index
    %c0_13 = arith.constant 0 : index
    %33 = vector.load %arg13[%c0_11, %c0_12, %c0_13] : memref<18x18x8xf32, #tpu.memory_space<vmem>>, vector<18x18x8xf32>
    tpu.vector_store %arg13[%c0_11, %c0_12, %c0_13], %32 {strides = array<i32>} : memref<18x18x8xf32, #tpu.memory_space<vmem>>, vector<18x18x8xf32>,
    %34 = vector.shape_cast %31 : vector<256x8xf32> to vector<16x16x8xf32>
    %c1 = arith.constant 1 : index
    %c1_14 = arith.constant 1 : index
    %c0_15 = arith.constant 0 : index
    %35 = vector.load %arg13[%c1, %c1_14, %c0_15] : memref<18x18x8xf32, #tpu.memory_space<vmem>>, vector<16x16x8xf32>
    tpu.vector_store %arg13[%c1, %c1_14, %c0_15], %34 {strides = array<i32>} : memref<18x18x8xf32, #tpu.memory_space<vmem>>, vector<16x16x8xf32>,
    %c0_16 = arith.constant 0 : index
    %c0_17 = arith.constant 0 : index
    %c0_18 = arith.constant 0 : index
    %36 = vector.load %arg13[%c0_16, %c0_17, %c0_18] : memref<18x18x8xf32, #tpu.memory_space<vmem>>, vector<18x18x8xf32>
    %37 = vector.extract_strided_slice %36 {offsets = [0, 0, 0], sizes = [16, 16, 8], strides = [1, 1, 1]} : vector<18x18x8xf32> to vector<16x16x8xf32>
    %38 = vector.shape_cast %37 : vector<16x16x8xf32> to vector<256x8xf32>
    %39 = vector.extract_strided_slice %36 {offsets = [0, 1, 0], sizes = [16, 16, 8], strides = [1, 1, 1]} : vector<18x18x8xf32> to vector<16x16x8xf32>
    %40 = vector.shape_cast %39 : vector<16x16x8xf32> to vector<256x8xf32>
    %41 = vector.extract_strided_slice %36 {offsets = [0, 2, 0], sizes = [16, 16, 8], strides = [1, 1, 1]} : vector<18x18x8xf32> to vector<16x16x8xf32>
    %42 = vector.shape_cast %41 : vector<16x16x8xf32> to vector<256x8xf32>
    %43 = vector.extract_strided_slice %36 {offsets = [1, 0, 0], sizes = [16, 16, 8], strides = [1, 1, 1]} : vector<18x18x8xf32> to vector<16x16x8xf32>
    %44 = vector.shape_cast %43 : vector<16x16x8xf32> to vector<256x8xf32>
    %45 = vector.extract_strided_slice %36 {offsets = [1, 1, 0], sizes = [16, 16, 8], strides = [1, 1, 1]} : vector<18x18x8xf32> to vector<16x16x8xf32>
    %46 = vector.shape_cast %45 : vector<16x16x8xf32> to vector<256x8xf32>
    %47 = vector.extract_strided_slice %36 {offsets = [1, 2, 0], sizes = [16, 16, 8], strides = [1, 1, 1]} : vector<18x18x8xf32> to vector<16x16x8xf32>
    %48 = vector.shape_cast %47 : vector<16x16x8xf32> to vector<256x8xf32>
    %49 = vector.extract_strided_slice %36 {offsets = [2, 0, 0], sizes = [16, 16, 8], strides = [1, 1, 1]} : vector<18x18x8xf32> to vector<16x16x8xf32>
    %50 = vector.shape_cast %49 : vector<16x16x8xf32> to vector<256x8xf32>
    %51 = vector.extract_strided_slice %36 {offsets = [2, 1, 0], sizes = [16, 16, 8], strides = [1, 1, 1]} : vector<18x18x8xf32> to vector<16x16x8xf32>
    %52 = vector.shape_cast %51 : vector<16x16x8xf32> to vector<256x8xf32>
    %53 = vector.extract_strided_slice %36 {offsets = [2, 2, 0], sizes = [16, 16, 8], strides = [1, 1, 1]} : vector<18x18x8xf32> to vector<16x16x8xf32>
    %54 = vector.shape_cast %53 : vector<16x16x8xf32> to vector<256x8xf32>
    %55 = tpu.concatenate %38, %40, %42, %44, %46, %48, %50, %52, %54 in 1 : vector<256x8xf32>, vector<256x8xf32>, vector<256x8xf32>, vector<256x8xf32>, vector<256x8xf32>, vector<256x8xf32>, vector<256x8xf32>, vector<256x8xf32>, vector<256x8xf32> -> vector<256x72xf32>
    %56 = arith.truncf %55 : vector<256x72xf32> to vector<256x72xbf16>
    %c0_19 = arith.constant 0 : index
    %c0_20 = arith.constant 0 : index
    %57 = vector.load %arg5[%c0_19, %c0_20] : memref<72x8xbf16, #tpu.memory_space<vmem>>, vector<72x8xbf16>
    %cst_21 = arith.constant dense<0.000000e+00> : vector<256x8xf32>
    %58 = tpu.matmul %56, %57, %cst_21 {dimension_numbers = #tpu.dot_dimension_numbers<[1], [0], [0], [1], [0, 0, 1, 1], [], []>} : vector<256x72xbf16>, vector<72x8xbf16>, vector<256x8xf32> -> vector<256x8xf32>
    %c0_22 = arith.constant 0 : index
    %c0_23 = arith.constant 0 : index
    %59 = vector.load %arg6[%c0_22, %c0_23] : memref<1x8xf32, #tpu.memory_space<vmem>>, vector<1x8xf32>
    %60 = vector.broadcast %59 : vector<1x8xf32> to vector<256x8xf32>
    %61 = arith.mulf %58, %60 : vector<256x8xf32>
    %c0_24 = arith.constant 0 : index
    %c0_25 = arith.constant 0 : index
    %62 = vector.load %arg7[%c0_24, %c0_25] : memref<1x8xf32, #tpu.memory_space<vmem>>, vector<1x8xf32>
    %63 = vector.broadcast %62 : vector<1x8xf32> to vector<256x8xf32>
    %64 = arith.addf %61, %63 : vector<256x8xf32>
    %cst_26 = arith.constant 0.000000e+00 : f32
    %65 = vector.broadcast %cst_26 : f32 to vector<256x8xf32>
    %66 = arith.maximumf %64, %65 : vector<256x8xf32>
    %67 = vector.shape_cast %66 : vector<256x8xf32> to vector<16x16x8xf32>
    %c1_27 = arith.constant 1 : index
    %c1_28 = arith.constant 1 : index
    %c0_29 = arith.constant 0 : index
    %68 = vector.load %arg13[%c1_27, %c1_28, %c0_29] : memref<18x18x8xf32, #tpu.memory_space<vmem>>, vector<16x16x8xf32>
    tpu.vector_store %arg13[%c1_27, %c1_28, %c0_29], %67 {strides = array<i32>} : memref<18x18x8xf32, #tpu.memory_space<vmem>>, vector<16x16x8xf32>,
    %c0_30 = arith.constant 0 : index
    %c0_31 = arith.constant 0 : index
    %c0_32 = arith.constant 0 : index
    %69 = vector.load %arg13[%c0_30, %c0_31, %c0_32] : memref<18x18x8xf32, #tpu.memory_space<vmem>>, vector<18x18x8xf32>
    %70 = vector.extract_strided_slice %69 {offsets = [0, 0, 0], sizes = [16, 16, 8], strides = [1, 1, 1]} : vector<18x18x8xf32> to vector<16x16x8xf32>
    %71 = vector.shape_cast %70 : vector<16x16x8xf32> to vector<256x8xf32>
    %72 = vector.extract_strided_slice %69 {offsets = [0, 1, 0], sizes = [16, 16, 8], strides = [1, 1, 1]} : vector<18x18x8xf32> to vector<16x16x8xf32>
    %73 = vector.shape_cast %72 : vector<16x16x8xf32> to vector<256x8xf32>
    %74 = vector.extract_strided_slice %69 {offsets = [0, 2, 0], sizes = [16, 16, 8], strides = [1, 1, 1]} : vector<18x18x8xf32> to vector<16x16x8xf32>
    %75 = vector.shape_cast %74 : vector<16x16x8xf32> to vector<256x8xf32>
    %76 = vector.extract_strided_slice %69 {offsets = [1, 0, 0], sizes = [16, 16, 8], strides = [1, 1, 1]} : vector<18x18x8xf32> to vector<16x16x8xf32>
    %77 = vector.shape_cast %76 : vector<16x16x8xf32> to vector<256x8xf32>
    %78 = vector.extract_strided_slice %69 {offsets = [1, 1, 0], sizes = [16, 16, 8], strides = [1, 1, 1]} : vector<18x18x8xf32> to vector<16x16x8xf32>
    %79 = vector.shape_cast %78 : vector<16x16x8xf32> to vector<256x8xf32>
    %80 = vector.extract_strided_slice %69 {offsets = [1, 2, 0], sizes = [16, 16, 8], strides = [1, 1, 1]} : vector<18x18x8xf32> to vector<16x16x8xf32>
    %81 = vector.shape_cast %80 : vector<16x16x8xf32> to vector<256x8xf32>
    %82 = vector.extract_strided_slice %69 {offsets = [2, 0, 0], sizes = [16, 16, 8], strides = [1, 1, 1]} : vector<18x18x8xf32> to vector<16x16x8xf32>
    %83 = vector.shape_cast %82 : vector<16x16x8xf32> to vector<256x8xf32>
    %84 = vector.extract_strided_slice %69 {offsets = [2, 1, 0], sizes = [16, 16, 8], strides = [1, 1, 1]} : vector<18x18x8xf32> to vector<16x16x8xf32>
    %85 = vector.shape_cast %84 : vector<16x16x8xf32> to vector<256x8xf32>
    %86 = vector.extract_strided_slice %69 {offsets = [2, 2, 0], sizes = [16, 16, 8], strides = [1, 1, 1]} : vector<18x18x8xf32> to vector<16x16x8xf32>
    %87 = vector.shape_cast %86 : vector<16x16x8xf32> to vector<256x8xf32>
    %88 = tpu.concatenate %71, %73, %75, %77, %79, %81, %83, %85, %87 in 1 : vector<256x8xf32>, vector<256x8xf32>, vector<256x8xf32>, vector<256x8xf32>, vector<256x8xf32>, vector<256x8xf32>, vector<256x8xf32>, vector<256x8xf32>, vector<256x8xf32> -> vector<256x72xf32>
    %89 = arith.truncf %88 : vector<256x72xf32> to vector<256x72xbf16>
    %c0_33 = arith.constant 0 : index
    %c0_34 = arith.constant 0 : index
    %90 = vector.load %arg8[%c0_33, %c0_34] : memref<72x8xbf16, #tpu.memory_space<vmem>>, vector<72x8xbf16>
    %cst_35 = arith.constant dense<0.000000e+00> : vector<256x8xf32>
    %91 = tpu.matmul %89, %90, %cst_35 {dimension_numbers = #tpu.dot_dimension_numbers<[1], [0], [0], [1], [0, 0, 1, 1], [], []>} : vector<256x72xbf16>, vector<72x8xbf16>, vector<256x8xf32> -> vector<256x8xf32>
    %c0_36 = arith.constant 0 : index
    %c0_37 = arith.constant 0 : index
    %92 = vector.load %arg9[%c0_36, %c0_37] : memref<1x8xf32, #tpu.memory_space<vmem>>, vector<1x8xf32>
    %93 = vector.broadcast %92 : vector<1x8xf32> to vector<256x8xf32>
    %94 = arith.mulf %91, %93 : vector<256x8xf32>
    %c0_38 = arith.constant 0 : index
    %c0_39 = arith.constant 0 : index
    %95 = vector.load %arg10[%c0_38, %c0_39] : memref<1x8xf32, #tpu.memory_space<vmem>>, vector<1x8xf32>
    %96 = vector.broadcast %95 : vector<1x8xf32> to vector<256x8xf32>
    %97 = arith.addf %94, %96 : vector<256x8xf32>
    %cst_40 = arith.constant 0.000000e+00 : f32
    %98 = vector.broadcast %cst_40 : f32 to vector<256x8xf32>
    %99 = arith.maximumf %97, %98 : vector<256x8xf32>
    %100 = arith.addf %99, %31 : vector<256x8xf32>
    %101 = tpu.transpose %100, [1, 0] : vector<256x8xf32> -> vector<8x256xf32>
    %102 = vector.shape_cast %101 : vector<8x256xf32> to vector<1x8x256xf32>
    %c0_41 = arith.constant 0 : index
    %c0_42 = arith.constant 0 : index
    %c0_43 = arith.constant 0 : index
    %103 = vector.load %arg11[%c0_41, %c0_42, %c0_43] : memref<1x8x256xf32, #tpu.memory_space<vmem>>, vector<1x8x256xf32>
    tpu.vector_store %arg11[%c0_41, %c0_42, %c0_43], %102 {strides = array<i32>} : memref<1x8x256xf32, #tpu.memory_space<vmem>>, vector<1x8x256xf32>,
    %104 = vector.shape_cast %100 : vector<256x8xf32> to vector<8x2x16x8xf32>
    %cst_44 = arith.constant dense<0xFF800000> : vector<8x16x8xf32>
    %105 = vector.multi_reduction <maximumf>, %104, %cst_44 [1] : vector<8x2x16x8xf32> to vector<8x16x8xf32>
    %106 = vector.extract_strided_slice %105 {offsets = [0, 0, 0], sizes = [8, 1, 8], strides = [1, 1, 1]} : vector<8x16x8xf32> to vector<8x1x8xf32>
    %107 = vector.extract_strided_slice %105 {offsets = [0, 1, 0], sizes = [8, 1, 8], strides = [1, 1, 1]} : vector<8x16x8xf32> to vector<8x1x8xf32>
    %108 = arith.maximumf %106, %107 : vector<8x1x8xf32>
    %c0_45 = arith.constant 0 : index
    %c0_46 = arith.constant 0 : index
    %c0_47 = arith.constant 0 : index
    %109 = vector.load %arg14[%c0_45, %c0_46, %c0_47] : memref<8x8x8xf32, #tpu.memory_space<vmem>>, vector<8x1x8xf32>
    tpu.vector_store %arg14[%c0_45, %c0_46, %c0_47], %108 {strides = array<i32>} : memref<8x8x8xf32, #tpu.memory_space<vmem>>, vector<8x1x8xf32>,
    %110 = vector.extract_strided_slice %105 {offsets = [0, 2, 0], sizes = [8, 1, 8], strides = [1, 1, 1]} : vector<8x16x8xf32> to vector<8x1x8xf32>
    %111 = vector.extract_strided_slice %105 {offsets = [0, 3, 0], sizes = [8, 1, 8], strides = [1, 1, 1]} : vector<8x16x8xf32> to vector<8x1x8xf32>
    %112 = arith.maximumf %110, %111 : vector<8x1x8xf32>
    %c0_48 = arith.constant 0 : index
    %c1_49 = arith.constant 1 : index
    %c0_50 = arith.constant 0 : index
    %113 = vector.load %arg14[%c0_48, %c1_49, %c0_50] : memref<8x8x8xf32, #tpu.memory_space<vmem>>, vector<8x1x8xf32>
    tpu.vector_store %arg14[%c0_48, %c1_49, %c0_50], %112 {strides = array<i32>} : memref<8x8x8xf32, #tpu.memory_space<vmem>>, vector<8x1x8xf32>,
    %114 = vector.extract_strided_slice %105 {offsets = [0, 4, 0], sizes = [8, 1, 8], strides = [1, 1, 1]} : vector<8x16x8xf32> to vector<8x1x8xf32>
    %115 = vector.extract_strided_slice %105 {offsets = [0, 5, 0], sizes = [8, 1, 8], strides = [1, 1, 1]} : vector<8x16x8xf32> to vector<8x1x8xf32>
    %116 = arith.maximumf %114, %115 : vector<8x1x8xf32>
    %c0_51 = arith.constant 0 : index
    %c2 = arith.constant 2 : index
    %c0_52 = arith.constant 0 : index
    %117 = vector.load %arg14[%c0_51, %c2, %c0_52] : memref<8x8x8xf32, #tpu.memory_space<vmem>>, vector<8x1x8xf32>
    tpu.vector_store %arg14[%c0_51, %c2, %c0_52], %116 {strides = array<i32>} : memref<8x8x8xf32, #tpu.memory_space<vmem>>, vector<8x1x8xf32>,
    %118 = vector.extract_strided_slice %105 {offsets = [0, 6, 0], sizes = [8, 1, 8], strides = [1, 1, 1]} : vector<8x16x8xf32> to vector<8x1x8xf32>
    %119 = vector.extract_strided_slice %105 {offsets = [0, 7, 0], sizes = [8, 1, 8], strides = [1, 1, 1]} : vector<8x16x8xf32> to vector<8x1x8xf32>
    %120 = arith.maximumf %118, %119 : vector<8x1x8xf32>
    %c0_53 = arith.constant 0 : index
    %c3 = arith.constant 3 : index
    %c0_54 = arith.constant 0 : index
    %121 = vector.load %arg14[%c0_53, %c3, %c0_54] : memref<8x8x8xf32, #tpu.memory_space<vmem>>, vector<8x1x8xf32>
    tpu.vector_store %arg14[%c0_53, %c3, %c0_54], %120 {strides = array<i32>} : memref<8x8x8xf32, #tpu.memory_space<vmem>>, vector<8x1x8xf32>,
    %122 = vector.extract_strided_slice %105 {offsets = [0, 8, 0], sizes = [8, 1, 8], strides = [1, 1, 1]} : vector<8x16x8xf32> to vector<8x1x8xf32>
    %123 = vector.extract_strided_slice %105 {offsets = [0, 9, 0], sizes = [8, 1, 8], strides = [1, 1, 1]} : vector<8x16x8xf32> to vector<8x1x8xf32>
    %124 = arith.maximumf %122, %123 : vector<8x1x8xf32>
    %c0_55 = arith.constant 0 : index
    %c4 = arith.constant 4 : index
    %c0_56 = arith.constant 0 : index
    %125 = vector.load %arg14[%c0_55, %c4, %c0_56] : memref<8x8x8xf32, #tpu.memory_space<vmem>>, vector<8x1x8xf32>
    tpu.vector_store %arg14[%c0_55, %c4, %c0_56], %124 {strides = array<i32>} : memref<8x8x8xf32, #tpu.memory_space<vmem>>, vector<8x1x8xf32>,
    %126 = vector.extract_strided_slice %105 {offsets = [0, 10, 0], sizes = [8, 1, 8], strides = [1, 1, 1]} : vector<8x16x8xf32> to vector<8x1x8xf32>
    %127 = vector.extract_strided_slice %105 {offsets = [0, 11, 0], sizes = [8, 1, 8], strides = [1, 1, 1]} : vector<8x16x8xf32> to vector<8x1x8xf32>
    %128 = arith.maximumf %126, %127 : vector<8x1x8xf32>
    %c0_57 = arith.constant 0 : index
    %c5 = arith.constant 5 : index
    %c0_58 = arith.constant 0 : index
    %129 = vector.load %arg14[%c0_57, %c5, %c0_58] : memref<8x8x8xf32, #tpu.memory_space<vmem>>, vector<8x1x8xf32>
    tpu.vector_store %arg14[%c0_57, %c5, %c0_58], %128 {strides = array<i32>} : memref<8x8x8xf32, #tpu.memory_space<vmem>>, vector<8x1x8xf32>,
    %130 = vector.extract_strided_slice %105 {offsets = [0, 12, 0], sizes = [8, 1, 8], strides = [1, 1, 1]} : vector<8x16x8xf32> to vector<8x1x8xf32>
    %131 = vector.extract_strided_slice %105 {offsets = [0, 13, 0], sizes = [8, 1, 8], strides = [1, 1, 1]} : vector<8x16x8xf32> to vector<8x1x8xf32>
    %132 = arith.maximumf %130, %131 : vector<8x1x8xf32>
    %c0_59 = arith.constant 0 : index
    %c6 = arith.constant 6 : index
    %c0_60 = arith.constant 0 : index
    %133 = vector.load %arg14[%c0_59, %c6, %c0_60] : memref<8x8x8xf32, #tpu.memory_space<vmem>>, vector<8x1x8xf32>
    tpu.vector_store %arg14[%c0_59, %c6, %c0_60], %132 {strides = array<i32>} : memref<8x8x8xf32, #tpu.memory_space<vmem>>, vector<8x1x8xf32>,
    %134 = vector.extract_strided_slice %105 {offsets = [0, 14, 0], sizes = [8, 1, 8], strides = [1, 1, 1]} : vector<8x16x8xf32> to vector<8x1x8xf32>
    %135 = vector.extract_strided_slice %105 {offsets = [0, 15, 0], sizes = [8, 1, 8], strides = [1, 1, 1]} : vector<8x16x8xf32> to vector<8x1x8xf32>
    %136 = arith.maximumf %134, %135 : vector<8x1x8xf32>
    %c0_61 = arith.constant 0 : index
    %c7 = arith.constant 7 : index
    %c0_62 = arith.constant 0 : index
    %137 = vector.load %arg14[%c0_61, %c7, %c0_62] : memref<8x8x8xf32, #tpu.memory_space<vmem>>, vector<8x1x8xf32>
    tpu.vector_store %arg14[%c0_61, %c7, %c0_62], %136 {strides = array<i32>} : memref<8x8x8xf32, #tpu.memory_space<vmem>>, vector<8x1x8xf32>,
    %c0_63 = arith.constant 0 : index
    %c0_64 = arith.constant 0 : index
    %c0_65 = arith.constant 0 : index
    %138 = vector.load %arg14[%c0_63, %c0_64, %c0_65] : memref<8x8x8xf32, #tpu.memory_space<vmem>>, vector<8x8x8xf32>
    %139 = vector.shape_cast %138 : vector<8x8x8xf32> to vector<64x8xf32>
    %140 = tpu.transpose %139, [1, 0] : vector<64x8xf32> -> vector<8x64xf32>
    %141 = vector.shape_cast %140 : vector<8x64xf32> to vector<1x8x64xf32>
    %c0_66 = arith.constant 0 : index
    %c0_67 = arith.constant 0 : index
    %c0_68 = arith.constant 0 : index
    %142 = vector.load %arg12[%c0_66, %c0_67, %c0_68] : memref<1x8x64xf32, #tpu.memory_space<vmem>>, vector<1x8x64xf32>
    tpu.vector_store %arg12[%c0_66, %c0_67, %c0_68], %141 {strides = array<i32>} : memref<1x8x64xf32, #tpu.memory_space<vmem>>, vector<1x8x64xf32>,
    return
  }
  func.func @transform_0(%arg0: i32) -> (i32, i32, i32, i32) {
    %c0_i32 = arith.constant 0 : i32
    %c0_i32_0 = arith.constant 0 : i32
    %c0_i32_1 = arith.constant 0 : i32
    %c0_i32_2 = arith.constant 0 : i32
    return %arg0, %c0_i32, %c0_i32_0, %c0_i32_1 : i32, i32, i32, i32
  }
  func.func @transform_1(%arg0: i32) -> (i32, i32) {
    %c0_i32 = arith.constant 0 : i32
    %c0_i32_0 = arith.constant 0 : i32
    %c0_i32_1 = arith.constant 0 : i32
    return %c0_i32, %c0_i32_0 : i32, i32
  }
  func.func @transform_2(%arg0: i32) -> (i32, i32) {
    %c0_i32 = arith.constant 0 : i32
    %c0_i32_0 = arith.constant 0 : i32
    %c0_i32_1 = arith.constant 0 : i32
    return %c0_i32, %c0_i32_0 : i32, i32
  }
  func.func @transform_3(%arg0: i32) -> (i32, i32) {
    %c0_i32 = arith.constant 0 : i32
    %c0_i32_0 = arith.constant 0 : i32
    %c0_i32_1 = arith.constant 0 : i32
    return %c0_i32, %c0_i32_0 : i32, i32
  }
  func.func @transform_4(%arg0: i32) -> (i32, i32) {
    %c0_i32 = arith.constant 0 : i32
    %c0_i32_0 = arith.constant 0 : i32
    %c0_i32_1 = arith.constant 0 : i32
    return %c0_i32, %c0_i32_0 : i32, i32
  }
  func.func @transform_5(%arg0: i32) -> (i32, i32) {
    %c0_i32 = arith.constant 0 : i32
    %c0_i32_0 = arith.constant 0 : i32
    %c0_i32_1 = arith.constant 0 : i32
    return %c0_i32, %c0_i32_0 : i32, i32
  }
  func.func @transform_6(%arg0: i32) -> (i32, i32) {
    %c0_i32 = arith.constant 0 : i32
    %c0_i32_0 = arith.constant 0 : i32
    %c0_i32_1 = arith.constant 0 : i32
    return %c0_i32, %c0_i32_0 : i32, i32
  }
  func.func @transform_7(%arg0: i32) -> (i32, i32) {
    %c0_i32 = arith.constant 0 : i32
    %c0_i32_0 = arith.constant 0 : i32
    %c0_i32_1 = arith.constant 0 : i32
    return %c0_i32, %c0_i32_0 : i32, i32
  }
  func.func @transform_8(%arg0: i32) -> (i32, i32) {
    %c0_i32 = arith.constant 0 : i32
    %c0_i32_0 = arith.constant 0 : i32
    %c0_i32_1 = arith.constant 0 : i32
    return %c0_i32, %c0_i32_0 : i32, i32
  }
  func.func @transform_9(%arg0: i32) -> (i32, i32) {
    %c0_i32 = arith.constant 0 : i32
    %c0_i32_0 = arith.constant 0 : i32
    %c0_i32_1 = arith.constant 0 : i32
    return %c0_i32, %c0_i32_0 : i32, i32
  }
  func.func @transform_10(%arg0: i32) -> (i32, i32, i32) {
    %c0_i32 = arith.constant 0 : i32
    %c0_i32_0 = arith.constant 0 : i32
    %c0_i32_1 = arith.constant 0 : i32
    return %arg0, %c0_i32, %c0_i32_0 : i32, i32, i32
  }
  func.func @transform_11(%arg0: i32) -> (i32, i32, i32) {
    %c0_i32 = arith.constant 0 : i32
    %c0_i32_0 = arith.constant 0 : i32
    %c0_i32_1 = arith.constant 0 : i32
    return %arg0, %c0_i32, %c0_i32_0 : i32, i32, i32
  }
}

</mosaic_0001>

<bundles_post_ra>
// kernel: tpu_custom_call.1
= control target key start
LH: loop header
LB: loop body
LE: loop exit
PB: predicated region body
PF: predicated region fallthrough
CT: control target
= control target key end

     0   :  { %s13806_s0 = inlined_call_operand.vmem [shape: f32[2,18,18,4], index: 0, kind: input, shape index: {}]   ;;  %s13807_s1 = inlined_call_operand.vmem [shape: bf16[36,8], index: 1, kind: input, shape index: {}]   ;;  %s13808_s2 = inlined_call_operand.vmem [shape: f32[1,8], index: 2, kind: input, shape index: {}]   ;;  %s13809_s3 = inlined_call_operand.vmem [shape: f32[1,8], index: 3, kind: input, shape index: {}]   ;;  %s13810_s4 = inlined_call_operand.vmem [shape: bf16[72,8], index: 4, kind: input, shape index: {}]   ;;  %s13811_s5 = inlined_call_operand.vmem [shape: f32[1,8], index: 5, kind: input, shape index: {}]   ;;  %s13812_s6 = inlined_call_operand.vmem [shape: f32[1,8], index: 6, kind: input, shape index: {}]   ;;  %s13813_s7 = inlined_call_operand.vmem [shape: bf16[72,8], index: 7, kind: input, shape index: {}]   ;;  %s13814_s8 = inlined_call_operand.vmem [shape: f32[1,8], index: 8, kind: input, shape index: {}]   ;;  %s13815_s9 = inlined_call_operand.vmem [shape: f32[1,8], index: 9, kind: input, shape index: {}]   ;;  %s13816_s10 = inlined_call_operand.hbm [shape: f32[2,8,256], index: 10, kind: output, shape index: {0}]   ;;  %s13817_s11 = inlined_call_operand.hbm [shape: f32[2,8,64], index: 11, kind: output, shape index: {1}]  }
   0x1   :  { %14055 = sst [smem:[#allocation89_spill]] %s13806_s0 }
   0x2   :  { %14056 = sst [smem:[#allocation90_spill]] %s13807_s1 }
   0x3   :  { %14057 = sst [smem:[#allocation91_spill]] %s13808_s2 }
   0x4   :  { %14058 = sst [smem:[#allocation92_spill]] %s13809_s3 }
   0x5   :  { %17 = vsyncpa [#allocation5], 0 }
   0x6   :  { %19 = vsyncpa [#allocation5 + $0x1], 0 }
   0x7   :  { %20 = vsyncpa [#allocation7], 0 }
   0x8   :  { %22 = vsyncpa [#allocation7 + $0x1], 0  ;;  %s8543_s17 = smov 0   ;;  %s8545_s18 = smov 0  }
   0x9   :  { %s8547_s19 = smov 0   ;;  %s8549_s20 = smov 0  }
   0xa LB: > { %s8564_s21 = sadd.s32 4294967295, %s8466_s20   ;;  %s6020_s22 = sadd.s32 4294967294, %s8466_s20   ;;  %s8466_s20 = sphi %s8549_s20, %s14507_s20   ;;  %s8462_s19 = sphi %s8547_s19, %s14506_s19   ;;  %s8458_s18 = sphi %s8545_s18, %s14505_s18   ;;  %s8454_s17 = sphi %s8543_s17, %s14504_s17  }
   0xb   : > { %s8568_s23 = sadd.s32 1, %s8466_s20   ;;  %s250_s24 = sadd.s32 1, %s8462_s19 }
   0xc   : > { %s247_s25 = ssub.s32 %s8466_s20, %s8568_s23  ;;  %p260_p0 = scmp.ne.s32.totalorder %s8462_s19, %s8458_s18 }
   0xd   : > { %p248_p1 = scmp.eq.s32.totalorder %s247_s25, 0  ;;  %p261_p2 = scmp.eq.s32.totalorder %s8564_s21, 1 }
   0xe   : > { %p266_p3 = scmp.ne.s32.totalorder %s8458_s18, %s8454_s17  ;;  %p267_p4 = scmp.eq.s32.totalorder %s6020_s22, 1 }
   0xf   : > { %s8579_s26 = scalar_select %p248_p1, %s8462_s19, %s250_s24  }
  0x10   : > { %p8581_p5 = por %p261_p2, %p260_p0  ;;  %p8585_p6 = por %p267_p4, %p266_p3 }
  0x11   : > { %p6023_p7 = scmp.ge.s32.totalorder %s8466_s20, 1  ;;  %p346_p8 = scmp.lt.s32.totalorder %s8466_s20, 3 }
  0x13   : > { %p347_p9 = pnand %p6023_p7, %p346_p8 }
  0x15   : > { %350 = sbr.rel (%p347_p9) target bundleno = 1877 (0x755), region = 60 }
  0x1a   : > { %p391_p10 = scmp.lt.s32.totalorder %s8564_s21, 1  ;;  %s14061_s0 = sld [smem:[#allocation89_spill]]  ;;  %vm499_vm0 = vcmask 1046528   ;;  %vm580_vm1 = vcmask 1045504   ;;  %vm1804_vm2 = vcmask 1041408   ;;  %vm1455_vm3 = vcmask 31744  }
  0x1b   : > { %s8468_s15 = smov 4   ;;  %s8469_s16 = smov 8   ;;  %vm1488_vm4 = vcmask 64512   ;;  %vm1521_vm5 = vcmask 97280   ;;  %vm1554_vm6 = vcmask 130048   ;;  %vm1587_vm7 = vcmask 162816  }
  0x1c   : > { %s392_s29 = scalar_select %p391_p10, %s8564_s21, 1  ;;  %vm1620_vm8 = vcmask 195584   ;;  %vm1653_vm9 = vcmask 228352   ;;  %vm1686_vm10 = vcmask 261120   ;;  %vm1755_vm11 = vcmask 293888  }
  0x1d   : > { %s8470_s22 = smov 12   ;;  %s8471_s24 = smov 16   ;;  %vm2081_vm12 = vcmask 58368   ;;  %vm3584_vm13 = vcmask 1043456   ;;  %vm3351_vm14 = vcmask 326656   ;;  %vm3384_vm15 = vcmask 392192  }
  0x1e   : > { %s6295_s30 = smul.u32 432, %s392_s29  ;;  %s8472_s25 = smov 20  }
  0x1f   : > { %s14053_s29 = smov 24   ;;  %s14122_s1 = sld [smem:[#allocation90_spill]] }
  0x20   : > { %s8596_s14 = scalar_lea.vmem %s14061_s0, %s6295_s30  ;;  %s8474_s30 = smov 28  }
  0x21   : > { %v8599_v0 = vld [vmem:[%s8596_s14 + $0x30] sm:$0xff]  ;;  %v8602_v1 = vld [vmem:[%s8596_s14 + $0x38] sm:$0xff]  ;;  %v8605_v2 = vld [vmem:[%s8596_s14 + $0x40] sm:$0x3]  ;;  %s14051_s13 = smov 32   ;;  %s14241_s2 = sld [smem:[#allocation91_spill]] }
  0x22   : > { %v510_v3 = vrot.slane %v8599_v0, 1  ;;  %v511_v4 = vrot.slane %v8602_v1, 1  ;;  %v513_v5 = vrot.slane %v8605_v2, 1  ;;  %v8611_v6 = vld [vmem:[%s8596_s14] sm:$0xff]  ;;  %v8614_v7 = vld [vmem:[%s8596_s14 + $0x8] sm:$0xff]  ;;  %v8625_v12 = vld [vmem:[%s8596_s14 + $0x50] sm:$0xff] }
  0x23   : > { %v8617_v8 = vld [vmem:[%s8596_s14 + $0x10] sm:$0x3]  ;;  %v500_v9 = vrot.slane %v8611_v6, 1  ;;  %v501_v10 = vrot.slane %v8614_v7, 1  ;;  %v8622_v11 = vld [vmem:[%s8596_s14 + $0x48] sm:$0xff]  ;;  %v8634_v17 = vld [vmem:[%s8596_s14 + $0x18] sm:$0xff] }
  0x24   : > { %v512_v13 = vsel %vm499_vm0, %v510_v3, %v511_v4  ;;  %v514_v14 = vsel %vm499_vm0, %v511_v4, %v513_v5  ;;  %v503_v15 = vrot.slane %v8617_v8, 1  ;;  %v8631_v16 = vld [vmem:[%s8596_s14 + $0x58] sm:$0x3]  ;;  %v8637_v18 = vld [vmem:[%s8596_s14 + $0x20] sm:$0xff]  ;;  %v515_v21 = vrot.slane %v8622_v11, 1  ;;  %v8669_v36 = vld [vmem:[%s8596_s14 + $0x68] sm:$0xff] }
  0x25   : > { %v8639_v19 = vpack.i.bf16 %v514_v14, %v512_v13  ;;  %v502_v20 = vsel %vm499_vm0, %v500_v9, %v501_v10  ;;  %v516_v22 = vrot.slane %v8625_v12, 1  ;;  %v8645_v23 = vld [vmem:[%s8596_s14 + $0x28] sm:$0x3]  ;;  %v8648_v24 = vld [vmem:[%s8596_s14 + $0x78] sm:$0xff]  ;;  %v8651_v25 = vld [vmem:[%s8596_s14 + $0x80] sm:$0xff]  ;;  %v518_v27 = vrot.slane %v8631_v16, 1 }
  0x26   : > { %v504_v26 = vsel %vm499_vm0, %v501_v10, %v503_v15  ;;  %v505_v28 = vrot.slane %v8634_v17, 1  ;;  %v506_v29 = vrot.slane %v8637_v18, 1  ;;  %v8658_v30 = vld [vmem:[%s8596_s14 + $0x88] sm:$0x3]  ;;  %v8661_v31 = vld [vmem:[%s8596_s14 + $0x60] sm:$0xff]  ;;  %v508_v34 = vrot.slane %v8645_v23, 1 }
  0x27   : > { %14062 = vst [vmem:[#allocation10_spill] sm:$0xff] %v8639_v19  ;;  %6364 = vrot.lane.b32.xlu1 %v8639_v19, %s8468_s15  ;;  %v6353_v32 = vpack.i.bf16 %v504_v26, %v502_v20  ;;  %v517_v33 = vsel %vm499_vm0, %v515_v21, %v516_v22  ;;  %v525_v35 = vrot.slane %v8648_v24, 1  ;;  %v8672_v37 = vld [vmem:[%s8596_s14 + $0x70] sm:$0x3]  ;;  %v519_v38 = vsel %vm499_vm0, %v516_v22, %v518_v27  ;;  %v8679_v42 = vld [vmem:[%s8596_s14 + $0xa8] sm:$0xff]  ;;  %v8697_v50 = vld [vmem:[%s8596_s14 + $0x98] sm:$0xff] }
  0x28   : > { %v507_v39 = vsel %vm499_vm0, %v505_v28, %v506_v29  ;;  %v526_v40 = vrot.slane %v8651_v25, 1  ;;  %v528_v41 = vrot.slane %v8658_v30, 1  ;;  %v8682_v43 = vld [vmem:[%s8596_s14 + $0xb0] sm:$0xff]  ;;  %v8685_v44 = vpack.i.bf16 %v519_v38, %v517_v33  ;;  %v8691_v48 = vld [vmem:[%s8596_s14 + $0xb8] sm:$0x3]  ;;  %v8718_v61 = vld [vmem:[%s8596_s14 + $0xe0] sm:$0xff] }
  0x29   : > { %6354 = vrot.lane.b32.xlu0 %v6353_v32, %s8468_s15  ;;  %v509_v45 = vsel %vm499_vm0, %v506_v29, %v508_v34  ;;  %v520_v46 = vrot.slane %v8661_v31, 1  ;;  %v521_v47 = vrot.slane %v8669_v36, 1  ;;  %v8694_v49 = vld [vmem:[%s8596_s14 + $0x90] sm:$0xff]  ;;  %v523_v54 = vrot.slane %v8672_v37, 1  ;;  %v8705_v55 = vld [vmem:[%s8596_s14 + $0xa0] sm:$0x3] }
  0x2a   : > { %14063 = vst [vmem:[#allocation11_spill] sm:$0xff] %v8685_v44  ;;  %v8699_v51 = vpack.i.bf16 %v509_v45, %v507_v39  ;;  %v527_v52 = vsel %vm499_vm0, %v525_v35, %v526_v40  ;;  %v529_v53 = vsel %vm499_vm0, %v526_v40, %v528_v41  ;;  %v8708_v56 = vld [vmem:[%s8596_s14 + $0xd8] sm:$0xff]  ;;  %v535_v59 = vrot.slane %v8679_v42, 1  ;;  %v8721_v62 = vld [vmem:[%s8596_s14 + $0xe8] sm:$0x3]  ;;  %v8728_v9 = vld [vmem:[%s8596_s14 + $0xc0] sm:$0xff] }
  0x2b   : > { %6369 = vrot.lane.b32.xlu1 %v8685_v44, %s8468_s15  ;;  %v8712_v57 = vpack.i.bf16 %v529_v53, %v527_v52  ;;  %v522_v58 = vsel %vm499_vm0, %v520_v46, %v521_v47  ;;  %v536_v60 = vrot.slane %v8682_v43, 1  ;;  %v524_v63 = vsel %vm499_vm0, %v521_v47, %v523_v54  ;;  %v8731_v10 = vld [vmem:[%s8596_s14 + $0xc8] sm:$0xff]  ;;  %v8741_v21 = vld [vmem:[%s8596_s14 + $0xd0] sm:$0x3]  ;;  %v8761_v39 = vld [vmem:[%s8596_s14 + $0x118] sm:$0x3] }
  0x2c   : > { %14064 = vst [vmem:[#allocation12_spill] sm:$0xff] %v8699_v51  ;;  %v538_v3 = vrot.slane %v8691_v48, 1  ;;  %v530_v4 = vrot.slane %v8694_v49, 1  ;;  %v531_v5 = vrot.slane %v8697_v50, 1  ;;  %v8735_v13 = vpack.i.bf16 %v524_v63, %v522_v58  ;;  %v8748_v29 = vld [vmem:[%s8596_s14 + $0x108] sm:$0xff]  ;;  %v8751_v32 = vld [vmem:[%s8596_s14 + $0x110] sm:$0xff] }
  0x2d   : > { %14065 = vst [vmem:[#allocation13_spill] sm:$0xff] %v8712_v57  ;;  %6359 = vrot.lane.b32.xlu0 %v8699_v51, %s8468_s15  ;;  %v537_v14 = vsel %vm499_vm0, %v535_v59, %v536_v60  ;;  %v533_v15 = vrot.slane %v8705_v55, 1  ;;  %v545_v20 = vrot.slane %v8708_v56, 1  ;;  %v546_v27 = vrot.slane %v8718_v61, 1  ;;  %v8764_v40 = vld [vmem:[%s8596_s14 + $0xf0] sm:$0xff]  ;;  %v8767_v41 = vld [vmem:[%s8596_s14 + $0xf8] sm:$0xff] }
  0x2e   : > { %14066 = vst [vmem:[#allocation14_spill] sm:$0xff] %v8735_v13  ;;  %v539_v22 = vsel %vm499_vm0, %v536_v60, %v538_v3  ;;  %v532_v26 = vsel %vm499_vm0, %v530_v4, %v531_v5  ;;  %v548_v28 = vrot.slane %v8721_v62, 1  ;;  %v540_v35 = vrot.slane %v8728_v9, 1  ;;  %v8773_v52 = vld [vmem:[%s8596_s14 + $0x100] sm:$0x3]  ;;  %v8776_v53 = vld [vmem:[%s8596_s14 + $0x138] sm:$0xff] }
  0x2f   : > { %6379 = vrot.lane.b32.xlu1 %v8712_v57, %s8468_s15  ;;  %v8755_v33 = vpack.i.bf16 %v539_v22, %v537_v14  ;;  %v534_v34 = vsel %vm499_vm0, %v531_v5, %v533_v15  ;;  %v541_v38 = vrot.slane %v8731_v10, 1  ;;  %v547_v45 = vsel %vm499_vm0, %v545_v20, %v546_v27  ;;  %14068 = vst [vmem:[#allocation16_spill] sm:$0xff] %v8773_v52  ;;  %v8779_v54 = vld [vmem:[%s8596_s14 + $0x140] sm:$0xff]  ;;  %v8789_v3 = vld [vmem:[%s8596_s14 + $0x148] sm:$0x3]  ;;  %v8821_v44 = vld [vmem:[%s8596_s14 + $0x150] sm:$0xff] }
  0x30   : > { %v549_v46 = vsel %vm499_vm0, %v546_v27, %v548_v28  ;;  %v543_v47 = vrot.slane %v8741_v21, 1  ;;  %14069 = vst [vmem:[#allocation17_spill] sm:$0xff] %v8776_v53  ;;  %v8783_v58 = vpack.i.bf16 %v534_v34, %v532_v26  ;;  %v555_v60 = vrot.slane %v8748_v29, 1  ;;  %14071 = vst [vmem:[#allocation19_spill] sm:$0xff] %v8789_v3  ;;  %v8792_v4 = vld [vmem:[%s8596_s14 + $0x120] sm:$0xff]  ;;  %v8795_v5 = vld [vmem:[%s8596_s14 + $0x128] sm:$0xff] }
  0x31   : > { %14067 = vst [vmem:[#allocation15_spill] sm:$0xff] %v8755_v33  ;;  %6374 = vrot.lane.b32.xlu0 %v8735_v13, %s8468_s15  ;;  %v542_v59 = vsel %vm499_vm0, %v540_v35, %v541_v38  ;;  %v556_v63 = vrot.slane %v8751_v32, 1  ;;  %v558_v15 = vrot.slane %v8761_v39, 1  ;;  %v550_v20 = vrot.slane %v8764_v40, 1  ;;  %v8802_v26 = vld [vmem:[%s8596_s14 + $0x130] sm:$0x3] }
  0x32   : > { %14070 = vst [vmem:[#allocation18_spill] sm:$0xff] %v8783_v58  ;;  %v544_v14 = vsel %vm499_vm0, %v541_v38, %v543_v47  ;;  %v551_v22 = vrot.slane %v8767_v41, 1  ;;  %v8805_v27 = vld [vmem:[%s8596_s14 + $0x168] sm:$0xff]  ;;  %v8809_v28 = vpack.i.bf16 %v549_v46, %v547_v45  ;;  %v553_v35 = vrot.slane %v8773_v52, 1  ;;  %v8815_v47 = vld [vmem:[%s8596_s14 + $0x170] sm:$0xff]  ;;  %s14242_s3 = sld [smem:[#allocation92_spill]] }
  0x33   : > { %6389 = vrot.lane.b32.xlu1 %v8755_v33, %s8468_s15  ;;  %v557_v34 = vsel %vm499_vm0, %v555_v60, %v556_v63  ;;  %v565_v38 = vrot.slane %v8776_v53, 1  ;;  %v8818_v57 = vld [vmem:[%s8596_s14 + $0x178] sm:$0x3]  ;;  %v559_v13 = vsel %vm499_vm0, %v556_v63, %v558_v15  ;;  %v566_v51 = vrot.slane %v8779_v54, 1  ;;  %v8827_v45 = vld [vmem:[%s8596_s14 + $0x160] sm:$0x3] }
  0x34   : > { %14072 = vst [vmem:[#allocation20_spill] sm:$0xff] %v8809_v28  ;;  %14073 = vst [vmem:[#allocation21_spill] sm:$0xff] %v8818_v57  ;;  %v568_v33 = vrot.slane %v8789_v3, 1  ;;  %v8831_v46 = vpack.i.bf16 %v544_v14, %v542_v59  ;;  %v552_v60 = vsel %vm499_vm0, %v550_v20, %v551_v22  ;;  %v560_v19 = vrot.slane %v8792_v4, 1  ;;  %v8836_v53 = vld [vmem:[%s8596_s14 + $0x158] sm:$0xff]  ;;  %s8478_s12 = smov 48  }
  0x35   : > { %6384 = vrot.lane.b32.xlu0 %v8783_v58, %s8468_s15  ;;  %14075 = vst [vmem:[#allocation23_spill] sm:$0xff] %v8836_v53  ;;  %v8838_v52 = vpack.i.bf16 %v559_v13, %v557_v34  ;;  %v554_v63 = vsel %vm499_vm0, %v551_v22, %v553_v35  ;;  %v561_v15 = vrot.slane %v8795_v5, 1  ;;  %v563_v3 = vrot.slane %v8802_v26, 1 }
  0x36   : > { %14074 = vst [vmem:[#allocation22_spill] sm:$0xff] %v8831_v46  ;;  %v567_v59 = vsel %vm499_vm0, %v565_v38, %v566_v51  ;;  %v569_v14 = vsel %vm499_vm0, %v566_v51, %v568_v33  ;;  %v575_v20 = vrot.slane %v8805_v27, 1  ;;  %v576_v58 = vrot.slane %v8815_v47, 1 }
  0x37   : > { %6399 = vrot.lane.b32.xlu1 %v8809_v28, %s8468_s15  ;;  %v578_v13 = vrot.slane %v8818_v57, 1  ;;  %v570_v34 = vrot.slane %v8821_v44, 1  ;;  %v571_v22 = vrot.slane %v8836_v53, 1  ;;  %v8854_v35 = vpack.i.bf16 %v554_v63, %v552_v60 }
  0x38   : > { %v573_v28 = vrot.slane %v8827_v45, 1  ;;  %v8857_v38 = vpack.i.bf16 %v569_v14, %v567_v59  ;;  %v562_v51 = vsel %vm499_vm0, %v560_v19, %v561_v15  ;;  %v564_v33 = vsel %vm499_vm0, %v561_v15, %v563_v3 }
  0x39   : > { %6394 = vrot.lane.b32.xlu0 %v8831_v46, %s8468_s15  ;;  %v577_v57 = vsel %vm499_vm0, %v575_v20, %v576_v58  ;;  %v579_v53 = vsel %vm499_vm0, %v576_v58, %v578_v13  ;;  %v572_v46 = vsel %vm499_vm0, %v570_v34, %v571_v22  ;;  %v586_v60 = vrot.slane %v8634_v17, 2 }
  0x3a   : > { %v587_v63 = vrot.slane %v8637_v18, 2  ;;  %v574_v59 = vsel %vm499_vm0, %v571_v22, %v573_v28  ;;  %v589_v14 = vrot.slane %v8645_v23, 2  ;;  %v581_v19 = vrot.slane %v8611_v6, 2 }
  0x3b   : > { %6409 = vrot.lane.b32.xlu1 %v8838_v52, %s8468_s15  ;;  %v582_v3 = vrot.slane %v8614_v7, 2  ;;  %v584_v15 = vrot.slane %v8617_v8, 2  ;;  %v8875_v58 = vpack.i.bf16 %v564_v33, %v562_v51  ;;  %v596_v20 = vrot.slane %v8622_v11, 2 }
  0x3c   : > { %v597_v13 = vrot.slane %v8625_v12, 2  ;;  %v599_v34 = vrot.slane %v8631_v16, 2  ;;  %v594_v28 = vrot.slane %v8605_v2, 2  ;;  %v8883_v6 = vpack.i.bf16 %v579_v53, %v577_v57 }
  0x3d   : > { %6404 = vrot.lane.b32.xlu0 %v8854_v35, %s8468_s15  ;;  %v8885_v7 = vpack.i.bf16 %v574_v59, %v572_v46  ;;  %v588_v8 = vsel %vm580_vm1, %v586_v60, %v587_v63  ;;  %v590_v23 = vsel %vm580_vm1, %v587_v63, %v589_v14  ;;  %v583_v22 = vsel %vm580_vm1, %v581_v19, %v582_v3 }
  0x3e   : > { %v591_v51 = vrot.slane %v8599_v0, 2  ;;  %v592_v33 = vrot.slane %v8602_v1, 2  ;;  %v585_v2 = vsel %vm580_vm1, %v582_v3, %v584_v15  ;;  %v606_v16 = vrot.slane %v8648_v24, 2 }
  0x3f   : > { %6419 = vrot.lane.b32.xlu1 %v8857_v38, %s8468_s15  ;;  %v607_v57 = vrot.slane %v8651_v25, 2  ;;  %v609_v53 = vrot.slane %v8658_v30, 2  ;;  %v598_v46 = vsel %vm580_vm1, %v596_v20, %v597_v13  ;;  %v600_v60 = vsel %vm580_vm1, %v597_v13, %v599_v34 }
  0x40   : > { %v8902_v63 = vpack.i.bf16 %v590_v23, %v588_v8  ;;  %v6433_v59 = vpack.i.bf16 %v585_v2, %v583_v22  ;;  %v593_v14 = vsel %vm580_vm1, %v591_v51, %v592_v33  ;;  %v595_v19 = vsel %vm580_vm1, %v592_v33, %v594_v28 }
  0x41   : > { %6414 = vrot.lane.b32.xlu0 %v8875_v58, %s8468_s15  ;;  %v8908_v3 = vpack.i.bf16 %v600_v60, %v598_v46  ;;  %v608_v30 = vsel %vm580_vm1, %v606_v16, %v607_v57  ;;  %v610_v15 = vsel %vm580_vm1, %v607_v57, %v609_v53  ;;  %v601_v20 = vrot.slane %v8661_v31, 2 }
  0x42   : > { %v602_v13 = vrot.slane %v8669_v36, 2  ;;  %v604_v34 = vrot.slane %v8672_v37, 2  ;;  %v616_v8 = vrot.slane %v8679_v42, 2  ;;  %v617_v23 = vrot.slane %v8682_v43, 2 }
  0x43   : > { %6429 = vrot.lane.b32.xlu1 %v8883_v6, %s8468_s15  ;;  %14076 = vst [vmem:[#allocation24_spill] sm:$0xff] %v8908_v3  ;;  %v619_v28 = vrot.slane %v8691_v48, 2  ;;  %v611_v22 = vrot.slane %v8694_v49, 2  ;;  %v612_v51 = vrot.slane %v8697_v50, 2  ;;  %v614_v33 = vrot.slane %v8705_v55, 2 }
  0x44   : > { %v8924_v2 = vpack.i.bf16 %v595_v19, %v593_v14  ;;  %v8926_v37 = vpack.i.bf16 %v610_v15, %v608_v30  ;;  %v603_v16 = vsel %vm580_vm1, %v601_v20, %v602_v13  ;;  %v605_v57 = vsel %vm580_vm1, %v602_v13, %v604_v34 }
  0x45   : > { %6424 = vrot.lane.b32.xlu0 %v8885_v7, %s8468_s15  ;;  %v618_v53 = vsel %vm580_vm1, %v616_v8, %v617_v23  ;;  %v626_v48 = vrot.slane %v8708_v56, 2  ;;  %v620_v46 = vsel %vm580_vm1, %v617_v23, %v619_v28  ;;  %v613_v55 = vsel %vm580_vm1, %v611_v22, %v612_v51  ;;  %v14081_v22 = vld [vmem:[#allocation16_spill] sm:$0xff]  ;;  %s14045_s15 = smov 64  }
  0x46   : > { %14077 = vst [vmem:[#allocation25_spill] sm:$0xff] %v8926_v37  ;;  %v615_v60 = vsel %vm580_vm1, %v612_v51, %v614_v33  ;;  %v629_v14 = vrot.slane %v8721_v62, 2  ;;  %v621_v19 = vrot.slane %v8728_v9, 2  ;;  %v622_v30 = vrot.slane %v8731_v10, 2 }
  0x47   : > { %6439 = vrot.lane.b32.xlu1 %v8902_v63, %s8469_s16  ;;  %v624_v15 = vrot.slane %v8741_v21, 2  ;;  %v8944_v20 = vpack.i.bf16 %v605_v57, %v603_v16  ;;  %v636_v13 = vrot.slane %v8748_v29, 2  ;;  %v637_v34 = vrot.slane %v8751_v32, 2 }
  0x48   : > { %v639_v8 = vrot.slane %v8761_v39, 2  ;;  %v8949_v23 = vpack.i.bf16 %v620_v46, %v618_v53  ;;  %v8953_v62 = vpack.i.bf16 %v615_v60, %v613_v55  ;;  %v631_v21 = vrot.slane %v8764_v40, 2  ;;  %v14082_v55 = vld [vmem:[#allocation17_spill] sm:$0xff] }
  0x49   : > { %6434 = vrot.lane.b32.xlu0 %v6433_v59, %s8469_s16  ;;  %v627_v59 = vrot.slane %v8718_v61, 2  ;;  %14078 = vst [vmem:[#allocation26_spill] sm:$0xff] %v8944_v20  ;;  %v632_v28 = vrot.slane %v8767_v41, 2  ;;  %v634_v51 = vrot.slane %v14081_v22, 2  ;;  %v623_v57 = vsel %vm580_vm1, %v621_v19, %v622_v30  ;;  %v14083_v22 = vld [vmem:[#allocation19_spill] sm:$0xff] }
  0x4a   : > { %14079 = vst [vmem:[#allocation27_spill] sm:$0xff] %v8949_v23  ;;  %14080 = vst [vmem:[#allocation28_spill] sm:$0xff] %v8953_v62  ;;  %v625_v39 = vsel %vm580_vm1, %v622_v30, %v624_v15  ;;  %v638_v53 = vsel %vm580_vm1, %v636_v13, %v637_v34  ;;  %v640_v46 = vsel %vm580_vm1, %v637_v34, %v639_v8  ;;  %v646_v60 = vrot.slane %v14082_v55, 2 }
  0x4b   : > { %6449 = vrot.lane.b32.xlu1 %v8908_v3, %s8469_s16  ;;  %v628_v33 = vsel %vm580_vm1, %v626_v48, %v627_v59  ;;  %v630_v16 = vsel %vm580_vm1, %v627_v59, %v629_v14  ;;  %v649_v48 = vrot.slane %v14083_v22, 2  ;;  %v633_v14 = vsel %vm580_vm1, %v631_v21, %v632_v28  ;;  %v446_v22 = vld [vmem:[%s8596_s14 + $0x188] sm:$0xff] }
  0x4c   : > { %v8971_v59 = vpack.i.bf16 %v630_v16, %v628_v33  ;;  %v635_v19 = vsel %vm580_vm1, %v632_v28, %v634_v51  ;;  %v8975_v30 = vpack.i.bf16 %v625_v39, %v623_v57  ;;  %v8977_v15 = vpack.i.bf16 %v640_v46, %v638_v53  ;;  %v447_v51 = vld [vmem:[%s8596_s14 + $0x190] sm:$0x3]  ;;  %v14086_v39 = vld [vmem:[#allocation21_spill] sm:$0xff]  ;;  %v445_v46 = vld [vmem:[%s8596_s14 + $0x180] sm:$0xff] }
  0x4d   : > { %6444 = vrot.lane.b32.xlu0 %v8924_v2, %s8469_s16  ;;  %v641_v34 = vrot.slane %v8792_v4, 2  ;;  %v642_v8 = vrot.slane %v8795_v5, 2  ;;  %v644_v33 = vrot.slane %v8802_v26, 2  ;;  %v8985_v21 = vpack.i.bf16 %v635_v19, %v633_v14  ;;  %v14087_v14 = vld [vmem:[#allocation23_spill] sm:$0xff] }
  0x4e   : > { %14084 = vst [vmem:[#allocation16_spill] sm:$0xff] %v8971_v59  ;;  %14085 = vst [vmem:[#allocation17_spill] sm:$0xff] %v8975_v30  ;;  %v656_v16 = vrot.slane %v8805_v27, 2  ;;  %v657_v57 = vrot.slane %v8815_v47, 2  ;;  %v659_v53 = vrot.slane %v14086_v39, 2  ;;  %v652_v19 = vrot.slane %v14087_v14, 2 }
  0x4f   : > { %6459 = vrot.lane.b32.xlu1 %v8926_v37, %s8469_s16  ;;  %v647_v37 = vrot.slane %v8779_v54, 2  ;;  %v643_v26 = vsel %vm580_vm1, %v641_v34, %v642_v8 }
  0x50   : > { %v660_v34 = vsel %vm580_vm1, %v657_v57, %v659_v53  ;;  %v672_v53 = vrot.slane %v447_v51, 2 }
  0x51   : > { %6454 = vrot.lane.b32.xlu0 %v8944_v20, %s8469_s16  ;;  %v648_v13 = vsel %vm580_vm1, %v646_v60, %v647_v37  ;;  %v650_v28 = vsel %vm580_vm1, %v647_v37, %v649_v48  ;;  %v645_v60 = vsel %vm580_vm1, %v642_v8, %v644_v33  ;;  %v651_v37 = vrot.slane %v8821_v44, 2 }
  0x52   : > { %v664_v48 = vrot.slane %v445_v46, 1  ;;  %v9005_v39 = vpack.i.bf16 %v650_v28, %v648_v13  ;;  %v9013_v3 = vpack.i.bf16 %v645_v60, %v643_v26  ;;  %v9046_v60 = vpack.i.bf16 %v8669_v36, %v8661_v31 }
  0x53   : > { %6469 = vrot.lane.b32.xlu1 %v8949_v23, %s8469_s16  ;;  %v665_v23 = vrot.slane %v446_v22, 1  ;;  %v653_v20 = vsel %vm580_vm1, %v651_v37, %v652_v19  ;;  %v9090_v31 = vpack.i.bf16 %v8751_v32, %v8748_v29  ;;  %v9095_v36 = vpack.i.bf16 %v14087_v14, %v8821_v44  ;;  %v14088_v44 = vld [vmem:[#allocation10_spill] sm:$0xff]  ;;  %v14095_v29 = vld [vmem:[#allocation15_spill] sm:$0xff]  ;;  %v14096_v32 = vld [vmem:[#allocation20_spill] sm:$0xff] }
  0x55   : > { %6464 = vrot.lane.b32.xlu0 %v8953_v62, %s8469_s16  ;;  %v667_v62 = vrot.slane %v447_v51, 1  ;;  %v666_v8 = vsel %vm499_vm0, %v664_v48, %v665_v23  ;;  %v9041_v51 = vpack.i.bf16 %v446_v22, %v445_v46  ;;  %v14098_v48 = vld [vmem:[#allocation24_spill] sm:$0xff] }
  0x57   : > { %6479 = vrot.lane.b32.xlu1 %v8971_v59, %s8469_s16  ;;  %v654_v59 = vrot.slane %v8827_v45, 2  ;;  %v668_v33 = vsel %vm499_vm0, %v665_v23, %v667_v62 }
  0x58   : > { %v9015_v45 = vpack.i.bf16 %v668_v33, %v666_v8  ;;  %v14100_v8 = vld [vmem:[#allocation25_spill] sm:$0xff] }
  0x59   : > { %6474 = vrot.lane.b32.xlu0 %v8975_v30, %s8469_s16  ;;  %v658_v30 = vsel %vm580_vm1, %v656_v16, %v657_v57  ;;  %v655_v13 = vsel %vm580_vm1, %v652_v19, %v654_v59  ;;  %v669_v16 = vrot.slane %v445_v46, 2  ;;  %v670_v57 = vrot.slane %v446_v22, 2  ;;  %v14097_v22 = vld [vmem:[#allocation26_spill] sm:$0xff] }
  0x5a   : > { %v9021_v28 = vpack.i.bf16 %v660_v34, %v658_v30  ;;  %v9025_v23 = vpack.i.bf16 %v655_v13, %v653_v20  ;;  %v9033_v59 = vpack.i.bf16 %v8602_v1, %v8599_v0  ;;  %v6513_v20 = vpack.i.bf16 %v8637_v18, %v8634_v17  ;;  %v14099_v34 = vld [vmem:[#allocation28_spill] sm:$0xff] }
  0x5b   : > { %6489 = vrot.lane.b32.xlu1 %v8977_v15, %s8469_s16  ;;  %v671_v62 = vsel %vm580_vm1, %v669_v16, %v670_v57  ;;  %v673_v26 = vsel %vm580_vm1, %v670_v57, %v672_v53  ;;  %v9050_v0 = vpack.i.bf16 %v8625_v12, %v8622_v11  ;;  %v9055_v1 = vpack.i.bf16 %v8697_v50, %v8694_v49  ;;  %v14089_v49 = vld [vmem:[#allocation12_spill] sm:$0xff]  ;;  %v14090_v50 = vld [vmem:[#allocation14_spill] sm:$0xff]  ;;  %v14103_v16 = vld [vmem:[#allocation27_spill] sm:$0xff] }
  0x5c   : > { %v9035_v30 = vpack.i.bf16 %v673_v26, %v671_v62  ;;  %v9060_v17 = vpack.i.bf16 %v8651_v25, %v8648_v24  ;;  %v9065_v18 = vpack.i.bf16 %v8731_v10, %v8728_v9  ;;  %v9070_v11 = vpack.i.bf16 %v8682_v43, %v8679_v42  ;;  %v14093_v9 = vld [vmem:[#allocation13_spill] sm:$0xff]  ;;  %v14094_v10 = vld [vmem:[#allocation22_spill] sm:$0xff]  ;;  %v14106_v62 = vld [vmem:[#allocation16_spill] sm:$0xff] }
  0x5d   : > { %6484 = vrot.lane.b32.xlu0 %v8985_v21, %s8469_s16  ;;  %v9075_v12 = vpack.i.bf16 %v8767_v41, %v8764_v40  ;;  %v9080_v24 = vpack.i.bf16 %v8718_v61, %v8708_v56  ;;  %v9085_v25 = vpack.i.bf16 %v8795_v5, %v8792_v4  ;;  %v9100_v42 = vpack.i.bf16 %v8779_v54, %v14082_v55  ;;  %v14091_v56 = vld [vmem:[#allocation11_spill] sm:$0xff]  ;;  %v14092_v61 = vld [vmem:[#allocation18_spill] sm:$0xff] }
  0x5e   : > { %v9106_v43 = vpack.i.bf16 %v8815_v47, %v8805_v27 }
  0x5f   : > { %6499 = vrot.lane.b32.xlu1 %v9005_v39, %s8469_s16 }
  0x61   : > { %6494 = vrot.lane.b32.xlu0 %v9013_v3, %s8469_s16 }
  0x63   : > { %6509 = vrot.lane.b32.xlu1 %v9021_v28, %s8469_s16 }
  0x65   : > { %6504 = vrot.lane.b32.xlu0 %v9025_v23, %s8469_s16 }
  0x67   : > { %6519 = vrot.lane.b32.xlu1 %v9033_v59, %s8470_s22 }
  0x69   : > { %6514 = vrot.lane.b32.xlu0 %v6513_v20, %s8470_s22 }
  0x6b   : > { %6529 = vrot.lane.b32.xlu1 %v9046_v60, %s8470_s22 }
  0x6d   : > { %6524 = vrot.lane.b32.xlu0 %v9050_v0, %s8470_s22 }
  0x6f   : > { %6539 = vrot.lane.b32.xlu1 %v9055_v1, %s8470_s22 }
  0x71   : > { %6534 = vrot.lane.b32.xlu0 %v9060_v17, %s8470_s22 }
  0x73   : > { %6549 = vrot.lane.b32.xlu1 %v9065_v18, %s8470_s22 }
  0x75   : > { %6544 = vrot.lane.b32.xlu0 %v9070_v11, %s8470_s22 }
  0x77   : > { %6559 = vrot.lane.b32.xlu1 %v9075_v12, %s8470_s22 }
  0x79   : > { %6554 = vrot.lane.b32.xlu0 %v9080_v24, %s8470_s22 }
  0x7b   : > { %6569 = vrot.lane.b32.xlu1 %v9085_v25, %s8470_s22 }
  0x7d   : > { %6564 = vrot.lane.b32.xlu0 %v9090_v31, %s8470_s22 }
  0x7f   : > { %6579 = vrot.lane.b32.xlu1 %v9095_v36, %s8470_s22 }
  0x81   : > { %6574 = vrot.lane.b32.xlu0 %v9100_v42, %s8470_s22 }
  0x83   : > { %6589 = vrot.lane.b32.xlu1 %v9041_v51, %s8470_s22 }
  0x85   : > { %6584 = vrot.lane.b32.xlu0 %v9106_v43, %s8470_s22  ;;  %s14438_s22 = smov 56  }
  0x87   : > { %6599 = vrot.lane.b32.xlu1 %v14088_v44, %s8471_s24 }
  0x89   : > { %6594 = vrot.lane.b32.xlu0 %v14089_v49, %s8471_s24 }
  0x8b   : > { %6609 = vrot.lane.b32.xlu1 %v14090_v50, %s8471_s24 }
  0x8d   : > { %6604 = vrot.lane.b32.xlu0 %v14091_v56, %s8471_s24 }
  0x8f   : > { %6619 = vrot.lane.b32.xlu1 %v14092_v61, %s8471_s24 }
  0x91   : > { %6614 = vrot.lane.b32.xlu0 %v14093_v9, %s8471_s24 }
  0x93   : > { %6629 = vrot.lane.b32.xlu1 %v14094_v10, %s8471_s24 }
  0x95   : > { %6624 = vrot.lane.b32.xlu0 %v14095_v29, %s8471_s24 }
  0x97   : > { %6639 = vrot.lane.b32.xlu1 %v8854_v35, %s8471_s24 }
  0x99   : > { %6634 = vrot.lane.b32.xlu0 %v14096_v32, %s8471_s24  ;;  %v9130_v40 = vpop.permute.xlu1 %6364 }
  0x9b   : > { %v9132_v41 = vpop.permute.xlu0 %6354  ;;  %6649 = vrot.lane.b32.xlu1 %v8875_v58, %s8471_s24 }
  0x9d   : > { %6644 = vrot.lane.b32.xlu0 %v8838_v52, %s8471_s24  ;;  %v9138_v54 = vpop.permute.xlu1 %6369 }
  0x9f   : > { %v9140_v4 = vpop.permute.xlu0 %6359  ;;  %6659 = vrot.lane.b32.xlu1 %v8885_v7, %s8471_s24 }
  0xa1   : > { %6654 = vrot.lane.b32.xlu0 %v8857_v38, %s8471_s24  ;;  %v9146_v5 = vpop.permute.xlu1 %6379 }
  0xa3   : > { %v9148_v27 = vpop.permute.xlu0 %6374  ;;  %6669 = vrot.lane.b32.xlu1 %v9015_v45, %s8471_s24 }
  0xa5   : > { %6664 = vrot.lane.b32.xlu0 %v8883_v6, %s8471_s24  ;;  %v9154_v47 = vpop.permute.xlu1 %6389 }
  0xa7   : > { %v9156_v55 = vpop.permute.xlu0 %6384  ;;  %6679 = vrot.lane.b32.xlu1 %v8924_v2, %s8472_s25 }
  0xa9   : > { %6674 = vrot.lane.b32.xlu0 %v8902_v63, %s8472_s25  ;;  %v9160_v46 = vpop.permute.xlu1 %6399  ;;  %v14102_v63 = vld [vmem:[#allocation17_spill] sm:$0xff] }
  0xab   : > { %v9162_v37 = vpop.permute.xlu0 %6394  ;;  %6689 = vrot.lane.b32.xlu1 %v14097_v22, %s8472_s25 }
  0xad   : > { %6684 = vrot.lane.b32.xlu0 %v14098_v48, %s8472_s25  ;;  %v9166_v14 = vpop.permute.xlu1 %6409 }
  0xaf   : > { %v9168_v19 = vpop.permute.xlu0 %6404  ;;  %6699 = vrot.lane.b32.xlu1 %v14099_v34, %s8472_s25 }
  0xb1   : > { %6694 = vrot.lane.b32.xlu0 %v14100_v8, %s8472_s25  ;;  %v9172_v33 = vpop.permute.xlu1 %6419 }
  0xb3   : > { %v9174_v13 = vpop.permute.xlu0 %6414  ;;  %6709 = vrot.lane.b32.xlu1 %v14102_v63, %s8472_s25 }
  0xb4   : > { %14101 = vst [vmem:[#allocation19_spill] sm:$0xff] %v9174_v13 }
  0xb5   : > { %6704 = vrot.lane.b32.xlu0 %v14103_v16, %s8472_s25  ;;  %v9178_v57 = vpop.permute.xlu1 %6429 }
  0xb6   : > { %14104 = vst [vmem:[#allocation21_spill] sm:$0xff] %v9178_v57 }
  0xb7   : > { %v9180_v53 = vpop.permute.xlu0 %6424  ;;  %6719 = vrot.lane.b32.xlu1 %v8985_v21, %s8472_s25 }
  0xb8   : > { %14105 = vst [vmem:[#allocation23_spill] sm:$0xff] %v9180_v53 }
  0xb9   : > { %6714 = vrot.lane.b32.xlu0 %v14106_v62, %s8472_s25  ;;  %v9184_v26 = vpop.permute.xlu1 %6439 }
  0xba   : > { %14107 = vst [vmem:[#allocation10_spill] sm:$0xff] %v9184_v26 }
  0xbb   : > { %v9186_v20 = vpop.permute.xlu0 %6434  ;;  %6729 = vrot.lane.b32.xlu1 %v9013_v3, %s8472_s25 }
  0xbc   : > { %14108 = vst [vmem:[#allocation12_spill] sm:$0xff] %v9186_v20 }
  0xbd   : > { %6724 = vrot.lane.b32.xlu0 %v8977_v15, %s8472_s25  ;;  %v9190_v49 = vpop.permute.xlu1 %6449 }
  0xbf   : > { %v9192_v13 = vpop.permute.xlu0 %6444  ;;  %6739 = vrot.lane.b32.xlu1 %v9025_v23, %s8472_s25 }
  0xc0   : > { %14109 = vst [vmem:[#allocation14_spill] sm:$0xff] %v9192_v13 }
  0xc1   : > { %6734 = vrot.lane.b32.xlu0 %v9005_v39, %s8472_s25  ;;  %v9196_v53 = vpop.permute.xlu1 %6459 }
  0xc2   : > { %14110 = vst [vmem:[#allocation11_spill] sm:$0xff] %v9196_v53 }
  0xc3   : > { %v9198_v57 = vpop.permute.xlu0 %6454  ;;  %6749 = vrot.lane.b32.xlu1 %v9035_v30, %s8472_s25 }
  0xc5   : > { %6744 = vrot.lane.b32.xlu0 %v9021_v28, %s8472_s25  ;;  %v9202_v20 = vpop.permute.xlu1 %6469  ;;  %s14047_s25 = smov 40  }
  0xc6   : > { %14111 = vst [vmem:[#allocation18_spill] sm:$0xff] %v9202_v20 }
  0xc7   : > { %v9204_v26 = vpop.permute.xlu0 %6464  ;;  %6759 = vrot.lane.b32.xlu1 %v9050_v0, %s14053_s29 }
  0xc8   : > { %14112 = vst [vmem:[#allocation13_spill] sm:$0xff] %v9204_v26 }
  0xc9   : > { %6754 = vrot.lane.b32.xlu0 %v9033_v59, %s14053_s29  ;;  %v9210_v13 = vpop.permute.xlu1 %6479 }
  0xcb   : > { %v9212_v53 = vpop.permute.xlu0 %6474  ;;  %6769 = vrot.lane.b32.xlu1 %v9060_v17, %s14053_s29 }
  0xcd   : > { %6764 = vrot.lane.b32.xlu0 %v9046_v60, %s14053_s29  ;;  %v9218_v20 = vpop.permute.xlu1 %6489 }
  0xcf   : > { %v9220_v26 = vpop.permute.xlu0 %6484  ;;  %6779 = vrot.lane.b32.xlu1 %v9070_v11, %s14053_s29 }
  0xd1   : > { %6774 = vrot.lane.b32.xlu0 %v9055_v1, %s14053_s29  ;;  %v9226_v59 = vpop.permute.xlu1 %6499 }
  0xd3   : > { %v9228_v0 = vpop.permute.xlu0 %6494  ;;  %6789 = vrot.lane.b32.xlu1 %v9080_v24, %s14053_s29  ;;  %v9249_v24 = vld [vmem:[%s8596_s14 + $0x198] sm:$0xff] }
  0xd5   : > { %6784 = vrot.lane.b32.xlu0 %v9065_v18, %s14053_s29  ;;  %v9234_v60 = vpop.permute.xlu1 %6509  ;;  %v9252_v18 = vld [vmem:[%s8596_s14 + $0x1a0] sm:$0xff] }
  0xd7   : > { %v9236_v17 = vpop.permute.xlu0 %6504  ;;  %6799 = vrot.lane.b32.xlu1 %v9090_v31, %s14053_s29 }
  0xd8   : > { %14113 = vst [vmem:[#allocation22_spill] sm:$0xff] %v9236_v17 }
  0xd9   : > { %6794 = vrot.lane.b32.xlu0 %v9075_v12, %s14053_s29  ;;  %v9242_v1 = vpop.permute.xlu1 %6519  ;;  %v6828_v12 = vpack.i.bf16 %v9252_v18, %v9249_v24 }
  0xdb   : > { %v9244_v11 = vpop.permute.xlu0 %6514  ;;  %6809 = vrot.lane.b32.xlu1 %v9100_v42, %s14053_s29 }
  0xdc   : > { %14114 = vst [vmem:[#allocation15_spill] sm:$0xff] %v9244_v11 }
  0xdd   : > { %6804 = vrot.lane.b32.xlu0 %v9085_v25, %s14053_s29  ;;  %v9256_v17 = vpop.permute.xlu1 %6529 }
  0xdf   : > { %v9258_v31 = vpop.permute.xlu0 %6524  ;;  %6819 = vrot.lane.b32.xlu1 %v9106_v43, %s14053_s29 }
  0xe0   : > { %14115 = vst [vmem:[#allocation20_spill] sm:$0xff] %v9258_v31 }
  0xe1   : > { %6814 = vrot.lane.b32.xlu0 %v9095_v36, %s14053_s29  ;;  %v9266_v42 = vpop.permute.xlu1 %6539 }
  0xe3   : > { %v9268_v11 = vpop.permute.xlu0 %6534  ;;  %6829 = vrot.lane.b32.xlu1 %v6828_v12, %s14053_s29 }
  0xe5   : > { %6824 = vrot.lane.b32.xlu0 %v9041_v51, %s14053_s29  ;;  %v9273_v25 = vpop.permute.xlu1 %6549 }
  0xe7   : > { %v9275_v31 = vpop.permute.xlu0 %6544  ;;  %6839 = vrot.lane.b32.xlu1 %v14091_v56, %s8474_s30 }
  0xe9   : > { %6834 = vrot.lane.b32.xlu0 %v14088_v44, %s8474_s30  ;;  %v9281_v36 = vpop.permute.xlu1 %6559 }
  0xea   : > { %14116 = vst [vmem:[#allocation26_spill] sm:$0xff] %v9281_v36 }
  0xeb   : > { %v9283_v43 = vpop.permute.xlu0 %6554  ;;  %6849 = vrot.lane.b32.xlu1 %v14093_v9, %s8474_s30 }
  0xec   : > { %14117 = vst [vmem:[#allocation24_spill] sm:$0xff] %v9283_v43 }
  0xed   : > { %6844 = vrot.lane.b32.xlu0 %v14090_v50, %s8474_s30  ;;  %v9289_v51 = vpop.permute.xlu1 %6569  ;;  %v8273_v50 = vld [vmem:[%s14122_s1 + $0x10] ss:$0 sps:$4 sm:$0x33]  }
  0xee   : > { %14118 = vst [vmem:[#allocation28_spill] sm:$0xff] %v9289_v51  ;;  %6291 = vmatprep.subr.msk.bf16.mxu0 %vm1804_vm2, %v8273_v50  ;;  %6292 = vmatprep.subr.msk.bf16.mxu1 %vm1804_vm2, %v8273_v50  ;;  %v14158_v51 = vld [vmem:[#allocation14_spill] sm:$0xff] }
  0xef   : > { %v9291_v12 = vpop.permute.xlu0 %6564  ;;  %6859 = vrot.lane.b32.xlu1 %v14095_v29, %s8474_s30  ;;  %v9311_v29 = vld [vmem:[%s8596_s14 + $0x1a8] sm:$0x3]  ;;  %v6446_v43 = vunpack.i.l.bf16 %v14158_v51 }
  0xf0   : > { %14119 = vst [vmem:[#allocation25_spill] sm:$0xff] %v9291_v12  ;;  %v680_v12 = vrot.slane %v9311_v29, 1 }
  0xf1   : > { %6854 = vrot.lane.b32.xlu0 %v14092_v61, %s8474_s30  ;;  %v9297_v44 = vpop.permute.xlu1 %6579 }
  0xf2   : > { %14120 = vst [vmem:[#allocation17_spill] sm:$0xff] %v9297_v44  ;;  %v677_v44 = vrot.slane %v9249_v24, 1 }
  0xf3   : > { %v9299_v56 = vpop.permute.xlu0 %6574  ;;  %6869 = vrot.lane.b32.xlu1 %v14096_v32, %s8474_s30  ;;  %v1806_v32 = vsel %vm1804_vm2, %v8273_v50, 0  ;;  %vm3417_vm2 = vcmask 457728  }
  0xf4   : > { %14121 = vst [vmem:[#allocation27_spill] sm:$0xff] %v9299_v56  ;;  %v678_v56 = vrot.slane %v9252_v18, 1  ;;  %6164 = vmatpush3.bf16.msra.mxu0 %v1806_v32  ;;  %6288 = vmatpush3.bf16.msra.mxu1 %v1806_v32  ;;  %v8275_v32 = vld [vmem:[%s14122_s1] sm:$0xff]  }
  0xf5   : > { %6864 = vrot.lane.b32.xlu0 %v14094_v10, %s8474_s30  ;;  %v9308_v9 = vpop.permute.xlu1 %6589  ;;  %v8274_v10 = vld [vmem:[%s14122_s1 + $0x8] sm:$0xff]  }
  0xf6   : > { %14123 = vst [vmem:[#allocation16_spill] sm:$0xff] %v9308_v9  ;;  %6165 = vmatprep.subr.bf16.mxu0 %v8274_v10  ;;  %6286 = vmatprep.subr.bf16.mxu1 %v8274_v10  ;;  %v679_v50 = vsel %vm499_vm0, %v677_v44, %v678_v56 }
  0xf7   : > { %v9313_v61 = vpop.permute.xlu0 %6584  ;;  %6879 = vrot.lane.b32.xlu1 %v8838_v52, %s8474_s30 }
  0xf8   : > { %14124 = vst [vmem:[#allocation29_spill] sm:$0xff] %v9313_v61  ;;  %v681_v61 = vsel %vm499_vm0, %v678_v56, %v680_v12  ;;  %6166 = vmatpush3.bf16.msra.mxu0 %v8274_v10  ;;  %6289 = vmatpush3.bf16.msra.mxu1 %v8274_v10  ;;  %v685_v10 = vrot.slane %v9311_v29, 2  ;;  %v6357_v29 = vunpack.i.h.bf16 %v9132_v41 }
  0xf9   : > { %6874 = vrot.lane.b32.xlu0 %v8854_v35, %s8474_s30  ;;  %v9325_v9 = vpop.permute.xlu1 %6599  ;;  %6167 = vmatprep.subr.bf16.mxu0 %v8275_v32 }
  0xfa   : > { %14125 = vst [vmem:[#allocation30_spill] sm:$0xff] %v9325_v9  ;;  %6287 = vmatprep.subr.bf16.mxu1 %v8275_v32  ;;  %v8315_v9 = vld [vmem:[%s8596_s14 + $0x168] sm:$0xff] }
  0xfb   : > { %v9327_v52 = vpop.permute.xlu0 %6594  ;;  %6889 = vrot.lane.b32.xlu1 %v8857_v38, %s8474_s30  ;;  %v6908_v38 = vpack.i.bf16 %v681_v61, %v679_v50 }
  0xfc   : > { %14126 = vst [vmem:[#allocation31_spill] sm:$0xff] %v9327_v52  ;;  %6168 = vmatpush3.bf16.msra.mxu0 %v8275_v32  ;;  %6290 = vmatpush3.bf16.msra.mxu1 %v8275_v32 }
  0xfd   : > { %6884 = vrot.lane.b32.xlu0 %v8875_v58, %s8474_s30  ;;  %v9338_v35 = vpop.permute.xlu1 %6609 }
  0xfe   : > { %14127 = vst [vmem:[#allocation32_spill] sm:$0xff] %v9338_v35 }
  0xff   : > { %v9340_v52 = vpop.permute.xlu0 %6604  ;;  %6899 = vrot.lane.b32.xlu1 %v8883_v6, %s8474_s30 }
 0x100   : > { %14128 = vst [vmem:[#allocation33_spill] sm:$0xff] %v9340_v52 }
 0x101   : > { %6894 = vrot.lane.b32.xlu0 %v8885_v7, %s8474_s30  ;;  %v9346_v12 = vpop.permute.xlu1 %6619 }
 0x102   : > { %14129 = vst [vmem:[#allocation34_spill] sm:$0xff] %v9346_v12  ;;  %v8313_v12 = vld [vmem:[%s8596_s14 + $0x120] sm:$0xff] }
 0x103   : > { %v9348_v44 = vpop.permute.xlu0 %6614  ;;  %6909 = vrot.lane.b32.xlu1 %v6908_v38, %s8474_s30  ;;  %v6372_v38 = vunpack.i.h.bf16 %v9138_v54 }
 0x104   : > { %14130 = vst [vmem:[#allocation35_spill] sm:$0xff] %v9348_v44 }
 0x105   : > { %6904 = vrot.lane.b32.xlu0 %v9015_v45, %s8474_s30  ;;  %v9353_v58 = vpop.permute.xlu1 %6629  ;;  %s14439_s30 = smov 24  }
 0x106   : > { %14131 = vst [vmem:[#allocation36_spill] sm:$0xff] %v9353_v58  ;;  %v8311_v58 = vld [vmem:[%s8596_s14 + $0x138] sm:$0xff] }
 0x107   : > { %v9355_v56 = vpop.permute.xlu0 %6624  ;;  %6919 = vrot.lane.b32.xlu1 %v14098_v48, %s14051_s13 }
 0x108   : > { %14132 = vst [vmem:[#allocation37_spill] sm:$0xff] %v9355_v56 }
 0x109   : > { %6914 = vrot.lane.b32.xlu0 %v8924_v2, %s14051_s13  ;;  %v9361_v6 = vpop.permute.xlu1 %6639 }
 0x10a   : > { %14133 = vst [vmem:[#allocation38_spill] sm:$0xff] %v9361_v6  ;;  %v8309_v6 = vld [vmem:[%s8596_s14 + $0xf0] sm:$0xff] }
 0x10b   : > { %v9363_v7 = vpop.permute.xlu0 %6634  ;;  %6929 = vrot.lane.b32.xlu1 %v14100_v8, %s14051_s13 }
 0x10c   : > { %14134 = vst [vmem:[#allocation39_spill] sm:$0xff] %v9363_v7 }
 0x10d   : > { %6924 = vrot.lane.b32.xlu0 %v14097_v22, %s14051_s13  ;;  %v9369_v45 = vpop.permute.xlu1 %6649 }
 0x10e   : > { %14135 = vst [vmem:[#allocation40_spill] sm:$0xff] %v9369_v45  ;;  %v8306_v45 = vld [vmem:[%s8596_s14 + $0x110] sm:$0xff] }
 0x10f   : > { %v9371_v61 = vpop.permute.xlu0 %6644  ;;  %6939 = vrot.lane.b32.xlu1 %v14103_v16, %s14051_s13  ;;  %v683_v16 = vrot.slane %v9252_v18, 2  ;;  %v6367_v18 = vunpack.i.h.bf16 %v9130_v40 }
 0x110   : > { %14136 = vst [vmem:[#allocation41_spill] sm:$0xff] %v9371_v61 }
 0x111   : > { %6934 = vrot.lane.b32.xlu0 %v14099_v34, %s14051_s13  ;;  %v9377_v2 = vpop.permute.xlu1 %6659  ;;  %v682_v34 = vrot.slane %v9249_v24, 2 }
 0x112   : > { %14137 = vst [vmem:[#allocation42_spill] sm:$0xff] %v9377_v2 }
 0x113   : > { %v9379_v48 = vpop.permute.xlu0 %6654  ;;  %6949 = vrot.lane.b32.xlu1 %v14106_v62, %s14051_s13 }
 0x114   : > { %14138 = vst [vmem:[#allocation43_spill] sm:$0xff] %v9379_v48  ;;  %v8302_v48 = vld [vmem:[%s8596_s14 + $0xe0] sm:$0xff] }
 0x115   : > { %6944 = vrot.lane.b32.xlu0 %v14102_v63, %s14051_s13  ;;  %v9385_v22 = vpop.permute.xlu1 %6669  ;;  %v684_v63 = vsel %vm580_vm1, %v682_v34, %v683_v16  ;;  %v6362_v34 = vunpack.i.h.bf16 %v9140_v4 }
 0x116   : > { %14139 = vst [vmem:[#allocation44_spill] sm:$0xff] %v9385_v22  ;;  %v6376_v22 = vunpack.i.l.bf16 %v9148_v27 }
 0x117   : > { %v9387_v8 = vpop.permute.xlu0 %6664  ;;  %6959 = vrot.lane.b32.xlu1 %v8977_v15, %s14051_s13  ;;  %v686_v15 = vsel %vm580_vm1, %v683_v16, %v685_v10  ;;  %v6371_v16 = vunpack.i.l.bf16 %v9138_v54  ;;  %v6381_v54 = vunpack.i.l.bf16 %v9146_v5 }
 0x118   : > { %14140 = vst [vmem:[#allocation45_spill] sm:$0xff] %v9387_v8 }
 0x119   : > { %6954 = vrot.lane.b32.xlu0 %v8985_v21, %s14051_s13  ;;  %v9396_v62 = vpop.permute.xlu1 %6679  ;;  %v6366_v21 = vunpack.i.l.bf16 %v9130_v40  ;;  %v6361_v40 = vunpack.i.l.bf16 %v9140_v4  ;;  %v8288_v4 = vld [vmem:[%s8596_s14 + $0x8] sm:$0xff] }
 0x11a   : > { %14141 = vst [vmem:[#allocation46_spill] sm:$0xff] %v9396_v62  ;;  %v8300_v62 = vld [vmem:[%s8596_s14 + $0x98] sm:$0xff] }
 0x11b   : > { %v9398_v50 = vpop.permute.xlu0 %6674  ;;  %6969 = vrot.lane.b32.xlu1 %v9005_v39, %s14051_s13  ;;  %v6988_v39 = vpack.i.bf16 %v686_v15, %v684_v63  ;;  %v8287_v63 = vld [vmem:[%s8596_s14 + $0x30] sm:$0xff] }
 0x11c   : > { %14142 = vst [vmem:[#allocation47_spill] sm:$0xff] %v9398_v50  ;;  %v9432_v15 = vsel %vm1455_vm3, %v8287_v63, %v6366_v21  ;;  %v8290_v21 = vld [vmem:[%s8596_s14 + $0x50] sm:$0xff]  ;;  %v8297_v50 = vld [vmem:[%s8596_s14 + $0x60] sm:$0xff] }
 0x11d   : > { %6964 = vrot.lane.b32.xlu0 %v9013_v3, %s14051_s13  ;;  %v9406_v24 = vpop.permute.xlu1 %6689  ;;  %v6356_v3 = vunpack.i.l.bf16 %v9132_v41  ;;  %v6382_v41 = vunpack.i.h.bf16 %v9146_v5  ;;  %v8289_v5 = vld [vmem:[%s8596_s14] sm:$0xff]  ;;  %v9449_v63 = vsel %vm1455_vm3, %v8290_v21, %v6372_v38  ;;  %v6387_v38 = vunpack.i.h.bf16 %v9156_v55 }
 0x11e   : > { %14143 = vst [vmem:[#allocation48_spill] sm:$0xff] %v9406_v24  ;;  %v8293_v24 = vld [vmem:[%s8596_s14 + $0x18] sm:$0xff]  ;;  %v8294_v21 = vld [vmem:[%s8596_s14 + $0x80] sm:$0xff] }
 0x11f   : > { %v9411_v32 = vpop.permute.xlu0 %6684  ;;  %6979 = vrot.lane.b32.xlu1 %v9021_v28, %s14051_s13  ;;  %v9505_v8 = vsel %vm1455_vm3, %v8300_v62, %v6387_v38  ;;  %v6422_v62 = vunpack.i.h.bf16 %v9172_v33  ;;  %v6421_v38 = vunpack.i.l.bf16 %v9172_v33 }
 0x120   : > { %14144 = vst [vmem:[#allocation49_spill] sm:$0xff] %v9411_v32  ;;  %v8286_v32 = vld [vmem:[%s8596_s14 + $0x38] sm:$0xff] }
 0x121   : > { %6974 = vrot.lane.b32.xlu0 %v9025_v23, %s14051_s13  ;;  %v9422_v10 = vpop.permute.xlu1 %6699  ;;  %v9426_v28 = vsel %vm1455_vm3, %v8286_v32, %v6367_v18  ;;  %v9436_v23 = vsel %vm1455_vm3, %v8288_v4, %v6357_v29  ;;  %v9445_v32 = vsel %vm1455_vm3, %v8289_v5, %v6356_v3  ;;  %v8291_v29 = vld [vmem:[%s8596_s14 + $0x48] sm:$0xff]  ;;  %v9462_v3 = vsel %vm1455_vm3, %v8293_v24, %v6361_v40 }
 0x122   : > { %14145 = vst [vmem:[#allocation50_spill] sm:$0xff] %v9422_v10  ;;  %v6377_v10 = vunpack.i.h.bf16 %v9148_v27  ;;  %v9453_v4 = vsel %vm1455_vm3, %v8291_v29, %v6371_v16  ;;  %v6392_v27 = vunpack.i.h.bf16 %v9154_v47  ;;  %v6391_v5 = vunpack.i.l.bf16 %v9154_v47  ;;  %v8296_v40 = vld [vmem:[%s8596_s14 + $0x68] sm:$0xff] }
 0x123   : > { %v9440_v18 = vpop.permute.xlu0 %6694  ;;  %6989 = vrot.lane.b32.xlu1 %v6988_v39, %s14051_s13  ;;  %v9472_v29 = vsel %vm1455_vm3, %v8294_v21, %v6382_v41  ;;  %v6386_v24 = vunpack.i.l.bf16 %v9156_v55  ;;  %v6402_v47 = vunpack.i.h.bf16 %v9160_v46  ;;  %v6401_v41 = vunpack.i.l.bf16 %v9160_v46  ;;  %v8298_v55 = vld [vmem:[%s8596_s14 + $0xb0] sm:$0xff]  ;;  %v8299_v46 = vld [vmem:[%s8596_s14 + $0xa8] sm:$0xff] }
 0x124   : > { %14146 = vst [vmem:[#allocation51_spill] sm:$0xff] %v9440_v18  ;;  %v8292_v18 = vld [vmem:[%s8596_s14 + $0x20] sm:$0xff] }
 0x125   : > { %v9458_v39 = vsel %vm1455_vm3, %v8292_v18, %v6362_v34  ;;  %6984 = vrot.lane.b32.xlu0 %v9035_v30, %s14051_s13  ;;  %v9468_v16 = vpop.permute.xlu1 %6709  ;;  %v8295_v34 = vld [vmem:[%s8596_s14 + $0x78] sm:$0xff]  ;;  %v9482_v30 = vsel %vm1455_vm3, %v8296_v40, %v6377_v10  ;;  %v6396_v10 = vunpack.i.l.bf16 %v9162_v37  ;;  %v6412_v40 = vunpack.i.h.bf16 %v9166_v14 }
 0x126   : > { %14147 = vst [vmem:[#allocation52_spill] sm:$0xff] %v9468_v16  ;;  %v9476_v18 = vsel %vm1455_vm3, %v8295_v34, %v6381_v54  ;;  %v9486_v16 = vsel %vm1455_vm3, %v8297_v50, %v6376_v22  ;;  %v6397_v54 = vunpack.i.h.bf16 %v9162_v37  ;;  %v9494_v34 = vsel %vm1455_vm3, %v8298_v55, %v6392_v27  ;;  %v8301_v55 = vld [vmem:[%s8596_s14 + $0x90] sm:$0xff] }
 0x127   : > { %v9490_v21 = vpop.permute.xlu0 %6704  ;;  %v6411_v22 = vunpack.i.l.bf16 %v9166_v14  ;;  %v9501_v50 = vsel %vm1455_vm3, %v8299_v46, %v6391_v5  ;;  %v6406_v27 = vunpack.i.l.bf16 %v9168_v19  ;;  %v9513_v14 = vsel %vm1455_vm3, %v8301_v55, %v6386_v24  ;;  %v8303_v46 = vld [vmem:[%s8596_s14 + $0xd8] sm:$0xff]  ;;  %v14150_v24 = vld [vmem:[#allocation19_spill] sm:$0xff] }
 0x128   : > { %14148 = vst [vmem:[#allocation53_spill] sm:$0xff] %v9490_v21  ;;  %v6407_v21 = vunpack.i.h.bf16 %v9168_v19  ;;  %v9517_v5 = vsel %vm1455_vm3, %v8302_v48, %v6402_v47  ;;  %v9523_v19 = vsel %vm1455_vm3, %v8303_v46, %v6401_v41  ;;  %v6417_v55 = vunpack.i.h.bf16 %v14150_v24  ;;  %v8305_v47 = vld [vmem:[%s8596_s14 + $0xc0] sm:$0xff]  ;;  %v8307_v46 = vld [vmem:[%s8596_s14 + $0x108] sm:$0xff] }
 0x129   : > { %v9509_v37 = vpop.permute.xlu1 %6719  ;;  %v6416_v61 = vunpack.i.l.bf16 %v14150_v24  ;;  %v9535_v33 = vsel %vm1455_vm3, %v8305_v47, %v6396_v10  ;;  %v9539_v41 = vsel %vm1455_vm3, %v8306_v45, %v6412_v40  ;;  %v8308_v24 = vld [vmem:[%s8596_s14 + $0xf8] sm:$0xff]  ;;  %v9552_v10 = vsel %vm1455_vm3, %v8309_v6, %v6406_v27  ;;  %v14153_v45 = vld [vmem:[#allocation23_spill] sm:$0xff]  ;;  %v14155_v6 = vld [vmem:[#allocation10_spill] sm:$0xff] }
 0x12a   : > { %14149 = vst [vmem:[#allocation54_spill] sm:$0xff] %v9509_v37  ;;  %v8304_v37 = vld [vmem:[%s8596_s14 + $0xc8] sm:$0xff]  ;;  %v6427_v40 = vunpack.i.h.bf16 %v14153_v45  ;;  %v6441_v27 = vunpack.i.l.bf16 %v14155_v6 }
 0x12b   : > { %v9527_v2 = vsel %vm1455_vm3, %v8304_v37, %v6397_v54  ;;  %v9531_v48 = vpop.permute.xlu0 %6714  ;;  %v9543_v54 = vsel %vm1455_vm3, %v8307_v46, %v6411_v22  ;;  %v14152_v37 = vld [vmem:[#allocation21_spill] sm:$0xff]  ;;  %v8310_v22 = vld [vmem:[%s8596_s14 + $0x140] sm:$0xff] }
 0x12c   : > { %14151 = vst [vmem:[#allocation19_spill] sm:$0xff] %v9531_v48  ;;  %v6432_v7 = vunpack.i.h.bf16 %v14152_v37  ;;  %v9548_v48 = vsel %vm1455_vm3, %v8308_v24, %v6407_v21  ;;  %v6431_v47 = vunpack.i.l.bf16 %v14152_v37  ;;  %v9560_v46 = vsel %vm1455_vm3, %v8310_v22, %v6422_v62  ;;  %v8312_v37 = vld [vmem:[%s8596_s14 + $0x128] sm:$0xff]  ;;  %v14156_v22 = vld [vmem:[#allocation12_spill] sm:$0xff] }
 0x12d   : > { %v9556_v56 = vpop.permute.xlu1 %6729  ;;  %v9564_v21 = vsel %vm1455_vm3, %v8311_v58, %v6421_v38  ;;  %v6426_v24 = vunpack.i.l.bf16 %v14153_v45  ;;  %v9570_v44 = vsel %vm1455_vm3, %v8312_v37, %v6417_v55  ;;  %v6442_v62 = vunpack.i.h.bf16 %v14155_v6  ;;  %v8314_v38 = vld [vmem:[%s8596_s14 + $0x170] sm:$0xff] }
 0x12e   : > { %14154 = vst [vmem:[#allocation21_spill] sm:$0xff] %v9556_v56  ;;  %v9574_v56 = vsel %vm1455_vm3, %v8313_v12, %v6416_v61  ;;  %v6436_v52 = vunpack.i.l.bf16 %v14156_v22  ;;  %v9582_v45 = vsel %vm1455_vm3, %v8314_v38, %v6432_v7  ;;  %v6437_v35 = vunpack.i.h.bf16 %v14156_v22  ;;  %v8316_v61 = vld [vmem:[%s8596_s14 + $0x158] sm:$0xff]  ;;  %v8317_v38 = vld [vmem:[%s8596_s14 + $0x150] sm:$0xff]  ;;  %s14049_s14 = smov 56  }
 0x12f   : > { %v9578_v58 = vpop.permute.xlu0 %6724  ;;  %v6452_v55 = vunpack.i.h.bf16 %v9190_v49  ;;  %v6451_v37 = vunpack.i.l.bf16 %v9190_v49  ;;  %v9589_v12 = vsel %vm1455_vm3, %v8315_v9, %v6431_v47  ;;  %v9593_v6 = vsel %vm1455_vm3, %v8316_v61, %v6427_v40  ;;  %v14159_v9 = vld [vmem:[#allocation11_spill] sm:$0xff] }
 0x130   : > { %14157 = vst [vmem:[#allocation23_spill] sm:$0xff] %v9578_v58  ;;  %v6447_v58 = vunpack.i.h.bf16 %v14158_v51  ;;  %v9601_v22 = vsel %vm1455_vm3, %v8317_v38, %v6426_v24  ;;  %v9605_v49 = vsel %vm1488_vm4, %v9462_v3, %v6441_v27  ;;  %v6462_v47 = vunpack.i.h.bf16 %v14159_v9 }
 0x131   : > { %v9597_v7 = vpop.permute.xlu1 %6739  ;;  %v6461_v36 = vunpack.i.l.bf16 %v14159_v9  ;;  %v9611_v40 = vsel %vm1488_vm4, %v9458_v39, %v6442_v62  ;;  %v9615_v51 = vsel %vm1488_vm4, %v9445_v32, %v6436_v52  ;;  %v6457_v61 = vunpack.i.h.bf16 %v9198_v57  ;;  %v14160_v52 = vld [vmem:[#allocation18_spill] sm:$0xff] }
 0x132   : > { %v6456_v24 = vunpack.i.l.bf16 %v9198_v57  ;;  %v9623_v3 = vsel %vm1488_vm4, %v9436_v23, %v6437_v35  ;;  %v9627_v27 = vsel %vm1488_vm4, %v9449_v63, %v6452_v55  ;;  %v9631_v39 = vsel %vm1488_vm4, %v9453_v4, %v6451_v37  ;;  %v14161_v23 = vld [vmem:[#allocation13_spill] sm:$0xff] }
 0x133   : > { %v9619_v38 = vpop.permute.xlu0 %6734  ;;  %v6472_v32 = vunpack.i.h.bf16 %v14160_v52  ;;  %v9636_v62 = vsel %vm1488_vm4, %v9426_v28, %v6447_v58  ;;  %v9640_v57 = vsel %vm1488_vm4, %v9432_v15, %v6446_v43  ;;  %v6471_v35 = vunpack.i.l.bf16 %v14160_v52 }
 0x134   : > { %v6466_v9 = vunpack.i.l.bf16 %v14161_v23  ;;  %v9648_v4 = vsel %vm1488_vm4, %v9472_v29, %v6462_v47  ;;  %v9652_v55 = vsel %vm1488_vm4, %v9476_v18, %v6461_v36  ;;  %v6467_v28 = vunpack.i.h.bf16 %v14161_v23 }
 0x135   : > { %v9644_v63 = vpop.permute.xlu1 %6749  ;;  %v6482_v58 = vunpack.i.h.bf16 %v9210_v13  ;;  %v9658_v43 = vsel %vm1488_vm4, %v9486_v16, %v6456_v24  ;;  %v9662_v15 = vsel %vm1488_vm4, %v9482_v30, %v6457_v61  ;;  %v6481_v37 = vunpack.i.l.bf16 %v9210_v13 }
 0x136   : > { %14162 = vst [vmem:[#allocation10_spill] sm:$0xff] %v9644_v63  ;;  %v6476_v29 = vunpack.i.l.bf16 %v9212_v53  ;;  %v9670_v36 = vsel %vm1488_vm4, %v9494_v34, %v6472_v32  ;;  %v6477_v18 = vunpack.i.h.bf16 %v9212_v53  ;;  %v6492_v16 = vunpack.i.h.bf16 %v9218_v20  ;;  %v14187_v63 = vld [vmem:[#allocation38_spill] sm:$0xff] }
 0x137   : > { %v9666_v47 = vpop.permute.xlu0 %6744  ;;  %v6491_v24 = vunpack.i.l.bf16 %v9218_v20  ;;  %v9677_v30 = vsel %vm1488_vm4, %v9501_v50, %v6471_v35  ;;  %v9681_v13 = vsel %vm1488_vm4, %v9513_v14, %v6466_v9  ;;  %v6487_v61 = vunpack.i.h.bf16 %v9220_v26 }
 0x138   : > { %14163 = vst [vmem:[#allocation12_spill] sm:$0xff] %v9666_v47  ;;  %v6486_v52 = vunpack.i.l.bf16 %v9220_v26  ;;  %v9689_v53 = vsel %vm1488_vm4, %v9505_v8, %v6467_v28  ;;  %v9693_v20 = vsel %vm1488_vm4, %v9517_v5, %v6482_v58  ;;  %v6502_v50 = vunpack.i.h.bf16 %v9226_v59  ;;  %v14164_v28 = vld [vmem:[#allocation22_spill] sm:$0xff] }
 0x139   : > { %v9685_v34 = vpop.permute.xlu1 %6759  ;;  %v6501_v32 = vunpack.i.l.bf16 %v9226_v59  ;;  %v9699_v14 = vsel %vm1488_vm4, %v9523_v19, %v6481_v37  ;;  %v9703_v26 = vsel %vm1488_vm4, %v9535_v33, %v6476_v29  ;;  %v6497_v35 = vunpack.i.h.bf16 %v9228_v0 }
 0x13a   : > { %v6496_v8 = vunpack.i.l.bf16 %v9228_v0  ;;  %v9711_v5 = vsel %vm1488_vm4, %v9527_v2, %v6477_v18  ;;  %v9715_v59 = vsel %vm1488_vm4, %v9539_v41, %v6492_v16  ;;  %v9719_v19 = vsel %vm1488_vm4, %v9543_v54, %v6491_v24 }
 0x13b   : > { %v9707_v23 = vpop.permute.xlu0 %6754  ;;  %v6512_v33 = vunpack.i.h.bf16 %v9234_v60  ;;  %v9724_v9 = vsel %vm1488_vm4, %v9552_v10, %v6486_v52  ;;  %v9728_v0 = vsel %vm1488_vm4, %v9548_v48, %v6487_v61  ;;  %v6511_v2 = vunpack.i.l.bf16 %v9234_v60 }
 0x13c   : > { %v6506_v58 = vunpack.i.l.bf16 %v14164_v28  ;;  %v9736_v54 = vsel %vm1488_vm4, %v9560_v46, %v6502_v50  ;;  %v9740_v37 = vsel %vm1488_vm4, %v9564_v21, %v6501_v32  ;;  %v6507_v10 = vunpack.i.h.bf16 %v14164_v28  ;;  %v14165_v46 = vld [vmem:[#allocation15_spill] sm:$0xff]  ;;  %v14168_v50 = vld [vmem:[#allocation20_spill] sm:$0xff] }
 0x13d   : > { %v9732_v41 = vpop.permute.xlu1 %6769  ;;  %v6521_v29 = vunpack.i.l.bf16 %v9242_v1  ;;  %v9746_v48 = vsel %vm1488_vm4, %v9574_v56, %v6496_v8  ;;  %v9750_v60 = vsel %vm1488_vm4, %v9570_v44, %v6497_v35  ;;  %v6522_v18 = vunpack.i.h.bf16 %v9242_v1 }
 0x13e   : > { %v6516_v16 = vunpack.i.l.bf16 %v14165_v46  ;;  %v9758_v21 = vsel %vm1488_vm4, %v9582_v45, %v6512_v33  ;;  %v6517_v61 = vunpack.i.h.bf16 %v14165_v46  ;;  %v6532_v52 = vunpack.i.h.bf16 %v9256_v17  ;;  %v14169_v46 = vld [vmem:[#allocation26_spill] sm:$0xff] }
 0x13f   : > { %v9754_v24 = vpop.permute.xlu0 %6764  ;;  %14166 = vst [vmem:[#allocation14_spill] sm:$0xff] %v9758_v21  ;;  %v6531_v56 = vunpack.i.l.bf16 %v9256_v17  ;;  %v9765_v44 = vsel %vm1488_vm4, %v9589_v12, %v6511_v2  ;;  %v9769_v1 = vsel %vm1488_vm4, %v9601_v22, %v6506_v58  ;;  %v6527_v32 = vunpack.i.h.bf16 %v14168_v50 }
 0x140   : > { %14167 = vst [vmem:[#allocation11_spill] sm:$0xff] %v9765_v44  ;;  %v6526_v35 = vunpack.i.l.bf16 %v14168_v50  ;;  %v9777_v8 = vsel %vm1488_vm4, %v9593_v6, %v6507_v10  ;;  %v9781_v17 = vsel %vm1521_vm5, %v9605_v49, %v6521_v29  ;;  %v6542_v12 = vunpack.i.h.bf16 %v9266_v42  ;;  %v14171_v50 = vld [vmem:[#allocation28_spill] sm:$0xff] }
 0x141   : > { %v9773_v45 = vpop.permute.xlu1 %6779  ;;  %v6541_v33 = vunpack.i.l.bf16 %v9266_v42  ;;  %v9787_v22 = vsel %vm1521_vm5, %v9611_v40, %v6522_v18  ;;  %v9791_v2 = vsel %vm1521_vm5, %v9615_v51, %v6516_v16  ;;  %v6537_v28 = vunpack.i.h.bf16 %v9268_v11 }
 0x142   : > { %v6536_v6 = vunpack.i.l.bf16 %v9268_v11  ;;  %v9799_v49 = vsel %vm1521_vm5, %v9623_v3, %v6517_v61  ;;  %v9803_v42 = vsel %vm1521_vm5, %v9631_v39, %v6531_v56  ;;  %v9807_v40 = vsel %vm1521_vm5, %v9627_v27, %v6532_v52  ;;  %v14170_v61 = vld [vmem:[#allocation24_spill] sm:$0xff] }
 0x143   : > { %v9795_v58 = vpop.permute.xlu0 %6774  ;;  %v6551_v51 = vunpack.i.l.bf16 %v9273_v25  ;;  %v9812_v10 = vsel %vm1521_vm5, %v9640_v57, %v6526_v35  ;;  %v9816_v11 = vsel %vm1521_vm5, %v9636_v62, %v6527_v32  ;;  %v6552_v3 = vunpack.i.h.bf16 %v9273_v25 }
 0x144   : > { %v6546_v29 = vunpack.i.l.bf16 %v9275_v31  ;;  %v9824_v27 = vsel %vm1521_vm5, %v9652_v55, %v6541_v33  ;;  %v9828_v18 = vsel %vm1521_vm5, %v9648_v4, %v6542_v12  ;;  %v6547_v57 = vunpack.i.h.bf16 %v9275_v31  ;;  %v14172_v12 = vld [vmem:[#allocation25_spill] sm:$0xff] }
 0x145   : > { %v9820_v39 = vpop.permute.xlu1 %6789  ;;  %v6561_v16 = vunpack.i.l.bf16 %v14169_v46  ;;  %v9834_v25 = vsel %vm1521_vm5, %v9658_v43, %v6536_v6  ;;  %v9838_v62 = vsel %vm1521_vm5, %v9662_v15, %v6537_v28  ;;  %v6562_v55 = vunpack.i.h.bf16 %v14169_v46 }
 0x146   : > { %v6556_v52 = vunpack.i.l.bf16 %v14170_v61  ;;  %v9846_v31 = vsel %vm1521_vm5, %v9677_v30, %v6551_v51  ;;  %v6557_v4 = vunpack.i.h.bf16 %v14170_v61  ;;  %v6572_v32 = vunpack.i.h.bf16 %v14171_v50  ;;  %v14174_v61 = vld [vmem:[#allocation27_spill] sm:$0xff] }
 0x147   : > { %v9842_v56 = vpop.permute.xlu0 %6784  ;;  %v6571_v43 = vunpack.i.l.bf16 %v14171_v50  ;;  %v9853_v15 = vsel %vm1521_vm5, %v9670_v36, %v6552_v3  ;;  %v9857_v35 = vsel %vm1521_vm5, %v9681_v13, %v6546_v29  ;;  %v6567_v33 = vunpack.i.h.bf16 %v14172_v12  ;;  %v14173_v36 = vld [vmem:[#allocation17_spill] sm:$0xff] }
 0x148   : > { %v6566_v28 = vunpack.i.l.bf16 %v14172_v12  ;;  %v9865_v6 = vsel %vm1521_vm5, %v9689_v53, %v6547_v57  ;;  %v9869_v51 = vsel %vm1521_vm5, %v9699_v14, %v6561_v16  ;;  %v6582_v3 = vunpack.i.h.bf16 %v14173_v36 }
 0x149   : > { %v9861_v30 = vpop.permute.xlu1 %6799  ;;  %v6581_v46 = vunpack.i.l.bf16 %v14173_v36  ;;  %v9875_v13 = vsel %vm1521_vm5, %v9693_v20, %v6562_v55  ;;  %v9879_v29 = vsel %vm1521_vm5, %v9703_v26, %v6556_v52  ;;  %v6577_v50 = vunpack.i.h.bf16 %v14174_v61  ;;  %v14175_v26 = vld [vmem:[#allocation29_spill] sm:$0xff] }
 0x14a   : > { %v6576_v53 = vunpack.i.l.bf16 %v14174_v61  ;;  %v9887_v14 = vsel %vm1521_vm5, %v9711_v5, %v6557_v4  ;;  %v9891_v16 = vsel %vm1521_vm5, %v9719_v19, %v6571_v43  ;;  %v9895_v20 = vsel %vm1521_vm5, %v9715_v59, %v6572_v32  ;;  %v14176_v4 = vld [vmem:[#allocation30_spill] sm:$0xff]  ;;  %v14177_v43 = vld [vmem:[#allocation31_spill] sm:$0xff] }
 0x14b   : > { %v9883_v57 = vpop.permute.xlu0 %6794  ;;  %v6586_v55 = vunpack.i.l.bf16 %v14175_v26  ;;  %v9900_v52 = vsel %vm1521_vm5, %v9724_v9, %v6566_v28  ;;  %v9904_v12 = vsel %vm1521_vm5, %v9728_v0, %v6567_v33  ;;  %v6587_v5 = vunpack.i.h.bf16 %v14175_v26 }
 0x14c   : > { %v6601_v36 = vunpack.i.l.bf16 %v14176_v4  ;;  %v9912_v59 = vsel %vm1521_vm5, %v9740_v37, %v6581_v46  ;;  %v9916_v32 = vsel %vm1521_vm5, %v9736_v54, %v6582_v3  ;;  %v6602_v9 = vunpack.i.h.bf16 %v14176_v4  ;;  %v14178_v37 = vld [vmem:[#allocation32_spill] sm:$0xff] }
 0x14d   : > { %v9908_v19 = vpop.permute.xlu1 %6809  ;;  %v6596_v28 = vunpack.i.l.bf16 %v14177_v43  ;;  %v9922_v0 = vsel %vm1521_vm5, %v9746_v48, %v6576_v53  ;;  %v9926_v33 = vsel %vm1521_vm5, %v9750_v60, %v6577_v50  ;;  %v6597_v61 = vunpack.i.h.bf16 %v14177_v43  ;;  %v14180_v53 = vld [vmem:[#allocation33_spill] sm:$0xff] }
 0x14e   : > { %v6611_v46 = vunpack.i.l.bf16 %v14178_v37  ;;  %v9936_v21 = vsel %vm1521_vm5, %v9769_v1, %v6586_v55  ;;  %v6612_v48 = vunpack.i.h.bf16 %v14178_v37  ;;  %v9941_v60 = vsel %vm1521_vm5, %v9777_v8, %v6587_v5  ;;  %v14182_v8 = vld [vmem:[#allocation34_spill] sm:$0xff] }
 0x14f   : > { %v9930_v26 = vpop.permute.xlu0 %6804  ;;  %v9945_v50 = vsel %vm1554_vm6, %v9781_v17, %v6601_v36  ;;  %v6607_v43 = vunpack.i.h.bf16 %v14180_v53  ;;  %v6606_v3 = vunpack.i.l.bf16 %v14180_v53  ;;  %v9953_v1 = vsel %vm1554_vm6, %v9787_v22, %v6602_v9  ;;  %v14183_v53 = vld [vmem:[#allocation35_spill] sm:$0xff] }
 0x150   : > { %v9957_v55 = vsel %vm1554_vm6, %v9791_v2, %v6596_v28  ;;  %v6622_v5 = vunpack.i.h.bf16 %v14182_v8  ;;  %v6621_v37 = vunpack.i.l.bf16 %v14182_v8  ;;  %v9963_v17 = vsel %vm1554_vm6, %v9799_v49, %v6597_v61  ;;  %v14185_v28 = vld [vmem:[#allocation36_spill] sm:$0xff]  ;;  %v14186_v49 = vld [vmem:[#allocation37_spill] sm:$0xff] }
 0x151   : > { %v9949_v44 = vpop.permute.xlu1 %6819  ;;  %v9967_v36 = vsel %vm1554_vm6, %v9803_v42, %v6611_v46  ;;  %v6617_v4 = vunpack.i.h.bf16 %v14183_v53  ;;  %v6616_v22 = vunpack.i.l.bf16 %v14183_v53  ;;  %v9975_v2 = vsel %vm1554_vm6, %v9807_v40, %v6612_v48 }
 0x152   : > { %14181 = vst [vmem:[#allocation18_spill] sm:$0xff] %v9949_v44  ;;  %v6632_v8 = vunpack.i.h.bf16 %v14185_v28  ;;  %v6631_v54 = vunpack.i.l.bf16 %v14185_v28  ;;  %v6626_v61 = vunpack.i.l.bf16 %v14186_v49  ;;  %v9982_v42 = vsel %vm1554_vm6, %v9812_v10, %v6606_v3  ;;  %v14189_v3 = vld [vmem:[#allocation39_spill] sm:$0xff] }
 0x153   : > { %v9971_v9 = vpop.permute.xlu0 %6814  ;;  %v9986_v46 = vsel %vm1554_vm6, %v9816_v11, %v6607_v43  ;;  %v6627_v53 = vunpack.i.h.bf16 %v14186_v49  ;;  %v6641_v44 = vunpack.i.l.bf16 %v14187_v63  ;;  %v9994_v48 = vsel %vm1554_vm6, %v9824_v27, %v6621_v37  ;;  %v14190_v27 = vld [vmem:[#allocation40_spill] sm:$0xff] }
 0x154   : > { %14184 = vst [vmem:[#allocation13_spill] sm:$0xff] %v9971_v9  ;;  %v9998_v28 = vsel %vm1554_vm6, %v9828_v18, %v6622_v5  ;;  %v6642_v10 = vunpack.i.h.bf16 %v14187_v63  ;;  %v6636_v11 = vunpack.i.l.bf16 %v14189_v3  ;;  %v10004_v43 = vsel %vm1554_vm6, %v9834_v25, %v6616_v22 }
 0x155   : > { %v9990_v40 = vpop.permute.xlu1 %6829  ;;  %v10008_v49 = vsel %vm1554_vm6, %v9838_v62, %v6617_v4  ;;  %v6651_v37 = vunpack.i.l.bf16 %v14190_v27  ;;  %v10016_v18 = vsel %vm1554_vm6, %v9846_v31, %v6631_v54  ;;  %v10020_v63 = vsel %vm1554_vm6, %v9853_v15, %v6632_v8  ;;  %v14192_v31 = vld [vmem:[#allocation41_spill] sm:$0xff] }
 0x156   : > { %14188 = vst [vmem:[#allocation22_spill] sm:$0xff] %v9990_v40  ;;  %v6637_v40 = vunpack.i.h.bf16 %v14189_v3  ;;  %v10024_v25 = vsel %vm1554_vm6, %v9857_v35, %v6626_v61  ;;  %v6652_v62 = vunpack.i.h.bf16 %v14190_v27  ;;  %v10029_v4 = vsel %vm1554_vm6, %v9865_v6, %v6627_v53  ;;  %v14193_v6 = vld [vmem:[#allocation42_spill] sm:$0xff]  ;;  %v14194_v3 = vld [vmem:[#allocation43_spill] sm:$0xff] }
 0x157   : > { %v10012_v47 = vpop.permute.xlu0 %6824  ;;  %v10033_v5 = vsel %vm1554_vm6, %v9869_v51, %v6641_v44  ;;  %v6647_v54 = vunpack.i.h.bf16 %v14192_v31  ;;  %v6646_v22 = vunpack.i.l.bf16 %v14192_v31  ;;  %v10041_v35 = vsel %vm1554_vm6, %v9875_v13, %v6642_v10 }
 0x158   : > { %14191 = vst [vmem:[#allocation15_spill] sm:$0xff] %v10012_v47  ;;  %v10045_v8 = vsel %vm1554_vm6, %v9879_v29, %v6636_v11  ;;  %v6662_v61 = vunpack.i.h.bf16 %v14193_v6  ;;  %v6661_v53 = vunpack.i.l.bf16 %v14193_v6  ;;  %v10051_v44 = vsel %vm1554_vm6, %v9887_v14, %v6637_v40  ;;  %v14196_v11 = vld [vmem:[#allocation45_spill] sm:$0xff]  ;;  %v14197_v14 = vld [vmem:[#allocation46_spill] sm:$0xff]  ;;  %v14198_v47 = vld [vmem:[#allocation47_spill] sm:$0xff] }
 0x159   : > { %v10037_v15 = vpop.permute.xlu1 %6839  ;;  %v10055_v51 = vsel %vm1554_vm6, %v9891_v16, %v6651_v37  ;;  %v6657_v27 = vunpack.i.h.bf16 %v14194_v3  ;;  %v6656_v13 = vunpack.i.l.bf16 %v14194_v3  ;;  %v10063_v29 = vsel %vm1554_vm6, %v9895_v20, %v6652_v62 }
 0x15a   : > { %v6667_v31 = vunpack.i.h.bf16 %v14196_v11  ;;  %v6666_v6 = vunpack.i.l.bf16 %v14196_v11  ;;  %v6681_v40 = vunpack.i.l.bf16 %v14197_v14  ;;  %v10070_v16 = vsel %vm1554_vm6, %v9900_v52, %v6646_v22  ;;  %v14202_v22 = vld [vmem:[#allocation48_spill] sm:$0xff] }
 0x15b   : > { %v10059_v10 = vpop.permute.xlu0 %6834  ;;  %v10074_v37 = vsel %vm1554_vm6, %v9904_v12, %v6647_v54  ;;  %v6682_v3 = vunpack.i.h.bf16 %v14197_v14  ;;  %v10082_v62 = vsel %vm1554_vm6, %v9912_v59, %v6661_v53  ;;  %v10086_v11 = vsel %vm1554_vm6, %v9916_v32, %v6662_v61 }
 0x15c   : > { %14195 = vst [vmem:[#allocation20_spill] sm:$0xff] %v10059_v10  ;;  %v6676_v10 = vunpack.i.l.bf16 %v14198_v47  ;;  %14200 = vst [vmem:[#allocation24_spill] sm:$0xff] %v10082_v62  ;;  %v6677_v52 = vunpack.i.h.bf16 %v14198_v47  ;;  %v6691_v9 = vunpack.i.l.bf16 %v14202_v22  ;;  %v10092_v12 = vsel %vm1554_vm6, %v9922_v0, %v6656_v13  ;;  %v14207_v13 = vld [vmem:[#allocation49_spill] sm:$0xff] }
 0x15d   : > { %v10078_v20 = vpop.permute.xlu1 %6849  ;;  %14201 = vst [vmem:[#allocation28_spill] sm:$0xff] %v10086_v11  ;;  %v10096_v54 = vsel %vm1554_vm6, %v9926_v33, %v6657_v27  ;;  %v6692_v59 = vunpack.i.h.bf16 %v14202_v22  ;;  %v10105_v47 = vsel %vm1554_vm6, %v9936_v21, %v6666_v6  ;;  %v10109_v0 = vsel %vm1554_vm6, %v9941_v60, %v6667_v31 }
 0x15e   : > { %14199 = vst [vmem:[#allocation26_spill] sm:$0xff] %v10078_v20  ;;  %14205 = vst [vmem:[#allocation17_spill] sm:$0xff] %v10105_v47  ;;  %v10113_v33 = vsel %vm1587_vm7, %v9945_v50, %v6681_v40  ;;  %v10117_v61 = vsel %vm1587_vm7, %v9953_v1, %v6682_v3  ;;  %v10121_v27 = vsel %vm1587_vm7, %v9957_v55, %v6676_v10  ;;  %v6687_v22 = vunpack.i.h.bf16 %v14207_v13  ;;  %v14209_v1 = vld [vmem:[#allocation50_spill] sm:$0xff]  ;;  %v14210_v10 = vld [vmem:[#allocation51_spill] sm:$0xff] }
 0x15f   : > { %v10100_v53 = vpop.permute.xlu0 %6844  ;;  %14206 = vst [vmem:[#allocation27_spill] sm:$0xff] %v10109_v0  ;;  %v6686_v21 = vunpack.i.l.bf16 %v14207_v13  ;;  %v10129_v60 = vsel %vm1587_vm7, %v9963_v17, %v6677_v52  ;;  %v10133_v50 = vsel %vm1587_vm7, %v9967_v36, %v6691_v9  ;;  %v6702_v31 = vunpack.i.h.bf16 %v14209_v1  ;;  %v14211_v20 = vld [vmem:[#allocation52_spill] sm:$0xff]  ;;  %v14213_v36 = vld [vmem:[#allocation53_spill] sm:$0xff]  ;;  %v14214_v0 = vld [vmem:[#allocation54_spill] sm:$0xff] }
 0x160   : > { %14204 = vst [vmem:[#allocation25_spill] sm:$0xff] %v10100_v53  ;;  %v6701_v40 = vunpack.i.l.bf16 %v14209_v1  ;;  %v10139_v55 = vsel %vm1587_vm7, %v9975_v2, %v6692_v59  ;;  %v6697_v3 = vunpack.i.h.bf16 %v14210_v10  ;;  %v6696_v13 = vunpack.i.l.bf16 %v14210_v10  ;;  %v14215_v47 = vld [vmem:[#allocation19_spill] sm:$0xff] }
 0x161   : > { %v10125_v6 = vpop.permute.xlu1 %6859  ;;  %v6711_v32 = vunpack.i.l.bf16 %v14211_v20  ;;  %v6712_v52 = vunpack.i.h.bf16 %v14211_v20  ;;  %v6707_v9 = vunpack.i.h.bf16 %v14213_v36  ;;  %v6706_v14 = vunpack.i.l.bf16 %v14213_v36 }
 0x162   : > { %14208 = vst [vmem:[#allocation29_spill] sm:$0xff] %v10125_v6  ;;  %v6721_v1 = vunpack.i.l.bf16 %v14214_v0  ;;  %v1592_v2 = vsel %vm1587_vm7, %v9982_v42, %v6686_v21  ;;  %v1593_v59 = vsel %vm1587_vm7, %v9986_v46, %v6687_v22  ;;  %v6722_v10 = vunpack.i.h.bf16 %v14214_v0  ;;  %v14216_v6 = vld [vmem:[#allocation21_spill] sm:$0xff] }
 0x163   : > { %v10144_v17 = vpop.permute.xlu0 %6854  ;;  %v6716_v11 = vunpack.i.l.bf16 %v14215_v47  ;;  %v1598_v20 = vsel %vm1587_vm7, %v9994_v48, %v6701_v40  ;;  %v1599_v36 = vsel %vm1587_vm7, %v9998_v28, %v6702_v31  ;;  %v6731_v53 = vunpack.i.l.bf16 %v14216_v6 }
 0x164   : > { %14212 = vst [vmem:[#allocation30_spill] sm:$0xff] %v10144_v17  ;;  %v6717_v17 = vunpack.i.h.bf16 %v14215_v47  ;;  %v10166_v42 = vsel %vm1587_vm7, %v10004_v43, %v6696_v13  ;;  %v10170_v46 = vsel %vm1587_vm7, %v10008_v49, %v6697_v3  ;;  %v10174_v0 = vsel %vm1587_vm7, %v10016_v18, %v6711_v32  ;;  %v14217_v47 = vld [vmem:[#allocation23_spill] sm:$0xff] }
 0x165   : > { %v10156_v62 = vpop.permute.xlu1 %6869  ;;  %v6732_v48 = vunpack.i.h.bf16 %v14216_v6  ;;  %v10181_v28 = vsel %vm1587_vm7, %v10020_v63, %v6712_v52  ;;  %v10185_v43 = vsel %vm1587_vm7, %v10024_v25, %v6706_v14  ;;  %v10189_v49 = vsel %vm1587_vm7, %v10029_v4, %v6707_v9 }
 0x166   : > { %v10193_v18 = vsel %vm1587_vm7, %v10033_v5, %v6721_v1  ;;  %v10197_v32 = vsel %vm1587_vm7, %v10041_v35, %v6722_v10  ;;  %v10201_v63 = vsel %vm1587_vm7, %v10045_v8, %v6716_v11  ;;  %v6727_v21 = vunpack.i.h.bf16 %v14217_v47 }
 0x167   : > { %v10177_v22 = vpop.permute.xlu0 %6864  ;;  %v6726_v25 = vunpack.i.l.bf16 %v14217_v47  ;;  %v10209_v4 = vsel %vm1587_vm7, %v10051_v44, %v6717_v17  ;;  %v10213_v5 = vsel %vm1587_vm7, %v10055_v51, %v6731_v53  ;;  %v6737_v35 = vunpack.i.h.bf16 %v9619_v38 }
 0x168   : > { %v6736_v6 = vunpack.i.l.bf16 %v9619_v38  ;;  %v10219_v8 = vsel %vm1587_vm7, %v10063_v29, %v6732_v48  ;;  %v6762_v11 = vunpack.i.h.bf16 %v9685_v34  ;;  %v6761_v31 = vunpack.i.l.bf16 %v9685_v34 }
 0x169   : > { %v10205_v14 = vpop.permute.xlu1 %6879  ;;  %v6756_v40 = vunpack.i.l.bf16 %v9707_v23  ;;  %v6757_v3 = vunpack.i.h.bf16 %v9707_v23  ;;  %v6772_v51 = vunpack.i.h.bf16 %v9732_v41  ;;  %v6771_v53 = vunpack.i.l.bf16 %v9732_v41 }
 0x16a   : > { %v6766_v38 = vunpack.i.l.bf16 %v9754_v24  ;;  %v1608_v29 = vsel %vm1587_vm7, %v10070_v16, %v6726_v25  ;;  %v1609_v13 = vsel %vm1587_vm7, %v10074_v37, %v6727_v21  ;;  %v6742_v34 = vunpack.i.h.bf16 %v9597_v7 }
 0x16b   : > { %v10224_v44 = vpop.permute.xlu0 %6874  ;;  %v6767_v17 = vunpack.i.h.bf16 %v9754_v24  ;;  %v6741_v23 = vunpack.i.l.bf16 %v9597_v7  ;;  %v10241_v9 = vsel %vm1587_vm7, %v10092_v12, %v6736_v6  ;;  %v10245_v41 = vsel %vm1587_vm7, %v10096_v54, %v6737_v35 }
 0x16c   : > { %v6781_v16 = vunpack.i.l.bf16 %v9773_v45  ;;  %v1623_v37 = vsel %vm1620_vm8, %v10113_v33, %v6761_v31  ;;  %v1624_v24 = vsel %vm1620_vm8, %v10117_v61, %v6762_v11  ;;  %v6782_v1 = vunpack.i.h.bf16 %v9773_v45 }
 0x16d   : > { %v10236_v52 = vpop.permute.xlu1 %6889  ;;  %v10257_v12 = vsel %vm1620_vm8, %v10121_v27, %v6756_v40  ;;  %v10261_v54 = vsel %vm1620_vm8, %v10133_v50, %v6771_v53  ;;  %v10265_v48 = vsel %vm1620_vm8, %v10139_v55, %v6772_v51  ;;  %v10268_v33 = vsel %vm1620_vm8, %v1592_v2, %v6766_v38 }
 0x16e   : > { %v1622_v45 = vsel %vm1620_vm8, %v10129_v60, %v6757_v3  ;;  %v10273_v61 = vsel %vm1620_vm8, %v1593_v59, %v6767_v17  ;;  %v6777_v27 = vunpack.i.h.bf16 %v9795_v58  ;;  %v6776_v47 = vunpack.i.l.bf16 %v9795_v58 }
 0x16f   : > { %v10253_v10 = vpop.permute.xlu0 %6884  ;;  %v6791_v50 = vunpack.i.l.bf16 %v9820_v39  ;;  %v10281_v55 = vsel %vm1620_vm8, %v1598_v20, %v6781_v16  ;;  %v6792_v2 = vunpack.i.h.bf16 %v9820_v39  ;;  %v6787_v25 = vunpack.i.h.bf16 %v9842_v56  ;;  %v14219_v16 = vld [vmem:[#allocation20_spill] sm:$0xff] }
 0x170   : > { %v6786_v60 = vunpack.i.l.bf16 %v9842_v56  ;;  %v10287_v59 = vsel %vm1620_vm8, %v1599_v36, %v6782_v1  ;;  %v6802_v35 = vunpack.i.h.bf16 %v9861_v30  ;;  %v6801_v58 = vunpack.i.l.bf16 %v9861_v30 }
 0x171   : > { %v10278_v21 = vpop.permute.xlu1 %6899  ;;  %v6796_v6 = vunpack.i.l.bf16 %v9883_v57  ;;  %v6797_v20 = vunpack.i.h.bf16 %v9883_v57  ;;  %v6812_v31 = vunpack.i.h.bf16 %v9908_v19  ;;  %v6811_v39 = vunpack.i.l.bf16 %v9908_v19 }
 0x172   : > { %v6806_v40 = vunpack.i.l.bf16 %v9930_v26  ;;  %v10300_v56 = vsel %vm1620_vm8, %v10166_v42, %v6776_v47  ;;  %v10304_v36 = vsel %vm1620_vm8, %v10170_v46, %v6777_v27  ;;  %v10308_v30 = vsel %vm1620_vm8, %v10174_v0, %v6791_v50 }
 0x173   : > { %v10292_v11 = vpop.permute.xlu0 %6894  ;;  %v6807_v57 = vunpack.i.h.bf16 %v9930_v26  ;;  %v10315_v19 = vsel %vm1620_vm8, %v10181_v28, %v6792_v2  ;;  %v10319_v42 = vsel %vm1620_vm8, %v10185_v43, %v6786_v60  ;;  %v10323_v46 = vsel %vm1620_vm8, %v10189_v49, %v6787_v25  ;;  %v14221_v60 = vld [vmem:[#allocation25_spill] sm:$0xff] }
 0x174   : > { %v6841_v51 = vunpack.i.l.bf16 %v10037_v15  ;;  %v10328_v26 = vsel %vm1620_vm8, %v10193_v18, %v6801_v58  ;;  %v10332_v0 = vsel %vm1620_vm8, %v10197_v32, %v6802_v35  ;;  %v6842_v28 = vunpack.i.h.bf16 %v10037_v15 }
 0x175   : > { %v10311_v3 = vpop.permute.xlu1 %6909  ;;  %v10339_v43 = vsel %vm1620_vm8, %v10201_v63, %v6796_v6  ;;  %v10343_v49 = vsel %vm1620_vm8, %v10213_v5, %v6811_v39  ;;  %v10347_v18 = vsel %vm1620_vm8, %v10219_v8, %v6812_v31  ;;  %v10350_v38 = vsel %vm1620_vm8, %v1608_v29, %v6806_v40  ;;  %v14218_v63 = vld [vmem:[#allocation13_spill] sm:$0xff] }
 0x176   : > { %v10354_v15 = vsel %vm1620_vm8, %v10209_v4, %v6797_v20  ;;  %v10357_v32 = vsel %vm1620_vm8, %v1609_v13, %v6807_v57  ;;  %v6816_v17 = vunpack.i.l.bf16 %v14218_v63  ;;  %v6837_v1 = vunpack.i.h.bf16 %v14219_v16  ;;  %v14220_v4 = vld [vmem:[#allocation26_spill] sm:$0xff] }
 0x177   : > { %v10335_v53 = vpop.permute.xlu0 %6904  ;;  %v6836_v5 = vunpack.i.l.bf16 %v14219_v16  ;;  %v6817_v8 = vunpack.i.h.bf16 %v14218_v63  ;;  %v1656_v47 = vsel %vm1653_vm9, %v1623_v37, %v6841_v51  ;;  %v1657_v2 = vsel %vm1653_vm9, %v1624_v24, %v6842_v28  ;;  %v14222_v28 = vld [vmem:[#allocation29_spill] sm:$0xff] }
 0x178   : > { %v6851_v25 = vunpack.i.l.bf16 %v14220_v4  ;;  %v6847_v13 = vunpack.i.h.bf16 %v14221_v60  ;;  %v6846_v35 = vunpack.i.l.bf16 %v14221_v60  ;;  %v10372_v37 = vsel %vm1620_vm8, %v10241_v9, %v6816_v17 }
 0x179   : > { %v6920_v27 = vpop.permute.xlu1 %6919  ;;  %v6852_v40 = vunpack.i.h.bf16 %v14220_v4  ;;  %v1654_v57 = vsel %vm1653_vm9, %v10257_v12, %v6836_v5  ;;  %v1655_v51 = vsel %vm1653_vm9, %v1622_v45, %v6837_v1  ;;  %v6861_v63 = vunpack.i.l.bf16 %v14222_v28  ;;  %v14223_v4 = vld [vmem:[#allocation30_spill] sm:$0xff] }
 0x17a   : > { %v6922_v29 = vunpack.i.h.bf16 %v6920_v27  ;;  %v6921_v50 = vunpack.i.l.bf16 %v6920_v27  ;;  %v1660_v9 = vsel %vm1653_vm9, %v10261_v54, %v6851_v25  ;;  %v6862_v17 = vunpack.i.h.bf16 %v14222_v28 }
 0x17b   : > { %v6915_v58 = vpop.permute.xlu0 %6914  ;;  %v1658_v45 = vsel %vm1653_vm9, %v10268_v33, %v6846_v35  ;;  %v1659_v1 = vsel %vm1653_vm9, %v10273_v61, %v6847_v13  ;;  %v6857_v60 = vunpack.i.h.bf16 %v14223_v4  ;;  %v1661_v25 = vsel %vm1653_vm9, %v10265_v48, %v6852_v40 }
 0x17c   : > { %v1689_v6 = vsel %vm1686_vm10, %v1656_v47, %v6921_v50  ;;  %v1690_v20 = vsel %vm1686_vm10, %v1657_v2, %v6922_v29  ;;  %v6917_v31 = vunpack.i.h.bf16 %v6915_v58  ;;  %v6916_v39 = vunpack.i.l.bf16 %v6915_v58 }
 0x17d   : > { %v6930_v24 = vpop.permute.xlu1 %6929  ;;  %v1720_v47 = vpack.c.bf16 %v1690_v20, %v1689_v6  ;;  %v10383_v29 = vsel %vm1620_vm8, %v10245_v41, %v6817_v8  ;;  %v6856_v41 = vunpack.i.l.bf16 %v14223_v4  ;;  %v1664_v33 = vsel %vm1653_vm9, %v10281_v55, %v6861_v63 }
 0x17e   : > { %v1687_v16 = vsel %vm1686_vm10, %v1654_v57, %v6916_v39  ;;  %v1688_v27 = vsel %vm1686_vm10, %v1655_v51, %v6917_v31  ;;  %v6932_v8 = vunpack.i.h.bf16 %v6930_v24  ;;  %v6931_v58 = vunpack.i.l.bf16 %v6930_v24 }
 0x17f   : > { %v6925_v50 = vpop.permute.xlu0 %6924  ;;  %v1719_v12 = vpack.c.bf16 %v1688_v27, %v1687_v16  ;;  %v1665_v13 = vsel %vm1653_vm9, %v10287_v59, %v6862_v17  ;;  %v6867_v6 = vunpack.i.h.bf16 %v10177_v22  ;;  %v6866_v20 = vunpack.i.l.bf16 %v10177_v22 }
 0x180   : > { %v6927_v5 = vunpack.i.h.bf16 %v6925_v50  ;;  %v6926_v2 = vunpack.i.l.bf16 %v6925_v50  ;;  %v6882_v48 = vunpack.i.h.bf16 %v10205_v14  ;;  %v6881_v40 = vunpack.i.l.bf16 %v10205_v14 }
 0x181   : > { %6169 = vmatprep.mubr.msk.bf16.mxu0 %vm1755_vm11, %v1719_v12  ;;  %v6940_v54 = vpop.permute.xlu1 %6939  ;;  %v1662_v57 = vsel %vm1653_vm9, %v10300_v56, %v6856_v41  ;;  %v1663_v51 = vsel %vm1653_vm9, %v10304_v36, %v6857_v60  ;;  %v1693_v59 = vsel %vm1686_vm10, %v1660_v9, %v6931_v58  ;;  %v1694_v28 = vsel %vm1686_vm10, %v1661_v25, %v6932_v8 }
 0x182   : > { %v1691_v35 = vsel %vm1686_vm10, %v1658_v45, %v6926_v2  ;;  %v1692_v61 = vsel %vm1686_vm10, %v1659_v1, %v6927_v5  ;;  %6170 = vmatmul.mubr.msk.bf16.vlgmr.msra.gmra.mxu0 %vm1755_vm11, %v1720_v47  ;;  %v6872_v63 = vunpack.i.h.bf16 %v10156_v62  ;;  %v6871_v14 = vunpack.i.l.bf16 %v10156_v62 }
 0x183   : > { %v6935_v31 = vpop.permute.xlu0 %6934  ;;  %v1721_v39 = vpack.c.bf16 %v1692_v61, %v1691_v35  ;;  %v1666_v56 = vsel %vm1653_vm9, %v10319_v42, %v6866_v20  ;;  %v1667_v36 = vsel %vm1653_vm9, %v10323_v46, %v6867_v6  ;;  %v6877_v47 = vunpack.i.h.bf16 %v10224_v44 }
 0x184   : > { %v6937_v55 = vunpack.i.h.bf16 %v6935_v31  ;;  %v6936_v24 = vunpack.i.l.bf16 %v6935_v31  ;;  %v6876_v9 = vunpack.i.l.bf16 %v10224_v44  ;;  %v1672_v50 = vsel %vm1653_vm9, %v10328_v26, %v6881_v40 }
 0x185   : > { %6173 = vmatprep.mubr.msk.bf16.mxu0 %vm1755_vm11, %v1721_v39  ;;  %v10415_v22 = vpop.permute.xlu1 %6949  ;;  %v1673_v12 = vsel %vm1653_vm9, %v10332_v0, %v6882_v48  ;;  %v6886_v45 = vunpack.i.l.bf16 %v10253_v10  ;;  %v1722_v1 = vpack.c.bf16 %v1694_v28, %v1693_v59  ;;  %v6942_v5 = vunpack.i.h.bf16 %v6940_v54 }
 0x186   : > { %v1695_v16 = vsel %vm1686_vm10, %v1662_v57, %v6936_v24  ;;  %v1696_v27 = vsel %vm1686_vm10, %v1663_v51, %v6937_v55  ;;  %v6941_v2 = vunpack.i.l.bf16 %v6940_v54  ;;  %v6892_v46 = vunpack.i.h.bf16 %v10236_v52 }
 0x187   : > { %v6945_v17 = vpop.permute.xlu0 %6944  ;;  %v1723_v60 = vpack.c.bf16 %v1696_v27, %v1695_v16  ;;  %v6891_v26 = vunpack.i.l.bf16 %v10236_v52  ;;  %v6887_v58 = vunpack.i.h.bf16 %v10253_v10  ;;  %v1670_v54 = vsel %vm1653_vm9, %v10339_v43, %v6876_v9  ;;  %v14224_v9 = vld [vmem:[#allocation12_spill] sm:$0xff] }
 0x188   : > { %v6946_v42 = vunpack.i.l.bf16 %v6945_v17  ;;  %v6947_v41 = vunpack.i.h.bf16 %v6945_v17  ;;  %v1671_v25 = vsel %vm1653_vm9, %v10354_v15, %v6877_v47  ;;  %v1674_v52 = vsel %vm1653_vm9, %v10350_v38, %v6886_v45 }
 0x189   : > { %v6960_v4 = vpop.permute.xlu1 %6959  ;;  %v1697_v10 = vsel %vm1686_vm10, %v1664_v33, %v6941_v2  ;;  %v1698_v31 = vsel %vm1686_vm10, %v1665_v13, %v6942_v5  ;;  %v1675_v24 = vsel %vm1653_vm9, %v10357_v32, %v6887_v58  ;;  %v6897_v57 = vunpack.i.h.bf16 %v10292_v11 }
 0x18a   : > { %6174 = vmatmul.mubr.msk.bf16.gmra.mxu0 %vm1755_vm11, %v1722_v1  ;;  %v6962_v44 = vunpack.i.h.bf16 %v6960_v4  ;;  %v6961_v8 = vunpack.i.l.bf16 %v6960_v4  ;;  %v1699_v39 = vsel %vm1686_vm10, %v1666_v56, %v6946_v42  ;;  %v1700_v43 = vsel %vm1686_vm10, %v1667_v36, %v6947_v41  ;;  %v14225_v4 = vld [vmem:[#allocation18_spill] sm:$0xff] }
 0x18b   : > { %v6955_v0 = vpop.permute.xlu0 %6954  ;;  %6177 = vmatprep.mubr.msk.bf16.mxu0 %vm1755_vm11, %v1723_v60  ;;  %v6896_v38 = vunpack.i.l.bf16 %v10292_v11  ;;  %v6952_v13 = vunpack.i.h.bf16 %v10415_v22  ;;  %v1724_v16 = vpack.c.bf16 %v1698_v31, %v1697_v10  ;;  %v6951_v27 = vunpack.i.l.bf16 %v10415_v22  ;;  %v14227_v31 = vld [vmem:[#allocation24_spill] sm:$0xff] }
 0x18c   : > { %v1705_v35 = vsel %vm1686_vm10, %v1672_v50, %v6961_v8  ;;  %v1706_v61 = vsel %vm1686_vm10, %v1673_v12, %v6962_v44  ;;  %v6957_v6 = vunpack.i.h.bf16 %v6955_v0  ;;  %v6956_v20 = vunpack.i.l.bf16 %v6955_v0  ;;  %v14226_v44 = vld [vmem:[#allocation15_spill] sm:$0xff] }
 0x18d   : > { %v6970_v48 = vpop.permute.xlu1 %6969  ;;  %v1728_v55 = vpack.c.bf16 %v1706_v61, %v1705_v35  ;;  %v1725_v47 = vpack.c.bf16 %v1700_v43, %v1699_v39  ;;  %v6747_v32 = vunpack.i.h.bf16 %v14224_v9  ;;  %v1668_v17 = vsel %vm1653_vm9, %v10308_v30, %v6871_v14  ;;  %v14228_v43 = vld [vmem:[#allocation28_spill] sm:$0xff] }
 0x18e   : > { %v1703_v15 = vsel %vm1686_vm10, %v1670_v54, %v6956_v20  ;;  %v1704_v40 = vsel %vm1686_vm10, %v1671_v25, %v6957_v6  ;;  %v6972_v56 = vunpack.i.h.bf16 %v6970_v48  ;;  %v6971_v36 = vunpack.i.l.bf16 %v6970_v48 }
 0x18f   : > { %v6965_v33 = vpop.permute.xlu0 %6964  ;;  %v1727_v51 = vpack.c.bf16 %v1704_v40, %v1703_v15  ;;  %v1669_v22 = vsel %vm1653_vm9, %v10315_v19, %v6872_v63  ;;  %v1676_v12 = vsel %vm1653_vm9, %v10343_v49, %v6891_v26  ;;  %v1677_v45 = vsel %vm1653_vm9, %v10347_v18, %v6892_v46 }
 0x190   : > { %v6967_v59 = vunpack.i.h.bf16 %v6965_v33  ;;  %v6966_v28 = vunpack.i.l.bf16 %v6965_v33  ;;  %v1678_v1 = vsel %vm1653_vm9, %v10372_v37, %v6896_v38  ;;  %v1679_v5 = vsel %vm1653_vm9, %v10383_v29, %v6897_v57 }
 0x191   : > { %6185 = vmatprep.mubr.msk.bf16.mxu1 %vm1755_vm11, %v1727_v51  ;;  %v1701_v19 = vsel %vm1686_vm10, %v1668_v17, %v6951_v27  ;;  %v1702_v63 = vsel %vm1686_vm10, %v1669_v22, %v6952_v13  ;;  %v1709_v49 = vsel %vm1686_vm10, %v1676_v12, %v6971_v36  ;;  %v1710_v18 = vsel %vm1686_vm10, %v1677_v45, %v6972_v56  ;;  %v6980_v37 = vpop.permute.xlu1 %6979  ;;  %v14236_v12 = vld [vmem:[#allocation14_spill] sm:$0xff] }
 0x192   : > { %v1707_v11 = vsel %vm1686_vm10, %v1674_v52, %v6966_v28  ;;  %v1708_v50 = vsel %vm1686_vm10, %v1675_v24, %v6967_v59  ;;  %6178 = vmatmul.mubr.msk.bf16.gmra.mxu0 %vm1755_vm11, %v1724_v16  ;;  %6186 = vmatmul.mubr.msk.bf16.vlgmr.msra.gmra.mxu1 %vm1755_vm11, %v1728_v55  ;;  %v6746_v42 = vunpack.i.l.bf16 %v14224_v9  ;;  %v6822_v60 = vunpack.i.h.bf16 %v14225_v4  ;;  %v14230_v55 = vld [vmem:[#allocation27_spill] sm:$0xff]  ;;  %v14231_v16 = vld [vmem:[#allocation10_spill] sm:$0xff] }
 0x193   : > { %v6975_v30 = vpop.permute.xlu0 %6974  ;;  %6181 = vmatprep.mubr.msk.bf16.mxu0 %vm1755_vm11, %v1725_v47  ;;  %v1729_v14 = vpack.c.bf16 %v1708_v50, %v1707_v11  ;;  %v6821_v41 = vunpack.i.l.bf16 %v14225_v4  ;;  %v6827_v8 = vunpack.i.h.bf16 %v14226_v44  ;;  %v6826_v26 = vunpack.i.l.bf16 %v14226_v44  ;;  %v14234_v11 = vld [vmem:[#allocation11_spill] sm:$0xff] }
 0x194   : > { %v6977_v62 = vunpack.i.h.bf16 %v6975_v30  ;;  %v6976_v2 = vunpack.i.l.bf16 %v6975_v30  ;;  %v6902_v58 = vunpack.i.h.bf16 %v10278_v21  ;;  %v6901_v54 = vunpack.i.l.bf16 %v10278_v21  ;;  %v14237_v30 = vld [vmem:[#allocation22_spill] sm:$0xff] }
 0x195   : > { %6189 = vmatprep.mubr.msk.bf16.mxu1 %vm1755_vm11, %v1729_v14  ;;  %v6907_v25 = vunpack.i.h.bf16 %v10335_v53  ;;  %v1726_v35 = vpack.c.bf16 %v1702_v63, %v1701_v19  ;;  %v1730_v61 = vpack.c.bf16 %v1710_v18, %v1709_v49  ;;  %v6906_v6 = vunpack.i.l.bf16 %v10335_v53  ;;  %v14229_v53 = vld [vmem:[#allocation17_spill] sm:$0xff]  ;;  %v6990_v36 = vpop.permute.xlu1 %6989 }
 0x196   : > { %v1711_v46 = vsel %vm1686_vm10, %v1678_v1, %v6976_v2  ;;  %v1712_v29 = vsel %vm1686_vm10, %v1679_v5, %v6977_v62  ;;  %v6982_v20 = vunpack.i.h.bf16 %v6980_v37  ;;  %v6981_v52 = vunpack.i.l.bf16 %v6980_v37  ;;  %v14238_v5 = vld [vmem:[#allocation44_spill] sm:$0xff] }
 0x197   : > { %v6985_v0 = vpop.permute.xlu0 %6984  ;;  %v1731_v10 = vpack.c.bf16 %v1712_v29, %v1711_v46  ;;  %v1614_v39 = vsel %vm1587_vm7, %v14227_v31, %v6741_v23  ;;  %v1615_v48 = vsel %vm1587_vm7, %v14228_v43, %v6742_v34  ;;  %v1616_v40 = vsel %vm1587_vm7, %v14229_v53, %v6746_v42 }
 0x198   : > { %v6987_v21 = vunpack.i.h.bf16 %v6985_v0  ;;  %v6986_v15 = vunpack.i.l.bf16 %v6985_v0  ;;  %v1617_v24 = vsel %vm1587_vm7, %v14230_v55, %v6747_v32  ;;  %v1647_v57 = vsel %vm1620_vm8, %v1614_v39, %v6821_v41  ;;  %v14232_v32 = vld [vmem:[#allocation16_spill] sm:$0xff]  ;;  %v10615_v55 = vld [vmem:[%s14241_s2] ss:$0 sm:$0xff] }
 0x199   : > { %v1648_v23 = vsel %vm1620_vm8, %v1615_v48, %v6822_v60  ;;  %v1649_v7 = vsel %vm1620_vm8, %v1616_v40, %v6826_v26  ;;  %v1650_v34 = vsel %vm1620_vm8, %v1617_v24, %v6827_v8  ;;  %v1680_v38 = vsel %vm1653_vm9, %v1647_v57, %v6901_v54  ;;  %v10620_v57 = vld [vmem:[%s14242_s3] ss:$0 sm:$0xff] }
 0x19a   : > { %6182 = vmatmul.mubr.msk.bf16.gmra.mxu0 %vm1755_vm11, %v1726_v35  ;;  %6190 = vmatmul.mubr.msk.bf16.gmra.mxu1 %vm1755_vm11, %v1730_v61  ;;  %v1681_v33 = vsel %vm1653_vm9, %v1648_v23, %v6902_v58  ;;  %v1682_v51 = vsel %vm1653_vm9, %v1649_v7, %v6906_v6  ;;  %v1683_v13 = vsel %vm1653_vm9, %v1650_v34, %v6907_v25  ;;  %v6752_v27 = vunpack.i.h.bf16 %v14231_v16 }
 0x19b   : > { %6193 = vmatprep.mubr.msk.bf16.mxu1 %vm1755_vm11, %v1731_v10  ;;  %v1713_v59 = vsel %vm1686_vm10, %v1680_v38, %v6981_v52  ;;  %v1714_v28 = vsel %vm1686_vm10, %v1681_v33, %v6982_v20  ;;  %v6751_v56 = vunpack.i.l.bf16 %v14231_v16  ;;  %v1715_v47 = vsel %vm1686_vm10, %v1682_v51, %v6986_v15 }
 0x19c   : > { %v1716_v9 = vsel %vm1686_vm10, %v1683_v13, %v6987_v21  ;;  %v14233_v17 = vunpack.i.l.bf16 %v14232_v32  ;;  %v14235_v22 = vunpack.i.h.bf16 %v14232_v32  ;;  %v6832_v14 = vunpack.i.h.bf16 %v14237_v30 }
 0x19d   : > { %v6831_v1 = vunpack.i.l.bf16 %v14237_v30  ;;  %v14239_v62 = vunpack.i.l.bf16 %v14238_v5  ;;  %v6912_v19 = vunpack.i.h.bf16 %v10311_v3  ;;  %v6911_v63 = vunpack.i.l.bf16 %v10311_v3 }
 0x19e   : > { %v1552_v50 = vsel %vm1521_vm5, %v14234_v11, %v14233_v17  ;;  %v1553_v45 = vsel %vm1521_vm5, %v14236_v12, %v14235_v22  ;;  %v1732_v49 = vpack.c.bf16 %v1714_v28, %v1713_v59  ;;  %v14240_v18 = vunpack.i.h.bf16 %v14238_v5 }
 0x19f   : > { %v1585_v2 = vsel %vm1554_vm6, %v1552_v50, %v14239_v62  ;;  %v6992_v4 = vunpack.i.h.bf16 %v6990_v36  ;;  %v6991_v60 = vunpack.i.l.bf16 %v6990_v36  ;;  %v1733_v37 = vpack.c.bf16 %v1716_v9, %v1715_v47 }
 0x1a0   : > { %v1586_v42 = vsel %vm1554_vm6, %v1553_v45, %v14240_v18  ;;  %v1618_v46 = vsel %vm1587_vm7, %v1585_v2, %v6751_v56  ;;  %v8476_v54 = vmov 0.0   ;;  %vm3450_vm3 = vcmask 523264  }
 0x1a1   : > { %v1619_v29 = vsel %vm1587_vm7, %v1586_v42, %v6752_v27  ;;  %v1651_v41 = vsel %vm1620_vm8, %v1618_v46, %v6831_v1  ;;  %2086 = vst.msk [vmem:[#allocation2 + $0x30] sm:$0xff] %vm1488_vm4, %v8476_v54  ;;  %2087 = vst.msk [vmem:[#allocation2 + $0x38] sm:$0xff] %vm1488_vm4, %v8476_v54  ;;  %vm3535_vm5 = vcmask 588800   ;;  %vm5782_vm7 = vcmask 63494  }
 0x1a2   : > { %6194 = vmatmul.mubr.msk.bf16.gmra.mxu1 %vm1755_vm11, %v1732_v49  ;;  %v1652_v44 = vsel %vm1620_vm8, %v1619_v29, %v6832_v14  ;;  %v1684_v3 = vsel %vm1653_vm9, %v1651_v41, %v6911_v63  ;;  %2079 = vst.msk [vmem:[#allocation2] sm:$0xff] %vm1488_vm4, %v8476_v54  ;;  %2080 = vst.msk [vmem:[#allocation2 + $0x8] sm:$0xff] %vm1488_vm4, %v8476_v54 }
 0x1a3   : > { %6197 = vmatprep.mubr.msk.bf16.mxu1 %vm1755_vm11, %v1733_v37  ;;  %v1685_v8 = vsel %vm1653_vm9, %v1652_v44, %v6912_v19  ;;  %v1717_v26 = vsel %vm1686_vm10, %v1684_v3, %v6991_v60  ;;  %2083 = vst.msk [vmem:[#allocation2 + $0x18] sm:$0xff] %vm1488_vm4, %v8476_v54  ;;  %2084 = vst.msk [vmem:[#allocation2 + $0x20] sm:$0xff] %vm1488_vm4, %v8476_v54 }
 0x1a4   : > { %v1718_v58 = vsel %vm1686_vm10, %v1685_v8, %v6992_v4  ;;  %2089 = vst.msk [vmem:[#allocation2 + $0x48] sm:$0xff] %vm1488_vm4, %v8476_v54  ;;  %2090 = vst.msk [vmem:[#allocation2 + $0x50] sm:$0xff] %vm1488_vm4, %v8476_v54 }
 0x1a5   : > { %v1734_v0 = vpack.c.bf16 %v1718_v58, %v1717_v26  ;;  %2092 = vst.msk [vmem:[#allocation2 + $0x60] sm:$0xff] %vm1488_vm4, %v8476_v54  ;;  %2093 = vst.msk [vmem:[#allocation2 + $0x68] sm:$0xff] %vm1488_vm4, %v8476_v54 }
 0x1a6   : > { %2095 = vst.msk [vmem:[#allocation2 + $0x78] sm:$0xff] %vm1488_vm4, %v8476_v54  ;;  %2096 = vst.msk [vmem:[#allocation2 + $0x80] sm:$0xff] %vm1488_vm4, %v8476_v54 }
 0x1a7   : > { %2098 = vst.msk [vmem:[#allocation2 + $0x90] sm:$0xff] %vm1488_vm4, %v8476_v54  ;;  %2099 = vst.msk [vmem:[#allocation2 + $0x98] sm:$0xff] %vm1488_vm4, %v8476_v54 }
 0x1a8   : > { %2101 = vst.msk [vmem:[#allocation2 + $0xa8] sm:$0xff] %vm1488_vm4, %v8476_v54  ;;  %2102 = vst.msk [vmem:[#allocation2 + $0xb0] sm:$0xff] %vm1488_vm4, %v8476_v54 }
 0x1a9   : > { %2104 = vst.msk [vmem:[#allocation2 + $0xc0] sm:$0xff] %vm1488_vm4, %v8476_v54  ;;  %2105 = vst.msk [vmem:[#allocation2 + $0xc8] sm:$0xff] %vm1488_vm4, %v8476_v54  ;;  %v2167_v25 = vld [vmem:[#allocation2] sm:$0xff]  ;;  %v2168_v35 = vld [vmem:[#allocation2 + $0x8] sm:$0xff] }
 0x1aa   : > { %6198 = vmatmul.mubr.msk.bf16.gmra.mxu1 %vm1755_vm11, %v1734_v0  ;;  %2107 = vst.msk [vmem:[#allocation2 + $0xd8] sm:$0xff] %vm1488_vm4, %v8476_v54  ;;  %2108 = vst.msk [vmem:[#allocation2 + $0xe0] sm:$0xff] %vm1488_vm4, %v8476_v54  ;;  %v2269_v6 = vrot.slane %v2167_v25, 1  ;;  %v2270_v20 = vrot.slane %v2168_v35, 1  ;;  %v2349_v43 = vrot.slane %v2167_v25, 2  ;;  %v2350_v48 = vrot.slane %v2168_v35, 2 }
 0x1ab   : > { %2110 = vst.msk [vmem:[#allocation2 + $0xf0] sm:$0xff] %vm1488_vm4, %v8476_v54  ;;  %2111 = vst.msk [vmem:[#allocation2 + $0xf8] sm:$0xff] %vm1488_vm4, %v8476_v54 }
 0x1ac   : > { %2113 = vst.msk [vmem:[#allocation2 + $0x108] sm:$0xff] %vm1488_vm4, %v8476_v54  ;;  %2114 = vst.msk [vmem:[#allocation2 + $0x110] sm:$0xff] %vm1488_vm4, %v8476_v54  ;;  %v2271_v10 = vsel %vm499_vm0, %v2269_v6, %v2270_v20  ;;  %v2351_v15 = vsel %vm580_vm1, %v2349_v43, %v2350_v48 }
 0x1ad   : > { %2116 = vst.msk [vmem:[#allocation2 + $0x120] sm:$0xff] %vm1488_vm4, %v8476_v54  ;;  %2117 = vst.msk [vmem:[#allocation2 + $0x128] sm:$0xff] %vm1488_vm4, %v8476_v54 }
 0x1ae   : > { %2119 = vst.msk [vmem:[#allocation2 + $0x138] sm:$0xff] %vm1488_vm4, %v8476_v54  ;;  %2120 = vst.msk [vmem:[#allocation2 + $0x140] sm:$0xff] %vm1488_vm4, %v8476_v54 }
 0x1af   : > { %2122 = vst.msk [vmem:[#allocation2 + $0x150] sm:$0xff] %vm1488_vm4, %v8476_v54  ;;  %2123 = vst.msk [vmem:[#allocation2 + $0x158] sm:$0xff] %vm1488_vm4, %v8476_v54 }
 0x1b0   : > { %2125 = vst.msk [vmem:[#allocation2 + $0x168] sm:$0xff] %vm1488_vm4, %v8476_v54  ;;  %2126 = vst.msk [vmem:[#allocation2 + $0x170] sm:$0xff] %vm1488_vm4, %v8476_v54 }
 0x1b1   : > { %2128 = vst.msk [vmem:[#allocation2 + $0x180] sm:$0xff] %vm1488_vm4, %v8476_v54  ;;  %2129 = vst.msk [vmem:[#allocation2 + $0x188] sm:$0xff] %vm1488_vm4, %v8476_v54 }
 0x1b2   : > { %2131 = vst.msk [vmem:[#allocation2 + $0x198] sm:$0xff] %vm1488_vm4, %v8476_v54  ;;  %2132 = vst.msk [vmem:[#allocation2 + $0x1a0] sm:$0xff] %vm1488_vm4, %v8476_v54 }
 0x1b3   : > { %2088 = vst.msk [vmem:[#allocation2 + $0x40] sm:$0x3] %vm2081_vm12, %v8476_v54  ;;  %2082 = vst.msk [vmem:[#allocation2 + $0x10] sm:$0x3] %vm2081_vm12, %v8476_v54 }
 0x1b4   : > { %2085 = vst.msk [vmem:[#allocation2 + $0x28] sm:$0x3] %vm2081_vm12, %v8476_v54  ;;  %2091 = vst.msk [vmem:[#allocation2 + $0x58] sm:$0x3] %vm2081_vm12, %v8476_v54 }
 0x1b5   : > { %2094 = vst.msk [vmem:[#allocation2 + $0x70] sm:$0x3] %vm2081_vm12, %v8476_v54  ;;  %2097 = vst.msk [vmem:[#allocation2 + $0x88] sm:$0x3] %vm2081_vm12, %v8476_v54 }
 0x1b6   : > { %2100 = vst.msk [vmem:[#allocation2 + $0xa0] sm:$0x3] %vm2081_vm12, %v8476_v54  ;;  %2103 = vst.msk [vmem:[#allocation2 + $0xb8] sm:$0x3] %vm2081_vm12, %v8476_v54 }
 0x1b7   : > { %2106 = vst.msk [vmem:[#allocation2 + $0xd0] sm:$0x3] %vm2081_vm12, %v8476_v54  ;;  %2109 = vst.msk [vmem:[#allocation2 + $0xe8] sm:$0x3] %vm2081_vm12, %v8476_v54 }
 0x1b8   : > { %2112 = vst.msk [vmem:[#allocation2 + $0x100] sm:$0x3] %vm2081_vm12, %v8476_v54  ;;  %2115 = vst.msk [vmem:[#allocation2 + $0x118] sm:$0x3] %vm2081_vm12, %v8476_v54 }
 0x1b9   : > { %2118 = vst.msk [vmem:[#allocation2 + $0x130] sm:$0x3] %vm2081_vm12, %v8476_v54  ;;  %2121 = vst.msk [vmem:[#allocation2 + $0x148] sm:$0x3] %vm2081_vm12, %v8476_v54 }
 0x1ba   : > { %2124 = vst.msk [vmem:[#allocation2 + $0x160] sm:$0x3] %vm2081_vm12, %v8476_v54  ;;  %2127 = vst.msk [vmem:[#allocation2 + $0x178] sm:$0x3] %vm2081_vm12, %v8476_v54  ;;  %v2169_v61 = vld [vmem:[#allocation2 + $0x10] sm:$0x3] }
 0x1bb   : > { %2130 = vst.msk [vmem:[#allocation2 + $0x190] sm:$0x3] %vm2081_vm12, %v8476_v54  ;;  %2133 = vst.msk [vmem:[#allocation2 + $0x1a8] sm:$0x3] %vm2081_vm12, %v8476_v54  ;;  %v2272_v52 = vrot.slane %v2169_v61, 1  ;;  %v2352_v21 = vrot.slane %v2169_v61, 2 }
 0x1bd   : > { %v2273_v31 = vsel %vm499_vm0, %v2270_v20, %v2272_v52  ;;  %v2353_v53 = vsel %vm580_vm1, %v2350_v48, %v2352_v21 }
 0x1be   : > { %v6993_v39 = vpack.i.bf16 %v2273_v31, %v2271_v10  ;;  %v6998_v40 = vpack.i.bf16 %v2353_v53, %v2351_v15 }
 0x1c0   : > { %6994 = vrot.lane.b32.xlu0 %v6993_v39, %s8469_s16 }
 0x1c4   : > { %6999 = vrot.lane.b32.xlu0 %v6998_v40, %s8471_s24 }
 0x242   : > { %v6171_v24 = vpop.f32.mrf.mxu0 }
 0x243   : > { %v1978_v23 = vmul.f32 %v6171_v24, %v10615_v55 }
 0x244   : > { %v1842_v7 = vpop.f32.mrf.mxu0 }
 0x245   : > { %v10624_v34 = vadd.f32 %v10620_v57, %v1978_v23  ;;  %v1976_v38 = vmul.f32 %v10615_v55, %v1842_v7 }
 0x246   : > { %v6172_v33 = vpop.f32.mrf.mxu0 }
 0x247   : > { %14243 = vst [vmem:[#allocation31_spill] sm:$0xff] %v10624_v34  ;;  %v13948_v51 = vmax.f32 %v10624_v34, 0.0  ;;  %v10629_v13 = vadd.f32 %v10620_v57, %v1976_v38  ;;  %v1979_v59 = vmul.f32 %v6172_v33, %v10615_v55 }
 0x248   : > { %v1845_v28 = vpop.f32.mrf.mxu0 }
 0x249   : > { %14244 = vst [vmem:[#allocation32_spill] sm:$0xff] %v10629_v13  ;;  %2137 = vst.msk [vmem:[#allocation2 + $0x31] sm:$0xff] %vm1488_vm4, %v13948_v51  ;;  %v13943_v16 = vmax.f32 %v10629_v13, 0.0  ;;  %v10637_v27 = vadd.f32 %v10620_v57, %v1979_v59  ;;  %v1977_v56 = vmul.f32 %v10615_v55, %v1845_v28 }
 0x24a   : > { %v6175_v36 = vpop.f32.mrf.mxu0 }
 0x24b   : > { %14245 = vst [vmem:[#allocation33_spill] sm:$0xff] %v10637_v27  ;;  %2135 = vst.msk [vmem:[#allocation2 + $0x19] sm:$0xff] %vm1488_vm4, %v13943_v16  ;;  %v13942_v47 = vmax.f32 %v10637_v27, 0.0  ;;  %v10645_v9 = vadd.f32 %v10620_v57, %v1977_v56  ;;  %v1982_v32 = vmul.f32 %v6175_v36, %v10615_v55 }
 0x24c   : > { %v1858_v17 = vpop.f32.mrf.mxu0 }
 0x24d   : > { %14246 = vst [vmem:[#allocation34_spill] sm:$0xff] %v10645_v9  ;;  %2138 = vst.msk [vmem:[#allocation2 + $0x39] sm:$0xff] %vm1488_vm4, %v13942_v47  ;;  %v13940_v11 = vmax.f32 %v10645_v9, 0.0  ;;  %v10653_v50 = vadd.f32 %v10620_v57, %v1982_v32  ;;  %v1980_v22 = vmul.f32 %v10615_v55, %v1858_v17 }
 0x24e   : > { %v6176_v12 = vpop.f32.mrf.mxu0 }
 0x24f   : > { %14247 = vst [vmem:[#allocation35_spill] sm:$0xff] %v10653_v50  ;;  %2136 = vst.msk [vmem:[#allocation2 + $0x21] sm:$0xff] %vm1488_vm4, %v13940_v11  ;;  %v13936_v45 = vmax.f32 %v10653_v50, 0.0  ;;  %v10661_v30 = vadd.f32 %v10620_v57, %v1980_v22  ;;  %v1983_v14 = vmul.f32 %v6176_v12, %v10615_v55 }
 0x250   : > { %v1861_v1 = vpop.f32.mrf.mxu0  ;;  %v10694_v8 = vld [vmem:[#allocation2 + $0x30] sm:$0xff] }
 0x251   : > { %14248 = vst [vmem:[#allocation36_spill] sm:$0xff] %v10661_v30  ;;  %2141 = vst.msk [vmem:[#allocation2 + $0x61] sm:$0xff] %vm1488_vm4, %v13936_v45  ;;  %v13935_v5 = vmax.f32 %v10661_v30, 0.0  ;;  %v10669_v62 = vadd.f32 %v10620_v57, %v1983_v14  ;;  %v1981_v2 = vmul.f32 %v10615_v55, %v1861_v1 }
 0x252   : > { %v6179_v19 = vpop.f32.mrf.mxu0  ;;  %v6187_v63 = vpop.f32.mrf.mxu1  ;;  %v10710_v52 = vld [vmem:[#allocation2 + $0x18] sm:$0xff] }
 0x253   : > { %14249 = vst [vmem:[#allocation37_spill] sm:$0xff] %v10669_v62  ;;  %2139 = vst.msk [vmem:[#allocation2 + $0x49] sm:$0xff] %vm1488_vm4, %v13935_v5  ;;  %v13934_v49 = vmax.f32 %v10669_v62, 0.0  ;;  %v10677_v18 = vadd.f32 %v10620_v57, %v1981_v2  ;;  %v1986_v42 = vmul.f32 %v6179_v19, %v10615_v55  ;;  %v1994_v4 = vmul.f32 %v6187_v63, %v10615_v55 }
 0x254   : > { %v1874_v60 = vpop.f32.mrf.mxu0  ;;  %v1906_v37 = vpop.f32.mrf.mxu1  ;;  %v10681_v46 = vld [vmem:[#allocation2 + $0x38] sm:$0xff]  ;;  %v10761_v19 = vld [vmem:[#allocation2 + $0x40] sm:$0x3] }
 0x255   : > { %14250 = vst [vmem:[#allocation38_spill] sm:$0xff] %v10677_v18  ;;  %2142 = vst.msk [vmem:[#allocation2 + $0x69] sm:$0xff] %vm1488_vm4, %v13934_v49  ;;  %v13933_v29 = vmax.f32 %v10677_v18, 0.0  ;;  %v10688_v41 = vadd.f32 %v10620_v57, %v1986_v42  ;;  %v10691_v44 = vadd.f32 %v10620_v57, %v1994_v4  ;;  %v1984_v3 = vmul.f32 %v10615_v55, %v1874_v60 }
 0x256   : > { %v1992_v26 = vmul.f32 %v10615_v55, %v1906_v37  ;;  %v6180_v58 = vpop.f32.mrf.mxu0  ;;  %v6188_v0 = vpop.f32.mrf.mxu1  ;;  %v7003_v54 = vpack.i.bf16 %v10681_v46, %v10694_v8  ;;  %v10699_v25 = vld [vmem:[#allocation2 + $0x20] sm:$0xff]  ;;  %v2362_v45 = vrot.slane %v10761_v19, 2 }
 0x257   : > { %14251 = vst [vmem:[#allocation39_spill] sm:$0xff] %v10688_v41  ;;  %14252 = vst [vmem:[#allocation40_spill] sm:$0xff] %v10691_v44  ;;  %v13932_v35 = vmax.f32 %v10688_v41, 0.0  ;;  %v13923_v61 = vmax.f32 %v10691_v44, 0.0  ;;  %v10707_v6 = vadd.f32 %v10620_v57, %v1984_v3  ;;  %v1987_v20 = vmul.f32 %v6180_v58, %v10615_v55 }
 0x258   : > { %2140 = vst.msk [vmem:[#allocation2 + $0x51] sm:$0xff] %vm1488_vm4, %v13933_v29  ;;  %v10713_v10 = vadd.f32 %v10620_v57, %v1992_v26  ;;  %v1995_v31 = vmul.f32 %v6188_v0, %v10615_v55  ;;  %7004 = vrot.lane.b32.xlu1 %v7003_v54, %s14053_s29  ;;  %v1877_v39 = vpop.f32.mrf.mxu0  ;;  %v1909_v43 = vpop.f32.mrf.mxu1  ;;  %v7013_v48 = vpack.i.bf16 %v10699_v25, %v10710_v52  ;;  %v2355_v16 = vrot.slane %v10699_v25, 2 }
 0x259   : > { %14253 = vst [vmem:[#allocation41_spill] sm:$0xff] %v10707_v6  ;;  %2145 = vst.msk [vmem:[#allocation2 + $0x91] sm:$0xff] %vm1488_vm4, %v13932_v35  ;;  %v13931_v21 = vmax.f32 %v10707_v6, 0.0  ;;  %v10727_v15 = vadd.f32 %v10620_v57, %v1987_v20  ;;  %v1985_v53 = vmul.f32 %v10615_v55, %v1877_v39  ;;  %v1993_v40 = vmul.f32 %v10615_v55, %v1909_v43 }
 0x25a   : > { %14254 = vst [vmem:[#allocation42_spill] sm:$0xff] %v10713_v10  ;;  %2153 = vst.msk [vmem:[#allocation2 + $0xf1] sm:$0xff] %vm1488_vm4, %v13923_v61  ;;  %v13922_v24 = vmax.f32 %v10713_v10, 0.0  ;;  %v10733_v23 = vadd.f32 %v10620_v57, %v1995_v31  ;;  %7014 = vrot.lane.b32.xlu0 %v7013_v48, %s14053_s29  ;;  %v6183_v7 = vpop.f32.mrf.mxu0  ;;  %v6191_v38 = vpop.f32.mrf.mxu1  ;;  %v2280_v39 = vrot.slane %v10681_v46, 1  ;;  %v2282_v43 = vrot.slane %v10761_v19, 1 }
 0x25b   : > { %14255 = vst [vmem:[#allocation43_spill] sm:$0xff] %v10727_v15  ;;  %2143 = vst.msk [vmem:[#allocation2 + $0x79] sm:$0xff] %vm1488_vm4, %v13931_v21  ;;  %v13929_v33 = vmax.f32 %v10727_v15, 0.0  ;;  %v10741_v59 = vadd.f32 %v10620_v57, %v1985_v53  ;;  %v10744_v28 = vadd.f32 %v10620_v57, %v1993_v40  ;;  %v1990_v56 = vmul.f32 %v6183_v7, %v10615_v55 }
 0x25c   : > { %14256 = vst [vmem:[#allocation45_spill] sm:$0xff] %v10733_v23  ;;  %2151 = vst.msk [vmem:[#allocation2 + $0xd9] sm:$0xff] %vm1488_vm4, %v13922_v24  ;;  %v13920_v36 = vmax.f32 %v10733_v23, 0.0  ;;  %v1998_v32 = vmul.f32 %v6191_v38, %v10615_v55  ;;  %v1890_v17 = vpop.f32.mrf.mxu0  ;;  %v1922_v22 = vpop.f32.mrf.mxu1  ;;  %v2360_v35 = vrot.slane %v10681_v46, 2 }
 0x25d   : > { %14257 = vst [vmem:[#allocation46_spill] sm:$0xff] %v10741_v59  ;;  %14258 = vst [vmem:[#allocation47_spill] sm:$0xff] %v10744_v28  ;;  %v13928_v12 = vmax.f32 %v10741_v59, 0.0  ;;  %v13919_v14 = vmax.f32 %v10744_v28, 0.0  ;;  %v10758_v1 = vadd.f32 %v10620_v57, %v1990_v56  ;;  %v1988_v2 = vmul.f32 %v10615_v55, %v1890_v17 }
 0x25e   : > { %2146 = vst.msk [vmem:[#allocation2 + $0x99] sm:$0xff] %vm1488_vm4, %v13929_v33  ;;  %2154 = vst.msk [vmem:[#allocation2 + $0xf9] sm:$0xff] %vm1488_vm4, %v13920_v36  ;;  %v10767_v63 = vadd.f32 %v10620_v57, %v1998_v32  ;;  %v1996_v42 = vmul.f32 %v10615_v55, %v1922_v22  ;;  %v6184_v4 = vpop.f32.mrf.mxu0  ;;  %v6192_v60 = vpop.f32.mrf.mxu1  ;;  %v2279_v17 = vrot.slane %v10694_v8, 1 }
 0x25f   : > { %14259 = vst [vmem:[#allocation48_spill] sm:$0xff] %v10758_v1  ;;  %2144 = vst.msk [vmem:[#allocation2 + $0x81] sm:$0xff] %vm1488_vm4, %v13928_v12  ;;  %v13926_v37 = vmax.f32 %v10758_v1, 0.0  ;;  %v10778_v3 = vadd.f32 %v10620_v57, %v1988_v2  ;;  %v1991_v26 = vmul.f32 %v6184_v4, %v10615_v55  ;;  %v1999_v58 = vmul.f32 %v6192_v60, %v10615_v55 }
 0x260   : > { %14260 = vst [vmem:[#allocation49_spill] sm:$0xff] %v10767_v63  ;;  %2152 = vst.msk [vmem:[#allocation2 + $0xe1] sm:$0xff] %vm1488_vm4, %v13919_v14  ;;  %v13918_v0 = vmax.f32 %v10767_v63, 0.0  ;;  %v10784_v54 = vadd.f32 %v10620_v57, %v1996_v42  ;;  %v1893_v20 = vpop.f32.mrf.mxu0  ;;  %v1925_v31 = vpop.f32.mrf.mxu1  ;;  %v2274_v12 = vrot.slane %v10710_v52, 1 }
 0x261   : > { %14261 = vst [vmem:[#allocation50_spill] sm:$0xff] %v10778_v3  ;;  %2149 = vst.msk [vmem:[#allocation2 + $0xc1] sm:$0xff] %vm1488_vm4, %v13926_v37  ;;  %v13925_v48 = vmax.f32 %v10778_v3, 0.0  ;;  %v10793_v53 = vadd.f32 %v10620_v57, %v1991_v26  ;;  %v10796_v40 = vadd.f32 %v10620_v57, %v1999_v58  ;;  %v1989_v7 = vmul.f32 %v10615_v55, %v1893_v20  ;;  %v10821_v20 = vld [vmem:[#allocation2 + $0x28] sm:$0x3] }
 0x262   : > { %14262 = vst [vmem:[#allocation51_spill] sm:$0xff] %v10784_v54  ;;  %2157 = vst.msk [vmem:[#allocation2 + $0x121] sm:$0xff] %vm1488_vm4, %v13918_v0  ;;  %v13917_v38 = vmax.f32 %v10784_v54, 0.0  ;;  %v1997_v56 = vmul.f32 %v10615_v55, %v1925_v31  ;;  %v6195_v32 = vpop.f32.mrf.mxu1  ;;  %v2281_v58 = vsel %vm499_vm0, %v2279_v17, %v2280_v39  ;;  %v2359_v31 = vrot.slane %v10694_v8, 2  ;;  %v10835_v17 = vld [vmem:[#allocation2 + $0xf0] sm:$0xff] }
 0x263   : > { %14263 = vst [vmem:[#allocation52_spill] sm:$0xff] %v10793_v53  ;;  %14264 = vst [vmem:[#allocation53_spill] sm:$0xff] %v10796_v40  ;;  %v13924_v22 = vmax.f32 %v10793_v53, 0.0  ;;  %v13921_v2 = vmax.f32 %v10796_v40, 0.0  ;;  %v10811_v42 = vadd.f32 %v10620_v57, %v1989_v7  ;;  %v2002_v4 = vmul.f32 %v6195_v32, %v10615_v55  ;;  %v10847_v24 = vld [vmem:[#allocation2 + $0xd8] sm:$0xff] }
 0x264   : > { %2147 = vst.msk [vmem:[#allocation2 + $0xa9] sm:$0xff] %vm1488_vm4, %v13925_v48  ;;  %2155 = vst.msk [vmem:[#allocation2 + $0x109] sm:$0xff] %vm1488_vm4, %v13917_v38  ;;  %v10818_v60 = vadd.f32 %v10620_v57, %v1997_v56  ;;  %v1938_v26 = vpop.f32.mrf.mxu1  ;;  %v2283_v8 = vsel %vm499_vm0, %v2280_v39, %v2282_v43 }
 0x265   : > { %14265 = vst [vmem:[#allocation54_spill] sm:$0xff] %v10811_v42  ;;  %2150 = vst.msk [vmem:[#allocation2 + $0xc9] sm:$0xff] %vm1488_vm4, %v13924_v22  ;;  %v13927_v7 = vmax.f32 %v10811_v42, 0.0  ;;  %v10832_v56 = vadd.f32 %v10620_v57, %v2002_v4  ;;  %v2000_v32 = vmul.f32 %v10615_v55, %v1938_v26  ;;  %v10837_v38 = vld [vmem:[#allocation2 + $0xf8] sm:$0xff]  ;;  %v10840_v0 = vld [vmem:[#allocation2 + $0x100] sm:$0x3]  ;;  %v10885_v49 = vpack.i.bf16 %v2283_v8, %v2281_v58 }
 0x266   : > { %14266 = vst [vmem:[#allocation19_spill] sm:$0xff] %v10818_v60  ;;  %2158 = vst.msk [vmem:[#allocation2 + $0x129] sm:$0xff] %vm1488_vm4, %v13921_v2  ;;  %v13930_v14 = vmax.f32 %v10818_v60, 0.0  ;;  %v6196_v36 = vpop.f32.mrf.mxu1  ;;  %v10845_v2 = vpack.i.bf16 %v10837_v38, %v10835_v17  ;;  %v2320_v26 = vrot.slane %v10837_v38, 1  ;;  %v2322_v61 = vrot.slane %v10840_v0, 1 }
 0x267   : > { %14267 = vst [vmem:[#allocation21_spill] sm:$0xff] %v10832_v56  ;;  %v10849_v4 = vld [vmem:[#allocation2 + $0xe0] sm:$0xff]  ;;  %2148 = vst.msk [vmem:[#allocation2 + $0xb1] sm:$0xff] %vm1488_vm4, %v13927_v7  ;;  %v13937_v39 = vmax.f32 %v10832_v56, 0.0  ;;  %v10858_v43 = vadd.f32 %v10620_v57, %v2000_v32  ;;  %v2003_v22 = vmul.f32 %v6196_v36, %v10615_v55  ;;  %v2319_v7 = vrot.slane %v10835_v17, 1 }
 0x268   : > { %14268 = vst [vmem:[#allocation23_spill] sm:$0xff] %v10845_v2  ;;  %v10863_v48 = vpack.i.bf16 %v10849_v4, %v10847_v24  ;;  %2156 = vst.msk [vmem:[#allocation2 + $0x111] sm:$0xff] %vm1488_vm4, %v13930_v14  ;;  %7009 = vrot.lane.b32.xlu1 %v10845_v2, %s14053_s29  ;;  %v1941_v37 = vpop.f32.mrf.mxu1  ;;  %v2275_v32 = vrot.slane %v10699_v25, 1  ;;  %v2277_v36 = vrot.slane %v10821_v20, 1  ;;  %v2323_v46 = vsel %vm499_vm0, %v2320_v26, %v2322_v61  ;;  %v2196_v8 = vld [vmem:[#allocation2 + $0xe8] sm:$0x3] }
 0x269   : > { %14269 = vst [vmem:[#allocation13_spill] sm:$0xff] %v10858_v43  ;;  %2161 = vst.msk [vmem:[#allocation2 + $0x151] sm:$0xff] %vm1488_vm4, %v13937_v39  ;;  %v13938_v33 = vmax.f32 %v10858_v43, 0.0  ;;  %v10879_v14 = vadd.f32 %v10620_v57, %v2003_v22  ;;  %v2001_v21 = vmul.f32 %v10615_v55, %v1941_v37  ;;  %v2321_v5 = vsel %vm499_vm0, %v2319_v7, %v2320_v26 }
 0x26a   : > { %14270 = vst [vmem:[#allocation20_spill] sm:$0xff] %v10863_v48  ;;  %7019 = vrot.lane.b32.xlu0 %v10863_v48, %s14053_s29  ;;  %v6199_v29 = vpop.f32.mrf.mxu1  ;;  %14272 = vst [vmem:[#allocation25_spill] sm:$0xff] %v10885_v49  ;;  %v2276_v7 = vsel %vm499_vm0, %v2274_v12, %v2275_v32  ;;  %v2278_v19 = vsel %vm499_vm0, %v2275_v32, %v2277_v36  ;;  %v2361_v61 = vsel %vm580_vm1, %v2359_v31, %v2360_v35 }
 0x26b   : > { %14271 = vst [vmem:[#allocation26_spill] sm:$0xff] %v10879_v14  ;;  %2159 = vst.msk [vmem:[#allocation2 + $0x139] sm:$0xff] %vm1488_vm4, %v13938_v33  ;;  %v13939_v22 = vmax.f32 %v10879_v14, 0.0  ;;  %v10894_v37 = vadd.f32 %v10620_v57, %v2001_v21  ;;  %v2006_v39 = vmul.f32 %v6199_v29, %v10615_v55  ;;  %v10913_v26 = vpack.i.bf16 %v2323_v46, %v2321_v5 }
 0x26c   : > { %7044 = vrot.lane.b32.xlu1 %v10885_v49, %s14051_s13  ;;  %v1954_v58 = vpop.f32.mrf.mxu1  ;;  %v2363_v32 = vsel %vm580_vm1, %v2360_v35, %v2362_v45  ;;  %v2315_v36 = vrot.slane %v10849_v4, 1  ;;  %v2317_v11 = vrot.slane %v2196_v8, 1  ;;  %v2314_v45 = vrot.slane %v10847_v24, 1  ;;  %v2193_v6 = vld [vmem:[#allocation2 + $0xd0] sm:$0x3] }
 0x26d   : > { %14273 = vst [vmem:[#allocation29_spill] sm:$0xff] %v10894_v37  ;;  %2162 = vst.msk [vmem:[#allocation2 + $0x159] sm:$0xff] %vm1488_vm4, %v13939_v22  ;;  %v13941_v21 = vmax.f32 %v10894_v37, 0.0  ;;  %v10907_v33 = vadd.f32 %v10620_v57, %v2006_v39  ;;  %v2004_v29 = vmul.f32 %v10615_v55, %v1954_v58  ;;  %v2400_v35 = vrot.slane %v10837_v38, 2 }
 0x26e   : > { %7024 = vrot.lane.b32.xlu0 %v10885_v49, %s8469_s16  ;;  %v6200_v12 = vpop.f32.mrf.mxu1  ;;  %14275 = vst [vmem:[#allocation12_spill] sm:$0xff] %v10913_v26  ;;  %v2402_v31 = vrot.slane %v10840_v0, 2  ;;  %v10940_v47 = vpack.i.bf16 %v2363_v32, %v2361_v61  ;;  %v2316_v38 = vsel %vm499_vm0, %v2314_v45, %v2315_v36  ;;  %v2399_v0 = vrot.slane %v10835_v17, 2  ;;  %v11132_v18 = vld [vmem:[#allocation2 + $0xb0] sm:$0xff] }
 0x26f   : > { %14274 = vst [vmem:[#allocation30_spill] sm:$0xff] %v10907_v33  ;;  %2160 = vst.msk [vmem:[#allocation2 + $0x141] sm:$0xff] %vm1488_vm4, %v13941_v21  ;;  %v13947_v39 = vmax.f32 %v10907_v33, 0.0  ;;  %v10922_v58 = vadd.f32 %v10620_v57, %v2004_v29  ;;  %v2007_v22 = vmul.f32 %v6200_v12, %v10615_v55  ;;  %v7053_v21 = vpack.i.bf16 %v2278_v19, %v2276_v7 }
 0x270   : > { %7049 = vrot.lane.b32.xlu1 %v10913_v26, %s14051_s13  ;;  %v1957_v5 = vpop.f32.mrf.mxu1  ;;  %v2357_v7 = vrot.slane %v10821_v20, 2  ;;  %v2401_v19 = vsel %vm580_vm1, %v2399_v0, %v2400_v35  ;;  %v2403_v17 = vsel %vm580_vm1, %v2400_v35, %v2402_v31  ;;  %v2354_v25 = vrot.slane %v10710_v52, 2  ;;  %v2181_v0 = vld [vmem:[#allocation2 + $0x70] sm:$0x3] }
 0x271   : > { %14276 = vst [vmem:[#allocation18_spill] sm:$0xff] %v10922_v58  ;;  %2165 = vst.msk [vmem:[#allocation2 + $0x181] sm:$0xff] %vm1488_vm4, %v13947_v39  ;;  %v13946_v46 = vmax.f32 %v10922_v58, 0.0  ;;  %v10935_v29 = vadd.f32 %v10620_v57, %v2007_v22  ;;  %v2005_v12 = vmul.f32 %v10615_v55, %v1957_v5  ;;  %v2318_v5 = vsel %vm499_vm0, %v2315_v36, %v2317_v11 }
 0x272   : > { %7029 = vrot.lane.b32.xlu0 %v10913_v26, %s8469_s16  ;;  %v2356_v11 = vsel %vm580_vm1, %v2354_v25, %v2355_v16  ;;  %v10970_v20 = vpack.i.bf16 %v2403_v17, %v2401_v19  ;;  %v2358_v52 = vsel %vm580_vm1, %v2355_v16, %v2357_v7  ;;  %v2395_v32 = vrot.slane %v10849_v4, 2  ;;  %v2179_v16 = vld [vmem:[#allocation2 + $0x60] sm:$0xff]  ;;  %v2205_v19 = vld [vmem:[#allocation2 + $0x130] sm:$0x3] }
 0x273   : > { %14277 = vst [vmem:[#allocation15_spill] sm:$0xff] %v10935_v29  ;;  %2163 = vst.msk [vmem:[#allocation2 + $0x169] sm:$0xff] %vm1488_vm4, %v13946_v46  ;;  %v13945_v22 = vmax.f32 %v10935_v29, 0.0  ;;  %v10950_v55 = vadd.f32 %v10620_v57, %v2005_v12  ;;  %v10964_v57 = vpack.i.bf16 %v2318_v5, %v2316_v38  ;;  %v2397_v36 = vrot.slane %v2196_v8, 2  ;;  %v2180_v38 = vld [vmem:[#allocation2 + $0x68] sm:$0xff]  ;;  %v2203_v17 = vld [vmem:[#allocation2 + $0x120] sm:$0xff] }
 0x274   : > { %7054 = vrot.lane.b32.xlu1 %v7053_v21, %s8469_s16  ;;  %v2394_v45 = vrot.slane %v10847_v24, 2  ;;  %v10979_v35 = vpack.i.bf16 %v2358_v52, %v2356_v11  ;;  %v2204_v8 = vld [vmem:[#allocation2 + $0x128] sm:$0xff]  ;;  %v2290_v5 = vrot.slane %v2180_v38, 1  ;;  %v2292_v7 = vrot.slane %v2181_v0, 1  ;;  %v10988_v24 = vld [vmem:[#allocation2 + $0x50] sm:$0xff] }
 0x275   : > { %14278 = vst [vmem:[#allocation24_spill] sm:$0xff] %v10950_v55  ;;  %2166 = vst.msk [vmem:[#allocation2 + $0x189] sm:$0xff] %vm1488_vm4, %v13945_v22  ;;  %v13944_v61 = vmax.f32 %v10950_v55, 0.0  ;;  %v2398_v12 = vsel %vm580_vm1, %v2395_v32, %v2397_v36  ;;  %v2289_v25 = vrot.slane %v2179_v16, 1  ;;  %v2178_v11 = vld [vmem:[#allocation2 + $0x58] sm:$0x3]  ;;  %v10994_v52 = vpack.i.bf16 %v2180_v38, %v2179_v16 }
 0x276   : > { %7034 = vrot.lane.b32.xlu0 %v10940_v47, %s8471_s24  ;;  %14279 = vst [vmem:[#allocation28_spill] sm:$0xff] %v10964_v57  ;;  %v2396_v31 = vsel %vm580_vm1, %v2394_v45, %v2395_v32  ;;  %v10996_v32 = vld [vmem:[#allocation2 + $0x110] sm:$0xff]  ;;  %v2330_v36 = vrot.slane %v2204_v8, 1  ;;  %v2332_v22 = vrot.slane %v2205_v19, 1  ;;  %v2329_v46 = vrot.slane %v2203_v17, 1 }
 0x277   : > { %2164 = vst.msk [vmem:[#allocation2 + $0x171] sm:$0xff] %vm1488_vm4, %v13944_v61  ;;  %v10986_v4 = vpack.i.bf16 %v2398_v12, %v2396_v31  ;;  %v11001_v31 = vld [vmem:[#allocation2 + $0x108] sm:$0xff]  ;;  %v2291_v12 = vsel %vm499_vm0, %v2289_v25, %v2290_v5  ;;  %v2293_v61 = vsel %vm499_vm0, %v2290_v5, %v2292_v7  ;;  %v2285_v39 = vrot.slane %v10988_v24, 1  ;;  %v2202_v29 = vld [vmem:[#allocation2 + $0x118] sm:$0x3] }
 0x278   : > { %7059 = vrot.lane.b32.xlu1 %v10964_v57, %s8469_s16  ;;  %v2287_v51 = vrot.slane %v2178_v11, 1  ;;  %v2370_v55 = vrot.slane %v2180_v38, 2  ;;  %v11008_v58 = vpack.i.bf16 %v2204_v8, %v2203_v17  ;;  %v11012_v33 = vpack.i.bf16 %v10996_v32, %v11001_v31 }
 0x279   : > { %v2372_v25 = vrot.slane %v2181_v0, 2  ;;  %v11016_v5 = vpack.i.bf16 %v2293_v61, %v2291_v12  ;;  %v2331_v7 = vsel %vm499_vm0, %v2329_v46, %v2330_v36  ;;  %v2369_v38 = vrot.slane %v2179_v16, 2 }
 0x27a   : > { %7039 = vrot.lane.b32.xlu0 %v10970_v20, %s8471_s24  ;;  %14280 = vst [vmem:[#allocation17_spill] sm:$0xff] %v11008_v58  ;;  %14281 = vst [vmem:[#allocation27_spill] sm:$0xff] %v11012_v33  ;;  %v2325_v14 = vrot.slane %v10996_v32, 1  ;;  %v2333_v43 = vsel %vm499_vm0, %v2330_v36, %v2332_v22  ;;  %v2327_v56 = vrot.slane %v2202_v29, 1  ;;  %v2410_v60 = vrot.slane %v2204_v8, 2 }
 0x27b   : > { %14282 = vst [vmem:[#allocation10_spill] sm:$0xff] %v11016_v5  ;;  %v2412_v40 = vrot.slane %v2205_v19, 2  ;;  %v2288_v63 = vsel %vm499_vm0, %v2285_v39, %v2287_v51  ;;  %v2371_v0 = vsel %vm580_vm1, %v2369_v38, %v2370_v55  ;;  %v2324_v28 = vrot.slane %v11001_v31, 1 }
 0x27c   : > { %7064 = vrot.lane.b32.xlu1 %v10979_v35, %s8471_s24  ;;  %v2373_v46 = vsel %vm580_vm1, %v2370_v55, %v2372_v25  ;;  %v2409_v61 = vrot.slane %v2203_v17, 2  ;;  %v2365_v16 = vrot.slane %v10988_v24, 2  ;;  %v2367_v22 = vrot.slane %v2178_v11, 2  ;;  %v2185_v25 = vld [vmem:[#allocation2 + $0x90] sm:$0xff]  ;;  %v11174_v50 = vld [vmem:[#allocation2 + $0x188] sm:$0xff] }
 0x27d   : > { %v11031_v8 = vpack.i.bf16 %v2333_v43, %v2331_v7  ;;  %v2326_v51 = vsel %vm499_vm0, %v2324_v28, %v2325_v14  ;;  %v2328_v19 = vsel %vm499_vm0, %v2325_v14, %v2327_v56  ;;  %v2413_v55 = vsel %vm580_vm1, %v2410_v60, %v2412_v40  ;;  %v11046_v28 = vld [vmem:[#allocation2 + $0x158] sm:$0xff]  ;;  %v11052_v7 = vld [vmem:[#allocation2 + $0x80] sm:$0xff]  ;;  %v2217_v13 = vld [vmem:[#allocation2 + $0x190] sm:$0x3] }
 0x27e   : > { %7074 = vrot.lane.b32.xlu0 %v7053_v21, %s14051_s13  ;;  %v2176_v21 = vld [vmem:[#allocation2 + $0x48] sm:$0xff]  ;;  %v2411_v36 = vsel %vm580_vm1, %v2409_v61, %v2410_v60  ;;  %v11043_v11 = vpack.i.bf16 %v2373_v46, %v2371_v0  ;;  %v2405_v43 = vrot.slane %v10996_v32, 2  ;;  %v2407_v12 = vrot.slane %v2202_v29, 2  ;;  %v2211_v32 = vld [vmem:[#allocation2 + $0x160] sm:$0x3]  ;;  %v11066_v0 = vld [vmem:[#allocation2 + $0x78] sm:$0xff] }
 0x27f   : > { %v10999_v45 = vpack.i.bf16 %v10988_v24, %v2176_v21  ;;  %v2284_v37 = vrot.slane %v2176_v21, 1  ;;  %14283 = vst [vmem:[#allocation16_spill] sm:$0xff] %v11031_v8  ;;  %v2364_v17 = vrot.slane %v2176_v21, 2  ;;  %v2368_v56 = vsel %vm580_vm1, %v2365_v16, %v2367_v22  ;;  %v2209_v21 = vld [vmem:[#allocation2 + $0x150] sm:$0xff]  ;;  %v11068_v46 = vld [vmem:[#allocation2 + $0x140] sm:$0xff] }
 0x280   : > { %7069 = vrot.lane.b32.xlu1 %v10986_v4, %s8471_s24  ;;  %v11058_v40 = vpack.i.bf16 %v2328_v19, %v2326_v51  ;;  %v11060_v60 = vpack.i.bf16 %v2413_v55, %v2411_v36  ;;  %v2404_v29 = vrot.slane %v11001_v31, 2  ;;  %v2299_v61 = vrot.slane %v2185_v25, 1  ;;  %v2184_v22 = vld [vmem:[#allocation2 + $0x88] sm:$0x3]  ;;  %v2206_v36 = vld [vmem:[#allocation2 + $0x138] sm:$0xff] }
 0x281   : > { %v2286_v54 = vsel %vm499_vm0, %v2284_v37, %v2285_v39  ;;  %v11034_v37 = vld [vmem:[#allocation2 + $0x98] sm:$0xff]  ;;  %v11036_v39 = vld [vmem:[#allocation2 + $0xa0] sm:$0x3]  ;;  %v2366_v14 = vsel %vm580_vm1, %v2364_v17, %v2365_v16  ;;  %v2340_v16 = vrot.slane %v11046_v28, 1  ;;  %v2408_v19 = vsel %vm580_vm1, %v2405_v43, %v2407_v12 }
 0x282   : > { %7079 = vrot.lane.b32.xlu0 %v10964_v57, %s14051_s13  ;;  %v11041_v24 = vpack.i.bf16 %v2288_v63, %v2286_v54  ;;  %v2300_v63 = vrot.slane %v11034_v37, 1  ;;  %v2302_v54 = vrot.slane %v11036_v39, 1  ;;  %14285 = vst [vmem:[#allocation14_spill] sm:$0xff] %v11058_v40  ;;  %v11064_v38 = vpack.i.bf16 %v11034_v37, %v2185_v25  ;;  %v2214_v30 = vld [vmem:[#allocation2 + $0x178] sm:$0x3] }
 0x283   : > { %v11071_v17 = vpack.i.bf16 %v2368_v56, %v2366_v14  ;;  %v2406_v51 = vsel %vm580_vm1, %v2404_v29, %v2405_v43  ;;  %v11077_v31 = vpack.i.bf16 %v11052_v7, %v11066_v0  ;;  %v2339_v10 = vrot.slane %v2209_v21, 1  ;;  %v2208_v29 = vld [vmem:[#allocation2 + $0x148] sm:$0x3] }
 0x284   : > { %7084 = vrot.lane.b32.xlu1 %v10994_v52, %s14053_s29  ;;  %14284 = vst [vmem:[#allocation11_spill] sm:$0xff] %v11041_v24  ;;  %14286 = vst [vmem:[#allocation22_spill] sm:$0xff] %v11064_v38  ;;  %v2301_v55 = vsel %vm499_vm0, %v2299_v61, %v2300_v63  ;;  %v2303_v23 = vsel %vm499_vm0, %v2300_v63, %v2302_v54  ;;  %v2342_v44 = vrot.slane %v2211_v32, 1  ;;  %v2295_v12 = vrot.slane %v11052_v7, 1 }
 0x285   : > { %v11086_v14 = vpack.i.bf16 %v11046_v28, %v2209_v21  ;;  %v11089_v43 = vpack.i.bf16 %v11068_v46, %v2206_v36  ;;  %v2297_v56 = vrot.slane %v2184_v22, 1  ;;  %v11092_v42 = vpack.i.bf16 %v2408_v19, %v2406_v51 }
 0x286   : > { %7094 = vrot.lane.b32.xlu0 %v10999_v45, %s14053_s29  ;;  %v11095_v61 = vsel %vm499_vm0, %v2339_v10, %v2340_v16  ;;  %v2294_v63 = vrot.slane %v11066_v0, 1  ;;  %v2380_v54 = vrot.slane %v11034_v37, 2  ;;  %v11099_v53 = vpack.i.bf16 %v2303_v23, %v2301_v55  ;;  %v11117_v55 = vld [vmem:[#allocation2 + $0xc8] sm:$0xff] }
 0x287   : > { %v2379_v3 = vrot.slane %v2185_v25, 2  ;;  %v2382_v1 = vrot.slane %v11036_v39, 2  ;;  %v2335_v59 = vrot.slane %v11068_v46, 1  ;;  %v11106_v51 = vsel %vm499_vm0, %v2340_v16, %v2342_v44 }
 0x288   : > { %7089 = vrot.lane.b32.xlu1 %v11008_v58, %s14053_s29  ;;  %v2337_v19 = vrot.slane %v2208_v29, 1  ;;  %v2420_v10 = vrot.slane %v11046_v28, 2  ;;  %v11112_v23 = vsel %vm499_vm0, %v2294_v63, %v2295_v12  ;;  %v11115_v37 = vsel %vm499_vm0, %v2295_v12, %v2297_v56 }
 0x289   : > { %v2334_v39 = vrot.slane %v2206_v36, 1  ;;  %v2422_v25 = vrot.slane %v2211_v32, 2  ;;  %v11120_v15 = vsel %vm580_vm1, %v2379_v3, %v2380_v54  ;;  %v2419_v44 = vrot.slane %v2209_v21, 2  ;;  %v11130_v32 = vld [vmem:[#allocation2 + $0xc0] sm:$0xff] }
 0x28a   : > { %7099 = vrot.lane.b32.xlu0 %v11012_v33, %s14053_s29  ;;  %v2375_v16 = vrot.slane %v11052_v7, 2  ;;  %v2377_v28 = vrot.slane %v2184_v22, 2  ;;  %v11124_v41 = vsel %vm580_vm1, %v2380_v54, %v2382_v1  ;;  %v2415_v12 = vrot.slane %v11068_v46, 2 }
 0x28b   : > { %v11127_v63 = vsel %vm499_vm0, %v2334_v39, %v2335_v59  ;;  %v2417_v56 = vrot.slane %v2208_v29, 2  ;;  %v11137_v3 = vsel %vm499_vm0, %v2335_v59, %v2337_v19  ;;  %v2421_v7 = vsel %vm580_vm1, %v2419_v44, %v2420_v10  ;;  %v11145_v29 = vld [vmem:[#allocation2 + $0xa8] sm:$0xff]  ;;  %v2190_v39 = vld [vmem:[#allocation2 + $0xb8] sm:$0x3] }
 0x28c   : > { %7124 = vrot.lane.b32.xlu1 %v11016_v5, %s14051_s13  ;;  %v2374_v1 = vrot.slane %v11066_v0, 2  ;;  %v2310_v21 = vrot.slane %v11117_v55, 1  ;;  %v2423_v46 = vsel %vm580_vm1, %v2420_v10, %v2422_v25  ;;  %v2414_v22 = vrot.slane %v2206_v36, 2  ;;  %v11163_v36 = vld [vmem:[#allocation2 + $0x168] sm:$0xff]  ;;  %v11165_v25 = vld [vmem:[#allocation2 + $0x170] sm:$0xff] }
 0x28d   : > { %v2312_v54 = vrot.slane %v2193_v6, 1  ;;  %v11151_v59 = vsel %vm580_vm1, %v2375_v16, %v2377_v28  ;;  %v2309_v0 = vrot.slane %v11130_v32, 1  ;;  %v2305_v19 = vrot.slane %v11132_v18, 1 }
 0x28e   : > { %7104 = vrot.lane.b32.xlu0 %v11016_v5, %s8469_s16  ;;  %v11148_v62 = vsel %vm580_vm1, %v2374_v1, %v2375_v16  ;;  %v11156_v44 = vsel %vm580_vm1, %v2414_v22, %v2415_v12  ;;  %v11159_v10 = vsel %vm580_vm1, %v2415_v12, %v2417_v56  ;;  %v2304_v28 = vrot.slane %v11145_v29, 1 }
 0x28f   : > { %v2311_v16 = vsel %vm499_vm0, %v2309_v0, %v2310_v21  ;;  %v2307_v1 = vrot.slane %v2190_v39, 1  ;;  %v2313_v22 = vsel %vm499_vm0, %v2310_v21, %v2312_v54  ;;  %v2389_v12 = vrot.slane %v11130_v32, 2  ;;  %v2215_v21 = vld [vmem:[#allocation2 + $0x180] sm:$0xff] }
 0x290   : > { %7129 = vrot.lane.b32.xlu1 %v11031_v8, %s14051_s13  ;;  %v2390_v56 = vrot.slane %v11117_v55, 2  ;;  %v2306_v9 = vsel %vm499_vm0, %v2304_v28, %v2305_v19  ;;  %v2392_v27 = vrot.slane %v2193_v6, 2  ;;  %v2344_v0 = vrot.slane %v11163_v36, 1 }
 0x291   : > { %v2345_v34 = vrot.slane %v11165_v25, 1  ;;  %v2308_v54 = vsel %vm499_vm0, %v2305_v19, %v2307_v1  ;;  %v2347_v57 = vrot.slane %v2214_v30, 1  ;;  %v2385_v26 = vrot.slane %v11132_v18, 2 }
 0x292   : > { %7109 = vrot.lane.b32.xlu0 %v11031_v8, %s8469_s16  ;;  %v11179_v8 = vpack.i.bf16 %v2423_v46, %v2421_v7  ;;  %v2425_v6 = vrot.slane %v11165_v25, 2  ;;  %v2427_v28 = vrot.slane %v2214_v30, 2  ;;  %v2433_v5 = vrot.slane %v11174_v50, 1 }
 0x293   : > { %v2435_v7 = vrot.slane %v2217_v13, 1  ;;  %v2391_v46 = vsel %vm580_vm1, %v2389_v12, %v2390_v56  ;;  %v2384_v49 = vrot.slane %v11145_v29, 2  ;;  %v2438_v33 = vrot.slane %v11174_v50, 2 }
 0x294   : > { %7134 = vrot.lane.b32.xlu1 %v11041_v24, %s8469_s16  ;;  %v2440_v19 = vrot.slane %v2217_v13, 2  ;;  %v2393_v1 = vsel %vm580_vm1, %v2390_v56, %v2392_v27  ;;  %v2424_v58 = vrot.slane %v11163_v36, 2  ;;  %v2348_v30 = vsel %vm499_vm0, %v2345_v34, %v2347_v57 }
 0x295   : > { %v2386_v48 = vsel %vm580_vm1, %v2384_v49, %v2385_v26  ;;  %v2437_v2 = vrot.slane %v2215_v21, 2  ;;  %v2428_v27 = vsel %vm580_vm1, %v2425_v6, %v2427_v28  ;;  %v11210_v49 = vpack.i.bf16 %v11115_v37, %v11112_v23 }
 0x296   : > { %7114 = vrot.lane.b32.xlu0 %v11043_v11, %s8471_s24  ;;  %v2426_v13 = vsel %vm580_vm1, %v2424_v58, %v2425_v6  ;;  %v11214_v57 = vpack.i.bf16 %v2308_v54, %v2306_v9  ;;  %v11222_v58 = vpack.i.bf16 %v11106_v51, %v11095_v61  ;;  %v11234_v9 = vpack.i.bf16 %v11124_v41, %v11120_v15 }
 0x297   : > { %v11250_v51 = vpack.i.bf16 %v11159_v10, %v11156_v44  ;;  %v11254_v15 = vpack.i.bf16 %v2428_v27, %v2426_v13  ;;  %v11293_v23 = vpack.i.bf16 %v11165_v25, %v11163_v36 }
 0x298   : > { %7139 = vrot.lane.b32.xlu1 %v11058_v40, %s8469_s16 }
 0x29a   : > { %7119 = vrot.lane.b32.xlu0 %v11060_v60, %s8471_s24 }
 0x29c   : > { %7144 = vrot.lane.b32.xlu1 %v11071_v17, %s8471_s24 }
 0x29e   : > { %7154 = vrot.lane.b32.xlu0 %v11041_v24, %s14051_s13  ;;  %v2387_v24 = vrot.slane %v2190_v39, 2  ;;  %v2346_v39 = vsel %vm499_vm0, %v2344_v0, %v2345_v34  ;;  %v2436_v0 = vsel %vm499_vm0, %v2433_v5, %v2435_v7  ;;  %v2441_v34 = vsel %vm580_vm1, %v2438_v33, %v2440_v19  ;;  %v11391_v19 = vld [vmem:[#allocation2 + $0x38] sm:$0xff] }
 0x2a0   : > { %7149 = vrot.lane.b32.xlu1 %v11092_v42, %s8471_s24  ;;  %v2388_v12 = vsel %vm580_vm1, %v2385_v26, %v2387_v24  ;;  %v11212_v26 = vpack.i.bf16 %v2313_v22, %v2311_v16  ;;  %v11238_v24 = vpack.i.bf16 %v11151_v59, %v11148_v62  ;;  %v11278_v62 = vpack.i.bf16 %v11117_v55, %v11130_v32 }
 0x2a1   : > { %v11242_v61 = vpack.i.bf16 %v2388_v12, %v2386_v48  ;;  %v11282_v48 = vpack.i.bf16 %v11132_v18, %v11145_v29  ;;  %v11299_v18 = vpop.permute.xlu0 %6994 }
 0x2a2   : > { %7159 = vrot.lane.b32.xlu0 %v11058_v40, %s14051_s13  ;;  %v2432_v40 = vrot.slane %v2215_v21, 1 }
 0x2a4   : > { %7164 = vrot.lane.b32.xlu1 %v11064_v38, %s14053_s29  ;;  %v2434_v56 = vsel %vm499_vm0, %v2432_v40, %v2433_v5  ;;  %v2439_v38 = vsel %vm580_vm1, %v2437_v2, %v2438_v33  ;;  %v11226_v33 = vpack.i.bf16 %v11137_v3, %v11127_v63  ;;  %v11230_v5 = vpack.i.bf16 %v2348_v30, %v2346_v39 }
 0x2a5   : > { %v11228_v2 = vpack.i.bf16 %v2436_v0, %v2434_v56  ;;  %v11240_v40 = vpack.i.bf16 %v2393_v1, %v2391_v46  ;;  %v11252_v41 = vpack.i.bf16 %v2441_v34, %v2439_v38  ;;  %v11289_v38 = vpack.i.bf16 %v11174_v50, %v2215_v21  ;;  %v11307_v50 = vpop.permute.xlu0 %6999  ;;  %v11393_v1 = vld [vmem:[#allocation2 + $0x30] sm:$0xff]  ;;  %v14288_v56 = vld [vmem:[#allocation22_spill] sm:$0xff] }
 0x2a6   : > { %7174 = vrot.lane.b32.xlu0 %v11077_v31, %s14053_s29  ;;  %v7393_v39 = vpack.i.bf16 %v11391_v19, %v11393_v1 }
 0x2a8   : > { %7169 = vrot.lane.b32.xlu1 %v11086_v14, %s14053_s29 }
 0x2aa   : > { %7179 = vrot.lane.b32.xlu0 %v11089_v43, %s14053_s29 }
 0x2ac   : > { %7204 = vrot.lane.b32.xlu1 %v11099_v53, %s14051_s13 }
 0x2ae   : > { %7184 = vrot.lane.b32.xlu0 %v11099_v53, %s8469_s16 }
 0x2b0   : > { %7209 = vrot.lane.b32.xlu1 %v11222_v58, %s14051_s13 }
 0x2b2   : > { %7189 = vrot.lane.b32.xlu0 %v11222_v58, %s8469_s16 }
 0x2b4   : > { %7214 = vrot.lane.b32.xlu1 %v11210_v49, %s8469_s16 }
 0x2b6   : > { %7194 = vrot.lane.b32.xlu0 %v11234_v9, %s8471_s24 }
 0x2b8   : > { %7219 = vrot.lane.b32.xlu1 %v11226_v33, %s8469_s16 }
 0x2ba   : > { %7199 = vrot.lane.b32.xlu0 %v11179_v8, %s8471_s24 }
 0x2bc   : > { %7224 = vrot.lane.b32.xlu1 %v11238_v24, %s8471_s24 }
 0x2be   : > { %7234 = vrot.lane.b32.xlu0 %v11210_v49, %s14051_s13 }
 0x2c0   : > { %7229 = vrot.lane.b32.xlu1 %v11250_v51, %s8471_s24 }
 0x2c2   : > { %7239 = vrot.lane.b32.xlu0 %v11226_v33, %s14051_s13 }
 0x2c4   : > { %7244 = vrot.lane.b32.xlu1 %v11278_v62, %s14053_s29 }
 0x2c6   : > { %7254 = vrot.lane.b32.xlu0 %v11282_v48, %s14053_s29 }
 0x2c8   : > { %7249 = vrot.lane.b32.xlu1 %v11289_v38, %s14053_s29 }
 0x2ca   : > { %7259 = vrot.lane.b32.xlu0 %v11293_v23, %s14053_s29  ;;  %v11315_v37 = vpop.permute.xlu1 %7004 }
 0x2cc   : > { %7274 = vrot.lane.b32.xlu1 %v11212_v26, %s14051_s13  ;;  %v11317_v55 = vpop.permute.xlu0 %7014 }
 0x2ce   : > { %7264 = vrot.lane.b32.xlu0 %v11212_v26, %s8469_s16 }
 0x2d0   : > { %7279 = vrot.lane.b32.xlu1 %v11214_v57, %s8469_s16 }
 0x2d2   : > { %7269 = vrot.lane.b32.xlu0 %v11240_v40, %s8471_s24 }
 0x2d4   : > { %7284 = vrot.lane.b32.xlu1 %v11230_v5, %s8469_s16 }
 0x2d6   : > { %7299 = vrot.lane.b32.xlu0 %v11214_v57, %s14051_s13 }
 0x2d8   : > { %7289 = vrot.lane.b32.xlu1 %v11242_v61, %s8471_s24 }
 0x2da   : > { %7304 = vrot.lane.b32.xlu0 %v11230_v5, %s14051_s13  ;;  %v11323_v63 = vpop.permute.xlu1 %7009 }
 0x2dc   : > { %v11325_v32 = vpop.permute.xlu0 %7019  ;;  %7294 = vrot.lane.b32.xlu1 %v11254_v15, %s8471_s24 }
 0x2de   : > { %7314 = vrot.lane.b32.xlu0 %v10979_v35, %s14047_s25  ;;  %v11331_v3 = vpop.permute.xlu1 %7044 }
 0x2e0   : > { %v11333_v29 = vpop.permute.xlu0 %7024  ;;  %7309 = vrot.lane.b32.xlu1 %v11228_v2, %s14051_s13 }
 0x2e2   : > { %7324 = vrot.lane.b32.xlu0 %v11071_v17, %s14047_s25  ;;  %v11339_v59 = vpop.permute.xlu1 %7049 }
 0x2e4   : > { %v11341_v44 = vpop.permute.xlu0 %7029  ;;  %7319 = vrot.lane.b32.xlu1 %v10940_v47, %s14047_s25 }
 0x2e6   : > { %7334 = vrot.lane.b32.xlu0 %v11238_v24, %s14047_s25  ;;  %v11347_v35 = vpop.permute.xlu1 %7054 }
 0x2e8   : > { %v11349_v10 = vpop.permute.xlu0 %7034  ;;  %7329 = vrot.lane.b32.xlu1 %v11043_v11, %s14047_s25 }
 0x2ea   : > { %7344 = vrot.lane.b32.xlu0 %v11242_v61, %s14047_s25  ;;  %v11355_v36 = vpop.permute.xlu1 %7059 }
 0x2ec   : > { %v11357_v25 = vpop.permute.xlu0 %7039  ;;  %7339 = vrot.lane.b32.xlu1 %v11234_v9, %s14047_s25 }
 0x2ee   : > { %7354 = vrot.lane.b32.xlu0 %v10986_v4, %s14047_s25  ;;  %v11363_v16 = vpop.permute.xlu1 %7064 }
 0x2f0   : > { %v11365_v22 = vpop.permute.xlu0 %7074  ;;  %7349 = vrot.lane.b32.xlu1 %v11240_v40, %s14047_s25 }
 0x2f2   : > { %7364 = vrot.lane.b32.xlu0 %v11092_v42, %s14047_s25  ;;  %v11371_v21 = vpop.permute.xlu1 %7069 }
 0x2f4   : > { %v11373_v54 = vpop.permute.xlu0 %7079  ;;  %7359 = vrot.lane.b32.xlu1 %v10970_v20, %s14047_s25 }
 0x2f6   : > { %7374 = vrot.lane.b32.xlu0 %v11250_v51, %s14047_s25  ;;  %v11379_v6 = vpop.permute.xlu1 %7084 }
 0x2f8   : > { %v11381_v28 = vpop.permute.xlu0 %7094  ;;  %7369 = vrot.lane.b32.xlu1 %v11060_v60, %s14047_s25 }
 0x2fa   : > { %7384 = vrot.lane.b32.xlu0 %v11254_v15, %s14047_s25  ;;  %v11387_v7 = vpop.permute.xlu1 %7089 }
 0x2fc   : > { %v11389_v46 = vpop.permute.xlu0 %7099  ;;  %7379 = vrot.lane.b32.xlu1 %v11179_v8, %s14047_s25 }
 0x2fe   : > { %7394 = vrot.lane.b32.xlu0 %v7393_v39, %s8478_s12  ;;  %v11400_v30 = vpop.permute.xlu1 %7124 }
 0x300   : > { %v11402_v12 = vpop.permute.xlu0 %7104  ;;  %7389 = vrot.lane.b32.xlu1 %v11252_v41, %s14047_s25  ;;  %s14435_s25 = smov 40  }
 0x302   : > { %7404 = vrot.lane.b32.xlu0 %v10994_v52, %s8478_s12  ;;  %v11408_v13 = vpop.permute.xlu1 %7129 }
 0x304   : > { %v11410_v27 = vpop.permute.xlu0 %7109  ;;  %7399 = vrot.lane.b32.xlu1 %v10999_v45, %s8478_s12  ;;  %v14292_v45 = vld [vmem:[#allocation23_spill] sm:$0xff] }
 0x305   : > { %14287 = vst [vmem:[#allocation44_spill] sm:$0xff] %v11410_v27 }
 0x306   : > { %7414 = vrot.lane.b32.xlu0 %v14288_v56, %s8478_s12  ;;  %v11416_v0 = vpop.permute.xlu1 %7134 }
 0x308   : > { %v11418_v34 = vpop.permute.xlu0 %7114  ;;  %7409 = vrot.lane.b32.xlu1 %v11077_v31, %s8478_s12  ;;  %v14295_v31 = vld [vmem:[#allocation17_spill] sm:$0xff] }
 0x309   : > { %14289 = vst [vmem:[#allocation22_spill] sm:$0xff] %v11418_v34  ;;  %v14294_v34 = vld [vmem:[#allocation20_spill] sm:$0xff] }
 0x30a   : > { %7424 = vrot.lane.b32.xlu0 %v11278_v62, %s8478_s12  ;;  %v11424_v52 = vpop.permute.xlu1 %7139 }
 0x30b   : > { %14290 = vst [vmem:[#allocation55_spill] sm:$0xff] %v11424_v52 }
 0x30c   : > { %v11426_v39 = vpop.permute.xlu0 %7119  ;;  %7419 = vrot.lane.b32.xlu1 %v11282_v48, %s8478_s12 }
 0x30d   : > { %14291 = vst [vmem:[#allocation56_spill] sm:$0xff] %v11426_v39  ;;  %v14297_v39 = vld [vmem:[#allocation27_spill] sm:$0xff] }
 0x30e   : > { %7434 = vrot.lane.b32.xlu0 %v14292_v45, %s8478_s12  ;;  %v11432_v56 = vpop.permute.xlu1 %7144 }
 0x310   : > { %v11434_v27 = vpop.permute.xlu0 %7154  ;;  %7429 = vrot.lane.b32.xlu1 %v14294_v34, %s8478_s12  ;;  %v11456_v34 = vld [vmem:[#allocation2 + $0x198] sm:$0xff] }
 0x311   : > { %14293 = vst [vmem:[#allocation23_spill] sm:$0xff] %v11434_v27 }
 0x312   : > { %7444 = vrot.lane.b32.xlu0 %v14295_v31, %s8478_s12  ;;  %v11440_v62 = vpop.permute.xlu1 %7149  ;;  %v11458_v31 = vld [vmem:[#allocation2 + $0x1a0] sm:$0xff] }
 0x314   : > { %v11442_v52 = vpop.permute.xlu0 %7159  ;;  %7439 = vrot.lane.b32.xlu1 %v14297_v39, %s8478_s12 }
 0x315   : > { %14296 = vst [vmem:[#allocation20_spill] sm:$0xff] %v11442_v52 }
 0x316   : > { %7454 = vrot.lane.b32.xlu0 %v11086_v14, %s8478_s12  ;;  %v11448_v48 = vpop.permute.xlu1 %7164  ;;  %v7468_v14 = vpack.i.bf16 %v11458_v31, %v11456_v34 }
 0x317   : > { %14298 = vst [vmem:[#allocation17_spill] sm:$0xff] %v11448_v48 }
 0x318   : > { %v11450_v45 = vpop.permute.xlu0 %7174  ;;  %7449 = vrot.lane.b32.xlu1 %v11089_v43, %s8478_s12  ;;  %v14302_v43 = vld [vmem:[#allocation25_spill] sm:$0xff] }
 0x319   : > { %14299 = vst [vmem:[#allocation27_spill] sm:$0xff] %v11450_v45  ;;  %v8277_v45 = vld [vmem:[%s13810_s4 + $0x18] sm:$0xff]  }
 0x31a   : > { %7464 = vrot.lane.b32.xlu0 %v11289_v38, %s8478_s12  ;;  %v11460_v52 = vpop.permute.xlu1 %7169  ;;  %v8276_v38 = vld [vmem:[%s13810_s4 + $0x20] ss:$0 sps:$4 sm:$0xff]  }
 0x31b   : > { %14300 = vst [vmem:[#allocation57_spill] sm:$0xff] %v11460_v52  ;;  %6293 = vmatprep.subr.msk.bf16.mxu1 %vm3584_vm13, %v8276_v38 }
 0x31c   : > { %v11462_v39 = vpop.permute.xlu0 %7179  ;;  %7459 = vrot.lane.b32.xlu1 %v11293_v23, %s8478_s12  ;;  %v3586_v23 = vsel %vm3584_vm13, %v8276_v38, 0 }
 0x31d   : > { %14301 = vst [vmem:[#allocation58_spill] sm:$0xff] %v11462_v39  ;;  %6202 = vmatpush3.bf16.msra.mxu1 %v3586_v23  ;;  %v14304_v39 = vld [vmem:[#allocation10_spill] sm:$0xff] }
 0x31e   : > { %7474 = vrot.lane.b32.xlu0 %v14302_v43, %s14049_s14  ;;  %v11473_v48 = vpop.permute.xlu1 %7204  ;;  %6203 = vmatprep.subr.bf16.mxu1 %v8277_v45 }
 0x31f   : > { %14303 = vst [vmem:[#allocation25_spill] sm:$0xff] %v11473_v48  ;;  %v14306_v48 = vld [vmem:[#allocation11_spill] sm:$0xff] }
 0x320   : > { %v11475_v52 = vpop.permute.xlu0 %7184  ;;  %7469 = vrot.lane.b32.xlu1 %v7468_v14, %s8478_s12 }
 0x321   : > { %6204 = vmatpush3.bf16.msra.mxu1 %v8277_v45 }
 0x322   : > { %7484 = vrot.lane.b32.xlu0 %v14304_v39, %s14049_s14  ;;  %v11482_v43 = vpop.permute.xlu1 %7209  ;;  %v8278_v39 = vld [vmem:[%s13810_s4 + $0x10] sm:$0xff]  }
 0x323   : > { %6205 = vmatprep.subr.bf16.mxu1 %v8278_v39 }
 0x324   : > { %v11487_v27 = vpop.permute.xlu0 %7189  ;;  %7479 = vrot.lane.b32.xlu1 %v14306_v48, %s14049_s14 }
 0x325   : > { %14305 = vst [vmem:[#allocation10_spill] sm:$0xff] %v11487_v27  ;;  %6206 = vmatpush3.bf16.msra.mxu1 %v8278_v39 }
 0x326   : > { %7494 = vrot.lane.b32.xlu0 %v11099_v53, %s14049_s14  ;;  %v11493_v14 = vpop.permute.xlu1 %7214  ;;  %v14310_v53 = vld [vmem:[#allocation12_spill] sm:$0xff] }
 0x328   : > { %v11495_v38 = vpop.permute.xlu0 %7194  ;;  %7489 = vrot.lane.b32.xlu1 %v11210_v49, %s14049_s14 }
 0x329   : > { %14307 = vst [vmem:[#allocation11_spill] sm:$0xff] %v11495_v38  ;;  %v14313_v38 = vld [vmem:[#allocation16_spill] sm:$0xff] }
 0x32a   : > { %7504 = vrot.lane.b32.xlu0 %v11212_v26, %s14049_s14  ;;  %v11504_v48 = vpop.permute.xlu1 %7219  ;;  %v14312_v26 = vld [vmem:[#allocation28_spill] sm:$0xff] }
 0x32b   : > { %14308 = vst [vmem:[#allocation59_spill] sm:$0xff] %v11504_v48 }
 0x32c   : > { %v11506_v23 = vpop.permute.xlu0 %7199  ;;  %7499 = vrot.lane.b32.xlu1 %v11214_v57, %s14049_s14  ;;  %v2220_v57 = vld [vmem:[#allocation2 + $0x1a8] sm:$0x3] }
 0x32d   : > { %14309 = vst [vmem:[#allocation60_spill] sm:$0xff] %v11506_v23  ;;  %v8279_v23 = vld [vmem:[%s13810_s4 + $0x8] sm:$0xff]  }
 0x32e   : > { %7514 = vrot.lane.b32.xlu0 %v14310_v53, %s14049_s14  ;;  %v11512_v49 = vpop.permute.xlu1 %7224  ;;  %6207 = vmatprep.subr.bf16.mxu1 %v8279_v23  ;;  %v14316_v53 = vld [vmem:[#allocation14_spill] sm:$0xff] }
 0x32f   : > { %6208 = vmatpush3.bf16.msra.mxu1 %v8279_v23 }
 0x330   : > { %v11514_v45 = vpop.permute.xlu0 %7234  ;;  %7509 = vrot.lane.b32.xlu1 %v14312_v26, %s14049_s14  ;;  %v2445_v26 = vrot.slane %v11456_v34, 1 }
 0x331   : > { %14311 = vst [vmem:[#allocation12_spill] sm:$0xff] %v11514_v45  ;;  %v2446_v45 = vrot.slane %v11458_v31, 1 }
 0x332   : > { %7524 = vrot.lane.b32.xlu0 %v14313_v38, %s14049_s14  ;;  %v11523_v48 = vpop.permute.xlu1 %7229  ;;  %v2448_v38 = vrot.slane %v2220_v57, 1 }
 0x333   : > { %14314 = vst [vmem:[#allocation28_spill] sm:$0xff] %v11523_v48  ;;  %v8280_v48 = vld [vmem:[%s13810_s4] sm:$0xff]   ;;  %v2447_v23 = vsel %vm499_vm0, %v2445_v26, %v2446_v45  ;;  %v2453_v26 = vrot.slane %v2220_v57, 2 }
 0x334   : > { %v11525_v39 = vpop.permute.xlu0 %7239  ;;  %7519 = vrot.lane.b32.xlu1 %v14316_v53, %s14049_s14  ;;  %6209 = vmatprep.subr.bf16.mxu1 %v8280_v48 }
 0x335   : > { %14315 = vst [vmem:[#allocation16_spill] sm:$0xff] %v11525_v39  ;;  %6210 = vmatpush3.bf16.msra.mxu1 %v8280_v48 }
 0x336   : > { %7534 = vrot.lane.b32.xlu0 %v11222_v58, %s14049_s14  ;;  %v11533_v27 = vpop.permute.xlu1 %7244  ;;  %v2449_v58 = vsel %vm499_vm0, %v2446_v45, %v2448_v38 }
 0x337   : > { %14317 = vst [vmem:[#allocation14_spill] sm:$0xff] %v11533_v27 }
 0x338   : > { %v11538_v39 = vpop.permute.xlu0 %7254  ;;  %7529 = vrot.lane.b32.xlu1 %v11226_v33, %s14049_s14 }
 0x339   : > { %14318 = vst [vmem:[#allocation61_spill] sm:$0xff] %v11538_v39  ;;  %v7548_v39 = vpack.i.bf16 %v2449_v58, %v2447_v23 }
 0x33a   : > { %7544 = vrot.lane.b32.xlu0 %v11228_v2, %s14049_s14  ;;  %v11546_v53 = vpop.permute.xlu1 %7249 }
 0x33c   : > { %v11548_v27 = vpop.permute.xlu0 %7259  ;;  %7539 = vrot.lane.b32.xlu1 %v11230_v5, %s14049_s14 }
 0x33e   : > { %7554 = vrot.lane.b32.xlu0 %v10940_v47, %s14045_s15  ;;  %v11554_v33 = vpop.permute.xlu1 %7274 }
 0x33f   : > { %14319 = vst [vmem:[#allocation62_spill] sm:$0xff] %v11554_v33 }
 0x340   : > { %v11556_v2 = vpop.permute.xlu0 %7264  ;;  %7549 = vrot.lane.b32.xlu1 %v7548_v39, %s14049_s14 }
 0x342   : > { %7564 = vrot.lane.b32.xlu0 %v11043_v11, %s14045_s15  ;;  %v11561_v48 = vpop.permute.xlu1 %7279 }
 0x344   : > { %v11563_v45 = vpop.permute.xlu0 %7269  ;;  %7559 = vrot.lane.b32.xlu1 %v11071_v17, %s14045_s15 }
 0x346   : > { %7574 = vrot.lane.b32.xlu0 %v11234_v9, %s14045_s15  ;;  %v11569_v47 = vpop.permute.xlu1 %7284 }
 0x348   : > { %v11571_v5 = vpop.permute.xlu0 %7299  ;;  %7569 = vrot.lane.b32.xlu1 %v11238_v24, %s14045_s15 }
 0x34a   : > { %7584 = vrot.lane.b32.xlu0 %v11240_v40, %s14045_s15  ;;  %v11577_v11 = vpop.permute.xlu1 %7289 }
 0x34c   : > { %v11579_v39 = vpop.permute.xlu0 %7304  ;;  %7579 = vrot.lane.b32.xlu1 %v11242_v61, %s14045_s15  ;;  %v2451_v61 = vrot.slane %v11458_v31, 2 }
 0x34d   : > { %14320 = vst [vmem:[#allocation63_spill] sm:$0xff] %v11579_v39 }
 0x34e   : > { %7594 = vrot.lane.b32.xlu0 %v10970_v20, %s14045_s15  ;;  %v11585_v17 = vpop.permute.xlu1 %7294  ;;  %v2450_v20 = vrot.slane %v11456_v34, 2 }
 0x34f   : > { %14321 = vst [vmem:[#allocation64_spill] sm:$0xff] %v11585_v17 }
 0x350   : > { %v11587_v9 = vpop.permute.xlu0 %7314  ;;  %7589 = vrot.lane.b32.xlu1 %v10986_v4, %s14045_s15 }
 0x351   : > { %14322 = vst [vmem:[#allocation65_spill] sm:$0xff] %v11587_v9  ;;  %v7051_v9 = vunpack.i.l.bf16 %v11339_v59 }
 0x352   : > { %7604 = vrot.lane.b32.xlu0 %v11060_v60, %s14045_s15  ;;  %v11593_v24 = vpop.permute.xlu1 %7309  ;;  %v2454_v60 = vsel %vm580_vm1, %v2451_v61, %v2453_v26 }
 0x353   : > { %14323 = vst [vmem:[#allocation66_spill] sm:$0xff] %v11593_v24 }
 0x354   : > { %v11595_v40 = vpop.permute.xlu0 %7324  ;;  %7599 = vrot.lane.b32.xlu1 %v11092_v42, %s14045_s15  ;;  %v2452_v42 = vsel %vm580_vm1, %v2450_v20, %v2451_v61  ;;  %v6996_v61 = vunpack.i.l.bf16 %v11299_v18  ;;  %v7002_v20 = vunpack.i.h.bf16 %v11307_v50 }
 0x355   : > { %14324 = vst [vmem:[#allocation67_spill] sm:$0xff] %v11595_v40 }
 0x356   : > { %7614 = vrot.lane.b32.xlu0 %v11179_v8, %s14045_s15  ;;  %v11603_v38 = vpop.permute.xlu1 %7319  ;;  %v7628_v8 = vpack.i.bf16 %v2454_v60, %v2452_v42  ;;  %v7001_v60 = vunpack.i.l.bf16 %v11307_v50  ;;  %v7026_v50 = vunpack.i.l.bf16 %v11333_v29 }
 0x357   : > { %14325 = vst [vmem:[#allocation68_spill] sm:$0xff] %v11603_v38 }
 0x358   : > { %v11605_v4 = vpop.permute.xlu0 %7334  ;;  %7609 = vrot.lane.b32.xlu1 %v11250_v51, %s14045_s15 }
 0x359   : > { %14326 = vst [vmem:[#allocation69_spill] sm:$0xff] %v11605_v4  ;;  %v7036_v4 = vunpack.i.l.bf16 %v11349_v10 }
 0x35a   : > { %7624 = vrot.lane.b32.xlu0 %v11252_v41, %s14045_s15  ;;  %v11613_v31 = vpop.permute.xlu1 %7329  ;;  %v6997_v41 = vunpack.i.h.bf16 %v11299_v18  ;;  %v7016_v18 = vunpack.i.l.bf16 %v11317_v55 }
 0x35b   : > { %14327 = vst [vmem:[#allocation70_spill] sm:$0xff] %v11613_v31 }
 0x35c   : > { %v11615_v34 = vpop.permute.xlu0 %7344  ;;  %7619 = vrot.lane.b32.xlu1 %v11254_v15, %s14045_s15  ;;  %v8320_v15 = vld [vmem:[#allocation2 + $0x8] sm:$0xff] }
 0x35d   : > { %14328 = vst [vmem:[#allocation71_spill] sm:$0xff] %v11615_v34  ;;  %v3224_v42 = vsel %vm1488_vm4, %v8320_v15, %v6997_v41  ;;  %v7027_v41 = vunpack.i.h.bf16 %v11333_v29  ;;  %v7007_v15 = vunpack.i.h.bf16 %v11315_v37  ;;  %v7031_v29 = vunpack.i.l.bf16 %v11341_v44 }
 0x35e   : > { %v11619_v57 = vpop.permute.xlu1 %7339 }
 0x35f   : > { %14329 = vst [vmem:[#allocation72_spill] sm:$0xff] %v11619_v57  ;;  %v7017_v57 = vunpack.i.h.bf16 %v11317_v55  ;;  %v7012_v55 = vunpack.i.h.bf16 %v11323_v63 }
 0x360   : > { %v11621_v23 = vpop.permute.xlu0 %7354  ;;  %7629 = vrot.lane.b32.xlu1 %v7628_v8, %s14045_s15  ;;  %v8321_v8 = vld [vmem:[#allocation2] sm:$0xff]  ;;  %s14436_s15 = smov 64  }
 0x361   : > { %14330 = vst [vmem:[#allocation73_spill] sm:$0xff] %v11621_v23 }
 0x362   : > { %v11624_v51 = vpop.permute.xlu1 %7349 }
 0x363   : > { %14331 = vst [vmem:[#allocation74_spill] sm:$0xff] %v11624_v51  ;;  %v3223_v51 = vsel %vm1488_vm4, %v8321_v8, %v6996_v61  ;;  %v7006_v61 = vunpack.i.l.bf16 %v11315_v37  ;;  %v7056_v37 = vunpack.i.l.bf16 %v11347_v35 }
 0x364   : > { %v11627_v58 = vpop.permute.xlu0 %7364 }
 0x365   : > { %14332 = vst [vmem:[#allocation75_spill] sm:$0xff] %v11627_v58  ;;  %v3256_v58 = vsel %vm1554_vm6, %v3224_v42, %v7002_v20  ;;  %v7011_v42 = vunpack.i.l.bf16 %v11323_v63  ;;  %v3227_v63 = vsel %vm1488_vm4, %v11393_v1, %v7026_v50  ;;  %v8322_v1 = vld [vmem:[#allocation2 + $0x20] sm:$0xff] }
 0x366   : > { %v11631_v26 = vpop.permute.xlu1 %7359  ;;  %v3288_v8 = vsel %vm1620_vm8, %v3256_v58, %v7017_v57  ;;  %v7046_v57 = vunpack.i.l.bf16 %v11331_v3  ;;  %v3228_v58 = vsel %vm1488_vm4, %v11391_v19, %v7027_v41  ;;  %v7071_v19 = vunpack.i.l.bf16 %v11371_v21 }
 0x367   : > { %14333 = vst [vmem:[#allocation76_spill] sm:$0xff] %v11631_v26  ;;  %v3255_v26 = vsel %vm1554_vm6, %v3223_v51, %v7001_v60  ;;  %v7032_v51 = vunpack.i.h.bf16 %v11341_v44  ;;  %v7042_v44 = vunpack.i.h.bf16 %v11357_v25  ;;  %v3259_v39 = vsel %vm1554_vm6, %v3227_v63, %v7036_v4 }
 0x368   : > { %v11635_v23 = vpop.permute.xlu0 %7374  ;;  %v3287_v20 = vsel %vm1620_vm8, %v3255_v26, %v7016_v18  ;;  %v7066_v26 = vunpack.i.l.bf16 %v11363_v16  ;;  %v8323_v18 = vld [vmem:[#allocation2 + $0x18] sm:$0xff] }
 0x369   : > { %14334 = vst [vmem:[#allocation77_spill] sm:$0xff] %v11635_v23  ;;  %v3225_v31 = vsel %vm1488_vm4, %v8323_v18, %v7056_v37 }
 0x36a   : > { %v11641_v24 = vpop.permute.xlu1 %7369  ;;  %v3257_v40 = vsel %vm1554_vm6, %v3225_v31, %v7066_v26 }
 0x36b   : > { %14335 = vst [vmem:[#allocation78_spill] sm:$0xff] %v11641_v24  ;;  %v7057_v24 = vunpack.i.h.bf16 %v11347_v35  ;;  %v7067_v35 = vunpack.i.h.bf16 %v11363_v16  ;;  %v7072_v16 = vunpack.i.h.bf16 %v11371_v21  ;;  %v8325_v21 = vld [vmem:[#allocation2 + $0xf8] sm:$0xff] }
 0x36c   : > { %v11644_v34 = vpop.permute.xlu0 %7384  ;;  %v3244_v18 = vsel %vm1488_vm4, %v8325_v21, %v7032_v51 }
 0x36d   : > { %14336 = vst [vmem:[#allocation79_spill] sm:$0xff] %v11644_v34  ;;  %v7061_v34 = vunpack.i.l.bf16 %v11355_v36  ;;  %v3226_v50 = vsel %vm1488_vm4, %v8322_v1, %v7057_v24  ;;  %v8324_v24 = vld [vmem:[#allocation2 + $0xd8] sm:$0xff] }
 0x36e   : > { %v11655_v60 = vpop.permute.xlu1 %7379  ;;  %v3258_v37 = vsel %vm1554_vm6, %v3226_v50, %v7067_v35  ;;  %v3289_v35 = vsel %vm1620_vm8, %v3257_v40, %v7006_v61  ;;  %v7097_v40 = vunpack.i.h.bf16 %v11381_v28  ;;  %v7096_v61 = vunpack.i.l.bf16 %v11381_v28 }
 0x36f   : > { %14337 = vst [vmem:[#allocation80_spill] sm:$0xff] %v11655_v60  ;;  %v7037_v60 = vunpack.i.h.bf16 %v11349_v10  ;;  %v3241_v1 = vsel %vm1488_vm4, %v8324_v24, %v7061_v34  ;;  %v7076_v10 = vunpack.i.l.bf16 %v11365_v22 }
 0x370   : > { %v11661_v23 = vpop.permute.xlu0 %7394  ;;  %v3273_v26 = vsel %vm1554_vm6, %v3241_v1, %v7071_v19  ;;  %v3291_v24 = vsel %vm1620_vm8, %v3259_v39, %v7096_v61  ;;  %v14343_v1 = vunpack.i.h.bf16 %v11339_v59  ;;  %v7127_v39 = vunpack.i.h.bf16 %v11400_v30 }
 0x371   : > { %14338 = vst [vmem:[#allocation81_spill] sm:$0xff] %v11661_v23  ;;  %v7062_v23 = vunpack.i.h.bf16 %v11355_v36  ;;  %v7041_v36 = vunpack.i.l.bf16 %v11357_v25  ;;  %v8327_v25 = vld [vmem:[#allocation2 + $0xe0] sm:$0xff]  ;;  %v3260_v34 = vsel %vm1554_vm6, %v3228_v58, %v7037_v60  ;;  %v11712_v19 = vsel %vm1686_vm10, %v3287_v20, %v7076_v10 }
 0x372   : > { %v11677_v41 = vpop.permute.xlu1 %7389  ;;  %v3305_v4 = vsel %vm1620_vm8, %v3273_v26, %v7011_v42  ;;  %v7101_v58 = vunpack.i.l.bf16 %v11389_v46  ;;  %v7087_v42 = vunpack.i.h.bf16 %v11379_v6  ;;  %v7137_v59 = vunpack.i.h.bf16 %v11416_v0  ;;  %v8328_v26 = vld [vmem:[#allocation2 + $0x68] sm:$0xff] }
 0x373   : > { %14339 = vst [vmem:[#allocation82_spill] sm:$0xff] %v11677_v41  ;;  %v7077_v41 = vunpack.i.h.bf16 %v11365_v22  ;;  %v3242_v31 = vsel %vm1488_vm4, %v8327_v25, %v7062_v23  ;;  %v3290_v23 = vsel %vm1620_vm8, %v3258_v37, %v7007_v15  ;;  %v11721_v15 = vsel %vm1686_vm10, %v3289_v35, %v7046_v57  ;;  %v8329_v35 = vld [vmem:[#allocation2 + $0x60] sm:$0xff] }
 0x374   : > { %v11683_v38 = vpop.permute.xlu0 %7404  ;;  %v3274_v22 = vsel %vm1554_vm6, %v3242_v31, %v7072_v16  ;;  %v7107_v57 = vunpack.i.h.bf16 %v11402_v12  ;;  %v7106_v16 = vunpack.i.l.bf16 %v11402_v12  ;;  %v7146_v25 = vunpack.i.l.bf16 %v11432_v56 }
 0x375   : > { %14340 = vst [vmem:[#allocation83_spill] sm:$0xff] %v11683_v38  ;;  %v8326_v38 = vld [vmem:[#allocation2 + $0xf0] sm:$0xff]  ;;  %v3306_v60 = vsel %vm1620_vm8, %v3274_v22, %v7012_v55  ;;  %v7152_v20 = vunpack.i.h.bf16 %v11440_v62 }
 0x376   : > { %v3243_v17 = vsel %vm1488_vm4, %v8326_v38, %v7031_v29  ;;  %v11697_v33 = vpop.permute.xlu1 %7399  ;;  %v3276_v38 = vsel %vm1554_vm6, %v3244_v18, %v7042_v44  ;;  %v11709_v29 = vsel %vm1686_vm10, %v3288_v8, %v7077_v41  ;;  %v14341_v41 = vunpack.i.h.bf16 %v11331_v3  ;;  %v14353_v3 = vld [vmem:[#allocation23_spill] sm:$0xff] }
 0x377   : > { %v3275_v51 = vsel %vm1554_vm6, %v3243_v17, %v7041_v36  ;;  %v7102_v17 = vunpack.i.h.bf16 %v11389_v46  ;;  %v7086_v46 = vunpack.i.l.bf16 %v11379_v6  ;;  %v11739_v44 = vsel %vm1686_vm10, %v3305_v4, %v7051_v9  ;;  %v14347_v4 = vld [vmem:[#allocation44_spill] sm:$0xff] }
 0x378   : > { %v11703_v50 = vpop.permute.xlu0 %7414  ;;  %v11731_v28 = vsel %vm1686_vm10, %v3290_v23, %v14341_v41  ;;  %14342 = vst [vmem:[#allocation84_spill] sm:$0xff] %v11739_v44  ;;  %v3292_v36 = vsel %vm1620_vm8, %v3260_v34, %v7097_v40  ;;  %v11747_v37 = vsel %vm1686_vm10, %v3306_v60, %v14343_v1  ;;  %v7091_v6 = vunpack.i.l.bf16 %v11387_v7  ;;  %v14348_v40 = vld [vmem:[#allocation55_spill] sm:$0xff] }
 0x379   : > { %14344 = vst [vmem:[#allocation85_spill] sm:$0xff] %v11747_v37  ;;  %v11751_v10 = vsel %vm1620_vm8, %v3276_v38, %v7102_v17  ;;  %v11754_v12 = vsel %vm1620_vm8, %v3275_v51, %v7101_v58  ;;  %v7136_v9 = vunpack.i.l.bf16 %v11416_v0  ;;  %v7126_v18 = vunpack.i.l.bf16 %v11400_v30  ;;  %v8330_v60 = vld [vmem:[#allocation2 + $0x48] sm:$0xff]  ;;  %v14349_v58 = vld [vmem:[#allocation22_spill] sm:$0xff] }
 0x37a   : > { %v11723_v8 = vpop.permute.xlu1 %7409  ;;  %v3232_v34 = vsel %vm1488_vm4, %v8328_v26, %v7107_v57  ;;  %v3231_v22 = vsel %vm1488_vm4, %v8329_v35, %v7106_v16  ;;  %v7147_v38 = vunpack.i.h.bf16 %v11432_v56  ;;  %v7131_v23 = vunpack.i.l.bf16 %v11408_v13  ;;  %v8331_v56 = vld [vmem:[#allocation2 + $0x50] sm:$0xff]  ;;  %v8332_v37 = vld [vmem:[#allocation2 + $0x128] sm:$0xff] }
 0x37b   : > { %v7112_v30 = vunpack.i.h.bf16 %v14347_v4  ;;  %v7111_v0 = vunpack.i.l.bf16 %v14347_v4  ;;  %v7141_v61 = vunpack.i.l.bf16 %v14348_v40  ;;  %v3229_v17 = vsel %vm1488_vm4, %v8330_v60, %v7136_v9  ;;  %v14352_v9 = vld [vmem:[#allocation56_spill] sm:$0xff] }
 0x37c   : > { %v11733_v55 = vpop.permute.xlu0 %7424  ;;  %v7116_v41 = vunpack.i.l.bf16 %v14349_v58  ;;  %v7142_v57 = vunpack.i.h.bf16 %v14348_v40  ;;  %v7151_v16 = vunpack.i.l.bf16 %v11440_v62  ;;  %v3230_v26 = vsel %vm1488_vm4, %v8331_v56, %v7137_v59  ;;  %v8333_v59 = vld [vmem:[#allocation2 + $0x120] sm:$0xff]  ;;  %v8334_v56 = vld [vmem:[#allocation2 + $0x108] sm:$0xff] }
 0x37d   : > { %v7117_v35 = vunpack.i.h.bf16 %v14349_v58  ;;  %v3261_v4 = vsel %vm1554_vm6, %v3229_v17, %v7146_v25  ;;  %v7122_v60 = vunpack.i.h.bf16 %v14352_v9  ;;  %v7121_v51 = vunpack.i.l.bf16 %v14352_v9 }
 0x37e   : > { %v11757_v21 = vpop.permute.xlu1 %7419  ;;  %v3262_v40 = vsel %vm1554_vm6, %v3230_v26, %v7147_v38  ;;  %v7157_v44 = vunpack.i.h.bf16 %v14353_v3  ;;  %v3247_v58 = vsel %vm1488_vm4, %v8333_v59, %v7111_v0  ;;  %v3245_v25 = vsel %vm1488_vm4, %v8334_v56, %v7141_v61  ;;  %v14355_v0 = vld [vmem:[#allocation20_spill] sm:$0xff] }
 0x37f   : > { %14345 = vst [vmem:[#allocation86_spill] sm:$0xff] %v11757_v21  ;;  %v7156_v62 = vunpack.i.l.bf16 %v14353_v3  ;;  %v3263_v17 = vsel %vm1554_vm6, %v3231_v22, %v7116_v41  ;;  %v3293_v38 = vsel %vm1620_vm8, %v3261_v4, %v7086_v46  ;;  %v3277_v26 = vsel %vm1554_vm6, %v3245_v25, %v7151_v16 }
 0x380   : > { %v11763_v31 = vpop.permute.xlu0 %7434  ;;  %v7162_v59 = vunpack.i.h.bf16 %v14355_v0  ;;  %v7161_v61 = vunpack.i.l.bf16 %v14355_v0  ;;  %v3264_v22 = vsel %vm1554_vm6, %v3232_v34, %v7117_v35  ;;  %v11809_v41 = vsel %vm1686_vm10, %v3292_v36, %v7157_v44  ;;  %v14359_v35 = vld [vmem:[#allocation58_spill] sm:$0xff] }
 0x381   : > { %14346 = vst [vmem:[#allocation87_spill] sm:$0xff] %v11763_v31  ;;  %v7186_v25 = vunpack.i.l.bf16 %v11475_v52 }
 0x382   : > { %v11777_v1 = vpop.permute.xlu1 %7429 }
 0x383   : > { %14350 = vst [vmem:[#allocation44_spill] sm:$0xff] %v11777_v1  ;;  %v3248_v1 = vsel %vm1488_vm4, %v8332_v37, %v7112_v30  ;;  %v3294_v37 = vsel %vm1620_vm8, %v3262_v40, %v7087_v42  ;;  %v14357_v42 = vld [vmem:[#allocation27_spill] sm:$0xff]  ;;  %v14358_v40 = vunpack.i.h.bf16 %v11387_v7  ;;  %v14363_v7 = vld [vmem:[#allocation17_spill] sm:$0xff] }
 0x384   : > { %v11783_v63 = vpop.permute.xlu0 %7444  ;;  %v3280_v46 = vsel %vm1554_vm6, %v3248_v1, %v7122_v60  ;;  %v7177_v16 = vunpack.i.h.bf16 %v14357_v42  ;;  %v7176_v4 = vunpack.i.l.bf16 %v14357_v42  ;;  %v11822_v1 = vsel %vm1686_vm10, %v3293_v38, %v7126_v18 }
 0x385   : > { %14351 = vst [vmem:[#allocation55_spill] sm:$0xff] %v11783_v63  ;;  %v8335_v63 = vld [vmem:[#allocation2 + $0x110] sm:$0xff]  ;;  %v11825_v44 = vsel %vm1686_vm10, %v3294_v37, %v7127_v39  ;;  %v7167_v60 = vunpack.i.h.bf16 %v14363_v7  ;;  %v7166_v18 = vunpack.i.l.bf16 %v14363_v7  ;;  %v7187_v39 = vunpack.i.h.bf16 %v11475_v52 }
 0x386   : > { %v3246_v9 = vsel %vm1488_vm4, %v8335_v63, %v7142_v57  ;;  %v11797_v31 = vpop.permute.xlu1 %7439  ;;  %v3279_v63 = vsel %vm1554_vm6, %v3247_v58, %v7121_v51  ;;  %v11812_v57 = vsel %vm1686_vm10, %v3291_v24, %v7156_v62  ;;  %v7182_v51 = vunpack.i.h.bf16 %v14359_v35 }
 0x387   : > { %14354 = vst [vmem:[#allocation22_spill] sm:$0xff] %v11797_v31  ;;  %v3278_v30 = vsel %vm1554_vm6, %v3246_v9, %v7152_v20  ;;  %v3309_v20 = vsel %vm1620_vm8, %v3277_v26, %v7091_v6  ;;  %v11831_v24 = vsel %vm1686_vm10, %v11751_v10, %v7162_v59  ;;  %v11835_v6 = vsel %vm1686_vm10, %v11754_v12, %v7161_v61  ;;  %v14366_v9 = vld [vmem:[#allocation57_spill] sm:$0xff] }
 0x388   : > { %v11803_v3 = vpop.permute.xlu0 %7454  ;;  %v3310_v34 = vsel %vm1620_vm8, %v3278_v30, %v14358_v40  ;;  %14361 = vst [vmem:[#allocation20_spill] sm:$0xff] %v11831_v24  ;;  %14362 = vst [vmem:[#allocation27_spill] sm:$0xff] %v11835_v6  ;;  %v7181_v58 = vunpack.i.l.bf16 %v14359_v35  ;;  %v11845_v62 = vsel %vm1686_vm10, %v3309_v20, %v7131_v23  ;;  %v3296_v10 = vsel %vm1620_vm8, %v3264_v22, %v7177_v16  ;;  %v14370_v61 = vld [vmem:[#allocation25_spill] sm:$0xff]  ;;  %v8337_v40 = vld [vmem:[#allocation2 + $0x90] sm:$0xff] }
 0x389   : > { %14356 = vst [vmem:[#allocation56_spill] sm:$0xff] %v11803_v3  ;;  %14365 = vst [vmem:[#allocation17_spill] sm:$0xff] %v11845_v62  ;;  %v3295_v12 = vsel %vm1620_vm8, %v3263_v17, %v7176_v4  ;;  %v14367_v26 = vunpack.i.h.bf16 %v11408_v13  ;;  %v11857_v0 = vsel %vm1620_vm8, %v3280_v46, %v7182_v51  ;;  %v7217_v52 = vunpack.i.h.bf16 %v11493_v14  ;;  %v8336_v16 = vld [vmem:[#allocation2 + $0x98] sm:$0xff]  ;;  %v14371_v35 = vld [vmem:[#allocation10_spill] sm:$0xff] }
 0x38a   : > { %v11827_v36 = vpop.permute.xlu1 %7449  ;;  %v7216_v23 = vunpack.i.l.bf16 %v11493_v14  ;;  %v11864_v17 = vsel %vm1620_vm8, %v3279_v63, %v7181_v58  ;;  %v7207_v22 = vunpack.i.h.bf16 %v14370_v61  ;;  %v7227_v13 = vunpack.i.h.bf16 %v11512_v49  ;;  %v14372_v58 = vld [vmem:[#allocation59_spill] sm:$0xff]  ;;  %v8343_v3 = vld [vmem:[#allocation2 + $0x138] sm:$0xff]  ;;  %v14378_v6 = vld [vmem:[#allocation16_spill] sm:$0xff] }
 0x38b   : > { %14360 = vst [vmem:[#allocation23_spill] sm:$0xff] %v11827_v36  ;;  %v11853_v37 = vsel %vm1686_vm10, %v3310_v34, %v14367_v26  ;;  %v7226_v20 = vunpack.i.l.bf16 %v11512_v49  ;;  %v7206_v46 = vunpack.i.l.bf16 %v14370_v61  ;;  %v3236_v4 = vsel %vm1488_vm4, %v8336_v16, %v7187_v39  ;;  %v8338_v26 = vld [vmem:[#allocation2 + $0x80] sm:$0xff]  ;;  %v8339_v61 = vld [vmem:[#allocation2 + $0x78] sm:$0xff]  ;;  %v14373_v39 = vld [vmem:[#allocation11_spill] sm:$0xff] }
 0x38c   : > { %v11839_v56 = vpop.permute.xlu0 %7464  ;;  %14368 = vst [vmem:[#allocation57_spill] sm:$0xff] %v11853_v37  ;;  %v3235_v14 = vsel %vm1488_vm4, %v8337_v40, %v7186_v25  ;;  %v7192_v51 = vunpack.i.h.bf16 %v14371_v35  ;;  %v7191_v7 = vunpack.i.l.bf16 %v14371_v35  ;;  %v7222_v49 = vunpack.i.h.bf16 %v14372_v58  ;;  %v14377_v37 = vld [vmem:[#allocation12_spill] sm:$0xff]  ;;  %v8340_v36 = vld [vmem:[#allocation2 + $0x158] sm:$0xff] }
 0x38d   : > { %14364 = vst [vmem:[#allocation58_spill] sm:$0xff] %v11839_v56  ;;  %v3234_v38 = vsel %vm1488_vm4, %v8338_v26, %v7217_v52  ;;  %v3233_v30 = vsel %vm1488_vm4, %v8339_v61, %v7216_v23  ;;  %v7196_v16 = vunpack.i.l.bf16 %v14373_v39  ;;  %v7221_v25 = vunpack.i.l.bf16 %v14372_v58  ;;  %v14376_v26 = vld [vmem:[#allocation60_spill] sm:$0xff] }
 0x38e   : > { %v11861_v59 = vpop.permute.xlu1 %7459  ;;  %v3265_v34 = vsel %vm1554_vm6, %v3233_v30, %v7226_v20  ;;  %v3266_v63 = vsel %vm1554_vm6, %v3234_v38, %v7227_v13  ;;  %v7197_v52 = vunpack.i.h.bf16 %v14373_v39  ;;  %v7202_v23 = vunpack.i.h.bf16 %v14376_v26  ;;  %v8341_v30 = vld [vmem:[#allocation2 + $0x150] sm:$0xff]  ;;  %v8342_v13 = vld [vmem:[#allocation2 + $0x140] sm:$0xff] }
 0x38f   : > { %14369 = vst [vmem:[#allocation88_spill] sm:$0xff] %v11861_v59  ;;  %v14375_v59 = vld [vmem:[#allocation28_spill] sm:$0xff]  ;;  %v7201_v61 = vunpack.i.l.bf16 %v14376_v26  ;;  %v7237_v58 = vunpack.i.h.bf16 %v14377_v37  ;;  %v3251_v38 = vsel %vm1488_vm4, %v8341_v30, %v7191_v7  ;;  %v3250_v20 = vsel %vm1488_vm4, %v8342_v13, %v7222_v49 }
 0x390   : > { %v11869_v42 = vpop.permute.xlu0 %7474  ;;  %v7232_v35 = vunpack.i.h.bf16 %v14375_v59  ;;  %v7231_v56 = vunpack.i.l.bf16 %v14375_v59  ;;  %v7236_v59 = vunpack.i.l.bf16 %v14377_v37  ;;  %v3249_v39 = vsel %vm1488_vm4, %v8343_v3, %v7221_v25 }
 0x391   : > { %v3297_v31 = vsel %vm1620_vm8, %v3265_v34, %v7166_v18  ;;  %v3298_v26 = vsel %vm1620_vm8, %v3266_v63, %v7167_v60  ;;  %v7242_v24 = vunpack.i.h.bf16 %v14378_v6  ;;  %v7241_v49 = vunpack.i.l.bf16 %v14378_v6 }
 0x392   : > { %v11883_v40 = vpop.permute.xlu1 %7469  ;;  %v3282_v7 = vsel %vm1554_vm6, %v3250_v20, %v7232_v35  ;;  %v3268_v3 = vsel %vm1554_vm6, %v3236_v4, %v7197_v52  ;;  %v3283_v18 = vsel %vm1554_vm6, %v3251_v38, %v7201_v61  ;;  %v11915_v34 = vsel %vm1686_vm10, %v3296_v10, %v7237_v58  ;;  %v14382_v61 = vld [vmem:[#allocation14_spill] sm:$0xff] }
 0x393   : > { %14374 = vst [vmem:[#allocation25_spill] sm:$0xff] %v11883_v40  ;;  %v3252_v40 = vsel %vm1488_vm4, %v8340_v36, %v7192_v51  ;;  %v3267_v36 = vsel %vm1554_vm6, %v3235_v14, %v7196_v16  ;;  %v3281_v51 = vsel %vm1554_vm6, %v3249_v39, %v7231_v56  ;;  %v11918_v63 = vsel %vm1686_vm10, %v3295_v12, %v7236_v59 }
 0x394   : > { %v11889_v62 = vpop.permute.xlu0 %7484  ;;  %v3284_v60 = vsel %vm1554_vm6, %v3252_v40, %v7202_v23  ;;  %v7266_v56 = vunpack.i.l.bf16 %v11556_v2  ;;  %v11922_v14 = vsel %vm1686_vm10, %v3297_v31, %v7206_v46  ;;  %v11925_v6 = vsel %vm1686_vm10, %v3298_v26, %v7207_v22  ;;  %v14381_v22 = vld [vmem:[#allocation61_spill] sm:$0xff] }
 0x395   : > { %v14379_v4 = vunpack.i.l.bf16 %v14366_v9  ;;  %v14380_v25 = vunpack.i.h.bf16 %v14366_v9  ;;  %v11935_v12 = vsel %vm1686_vm10, %v11857_v0, %v7242_v24  ;;  %v7271_v40 = vunpack.i.l.bf16 %v11563_v45 }
 0x396   : > { %v11903_v21 = vpop.permute.xlu1 %7479  ;;  %v11942_v31 = vsel %vm1686_vm10, %v11864_v17, %v7241_v49  ;;  %v7257_v46 = vunpack.i.h.bf16 %v14381_v22  ;;  %v7256_v52 = vunpack.i.l.bf16 %v14381_v22  ;;  %v7267_v9 = vunpack.i.h.bf16 %v11556_v2  ;;  %v8344_v17 = vld [vmem:[#allocation2 + $0xc0] sm:$0xff] }
 0x397   : > { %v3313_v16 = vsel %vm1620_vm8, %v3281_v51, %v14379_v4  ;;  %v3314_v10 = vsel %vm1620_vm8, %v3282_v7, %v14380_v25  ;;  %v7247_v58 = vunpack.i.h.bf16 %v14382_v61  ;;  %v7246_v24 = vunpack.i.l.bf16 %v14382_v61 }
 0x398   : > { %v11909_v37 = vpop.permute.xlu0 %7494  ;;  %v7262_v0 = vunpack.i.h.bf16 %v11548_v27  ;;  %v7272_v30 = vunpack.i.h.bf16 %v11563_v45  ;;  %v7261_v38 = vunpack.i.l.bf16 %v11548_v27  ;;  %v3239_v13 = vsel %vm1488_vm4, %v8344_v17, %v7266_v56  ;;  %v8345_v56 = vld [vmem:[#allocation2 + $0xc8] sm:$0xff] }
 0x399   : > { %v7282_v20 = vunpack.i.h.bf16 %v11561_v48  ;;  %v7281_v59 = vunpack.i.l.bf16 %v11561_v48  ;;  %v3271_v2 = vsel %vm1554_vm6, %v3239_v13, %v7271_v40  ;;  %v7292_v39 = vunpack.i.h.bf16 %v11577_v11 }
 0x39a   : > { %v11938_v35 = vpop.permute.xlu1 %7489  ;;  %v7291_v26 = vunpack.i.l.bf16 %v11577_v11  ;;  %v14383_v51 = vunpack.i.l.bf16 %v11482_v43  ;;  %v3300_v7 = vsel %vm1620_vm8, %v3268_v3, %v7257_v46  ;;  %v3299_v49 = vsel %vm1620_vm8, %v3267_v36, %v7256_v52  ;;  %v8346_v46 = vld [vmem:[#allocation2 + $0xb0] sm:$0xff] }
 0x39b   : > { %v3240_v48 = vsel %vm1488_vm4, %v8345_v56, %v7267_v9  ;;  %v14384_v4 = vunpack.i.h.bf16 %v11482_v43  ;;  %v3316_v22 = vsel %vm1620_vm8, %v3284_v60, %v7262_v0  ;;  %v3315_v36 = vsel %vm1620_vm8, %v3283_v18, %v7261_v38  ;;  %v8347_v9 = vld [vmem:[#allocation2 + $0xa8] sm:$0xff] }
 0x39c   : > { %v11947_v23 = vpop.permute.xlu0 %7504  ;;  %v11963_v45 = vsel %vm1686_vm10, %v3313_v16, %v14383_v51  ;;  %v3272_v3 = vsel %vm1554_vm6, %v3240_v48, %v7272_v30  ;;  %v3238_v52 = vsel %vm1488_vm4, %v8346_v46, %v7282_v20  ;;  %v3237_v43 = vsel %vm1488_vm4, %v8347_v9, %v7281_v59  ;;  %v14387_v51 = vld [vmem:[#allocation63_spill] sm:$0xff]  ;;  %v14388_v48 = vld [vmem:[#allocation62_spill] sm:$0xff]  ;;  %v14390_v9 = vld [vmem:[#allocation65_spill] sm:$0xff] }
 0x39d   : > { %v11973_v25 = vsel %vm1686_vm10, %v3314_v10, %v14384_v4  ;;  %v14385_v10 = vunpack.i.l.bf16 %v11325_v32  ;;  %v7287_v17 = vunpack.i.h.bf16 %v11569_v47  ;;  %v7286_v13 = vunpack.i.l.bf16 %v11569_v47  ;;  %v14389_v4 = vld [vmem:[#allocation64_spill] sm:$0xff] }
 0x39e   : > { %v11965_v27 = vpop.permute.xlu1 %7499  ;;  %v3269_v60 = vsel %vm1554_vm6, %v3237_v43, %v7291_v26  ;;  %v3270_v0 = vsel %vm1554_vm6, %v3238_v52, %v7292_v39  ;;  %v14386_v18 = vunpack.i.h.bf16 %v11325_v32  ;;  %v7302_v20 = vunpack.i.h.bf16 %v11571_v5  ;;  %v8348_v43 = vld [vmem:[#allocation2 + $0x170] sm:$0xff] }
 0x39f   : > { %v3303_v61 = vsel %vm1620_vm8, %v3271_v2, %v14385_v10  ;;  %v7301_v59 = vunpack.i.l.bf16 %v11571_v5  ;;  %v7307_v2 = vunpack.i.h.bf16 %v14387_v51  ;;  %v7277_v47 = vunpack.i.h.bf16 %v14388_v48 }
 0x3a0   : > { %v11975_v11 = vpop.permute.xlu0 %7514  ;;  %v3304_v38 = vsel %vm1620_vm8, %v3272_v3, %v14386_v18  ;;  %v7276_v26 = vunpack.i.l.bf16 %v14388_v48  ;;  %v7306_v39 = vunpack.i.l.bf16 %v14387_v51  ;;  %v7296_v46 = vunpack.i.l.bf16 %v14389_v4  ;;  %v8349_v18 = vld [vmem:[#allocation2 + $0x168] sm:$0xff] }
 0x3a1   : > { %v3301_v32 = vsel %vm1620_vm8, %v3269_v60, %v7246_v24  ;;  %v3302_v3 = vsel %vm1620_vm8, %v3270_v0, %v7247_v58  ;;  %v7297_v52 = vunpack.i.h.bf16 %v14389_v4  ;;  %v7317_v5 = vunpack.i.h.bf16 %v14390_v9 }
 0x3a2   : > { %v11991_v30 = vpop.permute.xlu1 %7509  ;;  %v3254_v10 = vsel %vm1488_vm4, %v8348_v43, %v7287_v17  ;;  %v3253_v40 = vsel %vm1488_vm4, %v8349_v18, %v7286_v13  ;;  %v14391_v48 = vunpack.i.l.bf16 %v11373_v54  ;;  %v14392_v24 = vunpack.i.h.bf16 %v11373_v54 }
 0x3a3   : > { %v3332_v0 = vsel %vm1686_vm10, %v3300_v7, %v7302_v20  ;;  %v3331_v17 = vsel %vm1686_vm10, %v3299_v49, %v7301_v59  ;;  %v12026_v4 = vsel %vm1686_vm10, %v3316_v22, %v7307_v2  ;;  %v7316_v13 = vunpack.i.l.bf16 %v14390_v9  ;;  %v14395_v20 = vld [vmem:[#allocation67_spill] sm:$0xff]  ;;  %v14396_v2 = vld [vmem:[#allocation68_spill] sm:$0xff] }
 0x3a4   : > { %v11999_v56 = vpop.permute.xlu0 %7524  ;;  %v12014_v51 = vsel %vm1686_vm10, %v3303_v61, %v14391_v48  ;;  %v12019_v58 = vsel %vm1686_vm10, %v3304_v38, %v14392_v24  ;;  %v12032_v54 = vsel %vm1686_vm10, %v3315_v36, %v7306_v39  ;;  %v12035_v61 = vsel %vm1554_vm6, %v3253_v40, %v7296_v46  ;;  %v14397_v46 = vld [vmem:[#allocation69_spill] sm:$0xff]  ;;  %v14400_v48 = vld [vmem:[#allocation66_spill] sm:$0xff] }
 0x3a5   : > { %14393 = vst [vmem:[#allocation10_spill] sm:$0xff] %v12035_v61  ;;  %v12038_v38 = vsel %vm1686_vm10, %v3301_v32, %v7276_v26  ;;  %v12041_v7 = vsel %vm1686_vm10, %v3302_v3, %v7277_v47  ;;  %v12044_v49 = vsel %vm1554_vm6, %v3254_v10, %v7297_v52  ;;  %v3353_v22 = vsel %vm3351_vm14, %v11709_v29, %v7317_v5  ;;  %v14398_v52 = vld [vmem:[#allocation70_spill] sm:$0xff]  ;;  %v14399_v5 = vld [vmem:[#allocation71_spill] sm:$0xff] }
 0x3a6   : > { %v12021_v60 = vpop.permute.xlu1 %7519  ;;  %14394 = vst [vmem:[#allocation59_spill] sm:$0xff] %v12044_v49  ;;  %v7327_v59 = vunpack.i.h.bf16 %v14395_v20  ;;  %v7326_v36 = vunpack.i.l.bf16 %v14395_v20  ;;  %v7322_v39 = vunpack.i.h.bf16 %v14396_v2  ;;  %v7321_v40 = vunpack.i.l.bf16 %v14396_v2  ;;  %v14401_v2 = vld [vmem:[#allocation81_spill] sm:$0xff] }
 0x3a7   : > { %v7337_v26 = vunpack.i.h.bf16 %v14397_v46  ;;  %v7336_v32 = vunpack.i.l.bf16 %v14397_v46  ;;  %v3352_v3 = vsel %vm3351_vm14, %v11712_v19, %v7316_v13  ;;  %v7332_v29 = vunpack.i.h.bf16 %v14398_v52 }
 0x3a8   : > { %v12029_v43 = vpop.permute.xlu0 %7534  ;;  %v7331_v9 = vunpack.i.l.bf16 %v14398_v52  ;;  %v7346_v10 = vunpack.i.l.bf16 %v14399_v5  ;;  %v7397_v46 = vunpack.i.h.bf16 %v14401_v2  ;;  %v7396_v16 = vunpack.i.l.bf16 %v14401_v2 }
 0x3a9   : > { %v3357_v49 = vsel %vm3351_vm14, %v11809_v41, %v7327_v59  ;;  %v3356_v19 = vsel %vm3351_vm14, %v11812_v57, %v7326_v36  ;;  %v7477_v13 = vunpack.i.h.bf16 %v11869_v42  ;;  %v7476_v52 = vunpack.i.l.bf16 %v11869_v42 }
 0x3aa   : > { %v12054_v47 = vpop.permute.xlu1 %7529  ;;  %v3355_v61 = vsel %vm3351_vm14, %v11731_v28, %v7322_v39  ;;  %v3354_v24 = vsel %vm3351_vm14, %v11721_v15, %v7321_v40  ;;  %v12079_v20 = vsel %vm3351_vm14, %v11915_v34, %v7337_v26  ;;  %v12083_v41 = vsel %vm3351_vm14, %v11918_v63, %v7336_v32  ;;  %v14402_v26 = vld [vmem:[#allocation83_spill] sm:$0xff] }
 0x3ab   : > { %v12089_v57 = vsel %vm3351_vm14, %v11825_v44, %v7332_v29  ;;  %v12093_v28 = vsel %vm3351_vm14, %v11822_v1, %v7331_v9  ;;  %v7347_v15 = vunpack.i.h.bf16 %v14399_v5  ;;  %v12097_v42 = vsel %vm3351_vm14, %v3331_v17, %v7346_v10 }
 0x3ac   : > { %v12061_v18 = vpop.permute.xlu0 %7544  ;;  %v3385_v36 = vsel %vm3384_vm15, %v3352_v3, %v7396_v16  ;;  %v3386_v63 = vsel %vm3384_vm15, %v3353_v22, %v7397_v46  ;;  %v7407_v32 = vunpack.i.h.bf16 %v14402_v26  ;;  %v7406_v44 = vunpack.i.l.bf16 %v14402_v26 }
 0x3ad   : > { %v3418_v29 = vsel %vm3417_vm2, %v3385_v36, %v7476_v52  ;;  %v3419_v1 = vsel %vm3417_vm2, %v3386_v63, %v7477_v13  ;;  %v7402_v9 = vunpack.i.h.bf16 %v11697_v33  ;;  %v7401_v17 = vunpack.i.l.bf16 %v11697_v33  ;;  %v14403_v63 = vld [vmem:[#allocation72_spill] sm:$0xff] }
 0x3ae   : > { %v12085_v59 = vpop.permute.xlu1 %7539  ;;  %v12112_v22 = vsel %vm3351_vm14, %v3332_v0, %v7347_v15  ;;  %v7487_v10 = vunpack.i.h.bf16 %v11889_v62  ;;  %v7486_v2 = vunpack.i.l.bf16 %v11889_v62  ;;  %v7482_v13 = vunpack.i.h.bf16 %v11903_v21 }
 0x3af   : > { %v3389_v26 = vsel %vm3384_vm15, %v3356_v19, %v7406_v44  ;;  %v3390_v0 = vsel %vm3384_vm15, %v3357_v49, %v7407_v32  ;;  %v3387_v62 = vsel %vm3384_vm15, %v3354_v24, %v7401_v17  ;;  %v3388_v15 = vsel %vm3384_vm15, %v3355_v61, %v7402_v9 }
 0x3b0   : > { %v7555_v34 = vpop.permute.xlu0 %7554  ;;  %v3421_v49 = vsel %vm3417_vm2, %v3388_v15, %v7482_v13  ;;  %v7412_v61 = vunpack.i.h.bf16 %v11723_v8  ;;  %v7411_v44 = vunpack.i.l.bf16 %v11723_v8 }
 0x3b1   : > { %v7557_v39 = vunpack.i.h.bf16 %v7555_v34  ;;  %v7556_v40 = vunpack.i.l.bf16 %v7555_v34  ;;  %v7481_v34 = vunpack.i.l.bf16 %v11903_v21  ;;  %v7416_v21 = vunpack.i.l.bf16 %v11703_v50 }
 0x3b2   : > { %v12109_v3 = vpop.permute.xlu1 %7549 }
 0x3b3   : > { %v3451_v5 = vsel %vm3450_vm3, %v3418_v29, %v7556_v40  ;;  %v3452_v16 = vsel %vm3450_vm3, %v3419_v1, %v7557_v39  ;;  %v7342_v40 = vunpack.i.h.bf16 %v14403_v63  ;;  %v7341_v39 = vunpack.i.l.bf16 %v14403_v63 }
 0x3b4   : > { %v7565_v46 = vpop.permute.xlu0 %7564  ;;  %v3483_v52 = vpack.c.bf16 %v3452_v16, %v3451_v5  ;;  %v7417_v29 = vunpack.i.h.bf16 %v11703_v50  ;;  %v3422_v5 = vsel %vm3417_vm2, %v3389_v26, %v7486_v2  ;;  %v3423_v16 = vsel %vm3417_vm2, %v3390_v0, %v7487_v10 }
 0x3b5   : > { %v7567_v33 = vunpack.i.h.bf16 %v7565_v46  ;;  %v7566_v36 = vunpack.i.l.bf16 %v7565_v46  ;;  %v3420_v19 = vsel %vm3417_vm2, %v3387_v62, %v7481_v34  ;;  %v7497_v10 = vunpack.i.h.bf16 %v11909_v37  ;;  %v14404_v62 = vld [vmem:[#allocation73_spill] sm:$0xff] }
 0x3b6   : > { %6211 = vmatprep.mubr.msk.bf16.mxu1 %vm3535_vm5, %v3483_v52  ;;  %v7560_v1 = vpop.permute.xlu1 %7559  ;;  %v7492_v2 = vunpack.i.h.bf16 %v11938_v35  ;;  %v7491_v52 = vunpack.i.l.bf16 %v11938_v35  ;;  %v7357_v8 = vunpack.i.h.bf16 %v14404_v62  ;;  %v7356_v15 = vunpack.i.l.bf16 %v14404_v62  ;;  %v14407_v62 = vld [vmem:[#allocation75_spill] sm:$0xff] }
 0x3b7   : > { %v7562_v46 = vunpack.i.h.bf16 %v7560_v1  ;;  %v7561_v63 = vunpack.i.l.bf16 %v7560_v1  ;;  %v3455_v32 = vsel %vm3450_vm3, %v3422_v5, %v7566_v36  ;;  %v3456_v24 = vsel %vm3450_vm3, %v3423_v16, %v7567_v33 }
 0x3b8   : > { %v7575_v17 = vpop.permute.xlu0 %7574  ;;  %v7496_v36 = vunpack.i.l.bf16 %v11909_v37  ;;  %v3485_v0 = vpack.c.bf16 %v3456_v24, %v3455_v32  ;;  %v3363_v16 = vsel %vm3351_vm14, %v11925_v6, %v7342_v40  ;;  %v3362_v35 = vsel %vm3351_vm14, %v11922_v14, %v7341_v39 }
 0x3b9   : > { %v3453_v50 = vsel %vm3450_vm3, %v3420_v19, %v7561_v63  ;;  %v3454_v9 = vsel %vm3450_vm3, %v3421_v49, %v7562_v46  ;;  %v7577_v1 = vunpack.i.h.bf16 %v7575_v17  ;;  %v7576_v5 = vunpack.i.l.bf16 %v7575_v17 }
 0x3ba   : > { %v3484_v13 = vpack.c.bf16 %v3454_v9, %v3453_v50  ;;  %v7570_v34 = vpop.permute.xlu1 %7569  ;;  %v3391_v37 = vsel %vm3384_vm15, %v12093_v28, %v7411_v44  ;;  %v3392_v46 = vsel %vm3384_vm15, %v12089_v57, %v7412_v61  ;;  %v3393_v63 = vsel %vm3384_vm15, %v12083_v41, %v7416_v21  ;;  %v14405_v61 = vld [vmem:[#allocation86_spill] sm:$0xff] }
 0x3bb   : > { %v7572_v33 = vunpack.i.h.bf16 %v7570_v34  ;;  %v7571_v26 = vunpack.i.l.bf16 %v7570_v34  ;;  %v3394_v19 = vsel %vm3384_vm15, %v12079_v20, %v7417_v29  ;;  %v3424_v49 = vsel %vm3417_vm2, %v3391_v37, %v7491_v52 }
 0x3bc   : > { %6212 = vmatmul.mubr.msk.bf16.vlgmr.msra.gmra.mxu1 %vm3535_vm5, %v3484_v13  ;;  %v3425_v6 = vsel %vm3417_vm2, %v3392_v46, %v7492_v2  ;;  %v3426_v14 = vsel %vm3417_vm2, %v3393_v63, %v7496_v36  ;;  %v3427_v40 = vsel %vm3417_vm2, %v3394_v19, %v7497_v10  ;;  %v12165_v39 = vsel %vm3351_vm14, %v12019_v58, %v7357_v8  ;;  %v7585_v9 = vpop.permute.xlu0 %7584  ;;  %v14406_v36 = vld [vmem:[#allocation74_spill] sm:$0xff] }
 0x3bd   : > { %6215 = vmatprep.mubr.msk.bf16.mxu1 %vm3535_vm5, %v3485_v0  ;;  %v3457_v28 = vsel %vm3450_vm3, %v3424_v49, %v7571_v26  ;;  %v3458_v57 = vsel %vm3450_vm3, %v3425_v6, %v7572_v33  ;;  %v12169_v41 = vsel %vm3351_vm14, %v12014_v51, %v7356_v15  ;;  %v3459_v20 = vsel %vm3450_vm3, %v3426_v14, %v7576_v5 }
 0x3be   : > { %v3460_v29 = vsel %vm3450_vm3, %v3427_v40, %v7577_v1  ;;  %v7580_v21 = vpop.permute.xlu1 %7579  ;;  %v7427_v32 = vunpack.i.h.bf16 %v11733_v55  ;;  %v7426_v24 = vunpack.i.l.bf16 %v11733_v55  ;;  %v7422_v44 = vunpack.i.h.bf16 %v14405_v61  ;;  %v14408_v40 = vld [vmem:[#allocation87_spill] sm:$0xff] }
 0x3bf   : > { %v7421_v50 = vunpack.i.l.bf16 %v14405_v61  ;;  %v7507_v58 = vunpack.i.h.bf16 %v11947_v23  ;;  %v7502_v17 = vunpack.i.h.bf16 %v11965_v27  ;;  %v7501_v51 = vunpack.i.l.bf16 %v11965_v27 }
 0x3c0   : > { %v3486_v10 = vpack.c.bf16 %v3458_v57, %v3457_v28  ;;  %v7506_v2 = vunpack.i.l.bf16 %v11947_v23  ;;  %v7582_v52 = vunpack.i.h.bf16 %v7580_v21  ;;  %v7581_v13 = vunpack.i.l.bf16 %v7580_v21 }
 0x3c1   : > { %v3487_v34 = vpack.c.bf16 %v3460_v29, %v3459_v20  ;;  %v7352_v33 = vunpack.i.h.bf16 %v14406_v36  ;;  %v7351_v55 = vunpack.i.l.bf16 %v14406_v36  ;;  %v7587_v26 = vunpack.i.h.bf16 %v7585_v9  ;;  %v14409_v20 = vld [vmem:[#allocation44_spill] sm:$0xff] }
 0x3c2   : > { %v7586_v0 = vunpack.i.l.bf16 %v7585_v9  ;;  %v7367_v8 = vunpack.i.h.bf16 %v14407_v62  ;;  %v7366_v15 = vunpack.i.l.bf16 %v14407_v62  ;;  %v3395_v27 = vsel %vm3384_vm15, %v3362_v35, %v7421_v50  ;;  %v7590_v14 = vpop.permute.xlu1 %7589 }
 0x3c3   : > { %v3396_v1 = vsel %vm3384_vm15, %v3363_v16, %v7422_v44  ;;  %v3397_v23 = vsel %vm3384_vm15, %v12097_v42, %v7426_v24  ;;  %v3398_v5 = vsel %vm3384_vm15, %v12112_v22, %v7427_v32  ;;  %v3428_v37 = vsel %vm3417_vm2, %v3395_v27, %v7501_v51  ;;  %v7595_v32 = vpop.permute.xlu0 %7594 }
 0x3c4   : > { %6216 = vmatmul.mubr.msk.bf16.gmra.mxu1 %vm3535_vm5, %v3486_v10  ;;  %v3429_v46 = vsel %vm3417_vm2, %v3396_v1, %v7502_v17  ;;  %v3430_v63 = vsel %vm3417_vm2, %v3397_v23, %v7506_v2  ;;  %v3431_v19 = vsel %vm3417_vm2, %v3398_v5, %v7507_v58  ;;  %v3461_v35 = vsel %vm3450_vm3, %v3428_v37, %v7581_v13  ;;  %v14410_v17 = vld [vmem:[#allocation20_spill] sm:$0xff]  ;;  %v14411_v10 = vld [vmem:[#allocation27_spill] sm:$0xff]  ;;  %v14413_v23 = vld [vmem:[#allocation77_spill] sm:$0xff] }
 0x3c5   : > { %6219 = vmatprep.mubr.msk.bf16.mxu1 %vm3535_vm5, %v3487_v34  ;;  %v3462_v16 = vsel %vm3450_vm3, %v3429_v46, %v7582_v52  ;;  %v3366_v49 = vsel %vm3351_vm14, %v12038_v38, %v7351_v55  ;;  %v3367_v42 = vsel %vm3351_vm14, %v12041_v7, %v7352_v33  ;;  %v3463_v22 = vsel %vm3450_vm3, %v3430_v63, %v7586_v0  ;;  %v14412_v34 = vld [vmem:[#allocation76_spill] sm:$0xff]  ;;  %v14414_v63 = vld [vmem:[#allocation55_spill] sm:$0xff] }
 0x3c6   : > { %v3464_v6 = vsel %vm3450_vm3, %v3431_v19, %v7587_v26  ;;  %v7437_v28 = vunpack.i.h.bf16 %v14408_v40  ;;  %v7436_v57 = vunpack.i.l.bf16 %v14408_v40  ;;  %v7432_v29 = vunpack.i.h.bf16 %v14409_v20  ;;  %v7600_v46 = vpop.permute.xlu1 %7599 }
 0x3c7   : > { %v7431_v21 = vunpack.i.l.bf16 %v14409_v20  ;;  %v7517_v24 = vunpack.i.h.bf16 %v11975_v11  ;;  %v7512_v38 = vunpack.i.h.bf16 %v11991_v30  ;;  %v7511_v7 = vunpack.i.l.bf16 %v11991_v30 }
 0x3c8   : > { %v3488_v61 = vpack.c.bf16 %v3462_v16, %v3461_v35  ;;  %v7516_v44 = vunpack.i.l.bf16 %v11975_v11  ;;  %v7592_v50 = vunpack.i.h.bf16 %v7590_v14  ;;  %v7591_v9 = vunpack.i.l.bf16 %v7590_v14  ;;  %v14415_v16 = vld [vmem:[#allocation22_spill] sm:$0xff] }
 0x3c9   : > { %v3489_v58 = vpack.c.bf16 %v3464_v6, %v3463_v22  ;;  %v3373_v51 = vsel %vm3351_vm14, %v14410_v17, %v7367_v8  ;;  %v3372_v2 = vsel %vm3351_vm14, %v14411_v10, %v7366_v15  ;;  %v7597_v52 = vunpack.i.h.bf16 %v7595_v32  ;;  %v7605_v22 = vpop.permute.xlu0 %7604 }
 0x3ca   : > { %v7596_v13 = vunpack.i.l.bf16 %v7595_v32  ;;  %v7362_v36 = vunpack.i.h.bf16 %v14412_v34  ;;  %v7361_v30 = vunpack.i.l.bf16 %v14412_v34  ;;  %v3399_v33 = vsel %vm3384_vm15, %v3366_v49, %v7431_v21  ;;  %v14416_v32 = vld [vmem:[#allocation85_spill] sm:$0xff] }
 0x3cb   : > { %v3400_v11 = vsel %vm3384_vm15, %v3367_v42, %v7432_v29  ;;  %v3401_v55 = vsel %vm3384_vm15, %v12169_v41, %v7436_v57  ;;  %v3402_v26 = vsel %vm3384_vm15, %v12165_v39, %v7437_v28  ;;  %v3432_v0 = vsel %vm3417_vm2, %v3399_v33, %v7511_v7 }
 0x3cc   : > { %6220 = vmatmul.mubr.msk.bf16.gmra.mxu1 %vm3535_vm5, %v3488_v61  ;;  %v3433_v62 = vsel %vm3417_vm2, %v3400_v11, %v7512_v38  ;;  %v3434_v8 = vsel %vm3417_vm2, %v3401_v55, %v7516_v44  ;;  %v3435_v15 = vsel %vm3417_vm2, %v3402_v26, %v7517_v24  ;;  %v3465_v27 = vsel %vm3450_vm3, %v3432_v0, %v7591_v9  ;;  %v14417_v38 = vld [vmem:[#allocation84_spill] sm:$0xff]  ;;  %v7610_v11 = vpop.permute.xlu1 %7609 }
 0x3cd   : > { %6223 = vmatprep.mubr.msk.bf16.mxu1 %vm3535_vm5, %v3489_v58  ;;  %v3466_v1 = vsel %vm3450_vm3, %v3433_v62, %v7592_v50  ;;  %v7377_v5 = vunpack.i.h.bf16 %v14413_v23  ;;  %v7376_v37 = vunpack.i.l.bf16 %v14413_v23  ;;  %v3467_v41 = vsel %vm3450_vm3, %v3434_v8, %v7596_v13  ;;  %v14419_v55 = vld [vmem:[#allocation56_spill] sm:$0xff]  ;;  %v14420_v62 = vld [vmem:[#allocation23_spill] sm:$0xff] }
 0x3ce   : > { %v3468_v39 = vsel %vm3450_vm3, %v3435_v15, %v7597_v52  ;;  %v7447_v19 = vunpack.i.h.bf16 %v14414_v63  ;;  %v7446_v35 = vunpack.i.l.bf16 %v14414_v63  ;;  %v7442_v49 = vunpack.i.h.bf16 %v14415_v16 }
 0x3cf   : > { %v7441_v42 = vunpack.i.l.bf16 %v14415_v16  ;;  %v7527_v6 = vunpack.i.h.bf16 %v11999_v56  ;;  %v7522_v14 = vunpack.i.h.bf16 %v12021_v60  ;;  %v7521_v40 = vunpack.i.l.bf16 %v12021_v60  ;;  %v14422_v16 = vld [vmem:[#allocation17_spill] sm:$0xff] }
 0x3d0   : > { %v3490_v28 = vpack.c.bf16 %v3466_v1, %v3465_v27  ;;  %v7526_v57 = vunpack.i.l.bf16 %v11999_v56  ;;  %v7602_v20 = vunpack.i.h.bf16 %v7600_v46  ;;  %v7601_v29 = vunpack.i.l.bf16 %v7600_v46  ;;  %v7615_v27 = vpop.permute.xlu0 %7614 }
 0x3d1   : > { %v3491_v21 = vpack.c.bf16 %v3468_v39, %v3467_v41  ;;  %v3371_v24 = vsel %vm3351_vm14, %v14416_v32, %v7362_v36  ;;  %v3370_v7 = vsel %vm3351_vm14, %v14417_v38, %v7361_v30  ;;  %v7607_v61 = vunpack.i.h.bf16 %v7605_v22  ;;  %v14418_v36 = vld [vmem:[#allocation78_spill] sm:$0xff] }
 0x3d2   : > { %v7606_v44 = vunpack.i.l.bf16 %v7605_v22  ;;  %v3377_v50 = vsel %vm3351_vm14, %v11935_v12, %v7377_v5  ;;  %v3376_v60 = vsel %vm3351_vm14, %v11942_v31, %v7376_v37  ;;  %v3403_v56 = vsel %vm3384_vm15, %v3370_v7, %v7441_v42  ;;  %v14424_v7 = vld [vmem:[#allocation80_spill] sm:$0xff] }
 0x3d3   : > { %v3404_v9 = vsel %vm3384_vm15, %v3371_v24, %v7442_v49  ;;  %v3405_v58 = vsel %vm3384_vm15, %v3372_v2, %v7446_v35  ;;  %v3406_v17 = vsel %vm3384_vm15, %v3373_v51, %v7447_v19  ;;  %v3436_v10 = vsel %vm3417_vm2, %v3403_v56, %v7521_v40  ;;  %v14421_v19 = vld [vmem:[#allocation57_spill] sm:$0xff]  ;;  %v7620_v56 = vpop.permute.xlu1 %7619 }
 0x3d4   : > { %6224 = vmatmul.mubr.msk.bf16.gmra.mxu1 %vm3535_vm5, %v3490_v28  ;;  %v3437_v52 = vsel %vm3417_vm2, %v3404_v9, %v7522_v14  ;;  %v3438_v13 = vsel %vm3417_vm2, %v3405_v58, %v7526_v57  ;;  %v3439_v12 = vsel %vm3417_vm2, %v3406_v17, %v7527_v6  ;;  %v3469_v31 = vsel %vm3450_vm3, %v3436_v10, %v7601_v29  ;;  %v14423_v6 = vld [vmem:[#allocation79_spill] sm:$0xff]  ;;  %v14425_v9 = vld [vmem:[#allocation58_spill] sm:$0xff]  ;;  %v14426_v10 = vld [vmem:[#allocation88_spill] sm:$0xff] }
 0x3d5   : > { %6227 = vmatprep.mubr.msk.bf16.mxu1 %vm3535_vm5, %v3491_v21  ;;  %v3470_v34 = vsel %vm3450_vm3, %v3437_v52, %v7602_v20  ;;  %v7372_v30 = vunpack.i.h.bf16 %v14418_v36  ;;  %v7371_v33 = vunpack.i.l.bf16 %v14418_v36  ;;  %v3471_v2 = vsel %vm3450_vm3, %v3438_v13, %v7606_v44 }
 0x3d6   : > { %v3472_v51 = vsel %vm3450_vm3, %v3439_v12, %v7607_v61  ;;  %v7457_v26 = vunpack.i.h.bf16 %v14419_v55  ;;  %v7456_v0 = vunpack.i.l.bf16 %v14419_v55  ;;  %v7452_v8 = vunpack.i.h.bf16 %v14420_v62  ;;  %v7625_v12 = vpop.permute.xlu0 %7624 }
 0x3d7   : > { %v7451_v15 = vunpack.i.l.bf16 %v14420_v62  ;;  %v7537_v1 = vunpack.i.h.bf16 %v12029_v43  ;;  %v7532_v23 = vunpack.i.h.bf16 %v12054_v47  ;;  %v7531_v5 = vunpack.i.l.bf16 %v12054_v47 }
 0x3d8   : > { %v3492_v37 = vpack.c.bf16 %v3470_v34, %v3469_v31  ;;  %v7536_v41 = vunpack.i.l.bf16 %v12029_v43  ;;  %v7612_v39 = vunpack.i.h.bf16 %v7610_v11  ;;  %v7611_v46 = vunpack.i.l.bf16 %v7610_v11 }
 0x3d9   : > { %v3493_v63 = vpack.c.bf16 %v3472_v51, %v3471_v2  ;;  %v3375_v35 = vsel %vm3351_vm14, %v14421_v19, %v7372_v30  ;;  %v3374_v49 = vsel %vm3351_vm14, %v14422_v16, %v7371_v33  ;;  %v7617_v42 = vunpack.i.h.bf16 %v7615_v27  ;;  %v7630_v19 = vpop.permute.xlu1 %7629  ;;  %v14429_v16 = vld [vmem:[#allocation10_spill] sm:$0xff] }
 0x3da   : > { %v7616_v22 = vunpack.i.l.bf16 %v7615_v27  ;;  %v7387_v14 = vunpack.i.h.bf16 %v14423_v6  ;;  %v7386_v47 = vunpack.i.l.bf16 %v14423_v6  ;;  %v3407_v40 = vsel %vm3384_vm15, %v3374_v49, %v7451_v15 }
 0x3db   : > { %v3408_v43 = vsel %vm3384_vm15, %v3375_v35, %v7452_v8  ;;  %v3409_v28 = vsel %vm3384_vm15, %v3376_v60, %v7456_v0  ;;  %v3410_v57 = vsel %vm3384_vm15, %v3377_v50, %v7457_v26  ;;  %v3440_v20 = vsel %vm3417_vm2, %v3407_v40, %v7531_v5 }
 0x3dc   : > { %6228 = vmatmul.mubr.msk.bf16.gmra.mxu1 %vm3535_vm5, %v3492_v37  ;;  %v3441_v29 = vsel %vm3417_vm2, %v3408_v43, %v7532_v23  ;;  %v3442_v21 = vsel %vm3417_vm2, %v3409_v28, %v7536_v41  ;;  %v3443_v32 = vsel %vm3417_vm2, %v3410_v57, %v7537_v1  ;;  %v3473_v24 = vsel %vm3450_vm3, %v3440_v20, %v7611_v46  ;;  %v14427_v37 = vld [vmem:[#allocation82_spill] sm:$0xff] }
 0x3dd   : > { %6231 = vmatprep.mubr.msk.bf16.mxu1 %vm3535_vm5, %v3493_v63  ;;  %v3474_v38 = vsel %vm3450_vm3, %v3441_v29, %v7612_v39  ;;  %v7382_v61 = vunpack.i.h.bf16 %v14424_v7  ;;  %v7381_v44 = vunpack.i.l.bf16 %v14424_v7  ;;  %v3475_v60 = vsel %vm3450_vm3, %v3442_v21, %v7616_v22  ;;  %v14431_v22 = vld [vmem:[#allocation59_spill] sm:$0xff] }
 0x3de   : > { %v3476_v50 = vsel %vm3450_vm3, %v3443_v32, %v7617_v42  ;;  %v7467_v58 = vunpack.i.h.bf16 %v14425_v9  ;;  %v7466_v17 = vunpack.i.l.bf16 %v14425_v9  ;;  %v7462_v52 = vunpack.i.h.bf16 %v14426_v10 }
 0x3df   : > { %v7461_v13 = vunpack.i.l.bf16 %v14426_v10  ;;  %v7547_v31 = vunpack.i.h.bf16 %v12061_v18  ;;  %v7542_v34 = vunpack.i.h.bf16 %v12085_v59  ;;  %v7541_v36 = vunpack.i.l.bf16 %v12085_v59  ;;  %v3893_v10 = vld [vmem:[#allocation2 + $0x10] sm:$0x3] }
 0x3e0   : > { %v3494_v30 = vpack.c.bf16 %v3474_v38, %v3473_v24  ;;  %v7546_v33 = vunpack.i.l.bf16 %v12061_v18  ;;  %v7622_v2 = vunpack.i.h.bf16 %v7620_v56  ;;  %v7621_v51 = vunpack.i.l.bf16 %v7620_v56 }
 0x3e1   : > { %v3495_v11 = vpack.c.bf16 %v3476_v50, %v3475_v60  ;;  %v3379_v55 = vsel %vm3351_vm14, %v11973_v25, %v7382_v61  ;;  %v3378_v26 = vsel %vm3351_vm14, %v11963_v45, %v7381_v44  ;;  %v7627_v0 = vunpack.i.h.bf16 %v7625_v12 }
 0x3e2   : > { %v7626_v62 = vunpack.i.l.bf16 %v7625_v12  ;;  %v3380_v8 = vsel %vm3351_vm14, %v12032_v54, %v7386_v47  ;;  %v3381_v59 = vsel %vm3351_vm14, %v12026_v4, %v7387_v14  ;;  %v3411_v18 = vsel %vm3384_vm15, %v3378_v26, %v7461_v13  ;;  %v14432_v14 = vld [vmem:[#allocation25_spill] sm:$0xff]  ;;  %v12377_v26 = vld [vmem:[%s13811_s5] ss:$0 sm:$0xff] }
 0x3e3   : > { %v3412_v15 = vsel %vm3384_vm15, %v3379_v55, %v7462_v52  ;;  %v3413_v25 = vsel %vm3384_vm15, %v3380_v8, %v7466_v17  ;;  %v3414_v45 = vsel %vm3384_vm15, %v3381_v59, %v7467_v58  ;;  %v3444_v27 = vsel %vm3417_vm2, %v3411_v18, %v7541_v36  ;;  %v12360_v58 = vld [vmem:[#allocation2] sm:$0xff]  ;;  %v12362_v17 = vld [vmem:[#allocation2 + $0x8] sm:$0xff] }
 0x3e4   : > { %6232 = vmatmul.mubr.msk.bf16.gmra.mxu1 %vm3535_vm5, %v3494_v30  ;;  %v3445_v1 = vsel %vm3417_vm2, %v3412_v15, %v7542_v34  ;;  %v3446_v23 = vsel %vm3417_vm2, %v3413_v25, %v7546_v33  ;;  %v3447_v54 = vsel %vm3417_vm2, %v3414_v45, %v7547_v31  ;;  %v3477_v4 = vsel %vm3450_vm3, %v3444_v27, %v7621_v51 }
 0x3e5   : > { %6235 = vmatprep.mubr.msk.bf16.mxu1 %vm3535_vm5, %v3495_v11  ;;  %v3478_v5 = vsel %vm3450_vm3, %v3445_v1, %v7622_v2  ;;  %v7392_v41 = vunpack.i.h.bf16 %v14427_v37  ;;  %v7391_v39 = vunpack.i.l.bf16 %v14427_v37  ;;  %v3479_v46 = vsel %vm3450_vm3, %v3446_v23, %v7626_v62  ;;  %v12382_v62 = vld [vmem:[%s13812_s6] ss:$0 sm:$0xff] }
 0x3e6   : > { %v3480_v63 = vsel %vm3450_vm3, %v3447_v54, %v7627_v0  ;;  %v14428_v35 = vunpack.i.l.bf16 %v11546_v53  ;;  %v14430_v42 = vunpack.i.h.bf16 %v11546_v53  ;;  %v7472_v47 = vunpack.i.h.bf16 %v14432_v14 }
 0x3e7   : > { %v7471_v40 = vunpack.i.l.bf16 %v14432_v14  ;;  %v14433_v43 = vunpack.i.l.bf16 %v14400_v48  ;;  %v7552_v57 = vunpack.i.h.bf16 %v12109_v3  ;;  %v7551_v20 = vunpack.i.l.bf16 %v12109_v3 }
 0x3e8   : > { %v3317_v49 = vsel %vm1620_vm8, %v14429_v16, %v14428_v35  ;;  %v3318_v6 = vsel %vm1620_vm8, %v14431_v22, %v14430_v42  ;;  %v3496_v29 = vpack.c.bf16 %v3478_v5, %v3477_v4  ;;  %v14434_v21 = vunpack.i.h.bf16 %v14400_v48 }
 0x3e9   : > { %v3349_v28 = vsel %vm1686_vm10, %v3317_v49, %v14433_v43  ;;  %v7632_v32 = vunpack.i.h.bf16 %v7630_v19  ;;  %v7631_v24 = vunpack.i.l.bf16 %v7630_v19  ;;  %v3497_v38 = vpack.c.bf16 %v3480_v63, %v3479_v46 }
 0x3ea   : > { %v3350_v53 = vsel %vm1686_vm10, %v3318_v6, %v14434_v21  ;;  %v3382_v7 = vsel %vm3351_vm14, %v3349_v28, %v7391_v39  ;;  %v3993_v52 = vrot.slane %v12360_v58, 1  ;;  %v3994_v13 = vrot.slane %v12362_v17, 1 }
 0x3eb   : > { %v3383_v61 = vsel %vm3351_vm14, %v3350_v53, %v7392_v41  ;;  %v3415_v44 = vsel %vm3384_vm15, %v3382_v7, %v7471_v40  ;;  %v3996_v12 = vrot.slane %v3893_v10, 1  ;;  %v4073_v30 = vrot.slane %v12360_v58, 2 }
 0x3ec   : > { %6236 = vmatmul.mubr.msk.bf16.gmra.mxu1 %vm3535_vm5, %v3496_v29  ;;  %v3416_v60 = vsel %vm3384_vm15, %v3383_v61, %v7472_v47  ;;  %v3448_v3 = vsel %vm3417_vm2, %v3415_v44, %v7551_v20  ;;  %v3995_v31 = vsel %vm499_vm0, %v3993_v52, %v3994_v13  ;;  %v4074_v33 = vrot.slane %v12362_v17, 2 }
 0x3ed   : > { %6239 = vmatprep.mubr.msk.bf16.mxu1 %vm3535_vm5, %v3497_v38  ;;  %v3449_v48 = vsel %vm3417_vm2, %v3416_v60, %v7552_v57  ;;  %v3481_v50 = vsel %vm3450_vm3, %v3448_v3, %v7631_v24  ;;  %v3997_v34 = vsel %vm499_vm0, %v3994_v13, %v3996_v12  ;;  %v4076_v2 = vrot.slane %v3893_v10, 2 }
 0x3ee   : > { %v3482_v56 = vsel %vm3450_vm3, %v3449_v48, %v7632_v32  ;;  %v7633_v36 = vpack.i.bf16 %v3997_v34, %v3995_v31  ;;  %v4075_v51 = vsel %vm580_vm1, %v4073_v30, %v4074_v33 }
 0x3ef   : > { %v3498_v9 = vpack.c.bf16 %v3482_v56, %v3481_v50  ;;  %v4077_v11 = vsel %vm580_vm1, %v4074_v33, %v4076_v2 }
 0x3f0   : > { %7634 = vrot.lane.b32.xlu0 %v7633_v36, %s8469_s16  ;;  %v7638_v55 = vpack.i.bf16 %v4077_v11, %v4075_v51 }
 0x3f4   : > { %6240 = vmatmul.mubr.msk.bf16.gmra.mxu1 %vm3535_vm5, %v3498_v9  ;;  %7639 = vrot.lane.b32.xlu0 %v7638_v55, %s8471_s24 }
 0x47c   : > { %v6213_v0 = vpop.f32.mrf.mxu1 }
 0x47d   : > { %v3758_v8 = vmul.f32 %v6213_v0, %v12377_v26 }
 0x47e   : > { %v3622_v59 = vpop.f32.mrf.mxu1 }
 0x47f   : > { %v3797_v18 = vadd.f32 %v12382_v62, %v3758_v8  ;;  %v3756_v15 = vmul.f32 %v12377_v26, %v3622_v59 }
 0x480   : > { %v6214_v25 = vpop.f32.mrf.mxu1 }
 0x481   : > { %v3829_v45 = vmax.f32 %v3797_v18, 0.0  ;;  %v3795_v27 = vadd.f32 %v12382_v62, %v3756_v15  ;;  %v3759_v1 = vmul.f32 %v6214_v25, %v12377_v26 }
 0x482   : > { %v3625_v23 = vpop.f32.mrf.mxu1 }
 0x483   : > { %3861 = vst.msk [vmem:[#allocation2 + $0x31] sm:$0xff] %vm1488_vm4, %v3829_v45  ;;  %v3827_v54 = vmax.f32 %v3795_v27, 0.0  ;;  %v3798_v4 = vadd.f32 %v12382_v62, %v3759_v1  ;;  %v3757_v5 = vmul.f32 %v12377_v26, %v3625_v23 }
 0x484   : > { %v6217_v37 = vpop.f32.mrf.mxu1 }
 0x485   : > { %3859 = vst.msk [vmem:[#allocation2 + $0x19] sm:$0xff] %vm1488_vm4, %v3827_v54  ;;  %v3830_v41 = vmax.f32 %v3798_v4, 0.0  ;;  %v3796_v39 = vadd.f32 %v12382_v62, %v3757_v5  ;;  %v3762_v46 = vmul.f32 %v6217_v37, %v12377_v26 }
 0x486   : > { %v3638_v63 = vpop.f32.mrf.mxu1 }
 0x487   : > { %3862 = vst.msk [vmem:[#allocation2 + $0x39] sm:$0xff] %vm1488_vm4, %v3830_v41  ;;  %v3828_v19 = vmax.f32 %v3796_v39, 0.0  ;;  %v3801_v35 = vadd.f32 %v12382_v62, %v3762_v46  ;;  %v3760_v16 = vmul.f32 %v12377_v26, %v3638_v63 }
 0x488   : > { %v6218_v49 = vpop.f32.mrf.mxu1 }
 0x489   : > { %3860 = vst.msk [vmem:[#allocation2 + $0x21] sm:$0xff] %vm1488_vm4, %v3828_v19  ;;  %v3833_v42 = vmax.f32 %v3801_v35, 0.0  ;;  %v3799_v22 = vadd.f32 %v12382_v62, %v3760_v16  ;;  %v3763_v6 = vmul.f32 %v6218_v49, %v12377_v26 }
 0x48a   : > { %v3641_v14 = vpop.f32.mrf.mxu1  ;;  %v3897_v21 = vld [vmem:[#allocation2 + $0x30] sm:$0xff] }
 0x48b   : > { %3865 = vst.msk [vmem:[#allocation2 + $0x61] sm:$0xff] %vm1488_vm4, %v3833_v42  ;;  %v3831_v47 = vmax.f32 %v3799_v22, 0.0  ;;  %v3802_v40 = vadd.f32 %v12382_v62, %v3763_v6  ;;  %v3761_v43 = vmul.f32 %v12377_v26, %v3641_v14  ;;  %v4003_v50 = vrot.slane %v3897_v21, 1 }
 0x48c   : > { %v6221_v28 = vpop.f32.mrf.mxu1  ;;  %v12410_v3 = vld [vmem:[#allocation2 + $0x18] sm:$0xff]  ;;  %v4083_v0 = vrot.slane %v3897_v21, 2 }
 0x48d   : > { %3863 = vst.msk [vmem:[#allocation2 + $0x49] sm:$0xff] %vm1488_vm4, %v3831_v47  ;;  %v3834_v57 = vmax.f32 %v3802_v40, 0.0  ;;  %v3800_v20 = vadd.f32 %v12382_v62, %v3761_v43  ;;  %v3766_v29 = vmul.f32 %v6221_v28, %v12377_v26  ;;  %v3998_v6 = vrot.slane %v12410_v3, 1 }
 0x48e   : > { %v3654_v53 = vpop.f32.mrf.mxu1  ;;  %v3898_v32 = vld [vmem:[#allocation2 + $0x38] sm:$0xff]  ;;  %v3899_v24 = vld [vmem:[#allocation2 + $0x40] sm:$0x3] }
 0x48f   : > { %3866 = vst.msk [vmem:[#allocation2 + $0x69] sm:$0xff] %vm1488_vm4, %v3834_v57  ;;  %v3832_v38 = vmax.f32 %v3800_v20, 0.0  ;;  %v3805_v7 = vadd.f32 %v12382_v62, %v3766_v29  ;;  %v3764_v61 = vmul.f32 %v12377_v26, %v3654_v53  ;;  %v7643_v44 = vpack.i.bf16 %v3898_v32, %v3897_v21 }
 0x490   : > { %v6222_v60 = vpop.f32.mrf.mxu1  ;;  %v12412_v48 = vld [vmem:[#allocation2 + $0x20] sm:$0xff]  ;;  %v4004_v56 = vrot.slane %v3898_v32, 1  ;;  %v4006_v9 = vrot.slane %v3899_v24, 1  ;;  %v4084_v30 = vrot.slane %v3898_v32, 2  ;;  %v4086_v33 = vrot.slane %v3899_v24, 2 }
 0x491   : > { %3864 = vst.msk [vmem:[#allocation2 + $0x51] sm:$0xff] %vm1488_vm4, %v3832_v38  ;;  %v3837_v10 = vmax.f32 %v3805_v7, 0.0  ;;  %v3803_v52 = vadd.f32 %v12382_v62, %v3764_v61  ;;  %v3767_v13 = vmul.f32 %v6222_v60, %v12377_v26  ;;  %7644 = vrot.lane.b32.xlu1 %v7643_v44, %s14053_s29  ;;  %v7653_v12 = vpack.i.bf16 %v12412_v48, %v12410_v3  ;;  %v3896_v4 = vld [vmem:[#allocation2 + $0x28] sm:$0x3] }
 0x492   : > { %v3657_v31 = vpop.f32.mrf.mxu1  ;;  %v4005_v34 = vsel %vm499_vm0, %v4003_v50, %v4004_v56  ;;  %v4007_v36 = vsel %vm499_vm0, %v4004_v56, %v4006_v9  ;;  %v4085_v45 = vsel %vm580_vm1, %v4083_v0, %v4084_v30  ;;  %v4087_v27 = vsel %vm580_vm1, %v4084_v30, %v4086_v33 }
 0x493   : > { %3869 = vst.msk [vmem:[#allocation2 + $0x91] sm:$0xff] %vm1488_vm4, %v3837_v10  ;;  %v3835_v2 = vmax.f32 %v3803_v52, 0.0  ;;  %v3806_v51 = vadd.f32 %v12382_v62, %v3767_v13  ;;  %v3765_v11 = vmul.f32 %v12377_v26, %v3657_v31  ;;  %7654 = vrot.lane.b32.xlu0 %v7653_v12, %s14053_s29  ;;  %v7658_v15 = vpack.i.bf16 %v4007_v36, %v4005_v34 }
 0x494   : > { %v6225_v55 = vpop.f32.mrf.mxu1  ;;  %v7663_v46 = vpack.i.bf16 %v4087_v27, %v4085_v45  ;;  %v3999_v19 = vrot.slane %v12412_v48, 1  ;;  %v4001_v35 = vrot.slane %v3896_v4, 1  ;;  %v4079_v32 = vrot.slane %v12412_v48, 2  ;;  %v12468_v34 = vld [vmem:[#allocation2 + $0x48] sm:$0xff] }
 0x495   : > { %3867 = vst.msk [vmem:[#allocation2 + $0x79] sm:$0xff] %vm1488_vm4, %v3835_v2  ;;  %v3838_v8 = vmax.f32 %v3806_v51, 0.0  ;;  %v3804_v59 = vadd.f32 %v12382_v62, %v3765_v11  ;;  %v3770_v18 = vmul.f32 %v6225_v55, %v12377_v26  ;;  %7649 = vrot.lane.b32.xlu1 %v7643_v44, %s8478_s12  ;;  %v4081_v24 = vrot.slane %v3896_v4, 2  ;;  %v3903_v55 = vld [vmem:[#allocation2 + $0x60] sm:$0xff] }
 0x496   : > { %v3670_v25 = vpop.f32.mrf.mxu1  ;;  %v4000_v28 = vsel %vm499_vm0, %v3998_v6, %v3999_v19  ;;  %v4002_v57 = vsel %vm499_vm0, %v3999_v19, %v4001_v35  ;;  %v4078_v56 = vrot.slane %v12410_v3, 2  ;;  %v3904_v13 = vld [vmem:[#allocation2 + $0x68] sm:$0xff]  ;;  %v3905_v12 = vld [vmem:[#allocation2 + $0x70] sm:$0x3] }
 0x497   : > { %3870 = vst.msk [vmem:[#allocation2 + $0x99] sm:$0xff] %vm1488_vm4, %v3838_v8  ;;  %v3836_v1 = vmax.f32 %v3804_v59, 0.0  ;;  %v3809_v23 = vadd.f32 %v12382_v62, %v3770_v18  ;;  %v3768_v54 = vmul.f32 %v12377_v26, %v3670_v25  ;;  %7659 = vrot.lane.b32.xlu0 %v7658_v15, %s8469_s16  ;;  %v7698_v44 = vpack.i.bf16 %v4002_v57, %v4000_v28 }
 0x498   : > { %v6226_v5 = vpop.f32.mrf.mxu1  ;;  %v12461_v50 = vld [vmem:[#allocation2 + $0x50] sm:$0xff]  ;;  %v4080_v36 = vsel %vm580_vm1, %v4078_v56, %v4079_v32  ;;  %v4082_v30 = vsel %vm580_vm1, %v4079_v32, %v4081_v24  ;;  %v4014_v8 = vrot.slane %v3904_v13, 1  ;;  %v4016_v59 = vrot.slane %v3905_v12, 1 }
 0x499   : > { %3868 = vst.msk [vmem:[#allocation2 + $0x81] sm:$0xff] %vm1488_vm4, %v3836_v1  ;;  %v3841_v37 = vmax.f32 %v3809_v23, 0.0  ;;  %v3807_v41 = vadd.f32 %v12382_v62, %v3768_v54  ;;  %v3771_v39 = vmul.f32 %v6226_v5, %v12377_v26  ;;  %7669 = vrot.lane.b32.xlu1 %v7658_v15, %s14051_s13  ;;  %v7718_v11 = vpack.i.bf16 %v12461_v50, %v12468_v34  ;;  %v12485_v23 = vld [vmem:[%s13813_s7 + $0x20] ss:$0 sps:$4 sm:$0xff]  }
 0x49a   : > { %v3673_v63 = vpop.f32.mrf.mxu1  ;;  %v7693_v45 = vpack.i.bf16 %v4082_v30, %v4080_v36  ;;  %v4013_v1 = vrot.slane %v3903_v55, 1  ;;  %6294 = vmatprep.subr.msk.bf16.mxu0 %vm3584_vm13, %v12485_v23 }
 0x49b   : > { %3873 = vst.msk [vmem:[#allocation2 + $0xc1] sm:$0xff] %vm1488_vm4, %v3841_v37  ;;  %v3839_v16 = vmax.f32 %v3807_v41, 0.0  ;;  %v3810_v49 = vadd.f32 %v12382_v62, %v3771_v39  ;;  %v3769_v42 = vmul.f32 %v12377_v26, %v3673_v63  ;;  %7664 = vrot.lane.b32.xlu0 %v7663_v46, %s8471_s24  ;;  %v4017_v39 = vsel %vm499_vm0, %v4014_v8, %v4016_v59 }
 0x49c   : > { %v6229_v22 = vpop.f32.mrf.mxu1  ;;  %v4015_v41 = vsel %vm499_vm0, %v4013_v1, %v4014_v8  ;;  %v4096_v63 = vrot.slane %v3905_v12, 2  ;;  %v4008_v12 = vrot.slane %v12468_v34, 1 }
 0x49d   : > { %3871 = vst.msk [vmem:[#allocation2 + $0xa9] sm:$0xff] %vm1488_vm4, %v3839_v16  ;;  %v3842_v14 = vmax.f32 %v3810_v49, 0.0  ;;  %v3808_v47 = vadd.f32 %v12382_v62, %v3769_v42  ;;  %v3774_v40 = vmul.f32 %v6229_v22, %v12377_v26  ;;  %7679 = vrot.lane.b32.xlu1 %v7658_v15, %s14049_s14  ;;  %v4093_v42 = vrot.slane %v3903_v55, 2 }
 0x49e   : > { %v3686_v43 = vpop.f32.mrf.mxu1 }
 0x49f   : > { %3874 = vst.msk [vmem:[#allocation2 + $0xc9] sm:$0xff] %vm1488_vm4, %v3842_v14  ;;  %v3840_v20 = vmax.f32 %v3808_v47, 0.0  ;;  %v3813_v29 = vadd.f32 %v12382_v62, %v3774_v40  ;;  %v3772_v21 = vmul.f32 %v12377_v26, %v3686_v43  ;;  %7674 = vrot.lane.b32.xlu0 %v7663_v46, %s14435_s25  ;;  %v7728_v47 = vpack.i.bf16 %v4017_v39, %v4015_v41 }
 0x4a0   : > { %v6230_v53 = vpop.f32.mrf.mxu1 }
 0x4a1   : > { %3872 = vst.msk [vmem:[#allocation2 + $0xb1] sm:$0xff] %vm1488_vm4, %v3840_v20  ;;  %v3845_v38 = vmax.f32 %v3813_v29, 0.0  ;;  %v3811_v7 = vadd.f32 %v12382_v62, %v3772_v21  ;;  %v3775_v61 = vmul.f32 %v6230_v53, %v12377_v26  ;;  %7684 = vrot.lane.b32.xlu1 %v7663_v46, %s14436_s15  ;;  %v4094_v46 = vrot.slane %v3904_v13, 2  ;;  %v3902_v53 = vld [vmem:[#allocation2 + $0x58] sm:$0x3] }
 0x4a2   : > { %v3689_v60 = vpop.f32.mrf.mxu1  ;;  %v7708_v21 = vpack.i.bf16 %v3904_v13, %v3903_v55  ;;  %v4011_v56 = vrot.slane %v3902_v53, 1  ;;  %v4091_v1 = vrot.slane %v3902_v53, 2 }
 0x4a3   : > { %3877 = vst.msk [vmem:[#allocation2 + $0xf1] sm:$0xff] %vm1488_vm4, %v3845_v38  ;;  %v3843_v9 = vmax.f32 %v3811_v7, 0.0  ;;  %v3814_v10 = vadd.f32 %v12382_v62, %v3775_v61  ;;  %v3773_v52 = vmul.f32 %v12377_v26, %v3689_v60  ;;  %7699 = vrot.lane.b32.xlu0 %v7698_v44, %s14051_s13  ;;  %v4095_v43 = vsel %vm580_vm1, %v4093_v42, %v4094_v46 }
 0x4a4   : > { %v6233_v31 = vpop.f32.mrf.mxu1  ;;  %v4097_v28 = vsel %vm580_vm1, %v4094_v46, %v4096_v63  ;;  %v4009_v60 = vrot.slane %v12461_v50, 1 }
 0x4a5   : > { %3875 = vst.msk [vmem:[#allocation2 + $0xd9] sm:$0xff] %vm1488_vm4, %v3843_v9  ;;  %v3846_v33 = vmax.f32 %v3814_v10, 0.0  ;;  %v3812_v2 = vadd.f32 %v12382_v62, %v3773_v52  ;;  %v3778_v51 = vmul.f32 %v6233_v31, %v12377_v26  ;;  %7689 = vrot.lane.b32.xlu1 %v7698_v44, %s8469_s16  ;;  %v7733_v61 = vpack.i.bf16 %v4097_v28, %v4095_v43  ;;  %v8282_v28 = vld [vmem:[%s13813_s7 + $0x18] sm:$0xff]  }
 0x4a6   : > { %v3702_v0 = vpop.f32.mrf.mxu1 }
 0x4a7   : > { %3878 = vst.msk [vmem:[#allocation2 + $0xf9] sm:$0xff] %vm1488_vm4, %v3846_v33  ;;  %v3844_v18 = vmax.f32 %v3812_v2, 0.0  ;;  %v3817_v15 = vadd.f32 %v12382_v62, %v3778_v51  ;;  %v3776_v25 = vmul.f32 %v12377_v26, %v3702_v0  ;;  %7719 = vrot.lane.b32.xlu0 %v7718_v11, %s14053_s29  ;;  %v4010_v2 = vsel %vm499_vm0, %v4008_v12, %v4009_v60 }
 0x4a8   : > { %v6234_v27 = vpop.f32.mrf.mxu1  ;;  %v4012_v51 = vsel %vm499_vm0, %v4009_v60, %v4011_v56 }
 0x4a9   : > { %3876 = vst.msk [vmem:[#allocation2 + $0xe1] sm:$0xff] %vm1488_vm4, %v3844_v18  ;;  %v3849_v54 = vmax.f32 %v3817_v15, 0.0  ;;  %v3815_v4 = vadd.f32 %v12382_v62, %v3776_v25  ;;  %v3779_v5 = vmul.f32 %v6234_v27, %v12377_v26  ;;  %7694 = vrot.lane.b32.xlu1 %v7693_v45, %s8471_s24  ;;  %v7768_v25 = vpack.i.bf16 %v4012_v51, %v4010_v2  ;;  %v3913_v2 = vld [vmem:[#allocation2 + $0xb0] sm:$0xff]  ;;  %v3916_v51 = vld [vmem:[#allocation2 + $0xc8] sm:$0xff] }
 0x4aa   : > { %v3705_v37 = vpop.f32.mrf.mxu1  ;;  %v4089_v27 = vrot.slane %v12461_v50, 2 }
 0x4ab   : > { %3881 = vst.msk [vmem:[#allocation2 + $0x121] sm:$0xff] %vm1488_vm4, %v3849_v54  ;;  %v3847_v19 = vmax.f32 %v3815_v4, 0.0  ;;  %v3818_v35 = vadd.f32 %v12382_v62, %v3779_v5  ;;  %v3777_v16 = vmul.f32 %v12377_v26, %v3705_v37  ;;  %7724 = vrot.lane.b32.xlu0 %v7718_v11, %s8478_s12  ;;  %v4088_v37 = vrot.slane %v12468_v34, 2  ;;  %v3907_v34 = vld [vmem:[#allocation2 + $0x80] sm:$0xff] }
 0x4ac   : > { %v6237_v49 = vpop.f32.mrf.mxu1  ;;  %v4092_v46 = vsel %vm580_vm1, %v4089_v27, %v4091_v1 }
 0x4ad   : > { %3879 = vst.msk [vmem:[#allocation2 + $0x109] sm:$0xff] %vm1488_vm4, %v3847_v19  ;;  %v3850_v22 = vmax.f32 %v3818_v35, 0.0  ;;  %v3816_v6 = vadd.f32 %v12382_v62, %v3777_v16  ;;  %v3782_v14 = vmul.f32 %v6237_v49, %v12377_v26  ;;  %7704 = vrot.lane.b32.xlu1 %v7693_v45, %s14435_s25  ;;  %v4090_v50 = vsel %vm580_vm1, %v4088_v37, %v4089_v27  ;;  %v3911_v19 = vld [vmem:[#allocation2 + $0xa0] sm:$0x3]  ;;  %v3906_v35 = vld [vmem:[#allocation2 + $0x78] sm:$0xff]  ;;  %v3909_v49 = vld [vmem:[#allocation2 + $0x90] sm:$0xff] }
 0x4ae   : > { %v3718_v40 = vpop.f32.mrf.mxu1  ;;  %v7798_v16 = vpack.i.bf16 %v3907_v34, %v3906_v35  ;;  %v4106_v43 = vrot.slane %v3911_v19, 2  ;;  %v4018_v60 = vrot.slane %v3906_v35, 1  ;;  %v4114_v27 = vrot.slane %v3916_v51, 2 }
 0x4af   : > { %3882 = vst.msk [vmem:[#allocation2 + $0x129] sm:$0xff] %vm1488_vm4, %v3850_v22  ;;  %v3848_v57 = vmax.f32 %v3816_v6, 0.0  ;;  %v3821_v20 = vadd.f32 %v12382_v62, %v3782_v14  ;;  %v3780_v29 = vmul.f32 %v12377_v26, %v3718_v40  ;;  %7729 = vrot.lane.b32.xlu0 %v7728_v47, %s8469_s16  ;;  %v4026_v22 = vrot.slane %v3911_v19, 1 }
 0x4b0   : > { %v6238_v32 = vpop.f32.mrf.mxu1  ;;  %v4023_v6 = vrot.slane %v3909_v49, 1 }
 0x4b1   : > { %3880 = vst.msk [vmem:[#allocation2 + $0x111] sm:$0xff] %vm1488_vm4, %v3848_v57  ;;  %v3853_v24 = vmax.f32 %v3821_v20, 0.0  ;;  %v3819_v38 = vadd.f32 %v12382_v62, %v3780_v29  ;;  %v3783_v7 = vmul.f32 %v6238_v32, %v12377_v26  ;;  %7709 = vrot.lane.b32.xlu1 %v7708_v21, %s14053_s29  ;;  %v4103_v57 = vrot.slane %v3909_v49, 2  ;;  %v8283_v32 = vld [vmem:[%s13813_s7 + $0x10] sm:$0xff]  }
 0x4b2   : > { %v3721_v44 = vpop.f32.mrf.mxu1  ;;  %v5304_v20 = vsel %vm3584_vm13, %v12485_v23, 0 }
 0x4b3   : > { %3885 = vst.msk [vmem:[#allocation2 + $0x151] sm:$0xff] %vm1488_vm4, %v3853_v24  ;;  %v3851_v9 = vmax.f32 %v3819_v38, 0.0  ;;  %v3822_v10 = vadd.f32 %v12382_v62, %v3783_v7  ;;  %v3781_v52 = vmul.f32 %v12377_v26, %v3721_v44  ;;  %7734 = vrot.lane.b32.xlu0 %v7733_v61, %s8471_s24  ;;  %6244 = vmatpush3.bf16.msra.mxu0 %v5304_v20  ;;  %v3908_v38 = vld [vmem:[#allocation2 + $0x88] sm:$0x3]  ;;  %v4019_v7 = vrot.slane %v3907_v34, 1 }
 0x4b4   : > { %v6241_v13 = vpop.f32.mrf.mxu1  ;;  %6245 = vmatprep.subr.bf16.mxu0 %v8282_v28  ;;  %v8284_v44 = vld [vmem:[%s13813_s7 + $0x8] sm:$0xff]   ;;  %v4101_v12 = vrot.slane %v3908_v38, 2 }
 0x4b5   : > { %3883 = vst.msk [vmem:[#allocation2 + $0x139] sm:$0xff] %vm1488_vm4, %v3851_v9  ;;  %v3854_v31 = vmax.f32 %v3822_v10, 0.0  ;;  %v3820_v36 = vadd.f32 %v12382_v62, %v3781_v52  ;;  %v3786_v30 = vmul.f32 %v6241_v13, %v12377_v26  ;;  %7714 = vrot.lane.b32.xlu1 %v7708_v21, %s8478_s12  ;;  %v4020_v56 = vsel %vm499_vm0, %v4018_v60, %v4019_v7  ;;  %v8285_v10 = vld [vmem:[%s13813_s7] sm:$0xff]  }
 0x4b6   : > { %v3734_v33 = vpop.f32.mrf.mxu1  ;;  %v4099_v13 = vrot.slane %v3907_v34, 2 }
 0x4b7   : > { %3886 = vst.msk [vmem:[#allocation2 + $0x159] sm:$0xff] %vm1488_vm4, %v3854_v31  ;;  %v3852_v11 = vmax.f32 %v3820_v36, 0.0  ;;  %v3825_v55 = vadd.f32 %v12382_v62, %v3786_v30  ;;  %v3784_v0 = vmul.f32 %v12377_v26, %v3734_v33  ;;  %7744 = vrot.lane.b32.xlu0 %v7733_v61, %s14435_s25  ;;  %6246 = vmatpush3.bf16.msra.mxu0 %v8282_v28  ;;  %v4098_v31 = vrot.slane %v3906_v35, 2  ;;  %v12604_v35 = vpop.permute.xlu0 %7634  ;;  %v3921_v28 = vld [vmem:[#allocation2 + $0xf0] sm:$0xff] }
 0x4b8   : > { %v6242_v8 = vpop.f32.mrf.mxu1  ;;  %6247 = vmatprep.subr.bf16.mxu0 %v8283_v32  ;;  %v4102_v30 = vsel %vm580_vm1, %v4099_v13, %v4101_v12  ;;  %v4123_v12 = vrot.slane %v3921_v28, 2 }
 0x4b9   : > { %3884 = vst.msk [vmem:[#allocation2 + $0x141] sm:$0xff] %vm1488_vm4, %v3852_v11  ;;  %v3857_v59 = vmax.f32 %v3825_v55, 0.0  ;;  %v3823_v18 = vadd.f32 %v12382_v62, %v3784_v0  ;;  %v3787_v15 = vmul.f32 %v6242_v8, %v12377_v26  ;;  %7739 = vrot.lane.b32.xlu1 %v7728_v47, %s14051_s13  ;;  %v4100_v36 = vsel %vm580_vm1, %v4098_v31, %v4099_v13  ;;  %v3917_v11 = vld [vmem:[#allocation2 + $0xd0] sm:$0x3]  ;;  %v3912_v55 = vld [vmem:[#allocation2 + $0xa8] sm:$0xff]  ;;  %v3915_v8 = vld [vmem:[#allocation2 + $0xc0] sm:$0xff] }
 0x4ba   : > { %v3737_v45 = vpop.f32.mrf.mxu1  ;;  %v7858_v33 = vpack.i.bf16 %v4102_v30, %v4100_v36  ;;  %v7878_v0 = vpack.i.bf16 %v3913_v2, %v3912_v55  ;;  %v4116_v1 = vrot.slane %v3917_v11, 2  ;;  %v3920_v30 = vld [vmem:[#allocation2 + $0xe8] sm:$0x3] }
 0x4bb   : > { %3889 = vst.msk [vmem:[#allocation2 + $0x181] sm:$0xff] %vm1488_vm4, %v3857_v59  ;;  %v3855_v54 = vmax.f32 %v3823_v18, 0.0  ;;  %v3826_v4 = vadd.f32 %v12382_v62, %v3787_v15  ;;  %v3785_v5 = vmul.f32 %v12377_v26, %v3737_v45  ;;  %7769 = vrot.lane.b32.xlu0 %v7768_v25, %s14051_s13  ;;  %v7778_v26 = vpack.i.bf16 %v4092_v46, %v4090_v50 }
 0x4bc   : > { %6248 = vmatpush3.bf16.msra.mxu0 %v8283_v32  ;;  %v4034_v59 = vrot.slane %v3916_v51, 1  ;;  %v4036_v18 = vrot.slane %v3917_v11, 1  ;;  %v4033_v15 = vrot.slane %v3915_v8, 1  ;;  %v4117_v37 = vsel %vm580_vm1, %v4114_v27, %v4116_v1  ;;  %v3918_v32 = vld [vmem:[#allocation2 + $0xd8] sm:$0xff] }
 0x4bd   : > { %3887 = vst.msk [vmem:[#allocation2 + $0x169] sm:$0xff] %vm1488_vm4, %v3855_v54  ;;  %v3858_v41 = vmax.f32 %v3826_v4, 0.0  ;;  %v3824_v39 = vadd.f32 %v12382_v62, %v3785_v5  ;;  %7749 = vrot.lane.b32.xlu1 %v7728_v47, %s14049_s14  ;;  %v3910_v62 = vld [vmem:[#allocation2 + $0x98] sm:$0xff]  ;;  %6249 = vmatprep.subr.bf16.mxu0 %v8284_v44  ;;  %v4113_v54 = vrot.slane %v3915_v8, 2  ;;  %v4029_v46 = vrot.slane %v3913_v2, 1 }
 0x4be   : > { %v4024_v42 = vrot.slane %v3910_v62, 1  ;;  %v4104_v40 = vrot.slane %v3910_v62, 2  ;;  %v7788_v24 = vpack.i.bf16 %v3910_v62, %v3909_v49  ;;  %v4037_v45 = vsel %vm499_vm0, %v4034_v59, %v4036_v18 }
 0x4bf   : > { %3890 = vst.msk [vmem:[#allocation2 + $0x189] sm:$0xff] %vm1488_vm4, %v3858_v41  ;;  %v3856_v63 = vmax.f32 %v3824_v39, 0.0  ;;  %7774 = vrot.lane.b32.xlu0 %v7768_v25, %s14049_s14  ;;  %v4115_v5 = vsel %vm580_vm1, %v4113_v54, %v4114_v27  ;;  %v7868_v41 = vpack.i.bf16 %v3916_v51, %v3915_v8  ;;  %v3914_v39 = vld [vmem:[#allocation2 + $0xb8] sm:$0x3]  ;;  %v7636_v51 = vunpack.i.l.bf16 %v12604_v35 }
 0x4c0   : > { %v4025_v14 = vsel %vm499_vm0, %v4023_v6, %v4024_v42  ;;  %v4027_v47 = vsel %vm499_vm0, %v4024_v42, %v4026_v22  ;;  %v4105_v21 = vsel %vm580_vm1, %v4103_v57, %v4104_v40  ;;  %v4107_v53 = vsel %vm580_vm1, %v4104_v40, %v4106_v43  ;;  %6250 = vmatpush3.bf16.msra.mxu0 %v8284_v44  ;;  %v3922_v40 = vld [vmem:[#allocation2 + $0xf8] sm:$0xff] }
 0x4c1   : > { %3888 = vst.msk [vmem:[#allocation2 + $0x171] sm:$0xff] %vm1488_vm4, %v3856_v63  ;;  %7754 = vrot.lane.b32.xlu1 %v7733_v61, %s14436_s15  ;;  %v7808_v29 = vpack.i.bf16 %v4027_v47, %v4025_v14  ;;  %v7813_v23 = vpack.i.bf16 %v4107_v53, %v4105_v21  ;;  %v4021_v61 = vrot.slane %v3908_v38, 1  ;;  %6251 = vmatprep.subr.bf16.mxu0 %v8285_v10  ;;  %v4031_v63 = vrot.slane %v3914_v39, 1  ;;  %v12611_v14 = vpop.permute.xlu0 %7639  ;;  %v3923_v53 = vld [vmem:[#allocation2 + $0x100] sm:$0x3] }
 0x4c2   : > { %v7893_v50 = vpack.i.bf16 %v4117_v37, %v4115_v5  ;;  %v4111_v49 = vrot.slane %v3914_v39, 2  ;;  %v4108_v42 = vrot.slane %v3912_v55, 2  ;;  %v7953_v20 = vpack.i.bf16 %v3922_v40, %v3921_v28 }
 0x4c3   : > { %7779 = vrot.lane.b32.xlu0 %v7778_v26, %s14436_s15  ;;  %v4022_v9 = vsel %vm499_vm0, %v4019_v7, %v4021_v61  ;;  %v4032_v62 = vsel %vm499_vm0, %v4029_v46, %v4031_v63  ;;  %v4046_v7 = vrot.slane %v3923_v53, 1  ;;  %v4043_v44 = vrot.slane %v3921_v28, 1 }
 0x4c4   : > { %v7848_v52 = vpack.i.bf16 %v4022_v9, %v4020_v56  ;;  %6252 = vmatpush3.bf16.msra.mxu0 %v8285_v10  ;;  %v4124_v10 = vrot.slane %v3922_v40, 2  ;;  %v7637_v18 = vunpack.i.h.bf16 %v12604_v35  ;;  %v4121_v5 = vrot.slane %v3920_v30, 2 }
 0x4c5   : > { %7759 = vrot.lane.b32.xlu1 %v7768_v25, %s8469_s16  ;;  %v4035_v25 = vsel %vm499_vm0, %v4033_v15, %v4034_v59  ;;  %v4038_v15 = vrot.slane %v3918_v32, 1  ;;  %v7642_v37 = vunpack.i.h.bf16 %v12611_v14  ;;  %v4118_v39 = vrot.slane %v3918_v32, 2 }
 0x4c6   : > { %v7888_v4 = vpack.i.bf16 %v4037_v45, %v4035_v25  ;;  %v4947_v25 = vsel %vm1488_vm4, %v12360_v58, %v7636_v51  ;;  %v7641_v45 = vunpack.i.l.bf16 %v12611_v14  ;;  %v4948_v58 = vsel %vm1488_vm4, %v12362_v17, %v7637_v18 }
 0x4c7   : > { %7799 = vrot.lane.b32.xlu0 %v7798_v16, %s14053_s29  ;;  %v4980_v17 = vsel %vm1554_vm6, %v4948_v58, %v7642_v37 }
 0x4c9   : > { %7764 = vrot.lane.b32.xlu1 %v7778_v26, %s8471_s24 }
 0x4cb   : > { %7804 = vrot.lane.b32.xlu0 %v7798_v16, %s8478_s12  ;;  %v4109_v16 = vrot.slane %v3913_v2, 2 }
 0x4cd   : > { %7784 = vrot.lane.b32.xlu1 %v7778_v26, %s14435_s25  ;;  %v4028_v26 = vrot.slane %v3912_v55, 1  ;;  %v4110_v22 = vsel %vm580_vm1, %v4108_v42, %v4109_v16  ;;  %v4112_v6 = vsel %vm580_vm1, %v4109_v16, %v4111_v49  ;;  %v12672_v16 = vld [vmem:[#allocation2 + $0x130] sm:$0x3] }
 0x4ce   : > { %v7938_v47 = vpack.i.bf16 %v4112_v6, %v4110_v22  ;;  %v12678_v6 = vld [vmem:[#allocation2 + $0x120] sm:$0xff] }
 0x4cf   : > { %7809 = vrot.lane.b32.xlu0 %v7808_v29, %s8469_s16  ;;  %v4030_v34 = vsel %vm499_vm0, %v4028_v26, %v4029_v46  ;;  %v12666_v26 = vld [vmem:[#allocation2 + $0x128] sm:$0xff] }
 0x4d0   : > { %v7928_v19 = vpack.i.bf16 %v4032_v62, %v4030_v34  ;;  %v12682_v14 = vpack.i.bf16 %v12666_v26, %v12678_v6  ;;  %v4054_v28 = vrot.slane %v12666_v26, 1  ;;  %v4134_v58 = vrot.slane %v12666_v26, 2 }
 0x4d1   : > { %7789 = vrot.lane.b32.xlu1 %v7788_v24, %s14053_s29  ;;  %s14437_s29 = smov 32   ;;  %v4133_v26 = vrot.slane %v12678_v6, 2 }
 0x4d3   : > { %7814 = vrot.lane.b32.xlu0 %v7813_v23, %s8471_s24 }
 0x4d5   : > { %7794 = vrot.lane.b32.xlu1 %v7788_v24, %s8478_s12 }
 0x4d7   : > { %7824 = vrot.lane.b32.xlu0 %v7813_v23, %s14435_s25 }
 0x4d9   : > { %7819 = vrot.lane.b32.xlu1 %v7808_v29, %s14437_s29 }
 0x4db   : > { %7849 = vrot.lane.b32.xlu0 %v7848_v52, %s14437_s29 }
 0x4dd   : > { %7829 = vrot.lane.b32.xlu1 %v7808_v29, %s14438_s22  ;;  %v3919_v29 = vld [vmem:[#allocation2 + $0xe0] sm:$0xff] }
 0x4de   : > { %v7958_v38 = vpack.i.bf16 %v3919_v29, %v3918_v32  ;;  %v4039_v55 = vrot.slane %v3919_v29, 1 }
 0x4df   : > { %7854 = vrot.lane.b32.xlu0 %v7848_v52, %s14438_s22 }
 0x4e0   : > { %v4040_v1 = vsel %vm499_vm0, %v4038_v15, %v4039_v55 }
 0x4e1   : > { %7834 = vrot.lane.b32.xlu1 %v7813_v23, %s14436_s15  ;;  %v4044_v23 = vrot.slane %v3922_v40, 1 }
 0x4e3   : > { %7859 = vrot.lane.b32.xlu0 %v7858_v33, %s14436_s15  ;;  %v4045_v56 = vsel %vm499_vm0, %v4043_v44, %v4044_v23  ;;  %v4047_v9 = vsel %vm499_vm0, %v4044_v23, %v4046_v7 }
 0x4e4   : > { %v7968_v36 = vpack.i.bf16 %v4047_v9, %v4045_v56 }
 0x4e5   : > { %7839 = vrot.lane.b32.xlu1 %v7848_v52, %s8469_s16  ;;  %v4126_v52 = vrot.slane %v3923_v53, 2 }
 0x4e7   : > { %7879 = vrot.lane.b32.xlu0 %v7878_v0, %s14439_s30  ;;  %v4127_v2 = vsel %vm580_vm1, %v4124_v10, %v4126_v52 }
 0x4e9   : > { %7844 = vrot.lane.b32.xlu1 %v7858_v33, %s8471_s24 }
 0x4eb   : > { %7884 = vrot.lane.b32.xlu0 %v7878_v0, %s8478_s12  ;;  %v4041_v0 = vrot.slane %v3920_v30, 1 }
 0x4ed   : > { %7864 = vrot.lane.b32.xlu1 %v7858_v33, %s14435_s25  ;;  %v4125_v33 = vsel %vm580_vm1, %v4123_v12, %v4124_v10  ;;  %v4042_v54 = vsel %vm499_vm0, %v4039_v55, %v4041_v0  ;;  %v12712_v55 = vld [vmem:[#allocation2 + $0x110] sm:$0xff]  ;;  %v4053_v0 = vrot.slane %v12678_v6, 1 }
 0x4ee   : > { %v7973_v59 = vpack.i.bf16 %v4127_v2, %v4125_v33  ;;  %v7998_v63 = vpack.i.bf16 %v4042_v54, %v4040_v1  ;;  %v3924_v54 = vld [vmem:[#allocation2 + $0x108] sm:$0xff] }
 0x4ef   : > { %7889 = vrot.lane.b32.xlu0 %v7888_v4, %s8469_s16 }
 0x4f1   : > { %7869 = vrot.lane.b32.xlu1 %v7868_v41, %s14439_s30 }
 0x4f3   : > { %7894 = vrot.lane.b32.xlu0 %v7893_v50, %s8471_s24 }
 0x4f5   : > { %7874 = vrot.lane.b32.xlu1 %v7868_v41, %s8478_s12 }
 0x4f7   : > { %7904 = vrot.lane.b32.xlu0 %v7893_v50, %s14435_s25 }
 0x4f9   : > { %7899 = vrot.lane.b32.xlu1 %v7888_v4, %s14437_s29 }
 0x4fb   : > { %7929 = vrot.lane.b32.xlu0 %v7928_v19, %s14437_s29 }
 0x4fd   : > { %7909 = vrot.lane.b32.xlu1 %v7888_v4, %s14438_s22  ;;  %v4119_v4 = vrot.slane %v3919_v29, 2 }
 0x4ff   : > { %7934 = vrot.lane.b32.xlu0 %v7928_v19, %s14438_s22  ;;  %v4122_v35 = vsel %vm580_vm1, %v4119_v4, %v4121_v5  ;;  %v4055_v5 = vsel %vm499_vm0, %v4053_v0, %v4054_v28 }
 0x501   : > { %7914 = vrot.lane.b32.xlu1 %v7893_v50, %s14436_s15  ;;  %v4979_v50 = vsel %vm1554_vm6, %v4947_v25, %v7641_v45 }
 0x503   : > { %v12614_v43 = vpop.permute.xlu1 %7644  ;;  %7939 = vrot.lane.b32.xlu0 %v7938_v47, %s14436_s15 }
 0x505   : > { %v12617_v57 = vpop.permute.xlu0 %7654  ;;  %7919 = vrot.lane.b32.xlu1 %v7928_v19, %s8469_s16  ;;  %v4120_v19 = vsel %vm580_vm1, %v4118_v39, %v4119_v4  ;;  %v4136_v39 = vrot.slane %v12672_v16, 2 }
 0x506   : > { %v7657_v34 = vunpack.i.h.bf16 %v12617_v57  ;;  %v7656_v62 = vunpack.i.l.bf16 %v12617_v57  ;;  %v12685_v40 = vpack.i.bf16 %v4122_v35, %v4120_v19  ;;  %v4056_v57 = vrot.slane %v12672_v16, 1 }
 0x507   : > { %v12620_v21 = vpop.permute.xlu1 %7649  ;;  %7954 = vrot.lane.b32.xlu0 %v7953_v20, %s8478_s12  ;;  %v7647_v16 = vunpack.i.h.bf16 %v12614_v43 }
 0x508   : > { %v5011_v29 = vsel %vm1620_vm8, %v4979_v50, %v7656_v62  ;;  %v7651_v23 = vunpack.i.l.bf16 %v12620_v21  ;;  %v4057_v37 = vsel %vm499_vm0, %v4054_v28, %v4056_v57  ;;  %v3926_v50 = vld [vmem:[#allocation2 + $0x118] sm:$0x3] }
 0x509   : > { %v12623_v24 = vpop.permute.xlu0 %7659  ;;  %7924 = vrot.lane.b32.xlu1 %v7938_v47, %s8471_s24  ;;  %v12746_v35 = vpack.i.bf16 %v4057_v37, %v4055_v5 }
 0x50b   : > { %v12626_v61 = vpop.permute.xlu1 %7669  ;;  %7959 = vrot.lane.b32.xlu0 %v7958_v38, %s14439_s30 }
 0x50d   : > { %v12629_v60 = vpop.permute.xlu0 %7664  ;;  %7944 = vrot.lane.b32.xlu1 %v7938_v47, %s14435_s25 }
 0x50f   : > { %v12634_v13 = vpop.permute.xlu1 %7679  ;;  %7964 = vrot.lane.b32.xlu0 %v7958_v38, %s8478_s12  ;;  %v7652_v38 = vunpack.i.h.bf16 %v12620_v21 }
 0x510   : > { %v7682_v9 = vunpack.i.h.bf16 %v12634_v13  ;;  %v7681_v10 = vunpack.i.l.bf16 %v12634_v13 }
 0x511   : > { %v12637_v31 = vpop.permute.xlu0 %7674  ;;  %7949 = vrot.lane.b32.xlu1 %v7953_v20, %s14439_s30  ;;  %v5012_v20 = vsel %vm1620_vm8, %v4980_v17, %v7657_v34 }
 0x513   : > { %v12643_v11 = vpop.permute.xlu1 %7684  ;;  %7969 = vrot.lane.b32.xlu0 %v7968_v36, %s8469_s16 }
 0x514   : > { %v7686_v21 = vunpack.i.l.bf16 %v12643_v11 }
 0x515   : > { %v7700_v8 = vpop.permute.xlu0 %7699  ;;  %7979 = vrot.lane.b32.xlu1 %v7968_v36, %s14437_s29 }
 0x516   : > { %v7702_v49 = vunpack.i.h.bf16 %v7700_v8  ;;  %v7701_v42 = vunpack.i.l.bf16 %v7700_v8 }
 0x517   : > { %v12651_v27 = vpop.permute.xlu1 %7689  ;;  %7974 = vrot.lane.b32.xlu0 %v7973_v59, %s8471_s24 }
 0x518   : > { %v5044_v7 = vsel %vm1686_vm10, %v5012_v20, %v7702_v49  ;;  %v5043_v44 = vsel %vm1686_vm10, %v5011_v29, %v7701_v42  ;;  %v7692_v8 = vunpack.i.h.bf16 %v12651_v27  ;;  %v4051_v49 = vrot.slane %v3926_v50, 1 }
 0x519   : > { %v12657_v41 = vpop.permute.xlu0 %7719  ;;  %7984 = vrot.lane.b32.xlu1 %v7973_v59, %s14435_s25  ;;  %v4135_v42 = vsel %vm580_vm1, %v4133_v26, %v4134_v58  ;;  %v7672_v20 = vunpack.i.h.bf16 %v12626_v61  ;;  %v7671_v29 = vunpack.i.l.bf16 %v12626_v61  ;;  %v7677_v61 = vunpack.i.h.bf16 %v12637_v31 }
 0x51a   : > { %v7722_v26 = vunpack.i.h.bf16 %v12657_v41 }
 0x51b   : > { %v12663_v46 = vpop.permute.xlu1 %7694  ;;  %7989 = vrot.lane.b32.xlu0 %v7968_v36, %s14438_s22  ;;  %v7687_v36 = vunpack.i.h.bf16 %v12643_v11  ;;  %v7691_v11 = vunpack.i.l.bf16 %v12651_v27  ;;  %v12729_v27 = vpack.i.bf16 %v12712_v55, %v3924_v54 }
 0x51c   : > { %v7697_v25 = vunpack.i.h.bf16 %v12663_v46  ;;  %v7696_v45 = vunpack.i.l.bf16 %v12663_v46  ;;  %v4950_v46 = vsel %vm1488_vm4, %v12412_v48, %v7692_v8  ;;  %v7646_v48 = vunpack.i.l.bf16 %v12614_v43 }
 0x51d   : > { %v12675_v22 = vpop.permute.xlu0 %7724  ;;  %7999 = vrot.lane.b32.xlu1 %v7998_v63, %s8469_s16  ;;  %v4048_v43 = vrot.slane %v3924_v54, 1 }
 0x51e   : > { %v4982_v19 = vsel %vm1554_vm6, %v4950_v46, %v7697_v25  ;;  %v7661_v46 = vunpack.i.l.bf16 %v12623_v24 }
 0x51f   : > { %v7705_v47 = vpop.permute.xlu1 %7704  ;;  %7994 = vrot.lane.b32.xlu0 %v7973_v59, %s14436_s15  ;;  %v5014_v6 = vsel %vm1620_vm8, %v4982_v19, %v7647_v16  ;;  %v12820_v19 = vld [vmem:[#allocation2 + $0x158] sm:$0xff]  ;;  %v7721_v16 = vunpack.i.l.bf16 %v12657_v41 }
 0x520   : > { %v7707_v53 = vunpack.i.h.bf16 %v7705_v47  ;;  %v7706_v32 = vunpack.i.l.bf16 %v7705_v47  ;;  %v4137_v47 = vsel %vm580_vm1, %v4134_v58, %v4136_v39 }
 0x521   : > { %v12695_v56 = vpop.permute.xlu0 %7729  ;;  %8004 = vrot.lane.b32.xlu1 %v12685_v40, %s8471_s24 }
 0x522   : > { %v5076_v52 = vsel %vm3351_vm14, %v5044_v7, %v7707_v53  ;;  %v5075_v12 = vsel %vm3351_vm14, %v5043_v44, %v7706_v32  ;;  %v12770_v32 = vpack.i.bf16 %v4137_v47, %v4135_v42  ;;  %v5046_v44 = vsel %vm1686_vm10, %v5014_v6, %v7672_v20  ;;  %v8350_v42 = vld [vmem:[#allocation2 + $0x38] sm:$0xff] }
 0x523   : > { %v5108_v30 = vsel %vm3384_vm15, %v5076_v52, %v7652_v38  ;;  %v5107_v33 = vsel %vm3384_vm15, %v5075_v12, %v7651_v23  ;;  %v12707_v2 = vpop.permute.xlu1 %7709  ;;  %8009 = vrot.lane.b32.xlu0 %v7998_v63, %s14437_s29  ;;  %v7676_v52 = vunpack.i.l.bf16 %v12637_v31  ;;  %v7727_v31 = vunpack.i.h.bf16 %v12675_v22 }
 0x524   : > { %v5139_v51 = vsel %vm3417_vm2, %v5107_v33, %v7681_v10  ;;  %v5140_v13 = vsel %vm3417_vm2, %v5108_v30, %v7682_v9  ;;  %v4129_v9 = vrot.slane %v12712_v55, 2  ;;  %v4131_v10 = vrot.slane %v3926_v50, 2 }
 0x525   : > { %v12717_v59 = vpop.permute.xlu0 %7734  ;;  %8029 = vrot.lane.b32.xlu1 %v12682_v14, %s14439_s30  ;;  %v5171_v18 = vsel %vm3450_vm3, %v5139_v51, %v7686_v21  ;;  %v5172_v15 = vsel %vm3450_vm3, %v5140_v13, %v7687_v36  ;;  %v4128_v36 = vrot.slane %v3924_v54, 2  ;;  %v5078_v30 = vsel %vm3351_vm14, %v5046_v44, %v7677_v61 }
 0x526   : > { %v5203_v1 = vpack.c.bf16 %v5172_v15, %v5171_v18  ;;  %v4132_v8 = vsel %vm580_vm1, %v4129_v9, %v4131_v10  ;;  %v5110_v18 = vsel %vm3384_vm15, %v5078_v30, %v7727_v31  ;;  %v7662_v50 = vunpack.i.h.bf16 %v12623_v24 }
 0x527   : > { %v12725_v4 = vpop.permute.xlu1 %7714  ;;  %8014 = vrot.lane.b32.xlu0 %v7998_v63, %s14438_s22  ;;  %v4949_v63 = vsel %vm1488_vm4, %v12410_v3, %v7691_v11  ;;  %v4049_v3 = vrot.slane %v12712_v55, 1  ;;  %v7726_v55 = vunpack.i.l.bf16 %v12675_v22  ;;  %v4130_v0 = vsel %vm580_vm1, %v4128_v36, %v4129_v9 }
 0x528   : > { %6253 = vmatprep.mubr.msk.bf16.mxu0 %vm3535_vm5, %v5203_v1  ;;  %v4981_v62 = vsel %vm1554_vm6, %v4949_v63, %v7696_v45  ;;  %v12803_v22 = vpack.i.bf16 %v4132_v8, %v4130_v0  ;;  %v7667_v63 = vunpack.i.h.bf16 %v12629_v60  ;;  %v4952_v47 = vsel %vm1488_vm4, %v8350_v42, %v7662_v50 }
 0x529   : > { %v12740_v34 = vpop.permute.xlu0 %7744  ;;  %8044 = vrot.lane.b32.xlu1 %v12729_v27, %s8478_s12  ;;  %v5013_v28 = vsel %vm1620_vm8, %v4981_v62, %v7646_v48  ;;  %v4050_v38 = vsel %vm499_vm0, %v4048_v43, %v4049_v3  ;;  %v4052_v23 = vsel %vm499_vm0, %v4049_v3, %v4051_v49  ;;  %v12824_v48 = vld [vmem:[#allocation2 + $0x160] sm:$0x3]  ;;  %v12832_v49 = vld [vmem:[#allocation2 + $0x150] sm:$0xff]  ;;  %v7717_v10 = vunpack.i.h.bf16 %v12725_v4 }
 0x52a   : > { %v5045_v7 = vsel %vm1686_vm10, %v5013_v28, %v7671_v29  ;;  %v8351_v28 = vld [vmem:[#allocation2 + $0x30] sm:$0xff]  ;;  %v12838_v41 = vpack.i.bf16 %v12820_v19, %v12832_v49  ;;  %v4064_v29 = vrot.slane %v12820_v19, 1  ;;  %v7716_v61 = vunpack.i.l.bf16 %v12725_v4 }
 0x52b   : > { %v12751_v17 = vpop.permute.xlu1 %7739  ;;  %8019 = vrot.lane.b32.xlu0 %v12685_v40, %s14436_s15  ;;  %v5077_v21 = vsel %vm3351_vm14, %v5045_v7, %v7676_v52  ;;  %v4951_v6 = vsel %vm1488_vm4, %v8351_v28, %v7661_v46 }
 0x52c   : > { %v5109_v15 = vsel %vm3384_vm15, %v5077_v21, %v7726_v55 }
 0x52d   : > { %v12760_v57 = vpop.permute.xlu0 %7769  ;;  %8059 = vrot.lane.b32.xlu1 %v12746_v35, %s14437_s29 }
 0x52e   : > { %v7772_v24 = vunpack.i.h.bf16 %v12760_v57  ;;  %v7771_v3 = vunpack.i.l.bf16 %v12760_v57  ;;  %v4984_v57 = vsel %vm1554_vm6, %v4952_v47, %v7667_v63 }
 0x52f   : > { %v12766_v53 = vpop.permute.xlu1 %7749  ;;  %8024 = vrot.lane.b32.xlu0 %v12685_v40, %s14435_s25  ;;  %v12781_v40 = vpack.i.bf16 %v4052_v23, %v4050_v38  ;;  %v4066_v38 = vrot.slane %v12824_v48, 1  ;;  %v5016_v23 = vsel %vm1620_vm8, %v4984_v57, %v7722_v26  ;;  %v3932_v26 = vld [vmem:[#allocation2 + $0x148] sm:$0x3] }
 0x530   : > { %v5048_v52 = vsel %vm1686_vm10, %v5016_v23, %v7772_v24  ;;  %v7752_v21 = vunpack.i.h.bf16 %v12766_v53  ;;  %v7751_v30 = vunpack.i.l.bf16 %v12766_v53 }
 0x531   : > { %v7775_v12 = vpop.permute.xlu0 %7774  ;;  %8064 = vrot.lane.b32.xlu1 %v12770_v32, %s14435_s25  ;;  %v4067_v63 = vsel %vm499_vm0, %v4064_v29, %v4066_v38 }
 0x532   : > { %v7777_v33 = vunpack.i.h.bf16 %v7775_v12  ;;  %v7776_v51 = vunpack.i.l.bf16 %v7775_v12 }
 0x533   : > { %v12785_v13 = vpop.permute.xlu1 %7754  ;;  %8034 = vrot.lane.b32.xlu0 %v12682_v14, %s8478_s12 }
 0x534   : > { %v5142_v14 = vsel %vm3417_vm2, %v5110_v18, %v7777_v33  ;;  %v5141_v1 = vsel %vm3417_vm2, %v5109_v15, %v7776_v51  ;;  %v7757_v31 = vunpack.i.h.bf16 %v12785_v13  ;;  %v7756_v4 = vunpack.i.l.bf16 %v12785_v13  ;;  %v12870_v18 = vld [vmem:[#allocation2 + $0x140] sm:$0xff] }
 0x535   : > { %v7780_v11 = vpop.permute.xlu0 %7779  ;;  %8079 = vrot.lane.b32.xlu1 %v12781_v40, %s8469_s16  ;;  %v4063_v15 = vrot.slane %v12832_v49, 1 }
 0x536   : > { %v7782_v25 = vunpack.i.h.bf16 %v7780_v11  ;;  %v7781_v45 = vunpack.i.l.bf16 %v7780_v11 }
 0x537   : > { %v12799_v54 = vpop.permute.xlu1 %7759  ;;  %8039 = vrot.lane.b32.xlu0 %v12729_v27, %s14439_s30  ;;  %v7666_v27 = vunpack.i.l.bf16 %v12629_v60  ;;  %v4065_v46 = vsel %vm499_vm0, %v4063_v15, %v4064_v29  ;;  %v4061_v29 = vrot.slane %v3932_v26, 1 }
 0x538   : > { %v5173_v5 = vsel %vm3450_vm3, %v5141_v1, %v7781_v45  ;;  %v5174_v37 = vsel %vm3450_vm3, %v5142_v14, %v7782_v25  ;;  %v7762_v25 = vunpack.i.h.bf16 %v12799_v54  ;;  %v7761_v13 = vunpack.i.l.bf16 %v12799_v54 }
 0x539   : > { %v5204_v58 = vpack.c.bf16 %v5174_v37, %v5173_v5  ;;  %v12807_v39 = vpop.permute.xlu0 %7799  ;;  %8084 = vrot.lane.b32.xlu1 %v12803_v22, %s8471_s24  ;;  %v4983_v43 = vsel %vm1554_vm6, %v4951_v6, %v7666_v27  ;;  %v4144_v27 = vrot.slane %v12820_v19, 2  ;;  %v12903_v6 = vpack.i.bf16 %v4067_v63, %v4065_v46 }
 0x53a   : > { %v5015_v7 = vsel %vm1620_vm8, %v4983_v43, %v7721_v16  ;;  %v8352_v16 = vld [vmem:[#allocation2 + $0x50] sm:$0xff]  ;;  %v4143_v19 = vrot.slane %v12832_v49, 2  ;;  %v7711_v43 = vunpack.i.l.bf16 %v12707_v2 }
 0x53b   : > { %6254 = vmatmul.mubr.msk.bf16.vlgmr.msra.gmra.mxu0 %vm3535_vm5, %v5204_v58  ;;  %v12816_v62 = vpop.permute.xlu1 %7764  ;;  %8049 = vrot.lane.b32.xlu0 %v12746_v35, %s8469_s16  ;;  %v5047_v12 = vsel %vm1686_vm10, %v5015_v7, %v7771_v3  ;;  %v3930_v58 = vld [vmem:[#allocation2 + $0x138] sm:$0xff]  ;;  %v4954_v24 = vsel %vm1488_vm4, %v8352_v16, %v7762_v25  ;;  %v8353_v3 = vld [vmem:[#allocation2 + $0x48] sm:$0xff] }
 0x53c   : > { %v7767_v1 = vunpack.i.h.bf16 %v12816_v62  ;;  %v7766_v5 = vunpack.i.l.bf16 %v12816_v62  ;;  %v12888_v54 = vpack.i.bf16 %v12870_v18, %v3930_v58  ;;  %v4146_v62 = vrot.slane %v12824_v48, 2 }
 0x53d   : > { %v12828_v60 = vpop.permute.xlu0 %7804  ;;  %8089 = vrot.lane.b32.xlu1 %v12781_v40, %s14438_s22  ;;  %v7712_v48 = vunpack.i.h.bf16 %v12707_v2  ;;  %v4145_v38 = vsel %vm580_vm1, %v4143_v19, %v4144_v27  ;;  %v4058_v2 = vrot.slane %v3930_v58, 1  ;;  %v7802_v19 = vunpack.i.h.bf16 %v12807_v39 }
 0x53e   : > { %v4986_v28 = vsel %vm1554_vm6, %v4954_v24, %v7767_v1  ;;  %v4147_v23 = vsel %vm580_vm1, %v4144_v27, %v4146_v62  ;;  %v7732_v24 = vunpack.i.h.bf16 %v12695_v56 }
 0x53f   : > { %v7785_v20 = vpop.permute.xlu1 %7784  ;;  %8054 = vrot.lane.b32.xlu0 %v12770_v32, %s8471_s24  ;;  %v5018_v49 = vsel %vm1620_vm8, %v4986_v28, %v7712_v48  ;;  %v12977_v28 = vld [vmem:[#allocation2 + $0x188] sm:$0xff]  ;;  %v7801_v48 = vunpack.i.l.bf16 %v12807_v39 }
 0x540   : > { %v7787_v44 = vunpack.i.h.bf16 %v7785_v20  ;;  %v7786_v9 = vunpack.i.l.bf16 %v7785_v20  ;;  %v4059_v20 = vrot.slane %v12870_v18, 1 }
 0x541   : > { %v12852_v36 = vpop.permute.xlu0 %7809  ;;  %8094 = vrot.lane.b32.xlu1 %v12803_v22, %s14436_s15 }
 0x542   : > { %v5080_v33 = vsel %vm3351_vm14, %v5048_v52, %v7787_v44  ;;  %v5079_v51 = vsel %vm3351_vm14, %v5047_v12, %v7786_v9  ;;  %v7742_v9 = vunpack.i.h.bf16 %v12751_v17  ;;  %v4060_v52 = vsel %vm499_vm0, %v4058_v2, %v4059_v20 }
 0x543   : > { %v5112_v55 = vsel %vm3384_vm15, %v5080_v33, %v7717_v10  ;;  %v5111_v0 = vsel %vm3384_vm15, %v5079_v51, %v7716_v61  ;;  %v12864_v8 = vpop.permute.xlu1 %7789  ;;  %8069 = vrot.lane.b32.xlu0 %v12746_v35, %s14438_s22  ;;  %v12927_v61 = vpack.i.bf16 %v4147_v23, %v4145_v38  ;;  %v4062_v12 = vsel %vm499_vm0, %v4059_v20, %v4061_v29  ;;  %v12989_v29 = vld [vmem:[#allocation2 + $0x180] sm:$0xff]  ;;  %v8354_v38 = vld [vmem:[#allocation2 + $0x68] sm:$0xff] }
 0x544   : > { %v5143_v11 = vsel %vm3417_vm2, %v5111_v0, %v7751_v30  ;;  %v5144_v53 = vsel %vm3417_vm2, %v5112_v55, %v7752_v21  ;;  %v5050_v30 = vsel %vm1686_vm10, %v5018_v49, %v7742_v9  ;;  %v4139_v33 = vrot.slane %v12870_v18, 2 }
 0x545   : > { %v12875_v45 = vpop.permute.xlu0 %7814  ;;  %8109 = vrot.lane.b32.xlu1 %v12838_v41, %s14439_s30  ;;  %v5175_v14 = vsel %vm3450_vm3, %v5143_v11, %v7756_v4  ;;  %v5176_v35 = vsel %vm3450_vm3, %v5144_v53, %v7757_v31  ;;  %v4141_v51 = vrot.slane %v3932_v26, 2  ;;  %v7746_v31 = vunpack.i.l.bf16 %v12740_v34 }
 0x546   : > { %v5205_v37 = vpack.c.bf16 %v5176_v35, %v5175_v14  ;;  %v4138_v55 = vrot.slane %v3930_v58, 2  ;;  %v7806_v18 = vunpack.i.l.bf16 %v12828_v60  ;;  %v4956_v23 = vsel %vm1488_vm4, %v8354_v38, %v7732_v24 }
 0x547   : > { %v12883_v50 = vpop.permute.xlu1 %7794  ;;  %8074 = vrot.lane.b32.xlu0 %v12770_v32, %s14436_s15  ;;  %v4953_v32 = vsel %vm1488_vm4, %v8353_v3, %v7761_v13  ;;  %v4142_v14 = vsel %vm580_vm1, %v4139_v33, %v4141_v51  ;;  %v7731_v3 = vunpack.i.l.bf16 %v12695_v56  ;;  %v12995_v39 = vpack.i.bf16 %v12977_v28, %v12989_v29 }
 0x548   : > { %6257 = vmatprep.mubr.msk.bf16.mxu0 %vm3535_vm5, %v5205_v37  ;;  %v4985_v47 = vsel %vm1554_vm6, %v4953_v32, %v7766_v5  ;;  %v4140_v13 = vsel %vm580_vm1, %v4138_v55, %v4139_v33  ;;  %v7737_v32 = vunpack.i.h.bf16 %v12717_v59  ;;  %v7797_v51 = vunpack.i.h.bf16 %v12883_v50 }
 0x549   : > { %v12897_v42 = vpop.permute.xlu0 %7824  ;;  %8124 = vrot.lane.b32.xlu1 %v12888_v54, %s8478_s12  ;;  %v5017_v7 = vsel %vm1620_vm8, %v4985_v47, %v7711_v43  ;;  %v12981_v43 = vld [vmem:[#allocation2 + $0x190] sm:$0x3] }
 0x54b   : > { %v12908_v57 = vpop.permute.xlu1 %7819  ;;  %8099 = vrot.lane.b32.xlu0 %v12781_v40, %s14437_s29  ;;  %v7741_v40 = vunpack.i.l.bf16 %v12751_v17  ;;  %v7747_v17 = vunpack.i.h.bf16 %v12740_v34  ;;  %v7807_v34 = vunpack.i.h.bf16 %v12828_v60  ;;  %v12960_v60 = vpack.i.bf16 %v4142_v14, %v4140_v13 }
 0x54d   : > { %v12917_v44 = vpop.permute.xlu0 %7849  ;;  %8139 = vrot.lane.b32.xlu1 %v12903_v6, %s14437_s29  ;;  %v5049_v21 = vsel %vm1686_vm10, %v5017_v7, %v7741_v40  ;;  %v5082_v11 = vsel %vm3351_vm14, %v5050_v30, %v7747_v17  ;;  %v8355_v7 = vld [vmem:[#allocation2 + $0x60] sm:$0xff]  ;;  %v4157_v40 = vrot.slane %v12977_v28, 1  ;;  %v7796_v17 = vunpack.i.l.bf16 %v12883_v50 }
 0x54e   : > { %v5081_v0 = vsel %vm3351_vm14, %v5049_v21, %v7746_v31  ;;  %v5114_v1 = vsel %vm3384_vm15, %v5082_v11, %v7807_v34  ;;  %v7852_v56 = vunpack.i.h.bf16 %v12917_v44  ;;  %v7851_v20 = vunpack.i.l.bf16 %v12917_v44 }
 0x54f   : > { %v12923_v10 = vpop.permute.xlu1 %7829  ;;  %8104 = vrot.lane.b32.xlu0 %v12803_v22, %s14435_s25  ;;  %v12938_v22 = vpack.i.bf16 %v4062_v12, %v4060_v52  ;;  %v5113_v5 = vsel %vm3384_vm15, %v5081_v0, %v7806_v18  ;;  %v4955_v49 = vsel %vm1488_vm4, %v8355_v7, %v7731_v3  ;;  %v4988_v44 = vsel %vm1554_vm6, %v4956_v23, %v7737_v32 }
 0x550   : > { %v4159_v52 = vrot.slane %v12981_v43, 1  ;;  %v5020_v12 = vsel %vm1620_vm8, %v4988_v44, %v7802_v19  ;;  %v7832_v0 = vunpack.i.h.bf16 %v12923_v10  ;;  %v7831_v11 = vunpack.i.l.bf16 %v12923_v10  ;;  %v3938_v19 = vld [vmem:[#allocation2 + $0x178] sm:$0x3] }
 0x551   : > { %v7855_v4 = vpop.permute.xlu0 %7854  ;;  %8144 = vrot.lane.b32.xlu1 %v12927_v61, %s14435_s25  ;;  %v5052_v31 = vsel %vm1686_vm10, %v5020_v12, %v7852_v56 }
 0x552   : > { %v7857_v53 = vunpack.i.h.bf16 %v7855_v4  ;;  %v7856_v15 = vunpack.i.l.bf16 %v7855_v4  ;;  %v4160_v32 = vsel %vm499_vm0, %v4157_v40, %v4159_v52 }
 0x553   : > { %v12942_v25 = vpop.permute.xlu1 %7834  ;;  %8114 = vrot.lane.b32.xlu0 %v12838_v41, %s8478_s12 }
 0x554   : > { %v5146_v41 = vsel %vm3417_vm2, %v5114_v1, %v7857_v53  ;;  %v5145_v46 = vsel %vm3417_vm2, %v5113_v5, %v7856_v15  ;;  %v7837_v34 = vunpack.i.h.bf16 %v12942_v25  ;;  %v7836_v50 = vunpack.i.l.bf16 %v12942_v25  ;;  %v13027_v1 = vld [vmem:[#allocation2 + $0x170] sm:$0xff] }
 0x555   : > { %v7860_v35 = vpop.permute.xlu0 %7859  ;;  %8159 = vrot.lane.b32.xlu1 %v12938_v22, %s8469_s16  ;;  %v4156_v5 = vrot.slane %v12989_v29, 1 }
 0x556   : > { %v7862_v37 = vunpack.i.h.bf16 %v7860_v35  ;;  %v7861_v58 = vunpack.i.l.bf16 %v7860_v35 }
 0x557   : > { %v12956_v63 = vpop.permute.xlu1 %7839  ;;  %8119 = vrot.lane.b32.xlu0 %v12888_v54, %s14439_s30  ;;  %v7736_v54 = vunpack.i.l.bf16 %v12717_v59  ;;  %v4158_v3 = vsel %vm499_vm0, %v4156_v5, %v4157_v40  ;;  %v4071_v40 = vrot.slane %v3938_v19, 1 }
 0x558   : > { %v5177_v27 = vsel %vm3450_vm3, %v5145_v46, %v7861_v58  ;;  %v5178_v62 = vsel %vm3450_vm3, %v5146_v41, %v7862_v37  ;;  %v7842_v37 = vunpack.i.h.bf16 %v12956_v63  ;;  %v7841_v25 = vunpack.i.l.bf16 %v12956_v63 }
 0x559   : > { %v5206_v26 = vpack.c.bf16 %v5178_v62, %v5177_v27  ;;  %v12964_v16 = vpop.permute.xlu0 %7879  ;;  %8164 = vrot.lane.b32.xlu1 %v12960_v60, %s8471_s24  ;;  %v4987_v2 = vsel %vm1554_vm6, %v4955_v49, %v7736_v54  ;;  %v4162_v54 = vrot.slane %v12977_v28, 2  ;;  %v13060_v49 = vpack.i.bf16 %v4160_v32, %v4158_v3 }
 0x55a   : > { %v5019_v21 = vsel %vm1620_vm8, %v4987_v2, %v7801_v48  ;;  %v8356_v48 = vld [vmem:[#allocation2 + $0x80] sm:$0xff]  ;;  %v4161_v28 = vrot.slane %v12989_v29, 2  ;;  %v7791_v2 = vunpack.i.l.bf16 %v12864_v8 }
 0x55b   : > { %6258 = vmatmul.mubr.msk.bf16.gmra.mxu0 %vm3535_vm5, %v5206_v26  ;;  %v12973_v47 = vpop.permute.xlu1 %7844  ;;  %8129 = vrot.lane.b32.xlu0 %v12903_v6, %s8469_s16  ;;  %v5051_v4 = vsel %vm1686_vm10, %v5019_v21, %v7851_v20  ;;  %v13040_v26 = vld [vmem:[#allocation2 + $0x168] sm:$0xff]  ;;  %v4958_v56 = vsel %vm1488_vm4, %v8356_v48, %v7842_v37  ;;  %v8357_v20 = vld [vmem:[#allocation2 + $0x78] sm:$0xff]  ;;  %v13116_v48 = vld [vmem:[#allocation2 + $0x1a0] sm:$0xff] }
 0x55c   : > { %v7847_v46 = vunpack.i.h.bf16 %v12973_v47  ;;  %v7846_v27 = vunpack.i.l.bf16 %v12973_v47  ;;  %v8198_v63 = vpack.i.bf16 %v13027_v1, %v13040_v26  ;;  %v4164_v47 = vrot.slane %v12981_v43, 2 }
 0x55d   : > { %v12985_v59 = vpop.permute.xlu0 %7884  ;;  %8169 = vrot.lane.b32.xlu1 %v12938_v22, %s14438_s22  ;;  %v7792_v43 = vunpack.i.h.bf16 %v12864_v8  ;;  %v4163_v52 = vsel %vm580_vm1, %v4161_v28, %v4162_v54  ;;  %v4068_v8 = vrot.slane %v13040_v26, 1  ;;  %v7812_v28 = vunpack.i.h.bf16 %v12852_v36 }
 0x55e   : > { %v4990_v7 = vsel %vm1554_vm6, %v4958_v56, %v7847_v46  ;;  %v4165_v12 = vsel %vm580_vm1, %v4162_v54, %v4164_v47 }
 0x55f   : > { %v7865_v9 = vpop.permute.xlu1 %7864  ;;  %8134 = vrot.lane.b32.xlu0 %v12927_v61, %s8471_s24  ;;  %v5022_v29 = vsel %vm1620_vm8, %v4990_v7, %v7792_v43  ;;  %v7811_v43 = vunpack.i.l.bf16 %v12852_v36  ;;  %v7881_v36 = vunpack.i.l.bf16 %v12964_v16 }
 0x560   : > { %v7867_v30 = vunpack.i.h.bf16 %v7865_v9  ;;  %v7866_v33 = vunpack.i.l.bf16 %v7865_v9  ;;  %v4069_v9 = vrot.slane %v13027_v1, 1 }
 0x561   : > { %v13009_v55 = vpop.permute.xlu0 %7889  ;;  %8174 = vrot.lane.b32.xlu1 %v12960_v60, %s14436_s15 }
 0x562   : > { %v5084_v53 = vsel %vm3351_vm14, %v5052_v31, %v7867_v30  ;;  %v5083_v15 = vsel %vm3351_vm14, %v5051_v4, %v7866_v33  ;;  %v7821_v33 = vunpack.i.l.bf16 %v12908_v57  ;;  %v4070_v31 = vsel %vm499_vm0, %v4068_v8, %v4069_v9 }
 0x563   : > { %v5116_v18 = vsel %vm3384_vm15, %v5084_v53, %v7797_v51  ;;  %v5115_v13 = vsel %vm3384_vm15, %v5083_v15, %v7796_v17  ;;  %v13021_v14 = vpop.permute.xlu1 %7869  ;;  %8149 = vrot.lane.b32.xlu0 %v12903_v6, %s14438_s22  ;;  %v13085_v17 = vpack.i.bf16 %v4165_v12, %v4163_v52  ;;  %v4072_v4 = vsel %vm499_vm0, %v4069_v9, %v4071_v40 }
 0x564   : > { %v5147_v35 = vsel %vm3417_vm2, %v5115_v13, %v7831_v11  ;;  %v5148_v10 = vsel %vm3417_vm2, %v5116_v18, %v7832_v0  ;;  %v4149_v53 = vrot.slane %v13027_v1, 2  ;;  %v4151_v15 = vrot.slane %v3938_v19, 2  ;;  %v13114_v19 = vld [vmem:[#allocation2 + $0x198] sm:$0xff] }
 0x565   : > { %v13032_v58 = vpop.permute.xlu0 %7894  ;;  %8189 = vrot.lane.b32.xlu1 %v12995_v39, %s14439_s30  ;;  %v5179_v41 = vsel %vm3450_vm3, %v5147_v35, %v7836_v50  ;;  %v5180_v6 = vsel %vm3450_vm3, %v5148_v10, %v7837_v34  ;;  %v7826_v34 = vunpack.i.l.bf16 %v12897_v42  ;;  %v4148_v18 = vrot.slane %v13040_v26, 2 }
 0x566   : > { %v5207_v62 = vpack.c.bf16 %v5180_v6, %v5179_v41  ;;  %v4152_v6 = vsel %vm580_vm1, %v4149_v53, %v4151_v15  ;;  %v4169_v9 = vrot.slane %v13114_v19, 1  ;;  %v7817_v40 = vunpack.i.h.bf16 %v12875_v45 }
 0x567   : > { %v13042_v24 = vpop.permute.xlu1 %7874  ;;  %8154 = vrot.lane.b32.xlu0 %v12927_v61, %s14436_s15  ;;  %v4957_v61 = vsel %vm1488_vm4, %v8357_v20, %v7841_v25  ;;  %v7887_v25 = vunpack.i.h.bf16 %v12985_v59  ;;  %v4150_v41 = vsel %vm580_vm1, %v4148_v18, %v4149_v53  ;;  %v7816_v52 = vunpack.i.l.bf16 %v12875_v45 }
 0x568   : > { %6261 = vmatprep.mubr.msk.bf16.mxu0 %vm3535_vm5, %v5207_v62  ;;  %v4989_v23 = vsel %vm1554_vm6, %v4957_v61, %v7846_v27  ;;  %v13120_v61 = vld [vmem:[#allocation2 + $0x1a8] sm:$0x3]  ;;  %v4175_v45 = vrot.slane %v13116_v48, 2 }
 0x569   : > { %v13055_v38 = vpop.permute.xlu0 %7904  ;;  %8199 = vrot.lane.b32.xlu1 %v8198_v63, %s8478_s12  ;;  %v5021_v21 = vsel %vm1620_vm8, %v4989_v23, %v7791_v2  ;;  %v4170_v2 = vrot.slane %v13116_v48, 1 }
 0x56a   : > { %v5053_v0 = vsel %vm1686_vm10, %v5021_v21, %v7821_v33  ;;  %v4172_v21 = vrot.slane %v13120_v61, 1 }
 0x56b   : > { %v13065_v44 = vpop.permute.xlu1 %7899  ;;  %8179 = vrot.lane.b32.xlu0 %v12938_v22, %s14437_s29  ;;  %v7822_v22 = vunpack.i.h.bf16 %v12908_v57  ;;  %v7827_v57 = vunpack.i.h.bf16 %v12897_v42  ;;  %v5085_v13 = vsel %vm3351_vm14, %v5053_v0, %v7826_v34  ;;  %v7886_v42 = vunpack.i.l.bf16 %v12985_v59 }
 0x56c   : > { %v8218_v59 = vpack.i.bf16 %v4152_v6, %v4150_v41  ;;  %v4171_v15 = vsel %vm499_vm0, %v4169_v9, %v4170_v2 }
 0x56d   : > { %v13074_v30 = vpop.permute.xlu0 %7929  ;;  %8204 = vrot.lane.b32.xlu1 %v13060_v49, %s14437_s29  ;;  %v5054_v11 = vsel %vm1686_vm10, %v5022_v29, %v7822_v22  ;;  %v5117_v62 = vsel %vm3384_vm15, %v5085_v13, %v7886_v42  ;;  %v7882_v29 = vunpack.i.h.bf16 %v12964_v16  ;;  %v4174_v16 = vrot.slane %v13114_v19, 2 }
 0x56e   : > { %v5086_v35 = vsel %vm3351_vm14, %v5054_v11, %v7827_v57  ;;  %v7932_v8 = vunpack.i.h.bf16 %v13074_v30  ;;  %v7931_v22 = vunpack.i.l.bf16 %v13074_v30  ;;  %v8359_v11 = vld [vmem:[#allocation2 + $0x90] sm:$0xff] }
 0x56f   : > { %v13081_v51 = vpop.permute.xlu1 %7909  ;;  %8184 = vrot.lane.b32.xlu0 %v12960_v60, %s14435_s25  ;;  %v8213_v60 = vpack.i.bf16 %v4072_v4, %v4070_v31  ;;  %v5118_v27 = vsel %vm3384_vm15, %v5086_v35, %v7887_v25  ;;  %v8248_v31 = vpack.i.bf16 %v13116_v48, %v13114_v19  ;;  %v8358_v4 = vld [vmem:[#allocation2 + $0x98] sm:$0xff]  ;;  %v4959_v53 = vsel %vm1488_vm4, %v8359_v11, %v7811_v43 }
 0x570   : > { %v4960_v0 = vsel %vm1488_vm4, %v8358_v4, %v7812_v28  ;;  %v4991_v30 = vsel %vm1554_vm6, %v4959_v53, %v7816_v52  ;;  %v7876_v25 = vunpack.i.l.bf16 %v13042_v24  ;;  %v7872_v11 = vunpack.i.h.bf16 %v13021_v14 }
 0x571   : > { %v7935_v50 = vpop.permute.xlu0 %7934  ;;  %8209 = vrot.lane.b32.xlu1 %v13085_v17, %s14435_s25  ;;  %v4992_v57 = vsel %vm1554_vm6, %v4960_v0, %v7817_v40  ;;  %v5023_v13 = vsel %vm1620_vm8, %v4991_v30, %v7881_v36  ;;  %v7871_v53 = vunpack.i.l.bf16 %v13021_v14 }
 0x572   : > { %v7937_v10 = vunpack.i.h.bf16 %v7935_v50  ;;  %v7936_v5 = vunpack.i.l.bf16 %v7935_v50  ;;  %v4173_v50 = vsel %vm499_vm0, %v4170_v2, %v4172_v21  ;;  %v5024_v18 = vsel %vm1620_vm8, %v4992_v57, %v7882_v29 }
 0x573   : > { %v13099_v37 = vpop.permute.xlu1 %7914  ;;  %8194 = vrot.lane.b32.xlu0 %v8198_v63, %s14439_s30  ;;  %v5056_v42 = vsel %vm1686_vm10, %v5024_v18, %v7932_v8  ;;  %v5055_v41 = vsel %vm1686_vm10, %v5023_v13, %v7931_v22  ;;  %v8360_v8 = vld [vmem:[#allocation2 + $0xb0] sm:$0xff]  ;;  %v7891_v57 = vunpack.i.l.bf16 %v13009_v55  ;;  %vm5755_vm0 = vcmask 57344  }
 0x574   : > { %v5150_v54 = vsel %vm3417_vm2, %v5118_v27, %v7937_v10  ;;  %v5149_v63 = vsel %vm3417_vm2, %v5117_v62, %v7936_v5  ;;  %v7877_v5 = vunpack.i.h.bf16 %v13042_v24  ;;  %v7916_v24 = vunpack.i.l.bf16 %v13099_v37 }
 0x575   : > { %v7940_v46 = vpop.permute.xlu0 %7939  ;;  %8214 = vrot.lane.b32.xlu1 %v8213_v60, %s8469_s16 }
 0x576   : > { %v7942_v3 = vunpack.i.h.bf16 %v7940_v46  ;;  %v7941_v32 = vunpack.i.l.bf16 %v7940_v46  ;;  %v7911_v46 = vunpack.i.l.bf16 %v13081_v51 }
 0x577   : > { %v13111_v47 = vpop.permute.xlu1 %7919  ;;  %8234 = vrot.lane.b32.xlu0 %v8213_v60, %s14437_s29 }
 0x578   : > { %v5181_v56 = vsel %vm3450_vm3, %v5149_v63, %v7941_v32  ;;  %v5182_v20 = vsel %vm3450_vm3, %v5150_v54, %v7942_v3  ;;  %v7917_v3 = vunpack.i.h.bf16 %v13099_v37  ;;  %v7922_v40 = vunpack.i.h.bf16 %v13111_v47 }
 0x579   : > { %v5208_v23 = vpack.c.bf16 %v5182_v20, %v5181_v56  ;;  %v13122_v7 = vpop.permute.xlu0 %7954  ;;  %8219 = vrot.lane.b32.xlu1 %v8218_v59, %s8471_s24  ;;  %v8258_v56 = vpack.i.bf16 %v4173_v50, %v4171_v15  ;;  %v7921_v52 = vunpack.i.l.bf16 %v13111_v47  ;;  %v7901_v50 = vunpack.i.l.bf16 %v13065_v44 }
 0x57a   : > { %v4962_v22 = vsel %vm1488_vm4, %v8360_v8, %v7922_v40 }
 0x57b   : > { %6262 = vmatmul.mubr.msk.bf16.gmra.mxu0 %vm3535_vm5, %v5208_v23  ;;  %v13132_v12 = vpop.permute.xlu1 %7924  ;;  %8239 = vrot.lane.b32.xlu0 %v8218_v59, %s14435_s25  ;;  %s13677_s25 = sand.u32 1, %s8458_s18  }
 0x57c   : > { %v7926_v29 = vunpack.i.l.bf16 %v13132_v12  ;;  %s5897_s29 = scalar_lea.sflag [#allocation5], %s13677_s25 }
 0x57d   : > { %v13140_v33 = vpop.permute.xlu0 %7959  ;;  %8224 = vrot.lane.b32.xlu1 %v8213_v60, %s14438_s22  ;;  %v4177_v60 = vrot.slane %v13120_v61, 2  ;;  %v4176_v61 = vsel %vm580_vm1, %v4174_v16, %v4175_v45 }
 0x57f   : > { %v7945_v34 = vpop.permute.xlu1 %7944  ;;  %8244 = vrot.lane.b32.xlu0 %v12995_v39, %s8478_s12  ;;  %v7912_v39 = vunpack.i.h.bf16 %v13081_v51  ;;  %v4178_v23 = vsel %vm580_vm1, %v4175_v45, %v4177_v60  ;;  %v8361_v45 = vld [vmem:[#allocation2 + $0xa8] sm:$0xff]  ;;  %vm5764_vm1 = vcmask 59394  }
 0x580   : > { %v7947_v35 = vunpack.i.h.bf16 %v7945_v34  ;;  %v7946_v10 = vunpack.i.l.bf16 %v7945_v34  ;;  %v8268_v43 = vpack.i.bf16 %v4178_v23, %v4176_v61  ;;  %v7902_v34 = vunpack.i.h.bf16 %v13065_v44  ;;  %v8362_v44 = vld [vmem:[#allocation2 + $0xc0] sm:$0xff] }
 0x581   : > { %v13162_v6 = vpop.permute.xlu0 %7964  ;;  %8229 = vrot.lane.b32.xlu1 %v8218_v59, %s14436_s15 }
 0x582   : > { %v5088_v27 = vsel %vm3351_vm14, %v5056_v42, %v7947_v35  ;;  %v5087_v62 = vsel %vm3351_vm14, %v5055_v41, %v7946_v10  ;;  %v7967_v14 = vunpack.i.h.bf16 %v13162_v6  ;;  %v7966_v35 = vunpack.i.l.bf16 %v13162_v6 }
 0x583   : > { %v5120_v32 = vsel %vm3384_vm15, %v5088_v27, %v7877_v5  ;;  %v5119_v54 = vsel %vm3384_vm15, %v5087_v62, %v7876_v25  ;;  %v13173_v63 = vpop.permute.xlu1 %7949  ;;  %8254 = vrot.lane.b32.xlu0 %v13060_v49, %s14438_s22  ;;  %v7907_v10 = vunpack.i.h.bf16 %v13055_v38  ;;  %v7906_v5 = vunpack.i.l.bf16 %v13055_v38 }
 0x584   : > { %v5151_v59 = vsel %vm3417_vm2, %v5119_v54, %v7911_v46  ;;  %v5152_v51 = vsel %vm3417_vm2, %v5120_v32, %v7912_v39  ;;  %v7892_v39 = vunpack.i.h.bf16 %v13009_v55  ;;  %v4963_v46 = vsel %vm1488_vm4, %v8362_v44, %v7891_v57  ;;  %v8364_v44 = vld [vmem:[#allocation2 + $0xe0] sm:$0xff] }
 0x585   : > { %v13179_v19 = vpop.permute.xlu0 %7969  ;;  %8249 = vrot.lane.b32.xlu1 %v8248_v31, %s8478_s12  ;;  %v5183_v48 = vsel %vm3450_vm3, %v5151_v59, %v7916_v24  ;;  %v5184_v37 = vsel %vm3450_vm3, %v5152_v51, %v7917_v3  ;;  %v4961_v31 = vsel %vm1488_vm4, %v8361_v45, %v7921_v52  ;;  %v7897_v27 = vunpack.i.h.bf16 %v13032_v58 }
 0x586   : > { %v5209_v20 = vpack.c.bf16 %v5184_v37, %v5183_v48  ;;  %v4993_v0 = vsel %vm1554_vm6, %v4961_v31, %v7926_v29  ;;  %v7896_v62 = vunpack.i.l.bf16 %v13032_v58  ;;  %v7962_v3 = vunpack.i.h.bf16 %v13140_v33 }
 0x587   : > { %v13186_v28 = vpop.permute.xlu1 %7979  ;;  %8264 = vrot.lane.b32.xlu0 %v13085_v17, %s14436_s15  ;;  %v7927_v17 = vunpack.i.h.bf16 %v13132_v12  ;;  %v5025_v12 = vsel %vm1620_vm8, %v4993_v0, %v7871_v53  ;;  %v7961_v6 = vunpack.i.l.bf16 %v13140_v33  ;;  %v8363_v33 = vld [vmem:[#allocation2 + $0xc8] sm:$0xff]  ;;  %v7956_v29 = vunpack.i.l.bf16 %v13122_v7 }
 0x588   : > { %6265 = vmatprep.mubr.msk.bf16.mxu0 %vm3535_vm5, %v5209_v20  ;;  %v5057_v18 = vsel %vm1686_vm10, %v5025_v12, %v7901_v50  ;;  %v4964_v61 = vsel %vm1488_vm4, %v8363_v33, %v7892_v39  ;;  %v4995_v23 = vsel %vm1554_vm6, %v4963_v46, %v7896_v62 }
 0x589   : > { %v13191_v49 = vpop.permute.xlu0 %7974  ;;  %8259 = vrot.lane.b32.xlu1 %v8258_v56, %s14438_s22  ;;  %v4994_v47 = vsel %vm1554_vm6, %v4962_v22, %v7927_v17  ;;  %v5089_v24 = vsel %vm3351_vm14, %v5057_v18, %v7906_v5  ;;  %v4996_v52 = vsel %vm1554_vm6, %v4964_v61, %v7897_v27  ;;  %v7957_v17 = vunpack.i.h.bf16 %v13122_v7  ;;  %v8365_v27 = vld [vmem:[#allocation2 + $0xd8] sm:$0xff]  ;;  %s6101_s22 = sshll.u32 %s8564_s21, 8 }
 0x58a   : > { %v5026_v15 = vsel %vm1620_vm8, %v4994_v47, %v7872_v11  ;;  %v5121_v55 = vsel %vm3384_vm15, %v5089_v24, %v7966_v35  ;;  %v5028_v45 = vsel %vm1620_vm8, %v4996_v52, %v7962_v3  ;;  %v5027_v31 = vsel %vm1620_vm8, %v4995_v23, %v7961_v6  ;;  %s5914_s24 = scalar_lea.hbm %s13816_s10, %s6101_s22 }
 0x58b   : > { %v13194_v2 = vpop.permute.xlu1 %7984  ;;  %v5058_v13 = vsel %vm1686_vm10, %v5026_v15, %v7902_v34  ;;  %v7952_v24 = vunpack.i.h.bf16 %v13173_v63 }
 0x58c   : > { %v5090_v38 = vsel %vm3351_vm14, %v5058_v13, %v7907_v10  ;;  %v7987_v61 = vunpack.i.h.bf16 %v13194_v2  ;;  %v7986_v23 = vunpack.i.l.bf16 %v13194_v2 }
 0x58d   : > { %v13196_v9 = vpop.permute.xlu0 %7989  ;;  %8269 = vrot.lane.b32.xlu1 %v8268_v43, %s14436_s15  ;;  %v5122_v54 = vsel %vm3384_vm15, %v5090_v38, %v7967_v14  ;;  %v7951_v38 = vunpack.i.l.bf16 %v13173_v63  ;;  %s6024_s15 = sshll.u32 %s13677_s25, 4 }
 0x58e   : > { %v7992_v11 = vunpack.i.h.bf16 %v13196_v9  ;;  %v7991_v53 = vunpack.i.l.bf16 %v13196_v9  ;;  %s13681_s13 = scalar_lea.vmem [#allocation4], %s6024_s15  ;;  %s8481_s15 = smov [#allocation4]  }
 0x58f   : > { %v13201_v21 = vpop.permute.xlu1 %7999  ;;  %s5916_s14 = sshll.u32 %s13681_s13, 4  ;;  %s8380_s0 = sshll.u32 %s8481_s15, 4  ;;  %s13741_s14 = int_to_ptr.vmem [resolvable:$true] %s5916_s14  ;;  %s8381_s0 = int_to_ptr.vmem [resolvable:$false] %s8380_s0 }
 0x590   : > { %v8002_v7 = vunpack.i.h.bf16 %v13201_v21  ;;  %v8001_v57 = vunpack.i.l.bf16 %v13201_v21  ;;  %s8376_s12 = scalar_lea.vmem %s13741_s14, 256  ;;  %s8382_s1 = scalar_lea.vmem %s8381_s0, 512 }
 0x591   : > { %v13205_v36 = vpop.permute.xlu0 %7994  ;;  %p8377_p11 = scmp.ne.s32.totalorder %s13741_s14, %s8376_s12  ;;  %p8383_p0 = scmp.lt.s32.totalorder %s13741_s14, %s8381_s0 }
 0x592   : > { %v7996_v9 = vunpack.i.l.bf16 %v13205_v36  ;;  %v4966_v46 = vsel %vm1488_vm4, %v8364_v44, %v8002_v7  ;;  %v4965_v62 = vsel %vm1488_vm4, %v8365_v27, %v8001_v57  ;;  %v7972_v57 = vunpack.i.h.bf16 %v13179_v19  ;;  %p8384_p1 = scmp.lt.s32.totalorder %s8382_s1, %s8376_s12 }
 0x593   : > { %v13209_v4 = vpop.permute.xlu1 %8004  ;;  %p8378_p12 = pnand %p8377_p11, %p8581_p5 }
 0x594   : > { %v8007_v35 = vunpack.i.h.bf16 %v13209_v4  ;;  %v8006_v10 = vunpack.i.l.bf16 %v13209_v4  ;;  %p8385_p2 = por %p8384_p1, %p8383_p0 }
 0x595   : > { %v8010_v16 = vpop.permute.xlu0 %8009  ;;  %p8379_p13 = pneg %p8378_p12 }
 0x596   : > { %v8012_v48 = vunpack.i.h.bf16 %v8010_v16  ;;  %v8011_v37 = vunpack.i.l.bf16 %v8010_v16  ;;  %v4997_v4 = vsel %vm1554_vm6, %v4965_v62, %v8006_v10  ;;  %v4998_v6 = vsel %vm1554_vm6, %v4966_v46, %v8007_v35 }
 0x597   : > { %v13217_v30 = vpop.permute.xlu1 %8029  ;;  %p8386_p3 = pnand %p8385_p2, %p8379_p13 }
 0x598   : > { %v5060_v16 = vsel %vm1686_vm10, %v5028_v45, %v8012_v48  ;;  %v5059_v12 = vsel %vm1686_vm10, %v5027_v31, %v8011_v37  ;;  %v7981_v48 = vunpack.i.l.bf16 %v13186_v28 }
 0x599   : > { %v8015_v60 = vpop.permute.xlu0 %8014 }
 0x59a   : > { %v8017_v25 = vunpack.i.h.bf16 %v8015_v60  ;;  %v8016_v42 = vunpack.i.l.bf16 %v8015_v60  ;;  %v7997_v60 = vunpack.i.h.bf16 %v13205_v36 }
 0x59b   : > { %v13228_v41 = vpop.permute.xlu1 %8044 }
 0x59c   : > { %v5154_v56 = vsel %vm3417_vm2, %v5122_v54, %v8017_v25  ;;  %v5153_v58 = vsel %vm3417_vm2, %v5121_v55, %v8016_v42  ;;  %v5029_v54 = vsel %vm1620_vm8, %v4997_v4, %v7951_v38  ;;  %v5030_v55 = vsel %vm1620_vm8, %v4998_v6, %v7952_v24 }
 0x59d   : > { %v8020_v32 = vpop.permute.xlu0 %8019  ;;  %v8047_v33 = vunpack.i.h.bf16 %v13228_v41  ;;  %v8046_v63 = vunpack.i.l.bf16 %v13228_v41 }
 0x59e   : > { %v8022_v59 = vunpack.i.h.bf16 %v8020_v32  ;;  %v8021_v51 = vunpack.i.l.bf16 %v8020_v32 }
 0x59f   : > { %v13242_v20 = vpop.permute.xlu1 %8059 }
 0x5a0   : > { %v5185_v43 = vsel %vm3450_vm3, %v5153_v58, %v8021_v51  ;;  %v5186_v40 = vsel %vm3450_vm3, %v5154_v56, %v8022_v59  ;;  %v7982_v51 = vunpack.i.h.bf16 %v13186_v28  ;;  %v5061_v56 = vsel %vm1686_vm10, %v5029_v54, %v7981_v48 }
 0x5a1   : > { %v5210_v8 = vpack.c.bf16 %v5186_v40, %v5185_v43  ;;  %v8025_v22 = vpop.permute.xlu0 %8024 }
 0x5a2   : > { %v8027_v0 = vunpack.i.h.bf16 %v8025_v22  ;;  %v8026_v47 = vunpack.i.l.bf16 %v8025_v22  ;;  %v5062_v58 = vsel %vm1686_vm10, %v5030_v55, %v7982_v51 }
 0x5a3   : > { %6266 = vmatmul.mubr.msk.bf16.gmra.mxu0 %vm3535_vm5, %v5210_v8  ;;  %v13258_v15 = vpop.permute.xlu1 %8064  ;;  %v5094_v28 = vsel %vm3351_vm14, %v5062_v58, %v7987_v61 }
 0x5a4   : > { %v5091_v34 = vsel %vm3351_vm14, %v5059_v12, %v8026_v47  ;;  %v5092_v50 = vsel %vm3351_vm14, %v5060_v16, %v8027_v0  ;;  %v5126_v8 = vsel %vm3384_vm15, %v5094_v28, %v8047_v33 }
 0x5a5   : > { %v5123_v18 = vsel %vm3384_vm15, %v5091_v34, %v7956_v29  ;;  %v5124_v13 = vsel %vm3384_vm15, %v5092_v50, %v7957_v17  ;;  %v13268_v14 = vpop.permute.xlu0 %8034  ;;  %v5093_v17 = vsel %vm3351_vm14, %v5061_v56, %v7986_v23  ;;  %v7971_v34 = vunpack.i.l.bf16 %v13179_v19 }
 0x5a6   : > { %v5155_v21 = vsel %vm3417_vm2, %v5123_v18, %v7991_v53  ;;  %v5156_v5 = vsel %vm3417_vm2, %v5124_v13, %v7992_v11  ;;  %v5125_v22 = vsel %vm3384_vm15, %v5093_v17, %v8046_v63  ;;  %v7977_v50 = vunpack.i.h.bf16 %v13191_v49 }
 0x5a7   : > { %v13274_v25 = vpop.permute.xlu1 %8079  ;;  %v5187_v42 = vsel %vm3450_vm3, %v5155_v21, %v7996_v9  ;;  %v5188_v36 = vsel %vm3450_vm3, %v5156_v5, %v7997_v60  ;;  %v7976_v60 = vunpack.i.l.bf16 %v13191_v49  ;;  %v8366_v5 = vld [vmem:[#allocation2 + $0xf8] sm:$0xff]  ;;  %v8037_v46 = vunpack.i.h.bf16 %v13268_v14 }
 0x5a8   : > { %v5211_v39 = vpack.c.bf16 %v5188_v36, %v5187_v42  ;;  %v4968_v42 = vsel %vm1488_vm4, %v8366_v5, %v7972_v57  ;;  %v8367_v36 = vld [vmem:[#allocation2 + $0xf0] sm:$0xff]  ;;  %v8036_v49 = vunpack.i.l.bf16 %v13268_v14  ;;  %v8082_v24 = vunpack.i.h.bf16 %v13274_v25 }
 0x5a9   : > { %v8040_v3 = vpop.permute.xlu0 %8039  ;;  %v5000_v19 = vsel %vm1554_vm6, %v4968_v42, %v7977_v50  ;;  %v8081_v38 = vunpack.i.l.bf16 %v13274_v25  ;;  %v8067_v5 = vunpack.i.h.bf16 %v13258_v15  ;;  %v8066_v42 = vunpack.i.l.bf16 %v13258_v15 }
 0x5aa   : > { %6269 = vmatprep.mubr.msk.bf16.mxu0 %vm3535_vm5, %v5211_v39  ;;  %v8042_v18 = vunpack.i.h.bf16 %v8040_v3  ;;  %v8041_v13 = vunpack.i.l.bf16 %v8040_v3  ;;  %v4967_v39 = vsel %vm1488_vm4, %v8367_v36, %v7971_v34 }
 0x5ab   : > { %v13285_v32 = vpop.permute.xlu1 %8084  ;;  %v4999_v44 = vsel %vm1554_vm6, %v4967_v39, %v7976_v60  ;;  %v8062_v60 = vunpack.i.h.bf16 %v13242_v20 }
 0x5ac   : > { %v5032_v62 = vsel %vm1620_vm8, %v5000_v19, %v8042_v18  ;;  %v5031_v3 = vsel %vm1620_vm8, %v4999_v44, %v8041_v13  ;;  %v8087_v25 = vunpack.i.h.bf16 %v13285_v32 }
 0x5ad   : > { %v13289_v59 = vpop.permute.xlu0 %8049 }
 0x5af   : > { %v8090_v37 = vpop.permute.xlu1 %8089 }
 0x5b0   : > { %v8092_v43 = vunpack.i.h.bf16 %v8090_v37  ;;  %v8091_v40 = vunpack.i.l.bf16 %v8090_v37 }
 0x5b1   : > { %v13299_v52 = vpop.permute.xlu0 %8054 }
 0x5b2   : > { %v5158_v41 = vsel %vm3417_vm2, %v5126_v8, %v8092_v43  ;;  %v5157_v0 = vsel %vm3417_vm2, %v5125_v22, %v8091_v40  ;;  %v8086_v43 = vunpack.i.l.bf16 %v13285_v32 }
 0x5b3   : > { %v8095_v29 = vpop.permute.xlu1 %8094 }
 0x5b4   : > { %v8097_v45 = vunpack.i.h.bf16 %v8095_v29  ;;  %v8096_v31 = vunpack.i.l.bf16 %v8095_v29 }
 0x5b5   : > { %v8070_v2 = vpop.permute.xlu0 %8069 }
 0x5b6   : > { %v5189_v47 = vsel %vm3450_vm3, %v5157_v0, %v8096_v31  ;;  %v5190_v11 = vsel %vm3450_vm3, %v5158_v41, %v8097_v45  ;;  %v8072_v48 = vunpack.i.h.bf16 %v8070_v2  ;;  %v8071_v37 = vunpack.i.l.bf16 %v8070_v2  ;;  %v8368_v45 = vld [vmem:[#allocation2 + $0x110] sm:$0xff]  ;;  %v8369_v41 = vld [vmem:[#allocation2 + $0x108] sm:$0xff] }
 0x5b7   : > { %v5212_v53 = vpack.c.bf16 %v5190_v11, %v5189_v47  ;;  %v13309_v16 = vpop.permute.xlu1 %8109  ;;  %v4970_v31 = vsel %vm1488_vm4, %v8368_v45, %v8082_v24  ;;  %v4969_v0 = vsel %vm1488_vm4, %v8369_v41, %v8081_v38  ;;  %v8032_v11 = vunpack.i.h.bf16 %v13217_v30 }
 0x5b8   : > { %v5001_v32 = vsel %vm1554_vm6, %v4969_v0, %v8086_v43  ;;  %v5002_v47 = vsel %vm1554_vm6, %v4970_v31, %v8087_v25  ;;  %v8370_v25 = vld [vmem:[#allocation2 + $0x128] sm:$0xff] }
 0x5b9   : > { %v8075_v12 = vpop.permute.xlu0 %8074  ;;  %6270 = vmatmul.mubr.msk.bf16.gmra.mxu0 %vm3535_vm5, %v5212_v53  ;;  %v8031_v53 = vunpack.i.l.bf16 %v13217_v30  ;;  %v5034_v34 = vsel %vm1620_vm8, %v5002_v47, %v8032_v11  ;;  %v8372_v47 = vld [vmem:[#allocation2 + $0x138] sm:$0xff] }
 0x5ba   : > { %v8077_v58 = vunpack.i.h.bf16 %v8075_v12  ;;  %v8076_v33 = vunpack.i.l.bf16 %v8075_v12 }
 0x5bb   : > { %v13312_v7 = vpop.permute.xlu1 %8124  ;;  %v5033_v57 = vsel %vm1620_vm8, %v5001_v32, %v8031_v53 }
 0x5bc   : > { %v8126_v30 = vunpack.i.l.bf16 %v13312_v7 }
 0x5bd   : > { %v8100_v9 = vpop.permute.xlu0 %8099 }
 0x5be   : > { %v8102_v35 = vunpack.i.h.bf16 %v8100_v9  ;;  %v8101_v10 = vunpack.i.l.bf16 %v8100_v9  ;;  %v8061_v9 = vunpack.i.l.bf16 %v13242_v20 }
 0x5bf   : > { %v13318_v21 = vpop.permute.xlu1 %8139 }
 0x5c0   : > { %v5064_v54 = vsel %vm1686_vm10, %v5032_v62, %v8102_v35  ;;  %v5063_v55 = vsel %vm1686_vm10, %v5031_v3, %v8101_v10  ;;  %v5065_v13 = vsel %vm1686_vm10, %v5033_v57, %v8061_v9  ;;  %v5066_v35 = vsel %vm1686_vm10, %v5034_v34, %v8062_v60  ;;  %v8373_v9 = vld [vmem:[#allocation2 + $0x140] sm:$0xff] }
 0x5c1   : > { %v8105_v27 = vpop.permute.xlu0 %8104  ;;  %v8127_v10 = vunpack.i.h.bf16 %v13312_v7  ;;  %v5097_v19 = vsel %vm3351_vm14, %v5065_v13, %v8066_v42  ;;  %v5098_v20 = vsel %vm3351_vm14, %v5066_v35, %v8067_v5 }
 0x5c2   : > { %v8107_v4 = vunpack.i.h.bf16 %v8105_v27  ;;  %v8106_v6 = vunpack.i.l.bf16 %v8105_v27  ;;  %v5129_v27 = vsel %vm3384_vm15, %v5097_v19, %v8126_v30 }
 0x5c3   : > { %v13332_v51 = vpop.permute.xlu1 %8144 }
 0x5c4   : > { %v5095_v14 = vsel %vm3351_vm14, %v5063_v55, %v8106_v6  ;;  %v5096_v56 = vsel %vm3351_vm14, %v5064_v54, %v8107_v4 }
 0x5c5   : > { %v5127_v63 = vsel %vm3384_vm15, %v5095_v14, %v8036_v49  ;;  %v5128_v61 = vsel %vm3384_vm15, %v5096_v56, %v8037_v46  ;;  %v13338_v23 = vpop.permute.xlu0 %8114  ;;  %v5130_v49 = vsel %vm3384_vm15, %v5098_v20, %v8127_v10  ;;  %v8057_v56 = vunpack.i.h.bf16 %v13299_v52 }
 0x5c6   : > { %v5159_v40 = vsel %vm3417_vm2, %v5127_v63, %v8071_v37  ;;  %v5160_v17 = vsel %vm3417_vm2, %v5128_v61, %v8072_v48  ;;  %v8052_v48 = vunpack.i.h.bf16 %v13289_v59  ;;  %v8051_v37 = vunpack.i.l.bf16 %v13289_v59 }
 0x5c7   : > { %v13344_v28 = vpop.permute.xlu1 %8159  ;;  %v5191_v29 = vsel %vm3450_vm3, %v5159_v40, %v8076_v33  ;;  %v5192_v8 = vsel %vm3450_vm3, %v5160_v17, %v8077_v58  ;;  %v8056_v58 = vunpack.i.l.bf16 %v13299_v52  ;;  %v8371_v40 = vld [vmem:[#allocation2 + $0x120] sm:$0xff]  ;;  %v8117_v0 = vunpack.i.h.bf16 %v13338_v23 }
 0x5c8   : > { %v5213_v22 = vpack.c.bf16 %v5192_v8, %v5191_v29  ;;  %v8161_v33 = vunpack.i.l.bf16 %v13344_v28  ;;  %v4972_v43 = vsel %vm1488_vm4, %v8370_v25, %v8052_v48  ;;  %v4971_v17 = vsel %vm1488_vm4, %v8371_v40, %v8051_v37 }
 0x5c9   : > { %v13350_v2 = vpop.permute.xlu0 %8119  ;;  %v8162_v59 = vunpack.i.h.bf16 %v13344_v28  ;;  %v5003_v31 = vsel %vm1554_vm6, %v4971_v17, %v8056_v58  ;;  %v5004_v41 = vsel %vm1554_vm6, %v4972_v43, %v8057_v56  ;;  %v8116_v32 = vunpack.i.l.bf16 %v13338_v23 }
 0x5ca   : > { %6273 = vmatprep.mubr.msk.bf16.mxu0 %vm3535_vm5, %v5213_v22  ;;  %v8122_v63 = vunpack.i.h.bf16 %v13350_v2  ;;  %v8121_v29 = vunpack.i.l.bf16 %v13350_v2  ;;  %v4973_v11 = vsel %vm1488_vm4, %v8372_v47, %v8161_v33  ;;  %v8142_v58 = vunpack.i.h.bf16 %v13318_v21 }
 0x5cb   : > { %v13357_v12 = vpop.permute.xlu1 %8164  ;;  %v8146_v43 = vunpack.i.l.bf16 %v13332_v51 }
 0x5cc   : > { %v8166_v8 = vunpack.i.l.bf16 %v13357_v12  ;;  %v5036_v2 = vsel %vm1620_vm8, %v5004_v41, %v8122_v63  ;;  %v5035_v53 = vsel %vm1620_vm8, %v5003_v31, %v8121_v29  ;;  %v8167_v57 = vunpack.i.h.bf16 %v13357_v12 }
 0x5cd   : > { %v13361_v50 = vpop.permute.xlu0 %8129 }
 0x5ce   : > { %v5005_v13 = vsel %vm1554_vm6, %v4973_v11, %v8166_v8  ;;  %v8132_v48 = vunpack.i.h.bf16 %v13361_v50 }
 0x5cf   : > { %v8170_v18 = vpop.permute.xlu1 %8169 }
 0x5d0   : > { %v8172_v36 = vunpack.i.h.bf16 %v8170_v18  ;;  %v8171_v39 = vunpack.i.l.bf16 %v8170_v18  ;;  %v4974_v18 = vsel %vm1488_vm4, %v8373_v9, %v8162_v59 }
 0x5d1   : > { %v13371_v44 = vpop.permute.xlu0 %8134 }
 0x5d2   : > { %v5162_v7 = vsel %vm3417_vm2, %v5130_v49, %v8172_v36  ;;  %v5161_v4 = vsel %vm3417_vm2, %v5129_v27, %v8171_v39  ;;  %v8111_v49 = vunpack.i.l.bf16 %v13309_v16  ;;  %v5006_v27 = vsel %vm1554_vm6, %v4974_v18, %v8167_v57 }
 0x5d3   : > { %v8175_v46 = vpop.permute.xlu1 %8174  ;;  %v8137_v33 = vunpack.i.h.bf16 %v13371_v44  ;;  %v8136_v63 = vunpack.i.l.bf16 %v13371_v44 }
 0x5d4   : > { %v8177_v62 = vunpack.i.h.bf16 %v8175_v46  ;;  %v8176_v3 = vunpack.i.l.bf16 %v8175_v46 }
 0x5d5   : > { %v8150_v15 = vpop.permute.xlu0 %8149 }
 0x5d6   : > { %v5193_v6 = vsel %vm3450_vm3, %v5161_v4, %v8176_v3  ;;  %v5194_v24 = vsel %vm3450_vm3, %v5162_v7, %v8177_v62  ;;  %v8152_v30 = vunpack.i.h.bf16 %v8150_v15  ;;  %v8151_v5 = vunpack.i.l.bf16 %v8150_v15 }
 0x5d7   : > { %v5214_v38 = vpack.c.bf16 %v5194_v24, %v5193_v6  ;;  %v13381_v54 = vpop.permute.xlu1 %8189  ;;  %v8112_v7 = vunpack.i.h.bf16 %v13309_v16  ;;  %v5037_v24 = vsel %vm1620_vm8, %v5005_v13, %v8111_v49  ;;  %v8131_v16 = vunpack.i.l.bf16 %v13361_v50  ;;  %v8374_v50 = vld [vmem:[#allocation2 + $0x158] sm:$0xff] }
 0x5d8   : > { %v4976_v59 = vsel %vm1488_vm4, %v8374_v50, %v8132_v48 }
 0x5d9   : > { %v8155_v55 = vpop.permute.xlu0 %8154  ;;  %6274 = vmatmul.mubr.msk.bf16.gmra.mxu0 %vm3535_vm5, %v5214_v38  ;;  %v8141_v38 = vunpack.i.l.bf16 %v13318_v21  ;;  %v8147_v21 = vunpack.i.h.bf16 %v13332_v51  ;;  %v5008_v11 = vsel %vm1554_vm6, %v4976_v59, %v8137_v33 }
 0x5da   : > { %v8157_v12 = vunpack.i.h.bf16 %v8155_v55  ;;  %v8156_v39 = vunpack.i.l.bf16 %v8155_v55  ;;  %v5038_v55 = vsel %vm1620_vm8, %v5006_v27, %v8112_v7 }
 0x5db   : > { %v13386_v14 = vpop.permute.xlu1 %8199  ;;  %v5070_v40 = vsel %vm1686_vm10, %v5038_v55, %v8142_v58 }
 0x5dc   : > { %v8202_v17 = vunpack.i.h.bf16 %v13386_v14  ;;  %v8201_v29 = vunpack.i.l.bf16 %v13386_v14  ;;  %v5102_v14 = vsel %vm3351_vm14, %v5070_v40, %v8147_v21  ;;  %v13484_v40 = vld [vmem:[%s13814_s8] ss:$0 sm:$0xff] }
 0x5dd   : > { %v8180_v61 = vpop.permute.xlu0 %8179 }
 0x5de   : > { %v8182_v22 = vunpack.i.h.bf16 %v8180_v61  ;;  %v8181_v45 = vunpack.i.l.bf16 %v8180_v61  ;;  %v5069_v61 = vsel %vm1686_vm10, %v5037_v24, %v8141_v38  ;;  %v5134_v57 = vsel %vm3384_vm15, %v5102_v14, %v8202_v17 }
 0x5df   : > { %v13397_v52 = vpop.permute.xlu1 %8204  ;;  %v5101_v41 = vsel %vm3351_vm14, %v5069_v61, %v8146_v43 }
 0x5e0   : > { %v5068_v35 = vsel %vm1686_vm10, %v5036_v2, %v8182_v22  ;;  %v5067_v23 = vsel %vm1686_vm10, %v5035_v53, %v8181_v45  ;;  %v8375_v45 = vld [vmem:[#allocation2 + $0x150] sm:$0xff]  ;;  %v8191_v53 = vunpack.i.l.bf16 %v13381_v54 }
 0x5e1   : > { %v8185_v28 = vpop.permute.xlu0 %8184  ;;  %v4975_v31 = vsel %vm1488_vm4, %v8375_v45, %v8131_v16 }
 0x5e2   : > { %v8187_v34 = vunpack.i.h.bf16 %v8185_v28  ;;  %v8186_v60 = vunpack.i.l.bf16 %v8185_v28  ;;  %v5007_v47 = vsel %vm1554_vm6, %v4975_v31, %v8136_v63  ;;  %v8192_v28 = vunpack.i.h.bf16 %v13381_v54  ;;  %v13493_v31 = vld [vmem:[%s13815_s9] ss:$0 sm:$0xff] }
 0x5e3   : > { %v13411_v10 = vpop.permute.xlu1 %8209 }
 0x5e4   : > { %v5099_v42 = vsel %vm3351_vm14, %v5067_v23, %v8186_v60  ;;  %v5100_v36 = vsel %vm3351_vm14, %v5068_v35, %v8187_v34  ;;  %v5133_v34 = vsel %vm3384_vm15, %v5101_v41, %v8201_v29  ;;  %v8207_v23 = vunpack.i.h.bf16 %v13397_v52 }
 0x5e5   : > { %v5131_v19 = vsel %vm3384_vm15, %v5099_v42, %v8116_v32  ;;  %v5132_v20 = vsel %vm3384_vm15, %v5100_v36, %v8117_v0  ;;  %v13417_v46 = vpop.permute.xlu0 %8194 }
 0x5e6   : > { %v5163_v62 = vsel %vm3417_vm2, %v5131_v19, %v8151_v5  ;;  %v5164_v3 = vsel %vm3417_vm2, %v5132_v20, %v8152_v30  ;;  %v8197_v51 = vunpack.i.h.bf16 %v13417_v46  ;;  %v8206_v30 = vunpack.i.l.bf16 %v13397_v52 }
 0x5e7   : > { %v8215_v4 = vpop.permute.xlu1 %8214  ;;  %v5195_v15 = vsel %vm3450_vm3, %v5163_v62, %v8156_v39  ;;  %v5196_v6 = vsel %vm3450_vm3, %v5164_v3, %v8157_v12  ;;  %v8196_v36 = vunpack.i.l.bf16 %v13417_v46 }
 0x5e8   : > { %v5215_v56 = vpack.c.bf16 %v5196_v6, %v5195_v15  ;;  %v8217_v8 = vunpack.i.h.bf16 %v8215_v4  ;;  %v8216_v44 = vunpack.i.l.bf16 %v8215_v4  ;;  %v5040_v42 = vsel %vm1620_vm8, %v5008_v11, %v8197_v51 }
 0x5e9   : > { %v13430_v37 = vpop.permute.xlu0 %8234  ;;  %v5039_v24 = vsel %vm1620_vm8, %v5007_v47, %v8196_v36 }
 0x5ea   : > { %6277 = vmatprep.mubr.msk.bf16.mxu0 %vm3535_vm5, %v5215_v56  ;;  %v4978_v60 = vsel %vm1488_vm4, %v13027_v1, %v8217_v8  ;;  %v4977_v9 = vsel %vm1488_vm4, %v13040_v26, %v8216_v44  ;;  %v8237_v1 = vunpack.i.h.bf16 %v13430_v37  ;;  %v8236_v12 = vunpack.i.l.bf16 %v13430_v37 }
 0x5eb   : > { %v8220_v25 = vpop.permute.xlu1 %8219  ;;  %v8212_v56 = vunpack.i.h.bf16 %v13411_v10 }
 0x5ec   : > { %v8222_v0 = vunpack.i.h.bf16 %v8220_v25  ;;  %v8221_v32 = vunpack.i.l.bf16 %v8220_v25  ;;  %v5072_v58 = vsel %vm1686_vm10, %v5040_v42, %v8237_v1  ;;  %v5071_v16 = vsel %vm1686_vm10, %v5039_v24, %v8236_v12 }
 0x5ed   : > { %v8240_v22 = vpop.permute.xlu0 %8239 }
 0x5ee   : > { %v5009_v5 = vsel %vm1554_vm6, %v4977_v9, %v8221_v32  ;;  %v5010_v54 = vsel %vm1554_vm6, %v4978_v60, %v8222_v0  ;;  %v8242_v39 = vunpack.i.h.bf16 %v8240_v22  ;;  %v8241_v19 = vunpack.i.l.bf16 %v8240_v22 }
 0x5ef   : > { %v8225_v2 = vpop.permute.xlu1 %8224  ;;  %v5041_v27 = vsel %vm1620_vm8, %v5009_v5, %v8191_v53  ;;  %v5042_v52 = vsel %vm1620_vm8, %v5010_v54, %v8192_v28  ;;  %v8211_v0 = vunpack.i.l.bf16 %v13411_v10  ;;  %vm5773_vm6 = vcmask 61444  }
 0x5f0   : > { %v8227_v18 = vunpack.i.h.bf16 %v8225_v2  ;;  %v8226_v13 = vunpack.i.l.bf16 %v8225_v2  ;;  %v5103_v33 = vsel %vm3351_vm14, %v5071_v16, %v8241_v19  ;;  %v5104_v63 = vsel %vm3351_vm14, %v5072_v58, %v8242_v39  ;;  %v14446_v58 = vld [vmem:[#allocation34_spill] sm:$0xff] }
 0x5f1   : > { %v8245_v35 = vpop.permute.xlu0 %8244  ;;  %v5073_v61 = vsel %vm1686_vm10, %v5041_v27, %v8206_v30  ;;  %v5074_v25 = vsel %vm1686_vm10, %v5042_v52, %v8207_v23  ;;  %v14447_v16 = vmax.f32 %v14446_v58, 0.0 }
 0x5f2   : > { %v5166_v62 = vsel %vm3417_vm2, %v5134_v57, %v8227_v18  ;;  %v5165_v3 = vsel %vm3417_vm2, %v5133_v34, %v8226_v13  ;;  %v8247_v4 = vunpack.i.h.bf16 %v8245_v35  ;;  %v8246_v46 = vunpack.i.l.bf16 %v8245_v35 }
 0x5f3   : > { %v8230_v26 = vpop.permute.xlu1 %8229  ;;  %v5105_v53 = vsel %vm3351_vm14, %v5073_v61, %v8211_v0  ;;  %v5106_v57 = vsel %vm3351_vm14, %v5074_v25, %v8212_v56 }
 0x5f4   : > { %v8232_v20 = vunpack.i.h.bf16 %v8230_v26  ;;  %v8231_v49 = vunpack.i.l.bf16 %v8230_v26  ;;  %v5135_v17 = vsel %vm3384_vm15, %v5103_v33, %v8246_v46  ;;  %v5136_v29 = vsel %vm3384_vm15, %v5104_v63, %v8247_v4  ;;  %v14442_v4 = vld [vmem:[#allocation32_spill] sm:$0xff] }
 0x5f5   : > { %v8255_v7 = vpop.permute.xlu0 %8254  ;;  %v14443_v46 = vmax.f32 %v14442_v4, 0.0 }
 0x5f6   : > { %v5197_v15 = vsel %vm3450_vm3, %v5165_v3, %v8231_v49  ;;  %v5198_v6 = vsel %vm3450_vm3, %v5166_v62, %v8232_v20  ;;  %v8257_v55 = vunpack.i.h.bf16 %v8255_v7  ;;  %v8256_v48 = vunpack.i.l.bf16 %v8255_v7  ;;  %v14440_v49 = vld [vmem:[#allocation31_spill] sm:$0xff] }
 0x5f7   : > { %v5216_v38 = vpack.c.bf16 %v5198_v6, %v5197_v15  ;;  %v8250_v37 = vpop.permute.xlu1 %8249  ;;  %v14441_v27 = vmax.f32 %v14440_v49, 0.0 }
 0x5f8   : > { %v5167_v59 = vsel %vm3417_vm2, %v5135_v17, %v8256_v48  ;;  %v5168_v8 = vsel %vm3417_vm2, %v5136_v29, %v8257_v55  ;;  %v8252_v44 = vunpack.i.h.bf16 %v8250_v37  ;;  %v8251_v22 = vunpack.i.l.bf16 %v8250_v37  ;;  %v14444_v55 = vld [vmem:[#allocation33_spill] sm:$0xff] }
 0x5f9   : > { %v8265_v43 = vpop.permute.xlu0 %8264  ;;  %6278 = vmatmul.mubr.msk.bf16.gmra.mxu0 %vm3535_vm5, %v5216_v38  ;;  %v14445_v48 = vmax.f32 %v14444_v55, 0.0 }
 0x5fa   : > { %v8267_v21 = vunpack.i.h.bf16 %v8265_v43  ;;  %v8266_v50 = vunpack.i.l.bf16 %v8265_v43  ;;  %v5137_v10 = vsel %vm3384_vm15, %v5105_v53, %v8251_v22  ;;  %v5138_v9 = vsel %vm3384_vm15, %v5106_v57, %v8252_v44 }
 0x5fb   : > { %v6255_v45 = vpop.f32.mrf.mxu0  ;;  %v8260_v41 = vpop.permute.xlu1 %8259 }
 0x5fc   : > { %v5199_v32 = vsel %vm3450_vm3, %v5167_v59, %v8266_v50  ;;  %v5200_v47 = vsel %vm3450_vm3, %v5168_v8, %v8267_v21  ;;  %v5476_v11 = vmul.f32 %v6255_v45, %v13484_v40  ;;  %v8262_v51 = vunpack.i.h.bf16 %v8260_v41 }
 0x5fd   : > { %v5217_v14 = vpack.c.bf16 %v5200_v47, %v5199_v32  ;;  %v8261_v2 = vunpack.i.l.bf16 %v8260_v41  ;;  %v5340_v28 = vpop.f32.mrf.mxu0 }
 0x5fe   : > { %v5515_v34 = vadd.f32 %v13493_v31, %v5476_v11  ;;  %v5474_v60 = vmul.f32 %v13484_v40, %v5340_v28  ;;  %v5170_v42 = vsel %vm3417_vm2, %v5138_v9, %v8262_v51 }
 0x5ff   : > { %v6256_v18 = vpop.f32.mrf.mxu0  ;;  %v8270_v13 = vpop.permute.xlu1 %8269  ;;  %6281 = vmatprep.mubr.msk.bf16.mxu0 %vm3535_vm5, %v5217_v14  ;;  %v5169_v54 = vsel %vm3417_vm2, %v5137_v10, %v8261_v2  ;;  %v14448_v2 = vld [vmem:[#allocation35_spill] sm:$0xff] }
 0x600   : > { %v5547_v35 = vmax.f32 %v5515_v34, 0.0  ;;  %v5513_v23 = vadd.f32 %v13493_v31, %v5474_v60  ;;  %v5477_v30 = vmul.f32 %v6256_v18, %v13484_v40  ;;  %v8272_v5 = vunpack.i.h.bf16 %v8270_v13  ;;  %v14450_v60 = vld [vmem:[#allocation36_spill] sm:$0xff] }
 0x601   : > { %v8271_v36 = vunpack.i.l.bf16 %v8270_v13  ;;  %v5343_v1 = vpop.f32.mrf.mxu0  ;;  %v14449_v28 = vmax.f32 %v14448_v2, 0.0  ;;  %v14451_v10 = vmax.f32 %v14450_v60, 0.0 }
 0x602   : > { %v5545_v12 = vmax.f32 %v5513_v23, 0.0  ;;  %v5516_v26 = vadd.f32 %v13493_v31, %v5477_v30  ;;  %v5202_v39 = vsel %vm3450_vm3, %v5170_v42, %v8272_v5  ;;  %v5475_v19 = vmul.f32 %v13484_v40, %v5343_v1  ;;  %v14452_v23 = vld [vmem:[#allocation37_spill] sm:$0xff]  ;;  %v14454_v42 = vld [vmem:[#allocation38_spill] sm:$0xff] }
 0x603   : > { %v5201_v20 = vsel %vm3450_vm3, %v5169_v54, %v8271_v36  ;;  %v5579_v52 = vadd.f32 %v5547_v35, %v14441_v27  ;;  %v14453_v30 = vmax.f32 %v14452_v23, 0.0  ;;  %v14455_v36 = vmax.f32 %v14454_v42, 0.0 }
 0x604   : > { %v5548_v62 = vmax.f32 %v5516_v26, 0.0  ;;  %v5218_v3 = vpack.c.bf16 %v5202_v39, %v5201_v20  ;;  %v5514_v7 = vadd.f32 %v13493_v31, %v5475_v19  ;;  %v5577_v15 = vadd.f32 %v5545_v12, %v14443_v46 }
 0x605   : > { %v5676_v38 = vsel %vm1488_vm4, %v5579_v52, -inf }
 0x606   : > { %v5546_v6 = vmax.f32 %v5514_v7, 0.0  ;;  %6282 = vmatmul.mubr.msk.bf16.gmra.mxu0 %vm3535_vm5, %v5218_v3  ;;  %v5675_v24 = vsel %vm1488_vm4, %v5577_v15, -inf  ;;  %5609 = vxpose.xlu0.b32.start [1/16] (narrow) %v5577_v15, 8  ;;  %v5580_v37 = vadd.f32 %v5548_v62, %v14445_v48 }
 0x607   : > { %v5677_v56 = vmax.f32 %v5675_v24, %v5676_v38 }
 0x608   : > { %v5578_v33 = vadd.f32 %v5546_v6, %v14447_v16  ;;  %v5679_v25 = vsel %vm1488_vm4, %v5580_v37, -inf }
 0x609   : > { %v5731_v63 = vrot.slane %v5677_v56, 1 }
 0x60a   : > { %v5678_v61 = vsel %vm1488_vm4, %v5578_v33, -inf  ;;  %5610 = vxpose.xlu0.b32.cont [2/16] (narrow) %v5578_v33, 8 }
 0x60b   : > { %v5747_v43 = vmax.f32 %v5677_v56, %v5731_v63  ;;  %v5680_v17 = vmax.f32 %v5678_v61, %v5679_v25  ;;  %v14456_v56 = vld [vmem:[#allocation39_spill] sm:$0xff]  ;;  %v14458_v61 = vld [vmem:[#allocation41_spill] sm:$0xff] }
 0x60c   : > { %v14457_v58 = vmax.f32 %v14456_v56, 0.0  ;;  %v14459_v25 = vmax.f32 %v14458_v61, 0.0 }
 0x60d   : > { %5756 = vst.msk [vmem:[#allocation3] sm:$0x1] %vm5755_vm0, %v5747_v43  ;;  %v5799_v29 = vrot.slane %v5680_v17, 1 }
 0x60e   : > { %5765 = vst.msk [vmem:[#allocation3 - $0x1] sm:$0x4] %vm5764_vm1, %v5747_v43  ;;  %5611 = vxpose.xlu0.b32.cont [3/16] (narrow) %v5579_v52, 8 }
 0x60f   : > { %5774 = vst.msk [vmem:[#allocation3 - $0x2] sm:$0x10] %vm5773_vm6, %v5747_v43  ;;  %v5815_v21 = vmax.f32 %v5680_v17, %v5799_v29 }
 0x610   : > { %5783 = vst.msk [vmem:[#allocation3 - $0x3] sm:$0x40] %vm5782_vm7, %v5747_v43 }
 0x611   : > { %5823 = vst.msk [vmem:[#allocation3 + $0x4] sm:$0x1] %vm5755_vm0, %v5815_v21 }
 0x612   : > { %5831 = vst.msk [vmem:[#allocation3 + $0x3] sm:$0x4] %vm5764_vm1, %v5815_v21  ;;  %5612 = vxpose.xlu0.b32.cont [4/16] (narrow) %v5580_v37, 8 }
 0x613   : > { %5839 = vst.msk [vmem:[#allocation3 + $0x2] sm:$0x10] %vm5773_vm6, %v5815_v21 }
 0x614   : > { %5847 = vst.msk [vmem:[#allocation3 + $0x1] sm:$0x40] %vm5782_vm7, %v5815_v21 }
 0x61b   : > { %v6259_v50 = vpop.f32.mrf.mxu0 }
 0x61c   : > { %v5480_v59 = vmul.f32 %v6259_v50, %v13484_v40  ;;  %v14460_v50 = vld [vmem:[#allocation43_spill] sm:$0xff] }
 0x61d   : > { %v5356_v8 = vpop.f32.mrf.mxu0 }
 0x61e   : > { %v5519_v44 = vadd.f32 %v13493_v31, %v5480_v59  ;;  %v5478_v22 = vmul.f32 %v13484_v40, %v5356_v8  ;;  %v14461_v59 = vmax.f32 %v14460_v50, 0.0 }
 0x61f   : > { %v6260_v45 = vpop.f32.mrf.mxu0 }
 0x620   : > { %v5551_v41 = vmax.f32 %v5519_v44, 0.0  ;;  %v5517_v0 = vadd.f32 %v13493_v31, %v5478_v22  ;;  %v5481_v32 = vmul.f32 %v6260_v45, %v13484_v40  ;;  %v14462_v22 = vld [vmem:[#allocation46_spill] sm:$0xff] }
 0x621   : > { %v5359_v47 = vpop.f32.mrf.mxu0  ;;  %v14463_v45 = vmax.f32 %v14462_v22, 0.0  ;;  %v14472_v22 = vld [vmem:[#allocation40_spill] sm:$0xff] }
 0x622   : > { %v5549_v11 = vmax.f32 %v5517_v0, 0.0  ;;  %v5520_v14 = vadd.f32 %v13493_v31, %v5481_v32  ;;  %v5479_v51 = vmul.f32 %v13484_v40, %v5359_v47  ;;  %v5583_v53 = vadd.f32 %v5551_v41, %v14449_v28 }
 0x624   : > { %v5552_v57 = vmax.f32 %v5520_v14, 0.0  ;;  %v5518_v34 = vadd.f32 %v13493_v31, %v5479_v51  ;;  %v5581_v9 = vadd.f32 %v5549_v11, %v14451_v10  ;;  %v5682_v35 = vsel %vm1488_vm4, %v5583_v53, -inf }
 0x626   : > { %v5550_v18 = vmax.f32 %v5518_v34, 0.0  ;;  %v5681_v13 = vsel %vm1488_vm4, %v5581_v9, -inf  ;;  %5613 = vxpose.xlu0.b32.cont [5/16] (narrow) %v5581_v9, 8  ;;  %v5584_v5 = vadd.f32 %v5552_v57, %v14453_v30 }
 0x627   : > { %v5683_v54 = vmax.f32 %v5681_v13, %v5682_v35 }
 0x628   : > { %v5582_v1 = vadd.f32 %v5550_v18, %v14455_v36  ;;  %v5685_v39 = vsel %vm1488_vm4, %v5584_v5, -inf }
 0x629   : > { %v5732_v12 = vrot.slane %v5683_v54, 1 }
 0x62a   : > { %v5684_v26 = vsel %vm1488_vm4, %v5582_v1, -inf  ;;  %5614 = vxpose.xlu0.b32.cont [6/16] (narrow) %v5582_v1, 8 }
 0x62b   : > { %v5748_v19 = vmax.f32 %v5683_v54, %v5732_v12  ;;  %v5686_v20 = vmax.f32 %v5684_v26, %v5685_v39  ;;  %v14464_v54 = vld [vmem:[#allocation48_spill] sm:$0xff]  ;;  %v14466_v26 = vld [vmem:[#allocation50_spill] sm:$0xff] }
 0x62c   : > { %v14465_v42 = vmax.f32 %v14464_v54, 0.0  ;;  %v14467_v39 = vmax.f32 %v14466_v26, 0.0 }
 0x62d   : > { %5757 = vst.msk [vmem:[#allocation3 + $0x8] sm:$0x1] %vm5755_vm0, %v5748_v19  ;;  %v5800_v49 = vrot.slane %v5686_v20, 1 }
 0x62e   : > { %5766 = vst.msk [vmem:[#allocation3 + $0x7] sm:$0x4] %vm5764_vm1, %v5748_v19  ;;  %5615 = vxpose.xlu0.b32.cont [7/16] (narrow) %v5583_v53, 8 }
 0x62f   : > { %5775 = vst.msk [vmem:[#allocation3 + $0x6] sm:$0x10] %vm5773_vm6, %v5748_v19  ;;  %v5816_v27 = vmax.f32 %v5686_v20, %v5800_v49 }
 0x630   : > { %5784 = vst.msk [vmem:[#allocation3 + $0x5] sm:$0x40] %vm5782_vm7, %v5748_v19 }
 0x631   : > { %5824 = vst.msk [vmem:[#allocation3 + $0xc] sm:$0x1] %vm5755_vm0, %v5816_v27 }
 0x632   : > { %5832 = vst.msk [vmem:[#allocation3 + $0xb] sm:$0x4] %vm5764_vm1, %v5816_v27  ;;  %5616 = vxpose.xlu0.b32.cont [8/16] (narrow) %v5584_v5, 8 }
 0x633   : > { %5840 = vst.msk [vmem:[#allocation3 + $0xa] sm:$0x10] %vm5773_vm6, %v5816_v27 }
 0x634   : > { %5848 = vst.msk [vmem:[#allocation3 + $0x9] sm:$0x40] %vm5782_vm7, %v5816_v27 }
 0x63b   : > { %v6263_v52 = vpop.f32.mrf.mxu0 }
 0x63c   : > { %v5484_v62 = vmul.f32 %v6263_v52, %v13484_v40  ;;  %v14468_v52 = vld [vmem:[#allocation52_spill] sm:$0xff] }
 0x63d   : > { %v5372_v3 = vpop.f32.mrf.mxu0 }
 0x63e   : > { %v5523_v7 = vadd.f32 %v13493_v31, %v5484_v62  ;;  %v5482_v4 = vmul.f32 %v13484_v40, %v5372_v3  ;;  %v14469_v62 = vmax.f32 %v14468_v52, 0.0 }
 0x63f   : > { %v6264_v46 = vpop.f32.mrf.mxu0 }
 0x640   : > { %v5555_v15 = vmax.f32 %v5523_v7, 0.0  ;;  %v5521_v6 = vadd.f32 %v13493_v31, %v5482_v4  ;;  %v5485_v24 = vmul.f32 %v6264_v46, %v13484_v40  ;;  %v14470_v4 = vld [vmem:[#allocation54_spill] sm:$0xff] }
 0x641   : > { %v5375_v38 = vpop.f32.mrf.mxu0  ;;  %v14471_v46 = vmax.f32 %v14470_v4, 0.0 }
 0x642   : > { %v5553_v55 = vmax.f32 %v5521_v6, 0.0  ;;  %v5524_v48 = vadd.f32 %v13493_v31, %v5485_v24  ;;  %v5483_v37 = vmul.f32 %v13484_v40, %v5375_v38  ;;  %v5587_v16 = vadd.f32 %v5555_v15, %v14457_v58 }
 0x644   : > { %v5556_v33 = vmax.f32 %v5524_v48, 0.0  ;;  %v5522_v63 = vadd.f32 %v13493_v31, %v5483_v37  ;;  %v5585_v43 = vadd.f32 %v5553_v55, %v14459_v25  ;;  %v5688_v21 = vsel %vm1488_vm4, %v5587_v16, -inf }
 0x646   : > { %v5554_v17 = vmax.f32 %v5522_v63, 0.0  ;;  %v5687_v29 = vsel %vm1488_vm4, %v5585_v43, -inf  ;;  %5617 = vxpose.xlu0.b32.cont [9/16] (narrow) %v5585_v43, 8  ;;  %v5588_v8 = vadd.f32 %v5556_v33, %v14461_v59  ;;  %v5855_v43 = vld [vmem:[#allocation3] sm:$0xff] }
 0x647   : > { %v5689_v44 = vmax.f32 %v5687_v29, %v5688_v21 }
 0x648   : > { %v5586_v41 = vadd.f32 %v5554_v17, %v14463_v45  ;;  %v5691_v47 = vsel %vm1488_vm4, %v5588_v8, -inf  ;;  %v14473_v45 = vmax.f32 %v14472_v22, 0.0 }
 0x649   : > { %v5733_v0 = vrot.slane %v5689_v44, 1 }
 0x64a   : > { %v5690_v32 = vsel %vm1488_vm4, %v5586_v41, -inf  ;;  %5618 = vxpose.xlu0.b32.cont [10/16] (narrow) %v5586_v41, 8 }
 0x64b   : > { %v5749_v11 = vmax.f32 %v5689_v44, %v5733_v0  ;;  %v5692_v14 = vmax.f32 %v5690_v32, %v5691_v47  ;;  %v5856_v0 = vld [vmem:[#allocation3 + $0x8] sm:$0xff] }
 0x64d   : > { %5758 = vst.msk [vmem:[#allocation3 + $0x10] sm:$0x1] %vm5755_vm0, %v5749_v11  ;;  %v5801_v51 = vrot.slane %v5692_v14, 1 }
 0x64e   : > { %5767 = vst.msk [vmem:[#allocation3 + $0xf] sm:$0x4] %vm5764_vm1, %v5749_v11  ;;  %5619 = vxpose.xlu0.b32.cont [11/16] (narrow) %v5587_v16, 8 }
 0x64f   : > { %5776 = vst.msk [vmem:[#allocation3 + $0xe] sm:$0x10] %vm5773_vm6, %v5749_v11  ;;  %v5817_v2 = vmax.f32 %v5692_v14, %v5801_v51 }
 0x650   : > { %5785 = vst.msk [vmem:[#allocation3 + $0xd] sm:$0x40] %vm5782_vm7, %v5749_v11  ;;  %v14474_v11 = vld [vmem:[#allocation42_spill] sm:$0xff] }
 0x651   : > { %5825 = vst.msk [vmem:[#allocation3 + $0x14] sm:$0x1] %vm5755_vm0, %v5817_v2  ;;  %v14475_v14 = vmax.f32 %v14474_v11, 0.0 }
 0x652   : > { %5833 = vst.msk [vmem:[#allocation3 + $0x13] sm:$0x4] %vm5764_vm1, %v5817_v2  ;;  %5620 = vxpose.xlu0.b32.cont [12/16] (narrow) %v5588_v8, 8 }
 0x653   : > { %5841 = vst.msk [vmem:[#allocation3 + $0x12] sm:$0x10] %vm5773_vm6, %v5817_v2 }
 0x654   : > { %5849 = vst.msk [vmem:[#allocation3 + $0x11] sm:$0x40] %vm5782_vm7, %v5817_v2 }
 0x663   : > { %v6267_v28 = vpop.f32.mrf.mxu0 }
 0x664   : > { %v5488_v53 = vmul.f32 %v6267_v28, %v13484_v40 }
 0x665   : > { %v5388_v57 = vpop.f32.mrf.mxu0 }
 0x666   : > { %v5527_v34 = vadd.f32 %v13493_v31, %v5488_v53  ;;  %v5486_v60 = vmul.f32 %v13484_v40, %v5388_v57  ;;  %v14476_v57 = vld [vmem:[#allocation45_spill] sm:$0xff] }
 0x667   : > { %v6268_v10 = vpop.f32.mrf.mxu0 }
 0x668   : > { %v5559_v9 = vmax.f32 %v5527_v34, 0.0  ;;  %v5525_v18 = vadd.f32 %v13493_v31, %v5486_v60  ;;  %v5489_v13 = vmul.f32 %v6268_v10, %v13484_v40  ;;  %v14477_v34 = vmax.f32 %v14476_v57, 0.0  ;;  %v5857_v10 = vld [vmem:[#allocation3 + $0x10] sm:$0xff] }
 0x669   : > { %v5391_v35 = vpop.f32.mrf.mxu0 }
 0x66a   : > { %v5557_v23 = vmax.f32 %v5525_v18, 0.0  ;;  %v5528_v30 = vadd.f32 %v13493_v31, %v5489_v13  ;;  %v5487_v5 = vmul.f32 %v13484_v40, %v5391_v35  ;;  %v5591_v36 = vadd.f32 %v5559_v9, %v14465_v42  ;;  %v14478_v18 = vld [vmem:[#allocation47_spill] sm:$0xff] }
 0x66b   : > { %v14479_v13 = vmax.f32 %v14478_v18, 0.0 }
 0x66c   : > { %v5560_v1 = vmax.f32 %v5528_v30, 0.0  ;;  %v5526_v12 = vadd.f32 %v13493_v31, %v5487_v5  ;;  %v5589_v19 = vadd.f32 %v5557_v23, %v14467_v39  ;;  %v5694_v27 = vsel %vm1488_vm4, %v5591_v36, -inf }
 0x66e   : > { %v5558_v20 = vmax.f32 %v5526_v12, 0.0  ;;  %v5693_v49 = vsel %vm1488_vm4, %v5589_v19, -inf  ;;  %5621 = vxpose.xlu0.b32.cont [13/16] (narrow) %v5589_v19, 8  ;;  %v5592_v3 = vadd.f32 %v5560_v1, %v14469_v62 }
 0x66f   : > { %v5695_v7 = vmax.f32 %v5693_v49, %v5694_v27 }
 0x670   : > { %v5590_v15 = vadd.f32 %v5558_v20, %v14471_v46  ;;  %v5697_v38 = vsel %vm1488_vm4, %v5592_v3, -inf }
 0x671   : > { %v5734_v6 = vrot.slane %v5695_v7, 1 }
 0x672   : > { %v5696_v24 = vsel %vm1488_vm4, %v5590_v15, -inf  ;;  %5622 = vxpose.xlu0.b32.cont [14/16] (narrow) %v5590_v15, 8 }
 0x673   : > { %v5750_v55 = vmax.f32 %v5695_v7, %v5734_v6  ;;  %v5698_v48 = vmax.f32 %v5696_v24, %v5697_v38  ;;  %v14480_v24 = vld [vmem:[#allocation49_spill] sm:$0xff] }
 0x674   : > { %v14481_v38 = vmax.f32 %v14480_v24, 0.0 }
 0x675   : > { %5759 = vst.msk [vmem:[#allocation3 + $0x18] sm:$0x1] %vm5755_vm0, %v5750_v55  ;;  %v5802_v37 = vrot.slane %v5698_v48, 1 }
 0x676   : > { %5768 = vst.msk [vmem:[#allocation3 + $0x17] sm:$0x4] %vm5764_vm1, %v5750_v55  ;;  %5623 = vxpose.xlu0.b32.cont [15/16] (narrow) %v5591_v36, 8 }
 0x677   : > { %5777 = vst.msk [vmem:[#allocation3 + $0x16] sm:$0x10] %vm5773_vm6, %v5750_v55  ;;  %v5818_v56 = vmax.f32 %v5698_v48, %v5802_v37 }
 0x678   : > { %5786 = vst.msk [vmem:[#allocation3 + $0x15] sm:$0x40] %vm5782_vm7, %v5750_v55 }
 0x679   : > { %v6271_v58 = vpop.f32.mrf.mxu0  ;;  %5826 = vst.msk [vmem:[#allocation3 + $0x1c] sm:$0x1] %vm5755_vm0, %v5818_v56 }
 0x67a   : > { %5834 = vst.msk [vmem:[#allocation3 + $0x1b] sm:$0x4] %vm5764_vm1, %v5818_v56  ;;  %v5492_v16 = vmul.f32 %v6271_v58, %v13484_v40  ;;  %5624 = vxpose.xlu0.b32.end [16/16] (narrow) %v5592_v3, 8 }
 0x67b   : > { %5842 = vst.msk [vmem:[#allocation3 + $0x1a] sm:$0x10] %vm5773_vm6, %v5818_v56  ;;  %v5404_v33 = vpop.f32.mrf.mxu0 }
 0x67c   : > { %5850 = vst.msk [vmem:[#allocation3 + $0x19] sm:$0x40] %vm5782_vm7, %v5818_v56  ;;  %v5531_v63 = vadd.f32 %v13493_v31, %v5492_v16  ;;  %v5490_v61 = vmul.f32 %v13484_v40, %v5404_v33  ;;  %v14482_v56 = vld [vmem:[#allocation51_spill] sm:$0xff] }
 0x67d   : > { %v6272_v25 = vpop.f32.mrf.mxu0  ;;  %v14483_v58 = vmax.f32 %v14482_v56, 0.0 }
 0x67e   : > { %v5563_v17 = vmax.f32 %v5531_v63, 0.0  ;;  %v5529_v29 = vadd.f32 %v13493_v31, %v5490_v61  ;;  %v5493_v21 = vmul.f32 %v6272_v25, %v13484_v40  ;;  %5863 = vxpose.xlu0.b32.start [1/8] (short) (narrow) %v5855_v43, 8  ;;  %v14484_v25 = vld [vmem:[#allocation53_spill] sm:$0xff] }
 0x67f   : > { %v5407_v50 = vpop.f32.mrf.mxu0  ;;  %v14485_v43 = vmax.f32 %v14484_v25, 0.0 }
 0x680   : > { %v5561_v59 = vmax.f32 %v5529_v29, 0.0  ;;  %v5532_v8 = vadd.f32 %v13493_v31, %v5493_v21  ;;  %v5491_v44 = vmul.f32 %v13484_v40, %v5407_v50  ;;  %v5595_v41 = vadd.f32 %v5563_v17, %v14473_v45  ;;  %v14486_v21 = vld [vmem:[#allocation19_spill] sm:$0xff] }
 0x681   : > { %v14487_v50 = vmax.f32 %v14486_v21, 0.0 }
 0x682   : > { %v5564_v32 = vmax.f32 %v5532_v8, 0.0  ;;  %v5530_v47 = vadd.f32 %v13493_v31, %v5491_v44  ;;  %5864 = vxpose.xlu0.b32.cont [2/8] (short) (narrow) %v5856_v0, 8  ;;  %v5593_v51 = vadd.f32 %v5561_v59, %v14475_v14  ;;  %v5700_v53 = vsel %vm1488_vm4, %v5595_v41, -inf }
 0x683   : > { %v5858_v54 = vld [vmem:[#allocation3 + $0x18] sm:$0xff] }
 0x684   : > { %v5562_v2 = vmax.f32 %v5530_v47, 0.0  ;;  %v5699_v28 = vsel %vm1488_vm4, %v5593_v51, -inf  ;;  %5641 = vxpose.xlu1.b32.start [1/16] (narrow) %v5593_v51, 8  ;;  %v5596_v60 = vadd.f32 %v5564_v32, %v14477_v34 }
 0x685   : > { %v5701_v9 = vmax.f32 %v5699_v28, %v5700_v53 }
 0x686   : > { %5865 = vxpose.xlu0.b32.cont [3/8] (short) (narrow) %v5857_v10, 8  ;;  %v5594_v35 = vadd.f32 %v5562_v2, %v14479_v13  ;;  %v5703_v5 = vsel %vm1488_vm4, %v5596_v60, -inf }
 0x687   : > { %v5735_v23 = vrot.slane %v5701_v9, 1 }
 0x688   : > { %v5702_v30 = vsel %vm1488_vm4, %v5594_v35, -inf  ;;  %5642 = vxpose.xlu1.b32.cont [2/16] (narrow) %v5594_v35, 8 }
 0x689   : > { %v5751_v42 = vmax.f32 %v5701_v9, %v5735_v23  ;;  %v5704_v36 = vmax.f32 %v5702_v30, %v5703_v5  ;;  %v14488_v23 = vld [vmem:[#allocation21_spill] sm:$0xff] }
 0x68a   : > { %5866 = vxpose.xlu0.b32.cont [4/8] (short) (narrow) %v5858_v54, 8  ;;  %v14489_v30 = vmax.f32 %v14488_v23, 0.0 }
 0x68b   : > { %5760 = vst.msk [vmem:[#allocation3 + $0x20] sm:$0x1] %vm5755_vm0, %v5751_v42  ;;  %v5803_v1 = vrot.slane %v5704_v36, 1 }
 0x68c   : > { %5769 = vst.msk [vmem:[#allocation3 + $0x1f] sm:$0x4] %vm5764_vm1, %v5751_v42  ;;  %5643 = vxpose.xlu1.b32.cont [3/16] (narrow) %v5595_v41, 8 }
 0x68d   : > { %5778 = vst.msk [vmem:[#allocation3 + $0x1e] sm:$0x10] %vm5773_vm6, %v5751_v42  ;;  %v5819_v12 = vmax.f32 %v5704_v36, %v5803_v1  ;;  %v14490_v36 = vld [vmem:[#allocation13_spill] sm:$0xff] }
 0x68e   : > { %5787 = vst.msk [vmem:[#allocation3 + $0x1d] sm:$0x40] %vm5782_vm7, %v5751_v42  ;;  %v14491_v1 = vmax.f32 %v14490_v36, 0.0 }
 0x68f   : > { %5827 = vst.msk [vmem:[#allocation3 + $0x24] sm:$0x1] %vm5755_vm0, %v5819_v12 }
 0x690   : > { %5835 = vst.msk [vmem:[#allocation3 + $0x23] sm:$0x4] %vm5764_vm1, %v5819_v12  ;;  %5644 = vxpose.xlu1.b32.cont [4/16] (narrow) %v5596_v60, 8 }
 0x691   : > { %5843 = vst.msk [vmem:[#allocation3 + $0x22] sm:$0x10] %vm5773_vm6, %v5819_v12 }
 0x692   : > { %5851 = vst.msk [vmem:[#allocation3 + $0x21] sm:$0x40] %vm5782_vm7, %v5819_v12 }
 0x699   : > { %v5859_v26 = vld [vmem:[#allocation3 + $0x20] sm:$0xff]  ;;  %v6275_v39 = vpop.f32.mrf.mxu0 }
 0x69a   : > { %5867 = vxpose.xlu0.b32.cont [5/8] (short) (narrow) %v5859_v26, 8  ;;  %v5496_v19 = vmul.f32 %v6275_v39, %v13484_v40 }
 0x69b   : > { %v5420_v20 = vpop.f32.mrf.mxu0 }
 0x69c   : > { %v5535_v49 = vadd.f32 %v13493_v31, %v5496_v19  ;;  %v5494_v27 = vmul.f32 %v13484_v40, %v5420_v20  ;;  %v14492_v20 = vld [vmem:[#allocation26_spill] sm:$0xff] }
 0x69d   : > { %v6276_v52 = vpop.f32.mrf.mxu0 }
 0x69e   : > { %v5567_v62 = vmax.f32 %v5535_v49, 0.0  ;;  %v5533_v3 = vadd.f32 %v13493_v31, %v5494_v27  ;;  %v5497_v7 = vmul.f32 %v6276_v52, %v13484_v40  ;;  %v14493_v49 = vmax.f32 %v14492_v20, 0.0 }
 0x69f   : > { %v5423_v4 = vpop.f32.mrf.mxu0 }
 0x6a0   : > { %v5565_v46 = vmax.f32 %v5533_v3, 0.0  ;;  %v5536_v15 = vadd.f32 %v13493_v31, %v5497_v7  ;;  %v5495_v6 = vmul.f32 %v13484_v40, %v5423_v4  ;;  %v5599_v55 = vadd.f32 %v5567_v62, %v14481_v38  ;;  %v14494_v3 = vld [vmem:[#allocation29_spill] sm:$0xff] }
 0x6a1   : > { %v14495_v7 = vmax.f32 %v14494_v3, 0.0 }
 0x6a2   : > { %v5568_v48 = vmax.f32 %v5536_v15, 0.0  ;;  %v5534_v37 = vadd.f32 %v13493_v31, %v5495_v6  ;;  %v5597_v16 = vadd.f32 %v5565_v46, %v14483_v58  ;;  %v5706_v61 = vsel %vm1488_vm4, %v5599_v55, -inf }
 0x6a4   : > { %v5566_v33 = vmax.f32 %v5534_v37, 0.0  ;;  %v5705_v63 = vsel %vm1488_vm4, %v5597_v16, -inf  ;;  %5645 = vxpose.xlu1.b32.cont [5/16] (narrow) %v5597_v16, 8  ;;  %v5600_v17 = vadd.f32 %v5568_v48, %v14485_v43 }
 0x6a5   : > { %v5707_v29 = vmax.f32 %v5705_v63, %v5706_v61 }
 0x6a6   : > { %v5598_v59 = vadd.f32 %v5566_v33, %v14487_v50  ;;  %v5709_v22 = vsel %vm1488_vm4, %v5600_v17, -inf  ;;  %v14496_v50 = vld [vmem:[#allocation30_spill] sm:$0xff] }
 0x6a7   : > { %v5736_v8 = vrot.slane %v5707_v29, 1 }
 0x6a8   : > { %v5708_v44 = vsel %vm1488_vm4, %v5598_v59, -inf  ;;  %5646 = vxpose.xlu1.b32.cont [6/16] (narrow) %v5598_v59, 8  ;;  %v14497_v59 = vmax.f32 %v14496_v50, 0.0 }
 0x6a9   : > { %v5752_v45 = vmax.f32 %v5707_v29, %v5736_v8  ;;  %v5710_v41 = vmax.f32 %v5708_v44, %v5709_v22 }
 0x6ab   : > { %5761 = vst.msk [vmem:[#allocation3 + $0x28] sm:$0x1] %vm5755_vm0, %v5752_v45  ;;  %v5804_v0 = vrot.slane %v5710_v41, 1 }
 0x6ac   : > { %5770 = vst.msk [vmem:[#allocation3 + $0x27] sm:$0x4] %vm5764_vm1, %v5752_v45  ;;  %5647 = vxpose.xlu1.b32.cont [7/16] (narrow) %v5599_v55, 8 }
 0x6ad   : > { %5779 = vst.msk [vmem:[#allocation3 + $0x26] sm:$0x10] %vm5773_vm6, %v5752_v45  ;;  %v5820_v32 = vmax.f32 %v5710_v41, %v5804_v0 }
 0x6ae   : > { %5788 = vst.msk [vmem:[#allocation3 + $0x25] sm:$0x40] %vm5782_vm7, %v5752_v45  ;;  %v14498_v45 = vld [vmem:[#allocation18_spill] sm:$0xff] }
 0x6af   : > { %5828 = vst.msk [vmem:[#allocation3 + $0x2c] sm:$0x1] %vm5755_vm0, %v5820_v32  ;;  %v14499_v41 = vmax.f32 %v14498_v45, 0.0 }
 0x6b0   : > { %5836 = vst.msk [vmem:[#allocation3 + $0x2b] sm:$0x4] %vm5764_vm1, %v5820_v32  ;;  %5648 = vxpose.xlu1.b32.cont [8/16] (narrow) %v5600_v17, 8 }
 0x6b1   : > { %5844 = vst.msk [vmem:[#allocation3 + $0x2a] sm:$0x10] %vm5773_vm6, %v5820_v32 }
 0x6b2   : > { %5852 = vst.msk [vmem:[#allocation3 + $0x29] sm:$0x40] %vm5782_vm7, %v5820_v32 }
 0x6b9   : > { %v5860_v47 = vld [vmem:[#allocation3 + $0x28] sm:$0xff]  ;;  %v6279_v11 = vpop.f32.mrf.mxu0 }
 0x6ba   : > { %5868 = vxpose.xlu0.b32.cont [6/8] (short) (narrow) %v5860_v47, 8  ;;  %v5500_v14 = vmul.f32 %v6279_v11, %v13484_v40  ;;  %v5625_v51 = vpop.trf.xlu0  ;;  %v14500_v11 = vld [vmem:[#allocation15_spill] sm:$0xff] }
 0x6bb   : > { %v5436_v2 = vpop.f32.mrf.mxu0  ;;  %5673 = vst [vmem:[%s13681_s13] sm:$0xff] %v5625_v51 }
 0x6bc   : > { %v5539_v28 = vadd.f32 %v13493_v31, %v5500_v14  ;;  %v5498_v53 = vmul.f32 %v13484_v40, %v5436_v2  ;;  %v14501_v14 = vmax.f32 %v14500_v11, 0.0  ;;  %v14502_v2 = vld [vmem:[#allocation24_spill] sm:$0xff] }
 0x6bd   : > { %v6280_v57 = vpop.f32.mrf.mxu0 }
 0x6be   : > { %v5571_v34 = vmax.f32 %v5539_v28, 0.0  ;;  %v5537_v60 = vadd.f32 %v13493_v31, %v5498_v53  ;;  %v5501_v10 = vmul.f32 %v6280_v57, %v13484_v40  ;;  %v14503_v28 = vmax.f32 %v14502_v2, 0.0 }
 0x6bf   : > { %v5439_v9 = vpop.f32.mrf.mxu0 }
 0x6c0   : > { %v5569_v18 = vmax.f32 %v5537_v60, 0.0  ;;  %v5540_v13 = vadd.f32 %v13493_v31, %v5501_v10  ;;  %v5499_v35 = vmul.f32 %v13484_v40, %v5439_v9  ;;  %v5603_v5 = vadd.f32 %v5571_v34, %v14489_v30 }
 0x6c2   : > { %v5572_v54 = vmax.f32 %v5540_v13, 0.0  ;;  %v5538_v42 = vadd.f32 %v13493_v31, %v5499_v35  ;;  %v5601_v12 = vadd.f32 %v5569_v18, %v14491_v1  ;;  %v5712_v19 = vsel %vm1488_vm4, %v5603_v5, -inf }
 0x6c4   : > { %v5570_v26 = vmax.f32 %v5538_v42, 0.0  ;;  %5649 = vxpose.xlu1.b32.cont [9/16] (narrow) %v5601_v12, 8  ;;  %v5711_v39 = vsel %vm1488_vm4, %v5601_v12, -inf  ;;  %v5604_v27 = vadd.f32 %v5572_v54, %v14493_v49 }
 0x6c5   : > { %v5713_v52 = vmax.f32 %v5711_v39, %v5712_v19 }
 0x6c6   : > { %v6283_v62 = vpop.f32.mrf.mxu0  ;;  %v5602_v4 = vadd.f32 %v5570_v26, %v14495_v7  ;;  %v5715_v38 = vsel %vm1488_vm4, %v5604_v27, -inf }
 0x6c7   : > { %v5504_v46 = vmul.f32 %v6283_v62, %v13484_v40  ;;  %v5737_v15 = vrot.slane %v5713_v52, 1 }
 0x6c8   : > { %v5452_v6 = vpop.f32.mrf.mxu0  ;;  %5650 = vxpose.xlu1.b32.cont [10/16] (narrow) %v5602_v4, 8  ;;  %v5714_v24 = vsel %vm1488_vm4, %v5602_v4, -inf }
 0x6c9   : > { %v5543_v55 = vadd.f32 %v13493_v31, %v5504_v46  ;;  %v5502_v48 = vmul.f32 %v13484_v40, %v5452_v6  ;;  %v5753_v37 = vmax.f32 %v5713_v52, %v5737_v15  ;;  %v5716_v56 = vmax.f32 %v5714_v24, %v5715_v38 }
 0x6ca   : > { %v6284_v58 = vpop.f32.mrf.mxu0 }
 0x6cb   : > { %v5575_v16 = vmax.f32 %v5543_v55, 0.0  ;;  %v5541_v33 = vadd.f32 %v13493_v31, %v5502_v48  ;;  %v5505_v63 = vmul.f32 %v6284_v58, %v13484_v40  ;;  %5762 = vst.msk [vmem:[#allocation3 + $0x30] sm:$0x1] %vm5755_vm0, %v5753_v37  ;;  %v5805_v61 = vrot.slane %v5716_v56, 1 }
 0x6cc   : > { %5771 = vst.msk [vmem:[#allocation3 + $0x2f] sm:$0x4] %vm5764_vm1, %v5753_v37  ;;  %v5455_v25 = vpop.f32.mrf.mxu0  ;;  %5651 = vxpose.xlu1.b32.cont [11/16] (narrow) %v5603_v5, 8 }
 0x6cd   : > { %5780 = vst.msk [vmem:[#allocation3 + $0x2e] sm:$0x10] %vm5773_vm6, %v5753_v37  ;;  %v5573_v43 = vmax.f32 %v5541_v33, 0.0  ;;  %v5544_v17 = vadd.f32 %v13493_v31, %v5505_v63  ;;  %v5503_v29 = vmul.f32 %v13484_v40, %v5455_v25  ;;  %v5821_v21 = vmax.f32 %v5716_v56, %v5805_v61 }
 0x6ce   : > { %5789 = vst.msk [vmem:[#allocation3 + $0x2d] sm:$0x40] %vm5782_vm7, %v5753_v37  ;;  %v5607_v8 = vadd.f32 %v5575_v16, %v14497_v59 }
 0x6cf   : > { %v5576_v44 = vmax.f32 %v5544_v17, 0.0  ;;  %v5542_v22 = vadd.f32 %v13493_v31, %v5503_v29  ;;  %5829 = vst.msk [vmem:[#allocation3 + $0x34] sm:$0x1] %vm5755_vm0, %v5821_v21  ;;  %v5605_v0 = vadd.f32 %v5573_v43, %v14499_v41 }
 0x6d0   : > { %5837 = vst.msk [vmem:[#allocation3 + $0x33] sm:$0x4] %vm5764_vm1, %v5821_v21  ;;  %5652 = vxpose.xlu1.b32.cont [12/16] (narrow) %v5604_v27, 8  ;;  %v5718_v47 = vsel %vm1488_vm4, %v5607_v8, -inf }
 0x6d1   : > { %5845 = vst.msk [vmem:[#allocation3 + $0x32] sm:$0x10] %vm5773_vm6, %v5821_v21  ;;  %v5574_v40 = vmax.f32 %v5542_v22, 0.0  ;;  %v5717_v32 = vsel %vm1488_vm4, %v5605_v0, -inf  ;;  %v5608_v31 = vadd.f32 %v5576_v44, %v14501_v14 }
 0x6d2   : > { %5853 = vst.msk [vmem:[#allocation3 + $0x31] sm:$0x40] %vm5782_vm7, %v5821_v21  ;;  %v5719_v51 = vmax.f32 %v5717_v32, %v5718_v47 }
 0x6d3   : > { %v5606_v53 = vadd.f32 %v5574_v40, %v14503_v28  ;;  %v5721_v60 = vsel %vm1488_vm4, %v5608_v31, -inf }
 0x6d4   : > { %5653 = vxpose.xlu1.b32.cont [13/16] (narrow) %v5605_v0, 8  ;;  %v5738_v57 = vrot.slane %v5719_v51, 1 }
 0x6d5   : > { %v5720_v34 = vsel %vm1488_vm4, %v5606_v53, -inf }
 0x6d6   : > { %v5754_v9 = vmax.f32 %v5719_v51, %v5738_v57  ;;  %v5722_v18 = vmax.f32 %v5720_v34, %v5721_v60 }
 0x6d8   : > { %5654 = vxpose.xlu1.b32.cont [14/16] (narrow) %v5606_v53, 8  ;;  %5763 = vst.msk [vmem:[#allocation3 + $0x38] sm:$0x1] %vm5755_vm0, %v5754_v9  ;;  %v5806_v13 = vrot.slane %v5722_v18, 1 }
 0x6d9   : > { %v5861_v10 = vld [vmem:[#allocation3 + $0x30] sm:$0xff]  ;;  %5772 = vst.msk [vmem:[#allocation3 + $0x37] sm:$0x4] %vm5764_vm1, %v5754_v9 }
 0x6da   : > { %5869 = vxpose.xlu0.b32.cont [7/8] (short) (narrow) %v5861_v10, 8  ;;  %5781 = vst.msk [vmem:[#allocation3 + $0x36] sm:$0x10] %vm5773_vm6, %v5754_v9  ;;  %v5822_v35 = vmax.f32 %v5722_v18, %v5806_v13 }
 0x6db   : > { %5790 = vst.msk [vmem:[#allocation3 + $0x35] sm:$0x40] %vm5782_vm7, %v5754_v9 }
 0x6dc   : > { %5655 = vxpose.xlu1.b32.cont [15/16] (narrow) %v5607_v8, 8  ;;  %5830 = vst.msk [vmem:[#allocation3 + $0x3c] sm:$0x1] %vm5755_vm0, %v5822_v35 }
 0x6dd   : > { %5838 = vst.msk [vmem:[#allocation3 + $0x3b] sm:$0x4] %vm5764_vm1, %v5822_v35 }
 0x6de   : > { %5846 = vst.msk [vmem:[#allocation3 + $0x3a] sm:$0x10] %vm5773_vm6, %v5822_v35 }
 0x6df   : > { %5854 = vst.msk [vmem:[#allocation3 + $0x39] sm:$0x40] %vm5782_vm7, %v5822_v35 }
 0x6e0   : > { %5656 = vxpose.xlu1.b32.end [16/16] (narrow) %v5608_v31, 8 }
 0x6e6   : > { %v5862_v23 = vld [vmem:[#allocation3 + $0x38] sm:$0xff] }
 0x6e7   : > { %5870 = vxpose.xlu0.b32.end [8/8] (short) (narrow) %v5862_v23, 8 }
 0x720   : > { %v5657_v30 = vpop.trf.xlu1 }
 0x721   : > { %5674 = vst [vmem:[%s13681_s13 + $0x8] sm:$0xff] %v5657_v30 }
 0x722   : > { %8389 = shalt.err (!%p8386_p3)
}
 0x723   : > { %s8390_s30 = scalar_lea.hbm %s5914_s24, 256  ;;  %s8394_s16 = scalar_lea.hbm %s13816_s10, 512 }
 0x724   : > { %p8391_p4 = scmp.ne.s32.totalorder %s5914_s24, %s8390_s30  ;;  %p8395_p9 = scmp.lt.s32.totalorder %s5914_s24, %s13816_s10 }
 0x725   : > { %p8396_p10 = scmp.lt.s32.totalorder %s8394_s16, %s8390_s30 }
 0x726   : > { %p8392_p7 = pnand %p8391_p4, %p8581_p5 }
 0x727   : > { %p8397_p11 = por %p8396_p10, %p8395_p9 }
 0x728   : > { %p8393_p8 = pneg %p8392_p7 }
 0x72a   : > { %p8398_p12 = pnand %p8397_p11, %p8393_p8 }
 0x72c   : > { %8401 = shalt.err (!%p8398_p12)
}
 0x72d   : > { %6296 = dma.vmem_to_hbm [thread:$0]  (%p8581_p5), %s13741_s14, 256, %s5914_s24, %s5897_s29  }
 0x72e   : > { %s6025_s0 = sshll.u32 %s13677_s25, 3  ;;  %s6098_s1 = sshll.u32 %s8564_s21, 7 }
 0x72f   : > { %s390_s12 = scalar_lea.vmem [#allocation6], %s6025_s0  ;;  %s13769_s2 = scalar_lea.hbm %s13817_s11, %s6098_s1 }
 0x730   : > { %s5929_s15 = sshll.u32 %s390_s12, 4  ;;  %s5902_s3 = scalar_lea.sflag [#allocation7], %s13677_s25  ;;  %s5930_s15 = int_to_ptr.vmem [resolvable:$true] %s5929_s15 }
 0x731   : > { %s8402_s30 = scalar_lea.vmem %s5930_s15, 128  ;;  %s8482_s14 = smov [#allocation6]  }
 0x732   : > { %p8403_p13 = scmp.ne.s32.totalorder %s5930_s15, %s8402_s30  ;;  %s8406_s24 = sshll.u32 %s8482_s14, 4  ;;  %s8407_s24 = int_to_ptr.vmem [resolvable:$false] %s8406_s24 }
 0x733   : > { %s8408_s21 = scalar_lea.vmem %s8407_s24, 256  ;;  %p8409_p2 = scmp.lt.s32.totalorder %s5930_s15, %s8407_s24 }
 0x734   : > { %p8404_p0 = pnand %p8403_p13, %p8581_p5  ;;  %p8410_p3 = scmp.lt.s32.totalorder %s8408_s21, %s8402_s30 }
 0x736   : > { %p8405_p1 = pneg %p8404_p0  ;;  %p8411_p4 = por %p8410_p3, %p8409_p2 }
 0x738   : > { %p8412_p7 = pnand %p8411_p4, %p8405_p1 }
 0x747   : > { %v5879_v5 = vpop.trf.xlu0 }
 0x748   : > { %5895 = vst.msk [vmem:[%s390_s12] sm:$0xff] %vm3450_vm3, %v5879_v5 }
 0x749   : > { %8415 = shalt.err (!%p8412_p7)
}
 0x74a   : > { %s8416_s29 = scalar_lea.hbm %s13769_s2, 128  ;;  %s8420_s0 = scalar_lea.hbm %s13817_s11, 256 }
 0x74b   : > { %p8417_p8 = scmp.ne.s32.totalorder %s13769_s2, %s8416_s29  ;;  %p8421_p11 = scmp.lt.s32.totalorder %s13769_s2, %s13817_s11 }
 0x74c   : > { %p8422_p12 = scmp.lt.s32.totalorder %s8420_s0, %s8416_s29 }
 0x74d   : > { %p8418_p9 = pnand %p8417_p8, %p8581_p5 }
 0x74e   : > { %p8423_p13 = por %p8422_p12, %p8421_p11 }
 0x74f   : > { %p8419_p10 = pneg %p8418_p9 }
 0x751   : > { %p8424_p0 = pnand %p8423_p13, %p8419_p10 }
 0x753   : > { %8427 = shalt.err (!%p8424_p0)
}
 0x754   : > { %6297 = dma.vmem_to_hbm [thread:$0]  (%p8581_p5), %s5930_s15, 128, %s13769_s2, %s5902_s3  }
 0x755 PF: > { %p6307_p1 = scmp.ge.s32.totalorder %s8466_s20, 2  ;;  %s5941_s13 = sand.u32 1, %s8454_s17  }
 0x756   : > { %s5942_s22 = scalar_lea.sflag [#allocation5], %s5941_s13 }
 0x757   : > { %p6301_p2 = pnand %p6307_p1, %p8585_p6 }
 0x759   : > { %p6302_p3 = pneg %p6301_p2 }
 0x75b   : > { %8445 = dma.done.wait (%p6302_p3), %s5942_s22, 256  }
 0x75c   : > { %8447 = vsyncadd (%p6302_p3), %s5942_s22, 4294967040  ;;  %s5951_s30 = scalar_lea.sflag [#allocation7], %s5941_s13 }
 0x75d   : > { %8449 = dma.done.wait (%p6302_p3), %s5951_s30, 128  }
 0x75e   : > { %8451 = vsyncadd (%p6302_p3), %s5951_s30, 4294967168  ;;  %p25_p5 = scmp.ge.s32.totalorder %s8568_s23, 4   ;;  %s14504_s17 = smov %s8458_s18 }
 0x75f   : > { %s14505_s18 = smov %s8462_s19  ;;  %s14506_s19 = smov %s8579_s26 }
 0x760   : > { %s14507_s20 = smov %s8568_s23  ;;  %27 = sbr.rel (!%p25_p5) target bundleno = 10 (0xa), region = 113 }
 0x765   :  { %5956 = vsyncpa [#allocation5], 1 }
 0x766   :  { %5958 = vsyncpa [#allocation5 + $0x1], 1 }
 0x767   :  { %5959 = vsyncpa [#allocation7], 1 }
 0x768   :  { %5961 = vsyncpa [#allocation7 + $0x1], 1 }

</bundles_post_ra>
